<compile_context>
chip_gen: v7x
topology: tpu7x:2x2x1
jax: 0.10.0
libtpu: 0.0.40
codegen_flags: <defaults>
</compile_context>

<pallas_src>
import jax
import jax.numpy as jnp
from jax.experimental import pallas as pl
from jax.experimental.pallas import tpu as pltpu


# ----------------------------------------------------------------------------
# Fused kernel (one batch element per grid step)
# ----------------------------------------------------------------------------
def _liveness_kernel(
    col1_ref,                              # (32, 1024)  precomputed im2col of the image (K padded 27->32)
    m32_ref, m16_ref,                      # (9, 1024), (9, 256) tap validity masks
    sel1_ref, sel2_ref,                    # (1024, 256), (256, 64) pool selection matrices
    w1_ref, b1_ref, g1_ref, d1_ref,        # conv1: (16, 32), (16,1)x3
    w2_ref, b2_ref, g2_ref, d2_ref,        # conv2: (16, 144), (16,1)x3
    w3_ref, b3_ref, g3_ref, d3_ref,        # conv3: (32, 144), (32,1)x3
    w4_ref, b4_ref, g4_ref, d4_ref,        # conv4: (32, 288), (32,1)x3
    hw1_ref, hb1_ref, hg_ref, hd_ref,      # head linear1 + BN1d: (2048,64), (1,64)x3
    hw2_ref, hb2_ref,                      # head linear2: (1,64), (1,1)
    o_ref,                                 # (1, 1) sigmoid output
    col2_s, col3_s, col4_s, flat_s,        # VMEM scratch
):
    def conv_bn_relu(w_ref, col, b_ref, g_ref, d_ref):
        # Conv as a single K=9*Cin matmul, then bias + ReLU + folded BatchNorm.
        z = jnp.dot(w_ref[...], col, preferred_element_type=jnp.float32)
        z = jnp.maximum(z + b_ref[...], 0.0)
        return z * g_ref[...] + d_ref[...]

    def build_col(x, col_ref, mask_ref, width, cin):
        # im2col for a 3x3 / pad=1 conv on a channel-major (cin, H*W) activation:
        # each tap is a lane roll; masks re-insert the zero padding.
        hw = x.shape[-1]
        for ky in range(3):
            for kx in range(3):
                t = ky * 3 + kx
                s = (ky - 1) * width + (kx - 1)        # flat index offset of the tap
                if s == 0:
                    piece = x
                else:
                    piece = pltpu.roll(x, (-s) % hw, axis=1) * mask_ref[pl.ds(t, 1), :]
                col_ref[pl.ds(t * cin, cin), :] = piece

    def maxpool2x2(x, sel_ref, width):
        # 2x2/stride-2 max pool: pairwise maxes via lane rolls, then compact the
        # valid window positions with a 0/1 selection matmul (MXU).
        hw = x.shape[-1]
        m = jnp.maximum(x, pltpu.roll(x, hw - 1, axis=1))        # max(x[p], x[p+1])
        m = jnp.maximum(m, pltpu.roll(m, hw - width, axis=1))    # max over the 2x2 window
        return jnp.dot(m, sel_ref[...], preferred_element_type=jnp.float32)

    # ---- block 1 (spatial 32x32) ----
    a = conv_bn_relu(w1_ref, col1_ref[...], b1_ref, g1_ref, d1_ref)    # (16, 1024)
    build_col(a, col2_s, m32_ref, 32, 16)
    a = conv_bn_relu(w2_ref, col2_s[...], b2_ref, g2_ref, d2_ref)      # (16, 1024)
    a = maxpool2x2(a, sel1_ref, 32)                                    # (16, 256)
    # Dropout(0.25): identity in eval mode.

    # ---- block 2 (spatial 16x16) ----
    build_col(a, col3_s, m16_ref, 16, 16)
    a = conv_bn_relu(w3_ref, col3_s[...], b3_ref, g3_ref, d3_ref)      # (32, 256)
    build_col(a, col4_s, m16_ref, 16, 32)
    a = conv_bn_relu(w4_ref, col4_s[...], b4_ref, g4_ref, d4_ref)      # (32, 256)
    a = maxpool2x2(a, sel2_ref, 16)                                    # (32, 64)
    # Dropout(0.25): identity in eval mode.

    # ---- flatten in NCHW (c, h, w) order into one lane-dense (1, 2048) vector ----
    for c in range(32):
        flat_s[:, pl.ds(64 * c, 64)] = a[c:c + 1, :]

    # ---- head: Linear(2048,64) + ReLU + BN1d + Dropout(id) + Linear(64,1) + Sigmoid
    h = jnp.dot(flat_s[...], hw1_ref[...], preferred_element_type=jnp.float32)  # (1, 64)
    h = jnp.maximum(h + hb1_ref[...], 0.0)
    h = h * hg_ref[...] + hd_ref[...]
    logit = jnp.sum(h * hw2_ref[...], axis=1, keepdims=True) + hb2_ref[...]     # (1, 1)
    o_ref[...] = jax.nn.sigmoid(logit)


# ----------------------------------------------------------------------------
# Wrapper-side constant / layout helpers (pure XLA, constant-folded under jit)
# ----------------------------------------------------------------------------
def _im2col_3x3(x_nchw):
    """(B, C, H, W) -> (B, 9*C, H*W), tap-major rows (t*C + c), zero padded."""
    B, C, H, W = x_nchw.shape
    xp = jnp.pad(x_nchw, ((0, 0), (0, 0), (1, 1), (1, 1)))
    taps = []
    for ky in range(3):
        for kx in range(3):
            taps.append(xp[:, :, ky:ky + H, kx:kx + W].reshape(B, C, H * W))
    return jnp.concatenate(taps, axis=1)


def _conv_valid_masks(H, W):
    """(9, H*W) 0/1 masks: which output positions see real data for each tap."""
    idx = jnp.arange(H * W, dtype=jnp.int32)
    h, w = idx // W, idx % W
    rows = []
    for ky in range(3):
        for kx in range(3):
            dy, dx = ky - 1, kx - 1
            ok = (h + dy >= 0) & (h + dy < H) & (w + dx >= 0) & (w + dx < W)
            rows.append(ok)
    return jnp.stack(rows, axis=0).astype(jnp.float32)


def _pool2x2_select(H, W):
    """(H*W, (H//2)*(W//2)) 0/1 matrix selecting each 2x2 window's top-left slot."""
    Ho, Wo = H // 2, W // 2
    q = jnp.arange(Ho * Wo, dtype=jnp.int32)
    src = (2 * (q // Wo)) * W + 2 * (q % Wo)
    p = jnp.arange(H * W, dtype=jnp.int32)
    return (p[:, None] == src[None, :]).astype(jnp.float32)


def _conv_args(p):
    """PyTorch-style conv params -> kernel layout: (Cout, 9*Cin) weight + (Cout,1) vecs."""
    w, b, sc, sh = p
    cout, cin = w.shape[0], w.shape[1]
    wk = jnp.transpose(w, (0, 2, 3, 1)).reshape(cout, 9 * cin)   # row index = t*Cin + c
    return [wk, b.reshape(cout, 1), sc.reshape(cout, 1), sh.reshape(cout, 1)]


def _const_spec(a):
    ndim = a.ndim
    return pl.BlockSpec(a.shape, lambda n, _nd=ndim: (0,) * _nd)


# ----------------------------------------------------------------------------
# Forward pass
# ----------------------------------------------------------------------------
def liveness_net(x_nchw, params):
    B, Cin, H, W = x_nchw.shape
    assert (Cin, H, W) == (3, 32, 32), "Linear(2048, 64) requires (B, 3, 32, 32) input"
    HW = H * W

    # Layer-1 im2col in the wrapper (keeps Cin=3 off the lane axis); pad K 27->32.
    col1 = _im2col_3x3(x_nchw)                                         # (B, 27, 1024)
    col1 = jnp.pad(col1, ((0, 0), (0, 5), (0, 0)))                     # (B, 32, 1024)
    k1 = col1.shape[1]

    m32 = _conv_valid_masks(32, 32)                                    # (9, 1024)
    m16 = _conv_valid_masks(16, 16)                                    # (9, 256)
    sel1 = _pool2x2_select(32, 32)                                     # (1024, 256)
    sel2 = _pool2x2_select(16, 16)                                     # (256, 64)

    c1 = _conv_args(params["b1c1"])
    c1[0] = jnp.pad(c1[0], ((0, 0), (0, 5)))                           # (16, 32) to match col1
    c2 = _conv_args(params["b1c2"])
    c3 = _conv_args(params["b2c1"])
    c4 = _conv_args(params["b2c2"])

    hw1, hb1, hsc, hsh, hw2, hb2 = params["head"]
    head_args = [hw1, hb1.reshape(1, -1), hsc.reshape(1, -1), hsh.reshape(1, -1),
                 hw2.reshape(1, -1), hb2.reshape(1, 1)]

    args = [col1, m32, m16, sel1, sel2] + c1 + c2 + c3 + c4 + head_args

    in_specs = [pl.BlockSpec((None, k1, HW), lambda n: (n, 0, 0))]
    in_specs += [_const_spec(a) for a in args[1:]]

    out = pl.pallas_call(
        _liveness_kernel,
        out_shape=jax.ShapeDtypeStruct((B, 1, 1), jnp.float32),
        grid=(B,),
        in_specs=in_specs,
        out_specs=pl.BlockSpec((None, 1, 1), lambda n: (n, 0, 0)),
        scratch_shapes=[
            pltpu.VMEM((9 * 16, 32 * 32), jnp.float32),   # im2col for conv2
            pltpu.VMEM((9 * 16, 16 * 16), jnp.float32),   # im2col for conv3
            pltpu.VMEM((9 * 32, 16 * 16), jnp.float32),   # im2col for conv4
            pltpu.VMEM((1, 2048), jnp.float32),           # flattened features
        ],
        compiler_params=pltpu.CompilerParams(dimension_semantics=("parallel",)),
    )(*args)
    return out.reshape(B)


# ----------------------------------------------------------------------------
# Pure-JAX reference (same folded-BN / eval semantics) for correctness check
# ----------------------------------------------------------------------------
def reference_forward(x, params):
    hp = jax.lax.Precision.HIGHEST

    def conv_bn(x, w, b, sc, sh):
        y = jax.lax.conv_general_dilated(
            x, w, window_strides=(1, 1), padding=((1, 1), (1, 1)),
            dimension_numbers=("NCHW", "OIHW", "NCHW"), precision=hp)
        y = jnp.maximum(y + b[None, :, None, None], 0.0)
        return y * sc[None, :, None, None] + sh[None, :, None, None]

    def pool(x):
        B, C, H, W = x.shape
        return x.reshape(B, C, H // 2, 2, W // 2, 2).max(axis=(3, 5))

    y = conv_bn(x, *params["b1c1"])
    y = conv_bn(y, *params["b1c2"])
    y = pool(y)
    y = conv_bn(y, *params["b2c1"])
    y = conv_bn(y, *params["b2c2"])
    y = pool(y)
    y = y.reshape(y.shape[0], -1)
    w1, b1, sc, sh, w2, b2 = params["head"]
    h = jnp.maximum(jnp.dot(y, w1, precision=hp) + b1, 0.0)
    h = h * sc + sh
    logits = jnp.dot(h, w2, precision=hp) + b2
    return jax.nn.sigmoid(logits).reshape(-1)


# ----------------------------------------------------------------------------
# Deterministic synthetic parameters (PyTorch-shaped; BN folded for eval)
# ----------------------------------------------------------------------------
def _fold_bn(kg, kb, km, kv, c, eps=1e-5):
    gamma = 1.0 + 0.1 * jax.random.normal(kg, (c,), jnp.float32)
    beta = 0.1 * jax.random.normal(kb, (c,), jnp.float32)
    rmean = 0.1 * jax.random.normal(km, (c,), jnp.float32)
    rvar = 1.0 + 0.1 * jnp.abs(jax.random.normal(kv, (c,), jnp.float32))
    scale = gamma / jnp.sqrt(rvar + eps)
    shift = beta - rmean * scale
    return scale, shift


def init_conv_bn(key, cin, cout):
    kw, kb, kg, kbe, km, kv = jax.random.split(key, 6)
    w = jax.random.normal(kw, (cout, cin, 3, 3), jnp.float32) / (9.0 * cin) ** 0.5
    b = 0.05 * jax.random.normal(kb, (cout,), jnp.float32)
    scale, shift = _fold_bn(kg, kbe, km, kv, cout)
    return w, b, scale, shift


def init_head(key):
    k1, k2, kg, kbe, km, kv, k3, k4 = jax.random.split(key, 8)
    w1 = jax.random.normal(k1, (2048, 64), jnp.float32) / 2048.0 ** 0.5
    b1 = 0.05 * jax.random.normal(k2, (64,), jnp.float32)
    scale, shift = _fold_bn(kg, kbe, km, kv, 64)
    w2 = jax.random.normal(k3, (64, 1), jnp.float32) / 64.0 ** 0.5
    b2 = 0.05 * jax.random.normal(k4, (1,), jnp.float32)
    return w1, b1, scale, shift, w2, b2


def make_params(key):
    k1, k2, k3, k4, k5 = jax.random.split(key, 5)
    return {
        "b1c1": init_conv_bn(k1, 3, 16),
        "b1c2": init_conv_bn(k2, 16, 16),
        "b2c1": init_conv_bn(k3, 16, 32),
        "b2c2": init_conv_bn(k4, 32, 32),
        "head": init_head(k5),
    }


if __name__ == "__main__":
    key = jax.random.PRNGKey(0)
    kx, kp = jax.random.split(key)
    # Linear1 expects 2048 = 32 * 8 * 8 features => input must be (B, 3, 32, 32).
    x = jax.random.normal(kx, (2, 3, 32, 32), jnp.float32)   # NCHW, like PyTorch
    params = make_params(kp)

    fwd = jax.jit(liveness_net)
    out = jax.block_until_ready(fwd(x, params))

    ref = jax.block_until_ready(jax.jit(reference_forward)(x, params))

    assert out.shape == (2,)
    assert bool(jnp.all(jnp.isfinite(out)))
    assert bool(jnp.all((out >= 0.0) & (out <= 1.0)))
    assert bool(jnp.allclose(out, ref, atol=1e-2, rtol=1e-2)), (out, ref)
    print("KERNEL_OK")
</pallas_src>

<mosaic_0001>
module attributes {stable_mosaic.version = 11 : i64} {
  func.func @_liveness_kernel(%arg0: i32, %arg1: memref<1x32x1024xf32, #tpu.memory_space<vmem>>, %arg2: memref<9x1024xf32, #tpu.memory_space<vmem>>, %arg3: memref<9x256xf32, #tpu.memory_space<vmem>>, %arg4: memref<1024x256xf32, #tpu.memory_space<vmem>>, %arg5: memref<256x64xf32, #tpu.memory_space<vmem>>, %arg6: memref<16x32xf32, #tpu.memory_space<vmem>>, %arg7: memref<16x1xf32, #tpu.memory_space<vmem>>, %arg8: memref<16x1xf32, #tpu.memory_space<vmem>>, %arg9: memref<16x1xf32, #tpu.memory_space<vmem>>, %arg10: memref<16x144xf32, #tpu.memory_space<vmem>>, %arg11: memref<16x1xf32, #tpu.memory_space<vmem>>, %arg12: memref<16x1xf32, #tpu.memory_space<vmem>>, %arg13: memref<16x1xf32, #tpu.memory_space<vmem>>, %arg14: memref<32x144xf32, #tpu.memory_space<vmem>>, %arg15: memref<32x1xf32, #tpu.memory_space<vmem>>, %arg16: memref<32x1xf32, #tpu.memory_space<vmem>>, %arg17: memref<32x1xf32, #tpu.memory_space<vmem>>, %arg18: memref<32x288xf32, #tpu.memory_space<vmem>>, %arg19: memref<32x1xf32, #tpu.memory_space<vmem>>, %arg20: memref<32x1xf32, #tpu.memory_space<vmem>>, %arg21: memref<32x1xf32, #tpu.memory_space<vmem>>, %arg22: memref<2048x64xf32, #tpu.memory_space<vmem>>, %arg23: memref<1x64xf32, #tpu.memory_space<vmem>>, %arg24: memref<1x64xf32, #tpu.memory_space<vmem>>, %arg25: memref<1x64xf32, #tpu.memory_space<vmem>>, %arg26: memref<1x64xf32, #tpu.memory_space<vmem>>, %arg27: memref<1x1xf32, #tpu.memory_space<vmem>>, %arg28: memref<1x1x1xf32, #tpu.memory_space<vmem>>, %arg29: memref<144x1024xf32, #tpu.memory_space<vmem>>, %arg30: memref<144x256xf32, #tpu.memory_space<vmem>>, %arg31: memref<288x256xf32, #tpu.memory_space<vmem>>, %arg32: memref<1x2048xf32, #tpu.memory_space<vmem>>) attributes {dimension_semantics = [#tpu.dimension_semantics<parallel>], iteration_bounds = array<i64: 2>, scalar_prefetch = 0 : i64, scratch_operands = 4 : i64, tpu.core_type = #tpu.core_type<tc>, window_params = [{transform_indices = @transform_0, window_bounds = array<i64: 1, 32, 1024>}, {pipeline_mode = #tpu.pipeline_mode<synchronous>, transform_indices = @transform_1, window_bounds = array<i64: 9, 1024>}, {pipeline_mode = #tpu.pipeline_mode<synchronous>, transform_indices = @transform_2, window_bounds = array<i64: 9, 256>}, {pipeline_mode = #tpu.pipeline_mode<synchronous>, transform_indices = @transform_3, window_bounds = array<i64: 1024, 256>}, {pipeline_mode = #tpu.pipeline_mode<synchronous>, transform_indices = @transform_4, window_bounds = array<i64: 256, 64>}, {pipeline_mode = #tpu.pipeline_mode<synchronous>, transform_indices = @transform_5, window_bounds = array<i64: 16, 32>}, {pipeline_mode = #tpu.pipeline_mode<synchronous>, transform_indices = @transform_6, window_bounds = array<i64: 16, 1>}, {pipeline_mode = #tpu.pipeline_mode<synchronous>, transform_indices = @transform_7, window_bounds = array<i64: 16, 1>}, {pipeline_mode = #tpu.pipeline_mode<synchronous>, transform_indices = @transform_8, window_bounds = array<i64: 16, 1>}, {pipeline_mode = #tpu.pipeline_mode<synchronous>, transform_indices = @transform_9, window_bounds = array<i64: 16, 144>}, {pipeline_mode = #tpu.pipeline_mode<synchronous>, transform_indices = @transform_10, window_bounds = array<i64: 16, 1>}, {pipeline_mode = #tpu.pipeline_mode<synchronous>, transform_indices = @transform_11, window_bounds = array<i64: 16, 1>}, {pipeline_mode = #tpu.pipeline_mode<synchronous>, transform_indices = @transform_12, window_bounds = array<i64: 16, 1>}, {pipeline_mode = #tpu.pipeline_mode<synchronous>, transform_indices = @transform_13, window_bounds = array<i64: 32, 144>}, {pipeline_mode = #tpu.pipeline_mode<synchronous>, transform_indices = @transform_14, window_bounds = array<i64: 32, 1>}, {pipeline_mode = #tpu.pipeline_mode<synchronous>, transform_indices = @transform_15, window_bounds = array<i64: 32, 1>}, {pipeline_mode = #tpu.pipeline_mode<synchronous>, transform_indices = @transform_16, window_bounds = array<i64: 32, 1>}, {pipeline_mode = #tpu.pipeline_mode<synchronous>, transform_indices = @transform_17, window_bounds = array<i64: 32, 288>}, {pipeline_mode = #tpu.pipeline_mode<synchronous>, transform_indices = @transform_18, window_bounds = array<i64: 32, 1>}, {pipeline_mode = #tpu.pipeline_mode<synchronous>, transform_indices = @transform_19, window_bounds = array<i64: 32, 1>}, {pipeline_mode = #tpu.pipeline_mode<synchronous>, transform_indices = @transform_20, window_bounds = array<i64: 32, 1>}, {pipeline_mode = #tpu.pipeline_mode<synchronous>, transform_indices = @transform_21, window_bounds = array<i64: 2048, 64>}, {pipeline_mode = #tpu.pipeline_mode<synchronous>, transform_indices = @transform_22, window_bounds = array<i64: 1, 64>}, {pipeline_mode = #tpu.pipeline_mode<synchronous>, transform_indices = @transform_23, window_bounds = array<i64: 1, 64>}, {pipeline_mode = #tpu.pipeline_mode<synchronous>, transform_indices = @transform_24, window_bounds = array<i64: 1, 64>}, {pipeline_mode = #tpu.pipeline_mode<synchronous>, transform_indices = @transform_25, window_bounds = array<i64: 1, 64>}, {pipeline_mode = #tpu.pipeline_mode<synchronous>, transform_indices = @transform_26, window_bounds = array<i64: 1, 1>}, {transform_indices = @transform_27, window_bounds = array<i64: 1, 1, 1>}]} {
    %c0 = arith.constant 0 : index
    %c0_0 = arith.constant 0 : index
    %c0_1 = arith.constant 0 : index
    %0 = vector.load %arg1[%c0, %c0_0, %c0_1] : memref<1x32x1024xf32, #tpu.memory_space<vmem>>, vector<1x32x1024xf32>
    %1 = vector.shape_cast %0 : vector<1x32x1024xf32> to vector<32x1024xf32>
    %c0_2 = arith.constant 0 : index
    %c0_3 = arith.constant 0 : index
    %2 = vector.load %arg6[%c0_2, %c0_3] : memref<16x32xf32, #tpu.memory_space<vmem>>, vector<16x32xf32>
    %cst = arith.constant dense<0.000000e+00> : vector<16x1024xf32>
    %3 = tpu.matmul %2, %1, %cst {dimension_numbers = #tpu.dot_dimension_numbers<[1], [0], [0], [1], [0, 0, 1, 1], [], []>} : vector<16x32xf32>, vector<32x1024xf32>, vector<16x1024xf32> -> vector<16x1024xf32>
    %c0_4 = arith.constant 0 : index
    %c0_5 = arith.constant 0 : index
    %4 = vector.load %arg7[%c0_4, %c0_5] : memref<16x1xf32, #tpu.memory_space<vmem>>, vector<16x1xf32>
    %5 = vector.broadcast %4 : vector<16x1xf32> to vector<16x1024xf32>
    %6 = arith.addf %3, %5 : vector<16x1024xf32>
    %cst_6 = arith.constant 0.000000e+00 : f32
    %7 = vector.broadcast %cst_6 : f32 to vector<16x1024xf32>
    %8 = arith.maximumf %6, %7 : vector<16x1024xf32>
    %c0_7 = arith.constant 0 : index
    %c0_8 = arith.constant 0 : index
    %9 = vector.load %arg8[%c0_7, %c0_8] : memref<16x1xf32, #tpu.memory_space<vmem>>, vector<16x1xf32>
    %10 = vector.broadcast %9 : vector<16x1xf32> to vector<16x1024xf32>
    %11 = arith.mulf %8, %10 : vector<16x1024xf32>
    %c0_9 = arith.constant 0 : index
    %c0_10 = arith.constant 0 : index
    %12 = vector.load %arg9[%c0_9, %c0_10] : memref<16x1xf32, #tpu.memory_space<vmem>>, vector<16x1xf32>
    %13 = vector.broadcast %12 : vector<16x1xf32> to vector<16x1024xf32>
    %14 = arith.addf %11, %13 : vector<16x1024xf32>
    %c33_i32 = arith.constant 33 : i32
    %15 = tpu.dynamic_rotate %14 by %c33_i32 dim 1 : vector<16x1024xf32>, i32 -> vector<16x1024xf32>
    %c0_11 = arith.constant 0 : index
    %c0_12 = arith.constant 0 : index
    %16 = vector.load %arg2[%c0_11, %c0_12] : memref<9x1024xf32, #tpu.memory_space<vmem>>, vector<1x1024xf32>
    %17 = vector.broadcast %16 : vector<1x1024xf32> to vector<16x1024xf32>
    %18 = arith.mulf %15, %17 : vector<16x1024xf32>
    %c0_13 = arith.constant 0 : index
    %c0_14 = arith.constant 0 : index
    %19 = vector.load %arg29[%c0_13, %c0_14] : memref<144x1024xf32, #tpu.memory_space<vmem>>, vector<16x1024xf32>
    tpu.vector_store %arg29[%c0_13, %c0_14], %18 {strides = array<i32>} : memref<144x1024xf32, #tpu.memory_space<vmem>>, vector<16x1024xf32>,
    %c32_i32 = arith.constant 32 : i32
    %20 = tpu.dynamic_rotate %14 by %c32_i32 dim 1 : vector<16x1024xf32>, i32 -> vector<16x1024xf32>
    %c1 = arith.constant 1 : index
    %c0_15 = arith.constant 0 : index
    %21 = vector.load %arg2[%c1, %c0_15] : memref<9x1024xf32, #tpu.memory_space<vmem>>, vector<1x1024xf32>
    %22 = vector.broadcast %21 : vector<1x1024xf32> to vector<16x1024xf32>
    %23 = arith.mulf %20, %22 : vector<16x1024xf32>
    %c16 = arith.constant 16 : index
    %c0_16 = arith.constant 0 : index
    %24 = vector.load %arg29[%c16, %c0_16] : memref<144x1024xf32, #tpu.memory_space<vmem>>, vector<16x1024xf32>
    tpu.vector_store %arg29[%c16, %c0_16], %23 {strides = array<i32>} : memref<144x1024xf32, #tpu.memory_space<vmem>>, vector<16x1024xf32>,
    %c31_i32 = arith.constant 31 : i32
    %25 = tpu.dynamic_rotate %14 by %c31_i32 dim 1 : vector<16x1024xf32>, i32 -> vector<16x1024xf32>
    %c2 = arith.constant 2 : index
    %c0_17 = arith.constant 0 : index
    %26 = vector.load %arg2[%c2, %c0_17] : memref<9x1024xf32, #tpu.memory_space<vmem>>, vector<1x1024xf32>
    %27 = vector.broadcast %26 : vector<1x1024xf32> to vector<16x1024xf32>
    %28 = arith.mulf %25, %27 : vector<16x1024xf32>
    %c32 = arith.constant 32 : index
    %c0_18 = arith.constant 0 : index
    %29 = vector.load %arg29[%c32, %c0_18] : memref<144x1024xf32, #tpu.memory_space<vmem>>, vector<16x1024xf32>
    tpu.vector_store %arg29[%c32, %c0_18], %28 {strides = array<i32>} : memref<144x1024xf32, #tpu.memory_space<vmem>>, vector<16x1024xf32>,
    %c1_i32 = arith.constant 1 : i32
    %30 = tpu.dynamic_rotate %14 by %c1_i32 dim 1 : vector<16x1024xf32>, i32 -> vector<16x1024xf32>
    %c3 = arith.constant 3 : index
    %c0_19 = arith.constant 0 : index
    %31 = vector.load %arg2[%c3, %c0_19] : memref<9x1024xf32, #tpu.memory_space<vmem>>, vector<1x1024xf32>
    %32 = vector.broadcast %31 : vector<1x1024xf32> to vector<16x1024xf32>
    %33 = arith.mulf %30, %32 : vector<16x1024xf32>
    %c48 = arith.constant 48 : index
    %c0_20 = arith.constant 0 : index
    %34 = vector.load %arg29[%c48, %c0_20] : memref<144x1024xf32, #tpu.memory_space<vmem>>, vector<16x1024xf32>
    tpu.vector_store %arg29[%c48, %c0_20], %33 {strides = array<i32>} : memref<144x1024xf32, #tpu.memory_space<vmem>>, vector<16x1024xf32>,
    %c64 = arith.constant 64 : index
    %c0_21 = arith.constant 0 : index
    %35 = vector.load %arg29[%c64, %c0_21] : memref<144x1024xf32, #tpu.memory_space<vmem>>, vector<16x1024xf32>
    tpu.vector_store %arg29[%c64, %c0_21], %14 {strides = array<i32>} : memref<144x1024xf32, #tpu.memory_space<vmem>>, vector<16x1024xf32>,
    %c1023_i32 = arith.constant 1023 : i32
    %36 = tpu.dynamic_rotate %14 by %c1023_i32 dim 1 : vector<16x1024xf32>, i32 -> vector<16x1024xf32>
    %c5 = arith.constant 5 : index
    %c0_22 = arith.constant 0 : index
    %37 = vector.load %arg2[%c5, %c0_22] : memref<9x1024xf32, #tpu.memory_space<vmem>>, vector<1x1024xf32>
    %38 = vector.broadcast %37 : vector<1x1024xf32> to vector<16x1024xf32>
    %39 = arith.mulf %36, %38 : vector<16x1024xf32>
    %c80 = arith.constant 80 : index
    %c0_23 = arith.constant 0 : index
    %40 = vector.load %arg29[%c80, %c0_23] : memref<144x1024xf32, #tpu.memory_space<vmem>>, vector<16x1024xf32>
    tpu.vector_store %arg29[%c80, %c0_23], %39 {strides = array<i32>} : memref<144x1024xf32, #tpu.memory_space<vmem>>, vector<16x1024xf32>,
    %c993_i32 = arith.constant 993 : i32
    %41 = tpu.dynamic_rotate %14 by %c993_i32 dim 1 : vector<16x1024xf32>, i32 -> vector<16x1024xf32>
    %c6 = arith.constant 6 : index
    %c0_24 = arith.constant 0 : index
    %42 = vector.load %arg2[%c6, %c0_24] : memref<9x1024xf32, #tpu.memory_space<vmem>>, vector<1x1024xf32>
    %43 = vector.broadcast %42 : vector<1x1024xf32> to vector<16x1024xf32>
    %44 = arith.mulf %41, %43 : vector<16x1024xf32>
    %c96 = arith.constant 96 : index
    %c0_25 = arith.constant 0 : index
    %45 = vector.load %arg29[%c96, %c0_25] : memref<144x1024xf32, #tpu.memory_space<vmem>>, vector<16x1024xf32>
    tpu.vector_store %arg29[%c96, %c0_25], %44 {strides = array<i32>} : memref<144x1024xf32, #tpu.memory_space<vmem>>, vector<16x1024xf32>,
    %c992_i32 = arith.constant 992 : i32
    %46 = tpu.dynamic_rotate %14 by %c992_i32 dim 1 : vector<16x1024xf32>, i32 -> vector<16x1024xf32>
    %c7 = arith.constant 7 : index
    %c0_26 = arith.constant 0 : index
    %47 = vector.load %arg2[%c7, %c0_26] : memref<9x1024xf32, #tpu.memory_space<vmem>>, vector<1x1024xf32>
    %48 = vector.broadcast %47 : vector<1x1024xf32> to vector<16x1024xf32>
    %49 = arith.mulf %46, %48 : vector<16x1024xf32>
    %c112 = arith.constant 112 : index
    %c0_27 = arith.constant 0 : index
    %50 = vector.load %arg29[%c112, %c0_27] : memref<144x1024xf32, #tpu.memory_space<vmem>>, vector<16x1024xf32>
    tpu.vector_store %arg29[%c112, %c0_27], %49 {strides = array<i32>} : memref<144x1024xf32, #tpu.memory_space<vmem>>, vector<16x1024xf32>,
    %c991_i32 = arith.constant 991 : i32
    %51 = tpu.dynamic_rotate %14 by %c991_i32 dim 1 : vector<16x1024xf32>, i32 -> vector<16x1024xf32>
    %c8 = arith.constant 8 : index
    %c0_28 = arith.constant 0 : index
    %52 = vector.load %arg2[%c8, %c0_28] : memref<9x1024xf32, #tpu.memory_space<vmem>>, vector<1x1024xf32>
    %53 = vector.broadcast %52 : vector<1x1024xf32> to vector<16x1024xf32>
    %54 = arith.mulf %51, %53 : vector<16x1024xf32>
    %c128 = arith.constant 128 : index
    %c0_29 = arith.constant 0 : index
    %55 = vector.load %arg29[%c128, %c0_29] : memref<144x1024xf32, #tpu.memory_space<vmem>>, vector<16x1024xf32>
    tpu.vector_store %arg29[%c128, %c0_29], %54 {strides = array<i32>} : memref<144x1024xf32, #tpu.memory_space<vmem>>, vector<16x1024xf32>,
    %c0_30 = arith.constant 0 : index
    %c0_31 = arith.constant 0 : index
    %56 = vector.load %arg29[%c0_30, %c0_31] : memref<144x1024xf32, #tpu.memory_space<vmem>>, vector<144x1024xf32>
    %c0_32 = arith.constant 0 : index
    %c0_33 = arith.constant 0 : index
    %57 = vector.load %arg10[%c0_32, %c0_33] : memref<16x144xf32, #tpu.memory_space<vmem>>, vector<16x144xf32>
    %cst_34 = arith.constant dense<0.000000e+00> : vector<16x1024xf32>
    %58 = tpu.matmul %57, %56, %cst_34 {dimension_numbers = #tpu.dot_dimension_numbers<[1], [0], [0], [1], [0, 0, 1, 1], [], []>} : vector<16x144xf32>, vector<144x1024xf32>, vector<16x1024xf32> -> vector<16x1024xf32>
    %c0_35 = arith.constant 0 : index
    %c0_36 = arith.constant 0 : index
    %59 = vector.load %arg11[%c0_35, %c0_36] : memref<16x1xf32, #tpu.memory_space<vmem>>, vector<16x1xf32>
    %60 = vector.broadcast %59 : vector<16x1xf32> to vector<16x1024xf32>
    %61 = arith.addf %58, %60 : vector<16x1024xf32>
    %cst_37 = arith.constant 0.000000e+00 : f32
    %62 = vector.broadcast %cst_37 : f32 to vector<16x1024xf32>
    %63 = arith.maximumf %61, %62 : vector<16x1024xf32>
    %c0_38 = arith.constant 0 : index
    %c0_39 = arith.constant 0 : index
    %64 = vector.load %arg12[%c0_38, %c0_39] : memref<16x1xf32, #tpu.memory_space<vmem>>, vector<16x1xf32>
    %65 = vector.broadcast %64 : vector<16x1xf32> to vector<16x1024xf32>
    %66 = arith.mulf %63, %65 : vector<16x1024xf32>
    %c0_40 = arith.constant 0 : index
    %c0_41 = arith.constant 0 : index
    %67 = vector.load %arg13[%c0_40, %c0_41] : memref<16x1xf32, #tpu.memory_space<vmem>>, vector<16x1xf32>
    %68 = vector.broadcast %67 : vector<16x1xf32> to vector<16x1024xf32>
    %69 = arith.addf %66, %68 : vector<16x1024xf32>
    %c1023_i32_42 = arith.constant 1023 : i32
    %70 = tpu.dynamic_rotate %69 by %c1023_i32_42 dim 1 : vector<16x1024xf32>, i32 -> vector<16x1024xf32>
    %71 = arith.maximumf %69, %70 : vector<16x1024xf32>
    %c992_i32_43 = arith.constant 992 : i32
    %72 = tpu.dynamic_rotate %71 by %c992_i32_43 dim 1 : vector<16x1024xf32>, i32 -> vector<16x1024xf32>
    %73 = arith.maximumf %71, %72 : vector<16x1024xf32>
    %c0_44 = arith.constant 0 : index
    %c0_45 = arith.constant 0 : index
    %74 = vector.load %arg4[%c0_44, %c0_45] : memref<1024x256xf32, #tpu.memory_space<vmem>>, vector<1024x256xf32>
    %cst_46 = arith.constant dense<0.000000e+00> : vector<16x256xf32>
    %75 = tpu.matmul %73, %74, %cst_46 {dimension_numbers = #tpu.dot_dimension_numbers<[1], [0], [0], [1], [0, 0, 1, 1], [], []>} : vector<16x1024xf32>, vector<1024x256xf32>, vector<16x256xf32> -> vector<16x256xf32>
    %c17_i32 = arith.constant 17 : i32
    %76 = tpu.dynamic_rotate %75 by %c17_i32 dim 1 : vector<16x256xf32>, i32 -> vector<16x256xf32>
    %c0_47 = arith.constant 0 : index
    %c0_48 = arith.constant 0 : index
    %77 = vector.load %arg3[%c0_47, %c0_48] : memref<9x256xf32, #tpu.memory_space<vmem>>, vector<1x256xf32>
    %78 = vector.broadcast %77 : vector<1x256xf32> to vector<16x256xf32>
    %79 = arith.mulf %76, %78 : vector<16x256xf32>
    %c0_49 = arith.constant 0 : index
    %c0_50 = arith.constant 0 : index
    %80 = vector.load %arg30[%c0_49, %c0_50] : memref<144x256xf32, #tpu.memory_space<vmem>>, vector<16x256xf32>
    tpu.vector_store %arg30[%c0_49, %c0_50], %79 {strides = array<i32>} : memref<144x256xf32, #tpu.memory_space<vmem>>, vector<16x256xf32>,
    %c16_i32 = arith.constant 16 : i32
    %81 = tpu.dynamic_rotate %75 by %c16_i32 dim 1 : vector<16x256xf32>, i32 -> vector<16x256xf32>
    %c1_51 = arith.constant 1 : index
    %c0_52 = arith.constant 0 : index
    %82 = vector.load %arg3[%c1_51, %c0_52] : memref<9x256xf32, #tpu.memory_space<vmem>>, vector<1x256xf32>
    %83 = vector.broadcast %82 : vector<1x256xf32> to vector<16x256xf32>
    %84 = arith.mulf %81, %83 : vector<16x256xf32>
    %c16_53 = arith.constant 16 : index
    %c0_54 = arith.constant 0 : index
    %85 = vector.load %arg30[%c16_53, %c0_54] : memref<144x256xf32, #tpu.memory_space<vmem>>, vector<16x256xf32>
    tpu.vector_store %arg30[%c16_53, %c0_54], %84 {strides = array<i32>} : memref<144x256xf32, #tpu.memory_space<vmem>>, vector<16x256xf32>,
    %c15_i32 = arith.constant 15 : i32
    %86 = tpu.dynamic_rotate %75 by %c15_i32 dim 1 : vector<16x256xf32>, i32 -> vector<16x256xf32>
    %c2_55 = arith.constant 2 : index
    %c0_56 = arith.constant 0 : index
    %87 = vector.load %arg3[%c2_55, %c0_56] : memref<9x256xf32, #tpu.memory_space<vmem>>, vector<1x256xf32>
    %88 = vector.broadcast %87 : vector<1x256xf32> to vector<16x256xf32>
    %89 = arith.mulf %86, %88 : vector<16x256xf32>
    %c32_57 = arith.constant 32 : index
    %c0_58 = arith.constant 0 : index
    %90 = vector.load %arg30[%c32_57, %c0_58] : memref<144x256xf32, #tpu.memory_space<vmem>>, vector<16x256xf32>
    tpu.vector_store %arg30[%c32_57, %c0_58], %89 {strides = array<i32>} : memref<144x256xf32, #tpu.memory_space<vmem>>, vector<16x256xf32>,
    %c1_i32_59 = arith.constant 1 : i32
    %91 = tpu.dynamic_rotate %75 by %c1_i32_59 dim 1 : vector<16x256xf32>, i32 -> vector<16x256xf32>
    %c3_60 = arith.constant 3 : index
    %c0_61 = arith.constant 0 : index
    %92 = vector.load %arg3[%c3_60, %c0_61] : memref<9x256xf32, #tpu.memory_space<vmem>>, vector<1x256xf32>
    %93 = vector.broadcast %92 : vector<1x256xf32> to vector<16x256xf32>
    %94 = arith.mulf %91, %93 : vector<16x256xf32>
    %c48_62 = arith.constant 48 : index
    %c0_63 = arith.constant 0 : index
    %95 = vector.load %arg30[%c48_62, %c0_63] : memref<144x256xf32, #tpu.memory_space<vmem>>, vector<16x256xf32>
    tpu.vector_store %arg30[%c48_62, %c0_63], %94 {strides = array<i32>} : memref<144x256xf32, #tpu.memory_space<vmem>>, vector<16x256xf32>,
    %c64_64 = arith.constant 64 : index
    %c0_65 = arith.constant 0 : index
    %96 = vector.load %arg30[%c64_64, %c0_65] : memref<144x256xf32, #tpu.memory_space<vmem>>, vector<16x256xf32>
    tpu.vector_store %arg30[%c64_64, %c0_65], %75 {strides = array<i32>} : memref<144x256xf32, #tpu.memory_space<vmem>>, vector<16x256xf32>,
    %c255_i32 = arith.constant 255 : i32
    %97 = tpu.dynamic_rotate %75 by %c255_i32 dim 1 : vector<16x256xf32>, i32 -> vector<16x256xf32>
    %c5_66 = arith.constant 5 : index
    %c0_67 = arith.constant 0 : index
    %98 = vector.load %arg3[%c5_66, %c0_67] : memref<9x256xf32, #tpu.memory_space<vmem>>, vector<1x256xf32>
    %99 = vector.broadcast %98 : vector<1x256xf32> to vector<16x256xf32>
    %100 = arith.mulf %97, %99 : vector<16x256xf32>
    %c80_68 = arith.constant 80 : index
    %c0_69 = arith.constant 0 : index
    %101 = vector.load %arg30[%c80_68, %c0_69] : memref<144x256xf32, #tpu.memory_space<vmem>>, vector<16x256xf32>
    tpu.vector_store %arg30[%c80_68, %c0_69], %100 {strides = array<i32>} : memref<144x256xf32, #tpu.memory_space<vmem>>, vector<16x256xf32>,
    %c241_i32 = arith.constant 241 : i32
    %102 = tpu.dynamic_rotate %75 by %c241_i32 dim 1 : vector<16x256xf32>, i32 -> vector<16x256xf32>
    %c6_70 = arith.constant 6 : index
    %c0_71 = arith.constant 0 : index
    %103 = vector.load %arg3[%c6_70, %c0_71] : memref<9x256xf32, #tpu.memory_space<vmem>>, vector<1x256xf32>
    %104 = vector.broadcast %103 : vector<1x256xf32> to vector<16x256xf32>
    %105 = arith.mulf %102, %104 : vector<16x256xf32>
    %c96_72 = arith.constant 96 : index
    %c0_73 = arith.constant 0 : index
    %106 = vector.load %arg30[%c96_72, %c0_73] : memref<144x256xf32, #tpu.memory_space<vmem>>, vector<16x256xf32>
    tpu.vector_store %arg30[%c96_72, %c0_73], %105 {strides = array<i32>} : memref<144x256xf32, #tpu.memory_space<vmem>>, vector<16x256xf32>,
    %c240_i32 = arith.constant 240 : i32
    %107 = tpu.dynamic_rotate %75 by %c240_i32 dim 1 : vector<16x256xf32>, i32 -> vector<16x256xf32>
    %c7_74 = arith.constant 7 : index
    %c0_75 = arith.constant 0 : index
    %108 = vector.load %arg3[%c7_74, %c0_75] : memref<9x256xf32, #tpu.memory_space<vmem>>, vector<1x256xf32>
    %109 = vector.broadcast %108 : vector<1x256xf32> to vector<16x256xf32>
    %110 = arith.mulf %107, %109 : vector<16x256xf32>
    %c112_76 = arith.constant 112 : index
    %c0_77 = arith.constant 0 : index
    %111 = vector.load %arg30[%c112_76, %c0_77] : memref<144x256xf32, #tpu.memory_space<vmem>>, vector<16x256xf32>
    tpu.vector_store %arg30[%c112_76, %c0_77], %110 {strides = array<i32>} : memref<144x256xf32, #tpu.memory_space<vmem>>, vector<16x256xf32>,
    %c239_i32 = arith.constant 239 : i32
    %112 = tpu.dynamic_rotate %75 by %c239_i32 dim 1 : vector<16x256xf32>, i32 -> vector<16x256xf32>
    %c8_78 = arith.constant 8 : index
    %c0_79 = arith.constant 0 : index
    %113 = vector.load %arg3[%c8_78, %c0_79] : memref<9x256xf32, #tpu.memory_space<vmem>>, vector<1x256xf32>
    %114 = vector.broadcast %113 : vector<1x256xf32> to vector<16x256xf32>
    %115 = arith.mulf %112, %114 : vector<16x256xf32>
    %c128_80 = arith.constant 128 : index
    %c0_81 = arith.constant 0 : index
    %116 = vector.load %arg30[%c128_80, %c0_81] : memref<144x256xf32, #tpu.memory_space<vmem>>, vector<16x256xf32>
    tpu.vector_store %arg30[%c128_80, %c0_81], %115 {strides = array<i32>} : memref<144x256xf32, #tpu.memory_space<vmem>>, vector<16x256xf32>,
    %c0_82 = arith.constant 0 : index
    %c0_83 = arith.constant 0 : index
    %117 = vector.load %arg30[%c0_82, %c0_83] : memref<144x256xf32, #tpu.memory_space<vmem>>, vector<144x256xf32>
    %c0_84 = arith.constant 0 : index
    %c0_85 = arith.constant 0 : index
    %118 = vector.load %arg14[%c0_84, %c0_85] : memref<32x144xf32, #tpu.memory_space<vmem>>, vector<32x144xf32>
    %cst_86 = arith.constant dense<0.000000e+00> : vector<32x256xf32>
    %119 = tpu.matmul %118, %117, %cst_86 {dimension_numbers = #tpu.dot_dimension_numbers<[1], [0], [0], [1], [0, 0, 1, 1], [], []>} : vector<32x144xf32>, vector<144x256xf32>, vector<32x256xf32> -> vector<32x256xf32>
    %c0_87 = arith.constant 0 : index
    %c0_88 = arith.constant 0 : index
    %120 = vector.load %arg15[%c0_87, %c0_88] : memref<32x1xf32, #tpu.memory_space<vmem>>, vector<32x1xf32>
    %121 = vector.broadcast %120 : vector<32x1xf32> to vector<32x256xf32>
    %122 = arith.addf %119, %121 : vector<32x256xf32>
    %cst_89 = arith.constant 0.000000e+00 : f32
    %123 = vector.broadcast %cst_89 : f32 to vector<32x256xf32>
    %124 = arith.maximumf %122, %123 : vector<32x256xf32>
    %c0_90 = arith.constant 0 : index
    %c0_91 = arith.constant 0 : index
    %125 = vector.load %arg16[%c0_90, %c0_91] : memref<32x1xf32, #tpu.memory_space<vmem>>, vector<32x1xf32>
    %126 = vector.broadcast %125 : vector<32x1xf32> to vector<32x256xf32>
    %127 = arith.mulf %124, %126 : vector<32x256xf32>
    %c0_92 = arith.constant 0 : index
    %c0_93 = arith.constant 0 : index
    %128 = vector.load %arg17[%c0_92, %c0_93] : memref<32x1xf32, #tpu.memory_space<vmem>>, vector<32x1xf32>
    %129 = vector.broadcast %128 : vector<32x1xf32> to vector<32x256xf32>
    %130 = arith.addf %127, %129 : vector<32x256xf32>
    %c17_i32_94 = arith.constant 17 : i32
    %131 = tpu.dynamic_rotate %130 by %c17_i32_94 dim 1 : vector<32x256xf32>, i32 -> vector<32x256xf32>
    %c0_95 = arith.constant 0 : index
    %c0_96 = arith.constant 0 : index
    %132 = vector.load %arg3[%c0_95, %c0_96] : memref<9x256xf32, #tpu.memory_space<vmem>>, vector<1x256xf32>
    %133 = vector.broadcast %132 : vector<1x256xf32> to vector<32x256xf32>
    %134 = arith.mulf %131, %133 : vector<32x256xf32>
    %c0_97 = arith.constant 0 : index
    %c0_98 = arith.constant 0 : index
    %135 = vector.load %arg31[%c0_97, %c0_98] : memref<288x256xf32, #tpu.memory_space<vmem>>, vector<32x256xf32>
    tpu.vector_store %arg31[%c0_97, %c0_98], %134 {strides = array<i32>} : memref<288x256xf32, #tpu.memory_space<vmem>>, vector<32x256xf32>,
    %c16_i32_99 = arith.constant 16 : i32
    %136 = tpu.dynamic_rotate %130 by %c16_i32_99 dim 1 : vector<32x256xf32>, i32 -> vector<32x256xf32>
    %c1_100 = arith.constant 1 : index
    %c0_101 = arith.constant 0 : index
    %137 = vector.load %arg3[%c1_100, %c0_101] : memref<9x256xf32, #tpu.memory_space<vmem>>, vector<1x256xf32>
    %138 = vector.broadcast %137 : vector<1x256xf32> to vector<32x256xf32>
    %139 = arith.mulf %136, %138 : vector<32x256xf32>
    %c32_102 = arith.constant 32 : index
    %c0_103 = arith.constant 0 : index
    %140 = vector.load %arg31[%c32_102, %c0_103] : memref<288x256xf32, #tpu.memory_space<vmem>>, vector<32x256xf32>
    tpu.vector_store %arg31[%c32_102, %c0_103], %139 {strides = array<i32>} : memref<288x256xf32, #tpu.memory_space<vmem>>, vector<32x256xf32>,
    %c15_i32_104 = arith.constant 15 : i32
    %141 = tpu.dynamic_rotate %130 by %c15_i32_104 dim 1 : vector<32x256xf32>, i32 -> vector<32x256xf32>
    %c2_105 = arith.constant 2 : index
    %c0_106 = arith.constant 0 : index
    %142 = vector.load %arg3[%c2_105, %c0_106] : memref<9x256xf32, #tpu.memory_space<vmem>>, vector<1x256xf32>
    %143 = vector.broadcast %142 : vector<1x256xf32> to vector<32x256xf32>
    %144 = arith.mulf %141, %143 : vector<32x256xf32>
    %c64_107 = arith.constant 64 : index
    %c0_108 = arith.constant 0 : index
    %145 = vector.load %arg31[%c64_107, %c0_108] : memref<288x256xf32, #tpu.memory_space<vmem>>, vector<32x256xf32>
    tpu.vector_store %arg31[%c64_107, %c0_108], %144 {strides = array<i32>} : memref<288x256xf32, #tpu.memory_space<vmem>>, vector<32x256xf32>,
    %c1_i32_109 = arith.constant 1 : i32
    %146 = tpu.dynamic_rotate %130 by %c1_i32_109 dim 1 : vector<32x256xf32>, i32 -> vector<32x256xf32>
    %c3_110 = arith.constant 3 : index
    %c0_111 = arith.constant 0 : index
    %147 = vector.load %arg3[%c3_110, %c0_111] : memref<9x256xf32, #tpu.memory_space<vmem>>, vector<1x256xf32>
    %148 = vector.broadcast %147 : vector<1x256xf32> to vector<32x256xf32>
    %149 = arith.mulf %146, %148 : vector<32x256xf32>
    %c96_112 = arith.constant 96 : index
    %c0_113 = arith.constant 0 : index
    %150 = vector.load %arg31[%c96_112, %c0_113] : memref<288x256xf32, #tpu.memory_space<vmem>>, vector<32x256xf32>
    tpu.vector_store %arg31[%c96_112, %c0_113], %149 {strides = array<i32>} : memref<288x256xf32, #tpu.memory_space<vmem>>, vector<32x256xf32>,
    %c128_114 = arith.constant 128 : index
    %c0_115 = arith.constant 0 : index
    %151 = vector.load %arg31[%c128_114, %c0_115] : memref<288x256xf32, #tpu.memory_space<vmem>>, vector<32x256xf32>
    tpu.vector_store %arg31[%c128_114, %c0_115], %130 {strides = array<i32>} : memref<288x256xf32, #tpu.memory_space<vmem>>, vector<32x256xf32>,
    %c255_i32_116 = arith.constant 255 : i32
    %152 = tpu.dynamic_rotate %130 by %c255_i32_116 dim 1 : vector<32x256xf32>, i32 -> vector<32x256xf32>
    %c5_117 = arith.constant 5 : index
    %c0_118 = arith.constant 0 : index
    %153 = vector.load %arg3[%c5_117, %c0_118] : memref<9x256xf32, #tpu.memory_space<vmem>>, vector<1x256xf32>
    %154 = vector.broadcast %153 : vector<1x256xf32> to vector<32x256xf32>
    %155 = arith.mulf %152, %154 : vector<32x256xf32>
    %c160 = arith.constant 160 : index
    %c0_119 = arith.constant 0 : index
    %156 = vector.load %arg31[%c160, %c0_119] : memref<288x256xf32, #tpu.memory_space<vmem>>, vector<32x256xf32>
    tpu.vector_store %arg31[%c160, %c0_119], %155 {strides = array<i32>} : memref<288x256xf32, #tpu.memory_space<vmem>>, vector<32x256xf32>,
    %c241_i32_120 = arith.constant 241 : i32
    %157 = tpu.dynamic_rotate %130 by %c241_i32_120 dim 1 : vector<32x256xf32>, i32 -> vector<32x256xf32>
    %c6_121 = arith.constant 6 : index
    %c0_122 = arith.constant 0 : index
    %158 = vector.load %arg3[%c6_121, %c0_122] : memref<9x256xf32, #tpu.memory_space<vmem>>, vector<1x256xf32>
    %159 = vector.broadcast %158 : vector<1x256xf32> to vector<32x256xf32>
    %160 = arith.mulf %157, %159 : vector<32x256xf32>
    %c192 = arith.constant 192 : index
    %c0_123 = arith.constant 0 : index
    %161 = vector.load %arg31[%c192, %c0_123] : memref<288x256xf32, #tpu.memory_space<vmem>>, vector<32x256xf32>
    tpu.vector_store %arg31[%c192, %c0_123], %160 {strides = array<i32>} : memref<288x256xf32, #tpu.memory_space<vmem>>, vector<32x256xf32>,
    %c240_i32_124 = arith.constant 240 : i32
    %162 = tpu.dynamic_rotate %130 by %c240_i32_124 dim 1 : vector<32x256xf32>, i32 -> vector<32x256xf32>
    %c7_125 = arith.constant 7 : index
    %c0_126 = arith.constant 0 : index
    %163 = vector.load %arg3[%c7_125, %c0_126] : memref<9x256xf32, #tpu.memory_space<vmem>>, vector<1x256xf32>
    %164 = vector.broadcast %163 : vector<1x256xf32> to vector<32x256xf32>
    %165 = arith.mulf %162, %164 : vector<32x256xf32>
    %c224 = arith.constant 224 : index
    %c0_127 = arith.constant 0 : index
    %166 = vector.load %arg31[%c224, %c0_127] : memref<288x256xf32, #tpu.memory_space<vmem>>, vector<32x256xf32>
    tpu.vector_store %arg31[%c224, %c0_127], %165 {strides = array<i32>} : memref<288x256xf32, #tpu.memory_space<vmem>>, vector<32x256xf32>,
    %c239_i32_128 = arith.constant 239 : i32
    %167 = tpu.dynamic_rotate %130 by %c239_i32_128 dim 1 : vector<32x256xf32>, i32 -> vector<32x256xf32>
    %c8_129 = arith.constant 8 : index
    %c0_130 = arith.constant 0 : index
    %168 = vector.load %arg3[%c8_129, %c0_130] : memref<9x256xf32, #tpu.memory_space<vmem>>, vector<1x256xf32>
    %169 = vector.broadcast %168 : vector<1x256xf32> to vector<32x256xf32>
    %170 = arith.mulf %167, %169 : vector<32x256xf32>
    %c256 = arith.constant 256 : index
    %c0_131 = arith.constant 0 : index
    %171 = vector.load %arg31[%c256, %c0_131] : memref<288x256xf32, #tpu.memory_space<vmem>>, vector<32x256xf32>
    tpu.vector_store %arg31[%c256, %c0_131], %170 {strides = array<i32>} : memref<288x256xf32, #tpu.memory_space<vmem>>, vector<32x256xf32>,
    %c0_132 = arith.constant 0 : index
    %c0_133 = arith.constant 0 : index
    %172 = vector.load %arg31[%c0_132, %c0_133] : memref<288x256xf32, #tpu.memory_space<vmem>>, vector<288x256xf32>
    %c0_134 = arith.constant 0 : index
    %c0_135 = arith.constant 0 : index
    %173 = vector.load %arg18[%c0_134, %c0_135] : memref<32x288xf32, #tpu.memory_space<vmem>>, vector<32x288xf32>
    %cst_136 = arith.constant dense<0.000000e+00> : vector<32x256xf32>
    %174 = tpu.matmul %173, %172, %cst_136 {dimension_numbers = #tpu.dot_dimension_numbers<[1], [0], [0], [1], [0, 0, 1, 1], [], []>} : vector<32x288xf32>, vector<288x256xf32>, vector<32x256xf32> -> vector<32x256xf32>
    %c0_137 = arith.constant 0 : index
    %c0_138 = arith.constant 0 : index
    %175 = vector.load %arg19[%c0_137, %c0_138] : memref<32x1xf32, #tpu.memory_space<vmem>>, vector<32x1xf32>
    %176 = vector.broadcast %175 : vector<32x1xf32> to vector<32x256xf32>
    %177 = arith.addf %174, %176 : vector<32x256xf32>
    %cst_139 = arith.constant 0.000000e+00 : f32
    %178 = vector.broadcast %cst_139 : f32 to vector<32x256xf32>
    %179 = arith.maximumf %177, %178 : vector<32x256xf32>
    %c0_140 = arith.constant 0 : index
    %c0_141 = arith.constant 0 : index
    %180 = vector.load %arg20[%c0_140, %c0_141] : memref<32x1xf32, #tpu.memory_space<vmem>>, vector<32x1xf32>
    %181 = vector.broadcast %180 : vector<32x1xf32> to vector<32x256xf32>
    %182 = arith.mulf %179, %181 : vector<32x256xf32>
    %c0_142 = arith.constant 0 : index
    %c0_143 = arith.constant 0 : index
    %183 = vector.load %arg21[%c0_142, %c0_143] : memref<32x1xf32, #tpu.memory_space<vmem>>, vector<32x1xf32>
    %184 = vector.broadcast %183 : vector<32x1xf32> to vector<32x256xf32>
    %185 = arith.addf %182, %184 : vector<32x256xf32>
    %c255_i32_144 = arith.constant 255 : i32
    %186 = tpu.dynamic_rotate %185 by %c255_i32_144 dim 1 : vector<32x256xf32>, i32 -> vector<32x256xf32>
    %187 = arith.maximumf %185, %186 : vector<32x256xf32>
    %c240_i32_145 = arith.constant 240 : i32
    %188 = tpu.dynamic_rotate %187 by %c240_i32_145 dim 1 : vector<32x256xf32>, i32 -> vector<32x256xf32>
    %189 = arith.maximumf %187, %188 : vector<32x256xf32>
    %c0_146 = arith.constant 0 : index
    %c0_147 = arith.constant 0 : index
    %190 = vector.load %arg5[%c0_146, %c0_147] : memref<256x64xf32, #tpu.memory_space<vmem>>, vector<256x64xf32>
    %cst_148 = arith.constant dense<0.000000e+00> : vector<32x64xf32>
    %191 = tpu.matmul %189, %190, %cst_148 {dimension_numbers = #tpu.dot_dimension_numbers<[1], [0], [0], [1], [0, 0, 1, 1], [], []>} : vector<32x256xf32>, vector<256x64xf32>, vector<32x64xf32> -> vector<32x64xf32>
    %192 = vector.extract_strided_slice %191 {offsets = [0, 0], sizes = [1, 64], strides = [1, 1]} : vector<32x64xf32> to vector<1x64xf32>
    %c0_149 = arith.constant 0 : index
    %c0_150 = arith.constant 0 : index
    %193 = vector.load %arg32[%c0_149, %c0_150] : memref<1x2048xf32, #tpu.memory_space<vmem>>, vector<1x64xf32>
    tpu.vector_store %arg32[%c0_149, %c0_150], %192 {strides = array<i32>} : memref<1x2048xf32, #tpu.memory_space<vmem>>, vector<1x64xf32>,
    %194 = vector.extract_strided_slice %191 {offsets = [1, 0], sizes = [1, 64], strides = [1, 1]} : vector<32x64xf32> to vector<1x64xf32>
    %c0_151 = arith.constant 0 : index
    %c64_152 = arith.constant 64 : index
    %195 = vector.load %arg32[%c0_151, %c64_152] : memref<1x2048xf32, #tpu.memory_space<vmem>>, vector<1x64xf32>
    tpu.vector_store %arg32[%c0_151, %c64_152], %194 {strides = array<i32>} : memref<1x2048xf32, #tpu.memory_space<vmem>>, vector<1x64xf32>,
    %196 = vector.extract_strided_slice %191 {offsets = [2, 0], sizes = [1, 64], strides = [1, 1]} : vector<32x64xf32> to vector<1x64xf32>
    %c0_153 = arith.constant 0 : index
    %c128_154 = arith.constant 128 : index
    %197 = vector.load %arg32[%c0_153, %c128_154] : memref<1x2048xf32, #tpu.memory_space<vmem>>, vector<1x64xf32>
    tpu.vector_store %arg32[%c0_153, %c128_154], %196 {strides = array<i32>} : memref<1x2048xf32, #tpu.memory_space<vmem>>, vector<1x64xf32>,
    %198 = vector.extract_strided_slice %191 {offsets = [3, 0], sizes = [1, 64], strides = [1, 1]} : vector<32x64xf32> to vector<1x64xf32>
    %c0_155 = arith.constant 0 : index
    %c192_156 = arith.constant 192 : index
    %199 = vector.load %arg32[%c0_155, %c192_156] : memref<1x2048xf32, #tpu.memory_space<vmem>>, vector<1x64xf32>
    tpu.vector_store %arg32[%c0_155, %c192_156], %198 {strides = array<i32>} : memref<1x2048xf32, #tpu.memory_space<vmem>>, vector<1x64xf32>,
    %200 = vector.extract_strided_slice %191 {offsets = [4, 0], sizes = [1, 64], strides = [1, 1]} : vector<32x64xf32> to vector<1x64xf32>
    %c0_157 = arith.constant 0 : index
    %c256_158 = arith.constant 256 : index
    %201 = vector.load %arg32[%c0_157, %c256_158] : memref<1x2048xf32, #tpu.memory_space<vmem>>, vector<1x64xf32>
    tpu.vector_store %arg32[%c0_157, %c256_158], %200 {strides = array<i32>} : memref<1x2048xf32, #tpu.memory_space<vmem>>, vector<1x64xf32>,
    %202 = vector.extract_strided_slice %191 {offsets = [5, 0], sizes = [1, 64], strides = [1, 1]} : vector<32x64xf32> to vector<1x64xf32>
    %c0_159 = arith.constant 0 : index
    %c320 = arith.constant 320 : index
    %203 = vector.load %arg32[%c0_159, %c320] : memref<1x2048xf32, #tpu.memory_space<vmem>>, vector<1x64xf32>
    tpu.vector_store %arg32[%c0_159, %c320], %202 {strides = array<i32>} : memref<1x2048xf32, #tpu.memory_space<vmem>>, vector<1x64xf32>,
    %204 = vector.extract_strided_slice %191 {offsets = [6, 0], sizes = [1, 64], strides = [1, 1]} : vector<32x64xf32> to vector<1x64xf32>
    %c0_160 = arith.constant 0 : index
    %c384 = arith.constant 384 : index
    %205 = vector.load %arg32[%c0_160, %c384] : memref<1x2048xf32, #tpu.memory_space<vmem>>, vector<1x64xf32>
    tpu.vector_store %arg32[%c0_160, %c384], %204 {strides = array<i32>} : memref<1x2048xf32, #tpu.memory_space<vmem>>, vector<1x64xf32>,
    %206 = vector.extract_strided_slice %191 {offsets = [7, 0], sizes = [1, 64], strides = [1, 1]} : vector<32x64xf32> to vector<1x64xf32>
    %c0_161 = arith.constant 0 : index
    %c448 = arith.constant 448 : index
    %207 = vector.load %arg32[%c0_161, %c448] : memref<1x2048xf32, #tpu.memory_space<vmem>>, vector<1x64xf32>
    tpu.vector_store %arg32[%c0_161, %c448], %206 {strides = array<i32>} : memref<1x2048xf32, #tpu.memory_space<vmem>>, vector<1x64xf32>,
    %208 = vector.extract_strided_slice %191 {offsets = [8, 0], sizes = [1, 64], strides = [1, 1]} : vector<32x64xf32> to vector<1x64xf32>
    %c0_162 = arith.constant 0 : index
    %c512 = arith.constant 512 : index
    %209 = vector.load %arg32[%c0_162, %c512] : memref<1x2048xf32, #tpu.memory_space<vmem>>, vector<1x64xf32>
    tpu.vector_store %arg32[%c0_162, %c512], %208 {strides = array<i32>} : memref<1x2048xf32, #tpu.memory_space<vmem>>, vector<1x64xf32>,
    %210 = vector.extract_strided_slice %191 {offsets = [9, 0], sizes = [1, 64], strides = [1, 1]} : vector<32x64xf32> to vector<1x64xf32>
    %c0_163 = arith.constant 0 : index
    %c576 = arith.constant 576 : index
    %211 = vector.load %arg32[%c0_163, %c576] : memref<1x2048xf32, #tpu.memory_space<vmem>>, vector<1x64xf32>
    tpu.vector_store %arg32[%c0_163, %c576], %210 {strides = array<i32>} : memref<1x2048xf32, #tpu.memory_space<vmem>>, vector<1x64xf32>,
    %212 = vector.extract_strided_slice %191 {offsets = [10, 0], sizes = [1, 64], strides = [1, 1]} : vector<32x64xf32> to vector<1x64xf32>
    %c0_164 = arith.constant 0 : index
    %c640 = arith.constant 640 : index
    %213 = vector.load %arg32[%c0_164, %c640] : memref<1x2048xf32, #tpu.memory_space<vmem>>, vector<1x64xf32>
    tpu.vector_store %arg32[%c0_164, %c640], %212 {strides = array<i32>} : memref<1x2048xf32, #tpu.memory_space<vmem>>, vector<1x64xf32>,
    %214 = vector.extract_strided_slice %191 {offsets = [11, 0], sizes = [1, 64], strides = [1, 1]} : vector<32x64xf32> to vector<1x64xf32>
    %c0_165 = arith.constant 0 : index
    %c704 = arith.constant 704 : index
    %215 = vector.load %arg32[%c0_165, %c704] : memref<1x2048xf32, #tpu.memory_space<vmem>>, vector<1x64xf32>
    tpu.vector_store %arg32[%c0_165, %c704], %214 {strides = array<i32>} : memref<1x2048xf32, #tpu.memory_space<vmem>>, vector<1x64xf32>,
    %216 = vector.extract_strided_slice %191 {offsets = [12, 0], sizes = [1, 64], strides = [1, 1]} : vector<32x64xf32> to vector<1x64xf32>
    %c0_166 = arith.constant 0 : index
    %c768 = arith.constant 768 : index
    %217 = vector.load %arg32[%c0_166, %c768] : memref<1x2048xf32, #tpu.memory_space<vmem>>, vector<1x64xf32>
    tpu.vector_store %arg32[%c0_166, %c768], %216 {strides = array<i32>} : memref<1x2048xf32, #tpu.memory_space<vmem>>, vector<1x64xf32>,
    %218 = vector.extract_strided_slice %191 {offsets = [13, 0], sizes = [1, 64], strides = [1, 1]} : vector<32x64xf32> to vector<1x64xf32>
    %c0_167 = arith.constant 0 : index
    %c832 = arith.constant 832 : index
    %219 = vector.load %arg32[%c0_167, %c832] : memref<1x2048xf32, #tpu.memory_space<vmem>>, vector<1x64xf32>
    tpu.vector_store %arg32[%c0_167, %c832], %218 {strides = array<i32>} : memref<1x2048xf32, #tpu.memory_space<vmem>>, vector<1x64xf32>,
    %220 = vector.extract_strided_slice %191 {offsets = [14, 0], sizes = [1, 64], strides = [1, 1]} : vector<32x64xf32> to vector<1x64xf32>
    %c0_168 = arith.constant 0 : index
    %c896 = arith.constant 896 : index
    %221 = vector.load %arg32[%c0_168, %c896] : memref<1x2048xf32, #tpu.memory_space<vmem>>, vector<1x64xf32>
    tpu.vector_store %arg32[%c0_168, %c896], %220 {strides = array<i32>} : memref<1x2048xf32, #tpu.memory_space<vmem>>, vector<1x64xf32>,
    %222 = vector.extract_strided_slice %191 {offsets = [15, 0], sizes = [1, 64], strides = [1, 1]} : vector<32x64xf32> to vector<1x64xf32>
    %c0_169 = arith.constant 0 : index
    %c960 = arith.constant 960 : index
    %223 = vector.load %arg32[%c0_169, %c960] : memref<1x2048xf32, #tpu.memory_space<vmem>>, vector<1x64xf32>
    tpu.vector_store %arg32[%c0_169, %c960], %222 {strides = array<i32>} : memref<1x2048xf32, #tpu.memory_space<vmem>>, vector<1x64xf32>,
    %224 = vector.extract_strided_slice %191 {offsets = [16, 0], sizes = [1, 64], strides = [1, 1]} : vector<32x64xf32> to vector<1x64xf32>
    %c0_170 = arith.constant 0 : index
    %c1024 = arith.constant 1024 : index
    %225 = vector.load %arg32[%c0_170, %c1024] : memref<1x2048xf32, #tpu.memory_space<vmem>>, vector<1x64xf32>
    tpu.vector_store %arg32[%c0_170, %c1024], %224 {strides = array<i32>} : memref<1x2048xf32, #tpu.memory_space<vmem>>, vector<1x64xf32>,
    %226 = vector.extract_strided_slice %191 {offsets = [17, 0], sizes = [1, 64], strides = [1, 1]} : vector<32x64xf32> to vector<1x64xf32>
    %c0_171 = arith.constant 0 : index
    %c1088 = arith.constant 1088 : index
    %227 = vector.load %arg32[%c0_171, %c1088] : memref<1x2048xf32, #tpu.memory_space<vmem>>, vector<1x64xf32>
    tpu.vector_store %arg32[%c0_171, %c1088], %226 {strides = array<i32>} : memref<1x2048xf32, #tpu.memory_space<vmem>>, vector<1x64xf32>,
    %228 = vector.extract_strided_slice %191 {offsets = [18, 0], sizes = [1, 64], strides = [1, 1]} : vector<32x64xf32> to vector<1x64xf32>
    %c0_172 = arith.constant 0 : index
    %c1152 = arith.constant 1152 : index
    %229 = vector.load %arg32[%c0_172, %c1152] : memref<1x2048xf32, #tpu.memory_space<vmem>>, vector<1x64xf32>
    tpu.vector_store %arg32[%c0_172, %c1152], %228 {strides = array<i32>} : memref<1x2048xf32, #tpu.memory_space<vmem>>, vector<1x64xf32>,
    %230 = vector.extract_strided_slice %191 {offsets = [19, 0], sizes = [1, 64], strides = [1, 1]} : vector<32x64xf32> to vector<1x64xf32>
    %c0_173 = arith.constant 0 : index
    %c1216 = arith.constant 1216 : index
    %231 = vector.load %arg32[%c0_173, %c1216] : memref<1x2048xf32, #tpu.memory_space<vmem>>, vector<1x64xf32>
    tpu.vector_store %arg32[%c0_173, %c1216], %230 {strides = array<i32>} : memref<1x2048xf32, #tpu.memory_space<vmem>>, vector<1x64xf32>,
    %232 = vector.extract_strided_slice %191 {offsets = [20, 0], sizes = [1, 64], strides = [1, 1]} : vector<32x64xf32> to vector<1x64xf32>
    %c0_174 = arith.constant 0 : index
    %c1280 = arith.constant 1280 : index
    %233 = vector.load %arg32[%c0_174, %c1280] : memref<1x2048xf32, #tpu.memory_space<vmem>>, vector<1x64xf32>
    tpu.vector_store %arg32[%c0_174, %c1280], %232 {strides = array<i32>} : memref<1x2048xf32, #tpu.memory_space<vmem>>, vector<1x64xf32>,
    %234 = vector.extract_strided_slice %191 {offsets = [21, 0], sizes = [1, 64], strides = [1, 1]} : vector<32x64xf32> to vector<1x64xf32>
    %c0_175 = arith.constant 0 : index
    %c1344 = arith.constant 1344 : index
    %235 = vector.load %arg32[%c0_175, %c1344] : memref<1x2048xf32, #tpu.memory_space<vmem>>, vector<1x64xf32>
    tpu.vector_store %arg32[%c0_175, %c1344], %234 {strides = array<i32>} : memref<1x2048xf32, #tpu.memory_space<vmem>>, vector<1x64xf32>,
    %236 = vector.extract_strided_slice %191 {offsets = [22, 0], sizes = [1, 64], strides = [1, 1]} : vector<32x64xf32> to vector<1x64xf32>
    %c0_176 = arith.constant 0 : index
    %c1408 = arith.constant 1408 : index
    %237 = vector.load %arg32[%c0_176, %c1408] : memref<1x2048xf32, #tpu.memory_space<vmem>>, vector<1x64xf32>
    tpu.vector_store %arg32[%c0_176, %c1408], %236 {strides = array<i32>} : memref<1x2048xf32, #tpu.memory_space<vmem>>, vector<1x64xf32>,
    %238 = vector.extract_strided_slice %191 {offsets = [23, 0], sizes = [1, 64], strides = [1, 1]} : vector<32x64xf32> to vector<1x64xf32>
    %c0_177 = arith.constant 0 : index
    %c1472 = arith.constant 1472 : index
    %239 = vector.load %arg32[%c0_177, %c1472] : memref<1x2048xf32, #tpu.memory_space<vmem>>, vector<1x64xf32>
    tpu.vector_store %arg32[%c0_177, %c1472], %238 {strides = array<i32>} : memref<1x2048xf32, #tpu.memory_space<vmem>>, vector<1x64xf32>,
    %240 = vector.extract_strided_slice %191 {offsets = [24, 0], sizes = [1, 64], strides = [1, 1]} : vector<32x64xf32> to vector<1x64xf32>
    %c0_178 = arith.constant 0 : index
    %c1536 = arith.constant 1536 : index
    %241 = vector.load %arg32[%c0_178, %c1536] : memref<1x2048xf32, #tpu.memory_space<vmem>>, vector<1x64xf32>
    tpu.vector_store %arg32[%c0_178, %c1536], %240 {strides = array<i32>} : memref<1x2048xf32, #tpu.memory_space<vmem>>, vector<1x64xf32>,
    %242 = vector.extract_strided_slice %191 {offsets = [25, 0], sizes = [1, 64], strides = [1, 1]} : vector<32x64xf32> to vector<1x64xf32>
    %c0_179 = arith.constant 0 : index
    %c1600 = arith.constant 1600 : index
    %243 = vector.load %arg32[%c0_179, %c1600] : memref<1x2048xf32, #tpu.memory_space<vmem>>, vector<1x64xf32>
    tpu.vector_store %arg32[%c0_179, %c1600], %242 {strides = array<i32>} : memref<1x2048xf32, #tpu.memory_space<vmem>>, vector<1x64xf32>,
    %244 = vector.extract_strided_slice %191 {offsets = [26, 0], sizes = [1, 64], strides = [1, 1]} : vector<32x64xf32> to vector<1x64xf32>
    %c0_180 = arith.constant 0 : index
    %c1664 = arith.constant 1664 : index
    %245 = vector.load %arg32[%c0_180, %c1664] : memref<1x2048xf32, #tpu.memory_space<vmem>>, vector<1x64xf32>
    tpu.vector_store %arg32[%c0_180, %c1664], %244 {strides = array<i32>} : memref<1x2048xf32, #tpu.memory_space<vmem>>, vector<1x64xf32>,
    %246 = vector.extract_strided_slice %191 {offsets = [27, 0], sizes = [1, 64], strides = [1, 1]} : vector<32x64xf32> to vector<1x64xf32>
    %c0_181 = arith.constant 0 : index
    %c1728 = arith.constant 1728 : index
    %247 = vector.load %arg32[%c0_181, %c1728] : memref<1x2048xf32, #tpu.memory_space<vmem>>, vector<1x64xf32>
    tpu.vector_store %arg32[%c0_181, %c1728], %246 {strides = array<i32>} : memref<1x2048xf32, #tpu.memory_space<vmem>>, vector<1x64xf32>,
    %248 = vector.extract_strided_slice %191 {offsets = [28, 0], sizes = [1, 64], strides = [1, 1]} : vector<32x64xf32> to vector<1x64xf32>
    %c0_182 = arith.constant 0 : index
    %c1792 = arith.constant 1792 : index
    %249 = vector.load %arg32[%c0_182, %c1792] : memref<1x2048xf32, #tpu.memory_space<vmem>>, vector<1x64xf32>
    tpu.vector_store %arg32[%c0_182, %c1792], %248 {strides = array<i32>} : memref<1x2048xf32, #tpu.memory_space<vmem>>, vector<1x64xf32>,
    %250 = vector.extract_strided_slice %191 {offsets = [29, 0], sizes = [1, 64], strides = [1, 1]} : vector<32x64xf32> to vector<1x64xf32>
    %c0_183 = arith.constant 0 : index
    %c1856 = arith.constant 1856 : index
    %251 = vector.load %arg32[%c0_183, %c1856] : memref<1x2048xf32, #tpu.memory_space<vmem>>, vector<1x64xf32>
    tpu.vector_store %arg32[%c0_183, %c1856], %250 {strides = array<i32>} : memref<1x2048xf32, #tpu.memory_space<vmem>>, vector<1x64xf32>,
    %252 = vector.extract_strided_slice %191 {offsets = [30, 0], sizes = [1, 64], strides = [1, 1]} : vector<32x64xf32> to vector<1x64xf32>
    %c0_184 = arith.constant 0 : index
    %c1920 = arith.constant 1920 : index
    %253 = vector.load %arg32[%c0_184, %c1920] : memref<1x2048xf32, #tpu.memory_space<vmem>>, vector<1x64xf32>
    tpu.vector_store %arg32[%c0_184, %c1920], %252 {strides = array<i32>} : memref<1x2048xf32, #tpu.memory_space<vmem>>, vector<1x64xf32>,
    %254 = vector.extract_strided_slice %191 {offsets = [31, 0], sizes = [1, 64], strides = [1, 1]} : vector<32x64xf32> to vector<1x64xf32>
    %c0_185 = arith.constant 0 : index
    %c1984 = arith.constant 1984 : index
    %255 = vector.load %arg32[%c0_185, %c1984] : memref<1x2048xf32, #tpu.memory_space<vmem>>, vector<1x64xf32>
    tpu.vector_store %arg32[%c0_185, %c1984], %254 {strides = array<i32>} : memref<1x2048xf32, #tpu.memory_space<vmem>>, vector<1x64xf32>,
    %c0_186 = arith.constant 0 : index
    %c0_187 = arith.constant 0 : index
    %256 = vector.load %arg32[%c0_186, %c0_187] : memref<1x2048xf32, #tpu.memory_space<vmem>>, vector<1x2048xf32>
    %c0_188 = arith.constant 0 : index
    %c0_189 = arith.constant 0 : index
    %257 = vector.load %arg22[%c0_188, %c0_189] : memref<2048x64xf32, #tpu.memory_space<vmem>>, vector<2048x64xf32>
    %cst_190 = arith.constant dense<0.000000e+00> : vector<1x64xf32>
    %258 = tpu.matmul %256, %257, %cst_190 {dimension_numbers = #tpu.dot_dimension_numbers<[1], [0], [0], [1], [0, 0, 1, 1], [], []>} : vector<1x2048xf32>, vector<2048x64xf32>, vector<1x64xf32> -> vector<1x64xf32>
    %c0_191 = arith.constant 0 : index
    %c0_192 = arith.constant 0 : index
    %259 = vector.load %arg23[%c0_191, %c0_192] : memref<1x64xf32, #tpu.memory_space<vmem>>, vector<1x64xf32>
    %260 = arith.addf %258, %259 : vector<1x64xf32>
    %cst_193 = arith.constant 0.000000e+00 : f32
    %261 = vector.broadcast %cst_193 : f32 to vector<1x64xf32>
    %262 = arith.maximumf %260, %261 : vector<1x64xf32>
    %c0_194 = arith.constant 0 : index
    %c0_195 = arith.constant 0 : index
    %263 = vector.load %arg24[%c0_194, %c0_195] : memref<1x64xf32, #tpu.memory_space<vmem>>, vector<1x64xf32>
    %264 = arith.mulf %262, %263 : vector<1x64xf32>
    %c0_196 = arith.constant 0 : index
    %c0_197 = arith.constant 0 : index
    %265 = vector.load %arg25[%c0_196, %c0_197] : memref<1x64xf32, #tpu.memory_space<vmem>>, vector<1x64xf32>
    %266 = arith.addf %264, %265 : vector<1x64xf32>
    %c0_198 = arith.constant 0 : index
    %c0_199 = arith.constant 0 : index
    %267 = vector.load %arg26[%c0_198, %c0_199] : memref<1x64xf32, #tpu.memory_space<vmem>>, vector<1x64xf32>
    %268 = arith.mulf %266, %267 : vector<1x64xf32>
    %cst_200 = arith.constant dense<0.000000e+00> : vector<1xf32>
    %269 = vector.multi_reduction <add>, %268, %cst_200 [1] : vector<1x64xf32> to vector<1xf32>
    %270 = vector.shape_cast %269 : vector<1xf32> to vector<1x1xf32>
    %c0_201 = arith.constant 0 : index
    %c0_202 = arith.constant 0 : index
    %271 = vector.load %arg27[%c0_201, %c0_202] : memref<1x1xf32, #tpu.memory_space<vmem>>, vector<1x1xf32>
    %272 = arith.addf %270, %271 : vector<1x1xf32>
    %273 = arith.negf %272 : vector<1x1xf32>
    %274 = math.exp %273 : vector<1x1xf32>
    %cst_203 = arith.constant 1.000000e+00 : f32
    %275 = vector.broadcast %cst_203 : f32 to vector<1x1xf32>
    %276 = arith.addf %275, %274 : vector<1x1xf32>
    %277 = arith.divf %275, %276 : vector<1x1xf32>
    %c0_204 = arith.constant 0 : index
    %c0_205 = arith.constant 0 : index
    %c0_206 = arith.constant 0 : index
    %278 = vector.load %arg28[%c0_204, %c0_205, %c0_206] : memref<1x1x1xf32, #tpu.memory_space<vmem>>, vector<1x1x1xf32>
    %279 = vector.shape_cast %278 : vector<1x1x1xf32> to vector<1x1xf32>
    %280 = vector.shape_cast %277 : vector<1x1xf32> to vector<1x1x1xf32>
    tpu.vector_store %arg28[%c0_204, %c0_205, %c0_206], %280 {strides = array<i32>} : memref<1x1x1xf32, #tpu.memory_space<vmem>>, vector<1x1x1xf32>,
    return
  }
  func.func @transform_0(%arg0: i32) -> (i32, i32, i32) {
    %c0_i32 = arith.constant 0 : i32
    %c0_i32_0 = arith.constant 0 : i32
    %c0_i32_1 = arith.constant 0 : i32
    return %arg0, %c0_i32, %c0_i32_0 : i32, i32, i32
  }
  func.func @transform_1(%arg0: i32) -> (i32, i32) {
    %c0_i32 = arith.constant 0 : i32
    %c0_i32_0 = arith.constant 0 : i32
    %c0_i32_1 = arith.constant 0 : i32
    return %c0_i32, %c0_i32_0 : i32, i32
  }
  func.func @transform_2(%arg0: i32) -> (i32, i32) {
    %c0_i32 = arith.constant 0 : i32
    %c0_i32_0 = arith.constant 0 : i32
    %c0_i32_1 = arith.constant 0 : i32
    return %c0_i32, %c0_i32_0 : i32, i32
  }
  func.func @transform_3(%arg0: i32) -> (i32, i32) {
    %c0_i32 = arith.constant 0 : i32
    %c0_i32_0 = arith.constant 0 : i32
    %c0_i32_1 = arith.constant 0 : i32
    return %c0_i32, %c0_i32_0 : i32, i32
  }
  func.func @transform_4(%arg0: i32) -> (i32, i32) {
    %c0_i32 = arith.constant 0 : i32
    %c0_i32_0 = arith.constant 0 : i32
    %c0_i32_1 = arith.constant 0 : i32
    return %c0_i32, %c0_i32_0 : i32, i32
  }
  func.func @transform_5(%arg0: i32) -> (i32, i32) {
    %c0_i32 = arith.constant 0 : i32
    %c0_i32_0 = arith.constant 0 : i32
    %c0_i32_1 = arith.constant 0 : i32
    return %c0_i32, %c0_i32_0 : i32, i32
  }
  func.func @transform_6(%arg0: i32) -> (i32, i32) {
    %c0_i32 = arith.constant 0 : i32
    %c0_i32_0 = arith.constant 0 : i32
    %c0_i32_1 = arith.constant 0 : i32
    return %c0_i32, %c0_i32_0 : i32, i32
  }
  func.func @transform_7(%arg0: i32) -> (i32, i32) {
    %c0_i32 = arith.constant 0 : i32
    %c0_i32_0 = arith.constant 0 : i32
    %c0_i32_1 = arith.constant 0 : i32
    return %c0_i32, %c0_i32_0 : i32, i32
  }
  func.func @transform_8(%arg0: i32) -> (i32, i32) {
    %c0_i32 = arith.constant 0 : i32
    %c0_i32_0 = arith.constant 0 : i32
    %c0_i32_1 = arith.constant 0 : i32
    return %c0_i32, %c0_i32_0 : i32, i32
  }
  func.func @transform_9(%arg0: i32) -> (i32, i32) {
    %c0_i32 = arith.constant 0 : i32
    %c0_i32_0 = arith.constant 0 : i32
    %c0_i32_1 = arith.constant 0 : i32
    return %c0_i32, %c0_i32_0 : i32, i32
  }
  func.func @transform_10(%arg0: i32) -> (i32, i32) {
    %c0_i32 = arith.constant 0 : i32
    %c0_i32_0 = arith.constant 0 : i32
    %c0_i32_1 = arith.constant 0 : i32
    return %c0_i32, %c0_i32_0 : i32, i32
  }
  func.func @transform_11(%arg0: i32) -> (i32, i32) {
    %c0_i32 = arith.constant 0 : i32
    %c0_i32_0 = arith.constant 0 : i32
    %c0_i32_1 = arith.constant 0 : i32
    return %c0_i32, %c0_i32_0 : i32, i32
  }
  func.func @transform_12(%arg0: i32) -> (i32, i32) {
    %c0_i32 = arith.constant 0 : i32
    %c0_i32_0 = arith.constant 0 : i32
    %c0_i32_1 = arith.constant 0 : i32
    return %c0_i32, %c0_i32_0 : i32, i32
  }
  func.func @transform_13(%arg0: i32) -> (i32, i32) {
    %c0_i32 = arith.constant 0 : i32
    %c0_i32_0 = arith.constant 0 : i32
    %c0_i32_1 = arith.constant 0 : i32
    return %c0_i32, %c0_i32_0 : i32, i32
  }
  func.func @transform_14(%arg0: i32) -> (i32, i32) {
    %c0_i32 = arith.constant 0 : i32
    %c0_i32_0 = arith.constant 0 : i32
    %c0_i32_1 = arith.constant 0 : i32
    return %c0_i32, %c0_i32_0 : i32, i32
  }
  func.func @transform_15(%arg0: i32) -> (i32, i32) {
    %c0_i32 = arith.constant 0 : i32
    %c0_i32_0 = arith.constant 0 : i32
    %c0_i32_1 = arith.constant 0 : i32
    return %c0_i32, %c0_i32_0 : i32, i32
  }
  func.func @transform_16(%arg0: i32) -> (i32, i32) {
    %c0_i32 = arith.constant 0 : i32
    %c0_i32_0 = arith.constant 0 : i32
    %c0_i32_1 = arith.constant 0 : i32
    return %c0_i32, %c0_i32_0 : i32, i32
  }
  func.func @transform_17(%arg0: i32) -> (i32, i32) {
    %c0_i32 = arith.constant 0 : i32
    %c0_i32_0 = arith.constant 0 : i32
    %c0_i32_1 = arith.constant 0 : i32
    return %c0_i32, %c0_i32_0 : i32, i32
  }
  func.func @transform_18(%arg0: i32) -> (i32, i32) {
    %c0_i32 = arith.constant 0 : i32
    %c0_i32_0 = arith.constant 0 : i32
    %c0_i32_1 = arith.constant 0 : i32
    return %c0_i32, %c0_i32_0 : i32, i32
  }
  func.func @transform_19(%arg0: i32) -> (i32, i32) {
    %c0_i32 = arith.constant 0 : i32
    %c0_i32_0 = arith.constant 0 : i32
    %c0_i32_1 = arith.constant 0 : i32
    return %c0_i32, %c0_i32_0 : i32, i32
  }
  func.func @transform_20(%arg0: i32) -> (i32, i32) {
    %c0_i32 = arith.constant 0 : i32
    %c0_i32_0 = arith.constant 0 : i32
    %c0_i32_1 = arith.constant 0 : i32
    return %c0_i32, %c0_i32_0 : i32, i32
  }
  func.func @transform_21(%arg0: i32) -> (i32, i32) {
    %c0_i32 = arith.constant 0 : i32
    %c0_i32_0 = arith.constant 0 : i32
    %c0_i32_1 = arith.constant 0 : i32
    return %c0_i32, %c0_i32_0 : i32, i32
  }
  func.func @transform_22(%arg0: i32) -> (i32, i32) {
    %c0_i32 = arith.constant 0 : i32
    %c0_i32_0 = arith.constant 0 : i32
    %c0_i32_1 = arith.constant 0 : i32
    return %c0_i32, %c0_i32_0 : i32, i32
  }
  func.func @transform_23(%arg0: i32) -> (i32, i32) {
    %c0_i32 = arith.constant 0 : i32
    %c0_i32_0 = arith.constant 0 : i32
    %c0_i32_1 = arith.constant 0 : i32
    return %c0_i32, %c0_i32_0 : i32, i32
  }
  func.func @transform_24(%arg0: i32) -> (i32, i32) {
    %c0_i32 = arith.constant 0 : i32
    %c0_i32_0 = arith.constant 0 : i32
    %c0_i32_1 = arith.constant 0 : i32
    return %c0_i32, %c0_i32_0 : i32, i32
  }
  func.func @transform_25(%arg0: i32) -> (i32, i32) {
    %c0_i32 = arith.constant 0 : i32
    %c0_i32_0 = arith.constant 0 : i32
    %c0_i32_1 = arith.constant 0 : i32
    return %c0_i32, %c0_i32_0 : i32, i32
  }
  func.func @transform_26(%arg0: i32) -> (i32, i32) {
    %c0_i32 = arith.constant 0 : i32
    %c0_i32_0 = arith.constant 0 : i32
    %c0_i32_1 = arith.constant 0 : i32
    return %c0_i32, %c0_i32_0 : i32, i32
  }
  func.func @transform_27(%arg0: i32) -> (i32, i32, i32) {
    %c0_i32 = arith.constant 0 : i32
    %c0_i32_0 = arith.constant 0 : i32
    %c0_i32_1 = arith.constant 0 : i32
    return %arg0, %c0_i32, %c0_i32_0 : i32, i32, i32
  }
}

</mosaic_0001>

<bundles_post_ra>
// kernel: liveness_net.1
= control target key start
LH: loop header
LB: loop body
LE: loop exit
PB: predicated region body
PF: predicated region fallthrough
CT: control target
= control target key end

     0   :  { %s12375_s0 = inlined_call_operand.vmem [shape: f32[2,32,1024], index: 0, kind: input, shape index: {}]   ;;  %s12376_s1 = inlined_call_operand.vmem [shape: f32[9,1024], index: 1, kind: input, shape index: {}]   ;;  %s12377_s2 = inlined_call_operand.vmem [shape: f32[9,256], index: 2, kind: input, shape index: {}]   ;;  %s12378_s3 = inlined_call_operand.vmem [shape: f32[1024,256], index: 3, kind: input, shape index: {}]   ;;  %s12379_s4 = inlined_call_operand.vmem [shape: f32[256,64], index: 4, kind: input, shape index: {}]   ;;  %s12380_s5 = inlined_call_operand.vmem [shape: f32[16,32], index: 5, kind: input, shape index: {}]   ;;  %s12381_s6 = inlined_call_operand.vmem [shape: f32[16,1], index: 6, kind: input, shape index: {}]   ;;  %s12382_s7 = inlined_call_operand.vmem [shape: f32[16,1], index: 7, kind: input, shape index: {}]   ;;  %s12383_s8 = inlined_call_operand.vmem [shape: f32[16,1], index: 8, kind: input, shape index: {}]   ;;  %s12384_s9 = inlined_call_operand.vmem [shape: f32[16,144], index: 9, kind: input, shape index: {}]   ;;  %s12385_s10 = inlined_call_operand.vmem [shape: f32[16,1], index: 10, kind: input, shape index: {}]   ;;  %s12386_s11 = inlined_call_operand.vmem [shape: f32[16,1], index: 11, kind: input, shape index: {}]   ;;  %s12387_s12 = inlined_call_operand.vmem [shape: f32[16,1], index: 12, kind: input, shape index: {}]   ;;  %s12388_s13 = inlined_call_operand.vmem [shape: f32[32,144], index: 13, kind: input, shape index: {}]   ;;  %s12389_s14 = inlined_call_operand.vmem [shape: f32[32,1], index: 14, kind: input, shape index: {}]   ;;  %s12390_s15 = inlined_call_operand.vmem [shape: f32[32,1], index: 15, kind: input, shape index: {}]   ;;  %s12391_s16 = inlined_call_operand.vmem [shape: f32[32,1], index: 16, kind: input, shape index: {}]   ;;  %s12392_s17 = inlined_call_operand.vmem [shape: f32[32,288], index: 17, kind: input, shape index: {}]   ;;  %s12393_s18 = inlined_call_operand.vmem [shape: f32[32,1], index: 18, kind: input, shape index: {}]   ;;  %s12394_s19 = inlined_call_operand.vmem [shape: f32[32,1], index: 19, kind: input, shape index: {}]   ;;  %s12395_s20 = inlined_call_operand.vmem [shape: f32[32,1], index: 20, kind: input, shape index: {}]   ;;  %s12396_s21 = inlined_call_operand.vmem [shape: f32[2048,64], index: 21, kind: input, shape index: {}]   ;;  %s12397_s22 = inlined_call_operand.vmem [shape: f32[1,64], index: 22, kind: input, shape index: {}]   ;;  %s12398_s23 = inlined_call_operand.vmem [shape: f32[1,64], index: 23, kind: input, shape index: {}]   ;;  %s12399_s24 = inlined_call_operand.vmem [shape: f32[1,64], index: 24, kind: input, shape index: {}]   ;;  %s12400_s25 = inlined_call_operand.vmem [shape: f32[1,64], index: 25, kind: input, shape index: {}]   ;;  %s12401_s26 = inlined_call_operand.<no memory space> [shape: f32[1,1], index: 26, kind: input, shape index: {}]   ;;  %s12402_s27 = inlined_call_operand.vmem [shape: f32[2,1,1], index: 27, kind: output, shape index: {}]  }
   0x1   :  { %12506 = sst [smem:[#allocation47_spill]] %s12375_s0  ;;  %v32_v0 = vstv %s12401_s26 }
   0x2   :  { %12507 = sst [smem:[#allocation48_spill]] %s12376_s1  ;;  %33 = vst [vmem:[#allocation6] sm:$0x1] %v32_v0 }
   0x3   :  { %12508 = sst [smem:[#allocation49_spill]] %s12377_s2 }
   0x4   :  { %12509 = sst [smem:[#allocation50_spill]] %s12378_s3 }
   0x5   :  { %12510 = sst [smem:[#allocation51_spill]] %s12379_s4 }
   0x6   :  { %12511 = sst [smem:[#allocation52_spill]] %s12380_s5 }
   0x7   :  { %12512 = sst [smem:[#allocation53_spill]] %s12381_s6 }
   0x8   :  { %12513 = sst [smem:[#allocation54_spill]] %s12382_s7 }
   0x9   :  { %12514 = sst [smem:[#allocation55_spill]] %s12383_s8  ;;  %s7825_s8 = smov 0  }
   0xa   :  { %12515 = sst [smem:[#allocation56_spill]] %s12384_s9 }
   0xb   :  { %12516 = sst [smem:[#allocation57_spill]] %s12385_s10 }
   0xc   :  { %12517 = sst [smem:[#allocation58_spill]] %s12386_s11 }
   0xd   :  { %12518 = sst [smem:[#allocation59_spill]] %s12400_s25 }
   0xe   :  { %12519 = sst [smem:[#allocation60_spill]] %s12402_s27 }
   0xf LB: > { %12520 = sst [smem:[#allocation7_spill]] %s7662_s8  ;;  %s6271_s30 = sadd.s32 4294967295, %s7662_s8   ;;  %s7662_s8 = sphi %s7825_s8, %s39_s8  }
  0x10   : > { %p6275_p0 = scmp.ge.s32.totalorder %s7662_s8, 1  ;;  %p739_p1 = scmp.lt.s32.totalorder %s7662_s8, 3 }
  0x12   : > { %p740_p2 = pnand %p6275_p0, %p739_p1 }
  0x14   : > { %743 = sbr.rel (%p740_p2) target bundleno = 3549 (0xddd), region = 128 }
  0x1b   : > { %p809_p3 = scmp.lt.s32.totalorder %s6271_s30, 1  ;;  %v12424_v1 = vmov 0.0   ;;  %s12521_s5 = sld [smem:[#allocation53_spill]]  ;;  %v7665_v4 = vmov 0   ;;  %vm863_vm0 = vcmask 261120   ;;  %vm2435_vm1 = vcmask 130048  }
  0x1c   : > { %934 = vmatprep.mubr.f32.mxu0 %v12424_v1  ;;  %1011 = vmatprep.mubr.f32.mxu1 %v12424_v1  ;;  %s12522_s10 = sld [smem:[#allocation54_spill]]  ;;  %s12524_s4 = sld [smem:[#allocation47_spill]] }
  0x1d   : > { %s12661_s30 = smov (!%p809_p3, %s6271_s30), 1  ;;  %7540 = vset.pattern.permute.xlu0 %v7665_v4  ;;  %7541 = vset.pattern.permute.xlu1 %v7665_v4  ;;  %s12525_s0 = sld [smem:[#allocation55_spill]] }
  0x1e   : > { %12523 = sst [smem:[#allocation8_spill]] %s12661_s30  ;;  %s6333_s29 = sshll.u32 %s12661_s30, 8 }
  0x1f   : > { %s12526_s2 = sld [smem:[#allocation52_spill]]  ;;  %s12440_s9 = smov 31  }
  0x20   : > { %s12444_s28 = smov 1   ;;  %s12418_s1 = smov 97  }
  0x21   : > { %v851_v2 = vld [vmem:[%s12521_s5] sm:$0xff]  ;;  %v852_v5 = vld [vmem:[%s12521_s5 + $0x8] sm:$0xff]  ;;  %s12414_s6 = smov 96   ;;  %s12416_s11 = smov 95  }
  0x22   : > { %v1194_v3 = vld [vmem:[%s12522_s10] sm:$0xff]  ;;  %855 = vperm.xlu0 %7540, %v851_v2   ;;  %v1195_v6 = vld [vmem:[%s12522_s10 + $0x8] sm:$0xff]  ;;  %s7853_s26 = scalar_lea.vmem %s12524_s4, %s6333_s29  ;;  %s12442_s4 = smov 33  }
  0x23   : > { %1198 = vperm.xlu1 %7541, %v1194_v3   ;;  %v818_v7 = vld [vmem:[%s7853_s26 + $0x8] sm:$0xff]  ;;  %v820_v9 = vld [vmem:[%s7853_s26 + $0x18] sm:$0xff]  ;;  %v1222_v10 = vld [vmem:[%s12525_s0] sm:$0xff]  ;;  %s12420_s29 = smov 127   ;;  %s12566_s3 = smov 95  }
  0x24   : > { %v826_v8 = vld [vmem:[%s7853_s26 + $0x48] sm:$0xff]  ;;  %v828_v12 = vld [vmem:[%s7853_s26 + $0x58] sm:$0xff]  ;;  %v817_v13 = vld [vmem:[%s7853_s26] sm:$0xff]  ;;  %s7674_s10 = smov 17   ;;  %s12486_s7 = smov 113  }
  0x25   : > { %v6658_v11 = vpack.c.bf16 %v826_v8, %v818_v7  ;;  %v825_v14 = vld [vmem:[%s7853_s26 + $0x40] sm:$0xff]  ;;  %v6666_v15 = vpack.c.bf16 %v828_v12, %v820_v9  ;;  %v819_v17 = vld [vmem:[%s7853_s26 + $0x10] sm:$0xff]  ;;  %v834_v19 = vld [vmem:[%s7853_s26 + $0x88] sm:$0xff]  ;;  %s12490_s25 = smov 111   ;;  %s7681_s30 = smov 64  }
  0x26   : > { %860 = vperm.xlu0 %7540, %v852_v5   ;;  %v6660_v16 = vpack.c.bf16 %v825_v14, %v817_v13  ;;  %v827_v18 = vld [vmem:[%s7853_s26 + $0x50] sm:$0xff]  ;;  %v1223_v20 = vld [vmem:[%s12525_s0 + $0x8] sm:$0xff]  ;;  %v836_v23 = vld [vmem:[%s7853_s26 + $0x98] sm:$0xff]  ;;  %s12560_s0 = smov 32  }
  0x27   : > { %1203 = vperm.xlu1 %7541, %v1195_v6   ;;  %6659 = vmatprep.subr.bf16.mxu0 %v6658_v11  ;;  %v6668_v21 = vpack.c.bf16 %v827_v18, %v819_v17  ;;  %v842_v22 = vld [vmem:[%s7853_s26 + $0xc8] sm:$0xff]  ;;  %v844_v24 = vld [vmem:[%s7853_s26 + $0xd8] sm:$0xff]  ;;  %v833_v27 = vld [vmem:[%s7853_s26 + $0x80] sm:$0xff] }
  0x28   : > { %6667 = vmatprep.subr.bf16.mxu1 %v6666_v15  ;;  %6661 = vmatpush1.bf16.msra.mxu0 %v6660_v16  ;;  %v6662_v25 = vpack.c.bf16 %v842_v22, %v834_v19  ;;  %v6670_v26 = vpack.c.bf16 %v844_v24, %v836_v23  ;;  %v841_v28 = vld [vmem:[%s7853_s26 + $0xc0] sm:$0xff]  ;;  %v835_v29 = vld [vmem:[%s7853_s26 + $0x90] sm:$0xff]  ;;  %v822_v32 = vld [vmem:[%s7853_s26 + $0x28] sm:$0xff] }
  0x29   : > { %6669 = vmatpush1.bf16.msra.mxu1 %v6668_v21  ;;  %v6664_v30 = vpack.c.bf16 %v841_v28, %v833_v27  ;;  %v843_v31 = vld [vmem:[%s7853_s26 + $0xd0] sm:$0xff]  ;;  %v830_v33 = vld [vmem:[%s7853_s26 + $0x68] sm:$0xff]  ;;  %v849_v35 = vld [vmem:[%s12526_s2] sm:$0xff] }
  0x2a   : > { %1226 = vperm.xlu0 %7540, %v1222_v10   ;;  %6663 = vmatprep.subr.bf16.mxu0 %v6662_v25  ;;  %v6672_v34 = vpack.c.bf16 %v843_v31, %v835_v29  ;;  %v6674_v36 = vpack.c.bf16 %v830_v33, %v822_v32  ;;  %v824_v37 = vld [vmem:[%s7853_s26 + $0x38] sm:$0xff]  ;;  %v821_v39 = vld [vmem:[%s7853_s26 + $0x20] sm:$0xff]  ;;  %v823_v42 = vld [vmem:[%s7853_s26 + $0x30] sm:$0xff] }
  0x2b   : > { %6671 = vmatprep.subr.bf16.mxu1 %v6670_v26  ;;  %v832_v38 = vld [vmem:[%s7853_s26 + $0x78] sm:$0xff]  ;;  %v829_v41 = vld [vmem:[%s7853_s26 + $0x60] sm:$0xff]  ;;  %v831_v43 = vld [vmem:[%s7853_s26 + $0x70] sm:$0xff]  ;;  %1231 = vperm.xlu1 %7541, %v1223_v20  }
  0x2c   : > { %v6682_v40 = vpack.c.bf16 %v832_v38, %v824_v37  ;;  %6665 = vmatpush1.bf16.msra.mxu0 %v6664_v30  ;;  %v6676_v44 = vpack.c.bf16 %v829_v41, %v821_v39  ;;  %v838_v45 = vld [vmem:[%s7853_s26 + $0xa8] sm:$0xff]  ;;  %v840_v47 = vld [vmem:[%s7853_s26 + $0xb8] sm:$0xff]  ;;  %v6684_v48 = vpack.c.bf16 %v831_v43, %v823_v42  ;;  %v837_v50 = vld [vmem:[%s7853_s26 + $0xa0] sm:$0xff] }
  0x2d   : > { %v846_v46 = vld [vmem:[%s7853_s26 + $0xe8] sm:$0xff]  ;;  %6673 = vmatpush1.bf16.msra.mxu1 %v6672_v34  ;;  %6675 = vmatprep.subr.bf16.mxu0 %v6674_v36  ;;  %v848_v49 = vld [vmem:[%s7853_s26 + $0xf8] sm:$0xff]  ;;  %v845_v51 = vld [vmem:[%s7853_s26 + $0xe0] sm:$0xff] }
  0x2e   : > { %6683 = vmatprep.subr.bf16.mxu1 %v6682_v40  ;;  %v6678_v52 = vpack.c.bf16 %v846_v46, %v838_v45  ;;  %v839_v53 = vld [vmem:[%s7853_s26 + $0xb0] sm:$0xff]  ;;  %v6686_v55 = vpack.c.bf16 %v848_v49, %v840_v47  ;;  %v850_v56 = vld [vmem:[%s12526_s2 + $0x8] sm:$0xff]  ;;  %v6680_v57 = vpack.c.bf16 %v845_v51, %v837_v50  ;;  %s12623_s2 = sld [smem:[#allocation50_spill]] }
  0x2f   : > { %v847_v54 = vld [vmem:[%s7853_s26 + $0xf0] sm:$0xff]  ;;  %6278 = vmatmul.mubr.msk.f32.vlgmr.msra.gmra.mrb[0].mxu0 %vm863_vm0, %v849_v35  ;;  %s12436_s26 = smov 32  }
  0x30   : > { %6280 = vmatmul.mubr.msk.f32.vlgmr.msra.gmra.mrb[0].mxu1 %vm863_vm0, %v849_v35  ;;  %6677 = vmatpush1.bf16.msra.mxu0 %v6676_v44  ;;  %v6688_v58 = vpack.c.bf16 %v847_v54, %v839_v53 }
  0x31   : > { %6685 = vmatpush1.bf16.msra.mxu1 %v6684_v48  ;;  %940 = vmatprep.mubr.f32.mxu0 %v12424_v1 }
  0x32   : > { %1017 = vmatprep.mubr.f32.mxu1 %v12424_v1  ;;  %6679 = vmatprep.subr.bf16.mxu0 %v6678_v52 }
  0x33   : > { %6279 = vmatmul.mubr.msk.f32.gmra.mrb[2].mxu0 %vm863_vm0, %v850_v56  ;;  %6687 = vmatprep.subr.bf16.mxu1 %v6686_v55 }
  0x34   : > { %6281 = vmatmul.mubr.msk.f32.gmra.mrb[2].mxu1 %vm863_vm0, %v850_v56  ;;  %6681 = vmatpush1.bf16.msra.mxu0 %v6680_v57 }
  0x35   : > { %6689 = vmatpush1.bf16.msra.mxu1 %v6688_v58  ;;  %1088 = vmatprep.mubr.f32.mxu0 %v12424_v1 }
  0x36   : > { %1165 = vmatprep.mubr.f32.mxu1 %v12424_v1 }
  0x37   : > { %6282 = vmatmul.mubr.msk.f32.vlgmr.msra.gmra.mrb[4].mxu0 %vm863_vm0, %v849_v35 }
  0x38   : > { %6284 = vmatmul.mubr.msk.f32.vlgmr.msra.gmra.mrb[4].mxu1 %vm863_vm0, %v849_v35  ;;  %1094 = vmatprep.mubr.f32.mxu0 %v12424_v1 }
  0x39   : > { %1171 = vmatprep.mubr.f32.mxu1 %v12424_v1 }
  0x3b   : > { %6283 = vmatmul.mubr.msk.f32.gmra.mrb[6].mxu0 %vm863_vm0, %v850_v56 }
  0x3c   : > { %6285 = vmatmul.mubr.msk.f32.gmra.mrb[6].mxu1 %vm863_vm0, %v850_v56 }
  0xa1   : > { %v7913_v59 = vpop.permute.xlu0 %855 }
  0xa2   : > { %v7915_v60 = vpop.permute.xlu1 %1198 }
  0xa5   : > { %v7917_v61 = vpop.permute.xlu0 %860 }
  0xa6   : > { %v7921_v6 = vpop.permute.xlu1 %1203 }
  0xa9   : > { %v7925_v13 = vpop.permute.xlu0 %1226 }
  0xaa   : > { %v7941_v24 = vpop.permute.xlu1 %1231 }
 0x102   : > { %v936_v62 = vpop.f32.mrb[0].mxu0 }
 0x103   : > { %v937_v63 = vadd.f32 %v936_v62, %v7913_v59  ;;  %v1013_v0 = vpop.f32.mrb[0].mxu1  ;;  %v938_v2 = vpop.f32.mrb[1].mxu0 }
 0x104   : > { %v1014_v3 = vadd.f32 %v1013_v0, %v7913_v59  ;;  %v1015_v4 = vpop.f32.mrb[1].mxu1  ;;  %v939_v34 = vadd.f32 %v938_v2, %v7913_v59 }
 0x105   : > { %v1178_v5 = vmax.f32 %v937_v63, 0.0  ;;  %v1016_v36 = vadd.f32 %v1015_v4, %v7913_v59 }
 0x106   : > { %v1180_v7 = vmax.f32 %v1014_v3, 0.0  ;;  %v942_v8 = vpop.f32.mrb[2].mxu0  ;;  %v1179_v35 = vmax.f32 %v939_v34, 0.0 }
 0x107   : > { %v1206_v9 = vmul.f32 %v7915_v60, %v1178_v5  ;;  %v943_v10 = vadd.f32 %v942_v8, %v7917_v61  ;;  %v1019_v11 = vpop.f32.mrb[2].mxu1  ;;  %v944_v12 = vpop.f32.mrb[3].mxu0  ;;  %v1181_v39 = vmax.f32 %v1016_v36, 0.0 }
 0x108   : > { %v1020_v14 = vadd.f32 %v1019_v11, %v7917_v61  ;;  %v1021_v15 = vpop.f32.mrb[3].mxu1  ;;  %v1208_v17 = vmul.f32 %v7915_v60, %v1180_v7  ;;  %v945_v37 = vadd.f32 %v944_v12, %v7917_v61  ;;  %v1207_v38 = vmul.f32 %v7915_v60, %v1179_v35 }
 0x109   : > { %v7929_v16 = vadd.f32 %v7925_v13, %v1206_v9  ;;  %v1186_v18 = vmax.f32 %v943_v10, 0.0  ;;  %v1022_v41 = vadd.f32 %v1021_v15, %v7917_v61  ;;  %v1209_v43 = vmul.f32 %v7915_v60, %v1181_v39 }
 0x10a   : > { %v1188_v19 = vmax.f32 %v1020_v14, 0.0  ;;  %v7932_v20 = vpop.f32.mrb[4].mxu0  ;;  %v7946_v26 = vadd.f32 %v7925_v13, %v1208_v17  ;;  %v1187_v40 = vmax.f32 %v945_v37, 0.0  ;;  %v8021_v42 = vadd.f32 %v7925_v13, %v1207_v38 }
 0x10b   : > { %12527 = vst [vmem:[#allocation9_spill] sm:$0xff] %v7929_v16  ;;  %v1214_v21 = vmul.f32 %v7921_v6, %v1186_v18  ;;  %v7935_v22 = vpop.f32.mrb[4].mxu1  ;;  %v7937_v23 = vpop.f32.mrb[5].mxu0  ;;  %1250 = vrot.lane.b32.xlu0 %v7929_v16, %s12442_s4  ;;  %v1189_v45 = vmax.f32 %v1022_v41, 0.0  ;;  %v8030_v46 = vadd.f32 %v7925_v13, %v1209_v43  ;;  %v1091_v50 = vadd.f32 %v7932_v20, %v7913_v59 }
 0x10c   : > { %v7943_v25 = vpop.f32.mrb[5].mxu1  ;;  %v1216_v28 = vmul.f32 %v7921_v6, %v1188_v19  ;;  %v1215_v44 = vmul.f32 %v7921_v6, %v1187_v40  ;;  %v1093_v34 = vadd.f32 %v7937_v23, %v7913_v59 }
 0x10d   : > { %v7949_v27 = vadd.f32 %v7941_v24, %v1214_v21  ;;  %v1217_v48 = vmul.f32 %v7921_v6, %v1189_v45  ;;  %v1182_v51 = vmax.f32 %v1091_v50, 0.0  ;;  %v1170_v56 = vadd.f32 %v7943_v25, %v7913_v59 }
 0x10e   : > { %v7952_v29 = vpop.f32.mrb[6].mxu0  ;;  %v7965_v33 = vadd.f32 %v7941_v24, %v1216_v28  ;;  %v8033_v47 = vadd.f32 %v7941_v24, %v1215_v44  ;;  %v1183_v37 = vmax.f32 %v1093_v34, 0.0  ;;  %v12422_v44 = vlaneseq }
 0x10f   : > { %12528 = vst [vmem:[#allocation10_spill] sm:$0xff] %v7949_v27  ;;  %v7954_v30 = vpop.f32.mrb[6].mxu1  ;;  %v7956_v31 = vpop.f32.mrb[7].mxu0  ;;  %1252 = vrot.lane.b32.xlu1 %v7949_v27, %s12442_s4  ;;  %1258 = vrot.lane.b32.xlu0 %v7946_v26, %s12442_s4  ;;  %v8041_v49 = vadd.f32 %v7941_v24, %v1217_v48  ;;  %v1097_v52 = vadd.f32 %v7952_v29, %v7917_v61  ;;  %v1185_v58 = vmax.f32 %v1170_v56, 0.0 }
 0x110   : > { %v7962_v32 = vpop.f32.mrb[7].mxu1  ;;  %v1210_v53 = vmul.f32 %v7915_v60, %v1182_v51  ;;  %v1211_v23 = vmul.f32 %v7915_v60, %v1183_v37  ;;  %v8237_v51 = vshrl.u32 %v12422_v44, 7 }
 0x111   : > { %v1190_v54 = vmax.f32 %v1097_v52, 0.0  ;;  %v1176_v63 = vadd.f32 %v7962_v32, %v7917_v61  ;;  %v1213_v2 = vmul.f32 %v7915_v60, %v1185_v58  ;;  %v8252_v58 = vand.u32 127, %v12422_v44 }
 0x112   : > { %v8097_v55 = vadd.f32 %v7925_v13, %v1210_v53  ;;  %v8226_v45 = vadd.f32 %v7925_v13, %v1211_v23  ;;  %12540 = vst [vmem:[#allocation21_spill] sm:$0xff] %v8237_v51  ;;  %v8273_v37 = vsub.s32 3, %v8237_v51 }
 0x113   : > { %1260 = vrot.lane.b32.xlu1 %v7965_v33, %s12442_s4  ;;  %1377 = vrot.lane.b32.xlu0 %v7929_v16, %s12436_s26  ;;  %v1218_v57 = vmul.f32 %v7921_v6, %v1190_v54  ;;  %v1193_v3 = vmax.f32 %v1176_v63, 0.0  ;;  %v8127_v7 = vadd.f32 %v7925_v13, %v1213_v2  ;;  %v1174_v54 = vadd.f32 %v7954_v30, %v7917_v61 }
 0x114   : > { %12529 = vst [vmem:[#allocation11_spill] sm:$0xff] %v8097_v55  ;;  %12538 = vst [vmem:[#allocation19_spill] sm:$0xff] %v8226_v45  ;;  %v8261_v2 = vsub.s32 1, %v8237_v51  ;;  %vm1284_vm2 = vcmp.lt.s32.totalorder %v8252_v58, 33  ;;  %vm1409_vm3 = vcmp.lt.s32.totalorder %v8252_v58, 32  ;;  %vm1535_vm4 = vcmp.lt.s32.totalorder %v8252_v58, 31 }
 0x115   : > { %v8107_v62 = vadd.f32 %v7941_v24, %v1218_v57  ;;  %12531 = vst [vmem:[#allocation13_spill] sm:$0xff] %v8127_v7  ;;  %v1221_v8 = vmul.f32 %v7921_v6, %v1193_v3  ;;  %v1192_v3 = vmax.f32 %v1174_v54, 0.0  ;;  %12545 = vst [vmem:[#allocation25_spill] sm:$0xff] %v8273_v37  ;;  %vm1661_vm5 = vcmp.lt.s32.totalorder %v8252_v58, 1 }
 0x116   : > { %12543 = vst [vmem:[#allocation23_spill] sm:$0xff] %v8261_v2  ;;  %vm1803_vm6 = vcmp.lt.s32.totalorder %v8252_v58, 127  ;;  %vm1929_vm7 = vcmp.lt.s32.totalorder %v8252_v58, 97  ;;  %vm2055_vm8 = vcmp.lt.s32.totalorder %v8252_v58, 96  ;;  %vm2181_vm9 = vcmp.lt.s32.totalorder %v8252_v58, 95 }
 0x117   : > { %1379 = vrot.lane.b32.xlu1 %v7949_v27, %s12436_s26  ;;  %1385 = vrot.lane.b32.xlu0 %v7946_v26, %s12436_s26  ;;  %12530 = vst [vmem:[#allocation12_spill] sm:$0xff] %v8107_v62  ;;  %v8139_v11 = vadd.f32 %v7941_v24, %v1221_v8  ;;  %vm3522_vm10 = vcmp.lt.s32.totalorder %v8252_v58, 17  ;;  %vm3555_vm11 = vcmp.lt.s32.totalorder %v8252_v58, 16  ;;  %vm3589_vm12 = vcmp.lt.s32.totalorder %v8252_v58, 15 }
 0x118   : > { %vm3693_vm13 = vcmp.lt.s32.totalorder %v8252_v58, 113  ;;  %vm3727_vm14 = vcmp.lt.s32.totalorder %v8252_v58, 112  ;;  %vm3761_vm15 = vcmp.lt.s32.totalorder %v8252_v58, 111  ;;  %v5308_v58 = vld [vmem:[%s12396_s21 + $0x20] sm:$0xff] }
 0x119   : > { %12532 = vst [vmem:[#allocation14_spill] sm:$0xff] %v8139_v11 }
 0x11b   : > { %1387 = vrot.lane.b32.xlu1 %v7965_v33, %s12436_s26  ;;  %1503 = vrot.lane.b32.xlu0 %v7929_v16, %s12440_s9 }
 0x11f   : > { %1505 = vrot.lane.b32.xlu1 %v7949_v27, %s12440_s9  ;;  %1511 = vrot.lane.b32.xlu0 %v7946_v26, %s12440_s9 }
 0x123   : > { %1513 = vrot.lane.b32.xlu1 %v7965_v33, %s12440_s9  ;;  %1629 = vrot.lane.b32.xlu0 %v7929_v16, %s12444_s28 }
 0x127   : > { %1631 = vrot.lane.b32.xlu1 %v7949_v27, %s12444_s28  ;;  %1637 = vrot.lane.b32.xlu0 %v7946_v26, %s12444_s28 }
 0x12b   : > { %1639 = vrot.lane.b32.xlu1 %v7965_v33, %s12444_s28  ;;  %1779 = vrot.lane.b32.xlu0 %v7946_v26, %s12420_s29 }
 0x12f   : > { %1781 = vrot.lane.b32.xlu1 %v7965_v33, %s12420_s29  ;;  %1771 = vrot.lane.b32.xlu0 %v7929_v16, %s12420_s29 }
 0x133   : > { %1773 = vrot.lane.b32.xlu1 %v7949_v27, %s12420_s29  ;;  %1905 = vrot.lane.b32.xlu0 %v7946_v26, %s12418_s1 }
 0x137   : > { %1907 = vrot.lane.b32.xlu1 %v7965_v33, %s12418_s1  ;;  %1897 = vrot.lane.b32.xlu0 %v7929_v16, %s12418_s1 }
 0x13b   : > { %1899 = vrot.lane.b32.xlu1 %v7949_v27, %s12418_s1  ;;  %2031 = vrot.lane.b32.xlu0 %v7946_v26, %s12414_s6 }
 0x13f   : > { %2033 = vrot.lane.b32.xlu1 %v7965_v33, %s12414_s6  ;;  %2023 = vrot.lane.b32.xlu0 %v7929_v16, %s12414_s6 }
 0x143   : > { %2025 = vrot.lane.b32.xlu1 %v7949_v27, %s12414_s6  ;;  %1254 = vrot.lane.b32.xlu0 %v8021_v42, %s12442_s4 }
 0x147   : > { %1256 = vrot.lane.b32.xlu1 %v8033_v47, %s12442_s4  ;;  %1262 = vrot.lane.b32.xlu0 %v8030_v46, %s12442_s4 }
 0x14b   : > { %1264 = vrot.lane.b32.xlu1 %v8041_v49, %s12442_s4  ;;  %1381 = vrot.lane.b32.xlu0 %v8021_v42, %s12436_s26 }
 0x14f   : > { %1383 = vrot.lane.b32.xlu1 %v8033_v47, %s12436_s26  ;;  %1389 = vrot.lane.b32.xlu0 %v8030_v46, %s12436_s26 }
 0x153   : > { %1391 = vrot.lane.b32.xlu1 %v8041_v49, %s12436_s26  ;;  %1507 = vrot.lane.b32.xlu0 %v8021_v42, %s12440_s9 }
 0x157   : > { %1509 = vrot.lane.b32.xlu1 %v8033_v47, %s12440_s9  ;;  %1515 = vrot.lane.b32.xlu0 %v8030_v46, %s12440_s9 }
 0x15b   : > { %1517 = vrot.lane.b32.xlu1 %v8041_v49, %s12440_s9  ;;  %1633 = vrot.lane.b32.xlu0 %v8021_v42, %s12444_s28 }
 0x15f   : > { %1635 = vrot.lane.b32.xlu1 %v8033_v47, %s12444_s28  ;;  %1641 = vrot.lane.b32.xlu0 %v8030_v46, %s12444_s28 }
 0x163   : > { %1643 = vrot.lane.b32.xlu1 %v8041_v49, %s12444_s28  ;;  %1775 = vrot.lane.b32.xlu0 %v8021_v42, %s12420_s29 }
 0x167   : > { %1777 = vrot.lane.b32.xlu1 %v8033_v47, %s12420_s29  ;;  %1783 = vrot.lane.b32.xlu0 %v8030_v46, %s12420_s29 }
 0x16b   : > { %1785 = vrot.lane.b32.xlu1 %v8041_v49, %s12420_s29  ;;  %1901 = vrot.lane.b32.xlu0 %v8021_v42, %s12418_s1 }
 0x16f   : > { %1903 = vrot.lane.b32.xlu1 %v8033_v47, %s12418_s1  ;;  %1909 = vrot.lane.b32.xlu0 %v8030_v46, %s12418_s1 }
 0x173   : > { %1911 = vrot.lane.b32.xlu1 %v8041_v49, %s12418_s1  ;;  %2027 = vrot.lane.b32.xlu0 %v8021_v42, %s12414_s6 }
 0x177   : > { %2029 = vrot.lane.b32.xlu1 %v8033_v47, %s12414_s6  ;;  %2035 = vrot.lane.b32.xlu0 %v8030_v46, %s12414_s6 }
 0x17b   : > { %2037 = vrot.lane.b32.xlu1 %v8041_v49, %s12414_s6  ;;  %1787 = vrot.lane.b32.xlu0 %v8097_v55, %s12420_s29 }
 0x17d   : > { %v8111_v0 = vpop.permute.xlu0 %1250 }
 0x17f   : > { %1789 = vrot.lane.b32.xlu1 %v8107_v62, %s12420_s29  ;;  %1913 = vrot.lane.b32.xlu0 %v8097_v55, %s12418_s1  ;;  %s12552_s29 = smov 97  }
 0x181   : > { %v8118_v4 = vpop.permute.xlu1 %1252  ;;  %v8120_v5 = vpop.permute.xlu0 %1258 }
 0x183   : > { %1915 = vrot.lane.b32.xlu1 %v8107_v62, %s12418_s1  ;;  %2039 = vrot.lane.b32.xlu0 %v8097_v55, %s12414_s6  ;;  %s12564_s1 = smov 1  }
 0x185   : > { %v8130_v9 = vpop.permute.xlu1 %1260  ;;  %v8132_v10 = vpop.permute.xlu0 %1377 }
 0x187   : > { %2041 = vrot.lane.b32.xlu1 %v8107_v62, %s12414_s6  ;;  %1278 = vrot.lane.b32.xlu0 %v8127_v7, %s12442_s4  ;;  %s12535_s6 = sld [smem:[#allocation56_spill]] }
 0x189   : > { %v8141_v12 = vpop.permute.xlu1 %1379  ;;  %v8143_v14 = vpop.permute.xlu0 %1385 }
 0x18b   : > { %1280 = vrot.lane.b32.xlu1 %v8139_v11, %s12442_s4  ;;  %1405 = vrot.lane.b32.xlu0 %v8127_v7, %s12436_s26 }
 0x18d   : > { %v8149_v15 = vpop.permute.xlu1 %1387  ;;  %v8151_v17 = vpop.permute.xlu0 %1503  ;;  %v8206_v40 = vld [vmem:[%s12535_s6 + $0x8] sm:$0xff] }
 0x18e   : > { %12536 = vst [vmem:[#allocation17_spill] sm:$0xff] %v8206_v40  ;;  %6302 = vmatprep.mubr.msk.f32.mxu1 %vm2435_vm1, %v8206_v40  ;;  %6300 = vmatprep.mubr.msk.f32.mxu0 %vm2435_vm1, %v8206_v40 }
 0x18f   : > { %1407 = vrot.lane.b32.xlu1 %v8139_v11, %s12436_s26  ;;  %1531 = vrot.lane.b32.xlu0 %v8127_v7, %s12440_s9 }
 0x191   : > { %v8157_v18 = vpop.permute.xlu1 %1505  ;;  %v8159_v19 = vpop.permute.xlu0 %1511 }
 0x193   : > { %1533 = vrot.lane.b32.xlu1 %v8139_v11, %s12440_s9  ;;  %1657 = vrot.lane.b32.xlu0 %v8127_v7, %s12444_s28 }
 0x195   : > { %v8165_v20 = vpop.permute.xlu1 %1513  ;;  %v8167_v21 = vpop.permute.xlu0 %1629 }
 0x197   : > { %1659 = vrot.lane.b32.xlu1 %v8139_v11, %s12444_s28  ;;  %2153 = vrot.lane.b32.xlu0 %v8021_v42, %s12416_s11 }
 0x199   : > { %v8173_v25 = vpop.permute.xlu1 %1631  ;;  %v8175_v28 = vpop.permute.xlu0 %1637 }
 0x19b   : > { %2155 = vrot.lane.b32.xlu1 %v8033_v47, %s12416_s11  ;;  %2157 = vrot.lane.b32.xlu0 %v7946_v26, %s12416_s11 }
 0x19d   : > { %v8181_v29 = vpop.permute.xlu1 %1639  ;;  %v8183_v32 = vpop.permute.xlu0 %1779 }
 0x19f   : > { %2159 = vrot.lane.b32.xlu1 %v7965_v33, %s12416_s11  ;;  %2161 = vrot.lane.b32.xlu0 %v8030_v46, %s12416_s11 }
 0x1a1   : > { %v8191_v35 = vpop.permute.xlu1 %1781  ;;  %v8193_v36 = vpop.permute.xlu0 %1771 }
 0x1a2   : > { %12533 = vst [vmem:[#allocation15_spill] sm:$0xff] %v8193_v36 }
 0x1a3   : > { %2163 = vrot.lane.b32.xlu1 %v8041_v49, %s12416_s11  ;;  %2165 = vrot.lane.b32.xlu0 %v8097_v55, %s12416_s11 }
 0x1a5   : > { %v8199_v38 = vpop.permute.xlu1 %1773  ;;  %v8201_v39 = vpop.permute.xlu0 %1905 }
 0x1a6   : > { %12534 = vst [vmem:[#allocation16_spill] sm:$0xff] %v8199_v38 }
 0x1a7   : > { %2167 = vrot.lane.b32.xlu1 %v8107_v62, %s12416_s11  ;;  %2149 = vrot.lane.b32.xlu0 %v7929_v16, %s12416_s11 }
 0x1a9   : > { %v8217_v41 = vpop.permute.xlu1 %1907  ;;  %v8219_v43 = vpop.permute.xlu0 %1897 }
 0x1aa   : > { %12537 = vst [vmem:[#allocation18_spill] sm:$0xff] %v8219_v43 }
 0x1ab   : > { %2151 = vrot.lane.b32.xlu1 %v7949_v27, %s12416_s11  ;;  %1266 = vrot.lane.b32.xlu0 %v8097_v55, %s12442_s4  ;;  %s12541_s11 = sld [smem:[#allocation48_spill]] }
 0x1ad   : > { %v8228_v48 = vpop.permute.xlu1 %1899  ;;  %v8230_v50 = vpop.permute.xlu0 %2031 }
 0x1ae   : > { %12539 = vst [vmem:[#allocation20_spill] sm:$0xff] %v8228_v48 }
 0x1af   : > { %1268 = vrot.lane.b32.xlu1 %v8107_v62, %s12442_s4  ;;  %1270 = vrot.lane.b32.xlu0 %v8226_v45, %s12442_s4  ;;  %s12554_s4 = smov 96  }
 0x1b1   : > { %v1301_v52 = vld [vmem:[%s12541_s11] ss:$8 sm:$0xf]  ;;  %v8247_v56 = vpop.permute.xlu1 %2033  ;;  %v8249_v57 = vpop.permute.xlu0 %2023 }
 0x1b2   : > { %v1302_v53 = vld [vmem:[%s12541_s11] ss:$8 sm:$0xf0]  ;;  %12542 = vst [vmem:[#allocation22_spill] sm:$0xff] %v8249_v57 }
 0x1b3   : > { %1395 = vrot.lane.b32.xlu1 %v8107_v62, %s12436_s26  ;;  %1393 = vrot.lane.b32.xlu0 %v8097_v55, %s12436_s26  ;;  %v8258_v63 = vor.u32 %v1302_v53, %v1301_v52  ;;  %v1220_v52 = vmul.f32 %v7921_v6, %v1192_v3  ;;  %v8280_v53 = vsub.s32 2, %v8237_v51 }
 0x1b5   : > { %v8263_v30 = vpop.permute.xlu1 %2025  ;;  %v1255_v8 = vpop.permute.xlu0 %1254  ;;  %v1312_v34 = vrot.slane %v8258_v63, %v8261_v2  ;;  %12546 = vst [vmem:[#allocation26_spill] sm:$0xff] %v8280_v53 }
 0x1b6   : > { %12544 = vst [vmem:[#allocation24_spill] sm:$0xff] %v8263_v30  ;;  %v1297_v23 = vsel %vm1284_vm2, %v8111_v0, %v1255_v8  ;;  %v1320_v30 = vrot.slane %v8258_v63, %v8273_v37 }
 0x1b7   : > { %1521 = vrot.lane.b32.xlu1 %v8107_v62, %s12440_s9  ;;  %1397 = vrot.lane.b32.xlu0 %v8226_v45, %s12436_s26  ;;  %v1346_v40 = vmul.f32 %v1312_v34, %v1297_v23  ;;  %v1316_v23 = vrot.slane %v8258_v63, %v8280_v53  ;;  %s12550_s26 = smov 127  }
 0x1b9   : > { %v1257_v54 = vpop.permute.xlu1 %1256  ;;  %v8282_v44 = vpop.permute.xlu0 %1262 }
 0x1ba   : > { %12547 = vst [vmem:[#allocation27_spill] sm:$0xff] %v8282_v44  ;;  %v1298_v1 = vsel %vm1284_vm2, %v8118_v4, %v1257_v54  ;;  %v1296_v3 = vsel %vm1284_vm2, %v1257_v54, %v8130_v9  ;;  %v1293_v43 = vsel %vm1284_vm2, %v8120_v5, %v8282_v44  ;;  %v1295_v54 = vsel %vm1284_vm2, %v1255_v8, %v8120_v5 }
 0x1bb   : > { %v1354_v57 = vmul.f32 %v1312_v34, %v1298_v1  ;;  %1647 = vrot.lane.b32.xlu1 %v8107_v62, %s12444_s28  ;;  %1519 = vrot.lane.b32.xlu0 %v8097_v55, %s12440_s9  ;;  %v8301_v1 = vadd.f32 %v7941_v24, %v1220_v52  ;;  %v1099_v34 = vadd.f32 %v7956_v31, %v7917_v61  ;;  %v6286_v61 = vld [vmem:[%s12541_s11 + $0x1] ss:$8 sm:$0xf] }
 0x1bc   : > { %v6287_v31 = vld [vmem:[%s12541_s11 + $0x1] ss:$8 sm:$0xf0]  ;;  %v1355_v44 = vmul.f32 %v1316_v23, %v1296_v3  ;;  %v1348_v27 = vmul.f32 %v1320_v30, %v1293_v43  ;;  %v1168_v5 = vadd.f32 %v7935_v22, %v7913_v59 }
 0x1bd   : > { %12548 = vst [vmem:[#allocation28_spill] sm:$0xff] %v8301_v1  ;;  %v8307_v62 = vpop.permute.xlu1 %1264  ;;  %v8309_v48 = vpop.permute.xlu0 %1381  ;;  %v6690_v36 = vpack.c.bf16 %v1354_v57, %v1346_v40  ;;  %v1347_v57 = vmul.f32 %v1316_v23, %v1295_v54  ;;  %v8330_v8 = vor.u32 %v6287_v31, %v6286_v61  ;;  %v6289_v61 = vld [vmem:[%s12541_s11 + $0x2] ss:$8 sm:$0xf0] }
 0x1be   : > { %12549 = vst [vmem:[#allocation29_spill] sm:$0xff] %v8307_v62  ;;  %v1294_v52 = vsel %vm1284_vm2, %v8130_v9, %v8307_v62  ;;  %v1191_v9 = vmax.f32 %v1099_v34, 0.0  ;;  %v1184_v59 = vmax.f32 %v1168_v5, 0.0  ;;  %v1420_v54 = vsel %vm1409_vm3, %v8309_v48, %v8143_v14 }
 0x1bf   : > { %v1356_v40 = vmul.f32 %v1320_v30, %v1294_v52  ;;  %1797 = vrot.lane.b32.xlu1 %v8301_v1, %s12550_s26  ;;  %1523 = vrot.lane.b32.xlu0 %v8226_v45, %s12440_s9  ;;  %v6728_v30 = vpack.c.bf16 %v1355_v44, %v1347_v57  ;;  %v1446_v3 = vrot.slane %v8330_v8, %v8273_v37  ;;  %s12557_s9 = smov 33  }
 0x1c0   : > { %6691 = vmatprep.subr.bf16.mxu0 %v6690_v36  ;;  %v1219_v36 = vmul.f32 %v7921_v6, %v1191_v9  ;;  %v1442_v44 = vrot.slane %v8330_v8, %v8280_v53  ;;  %v6288_v6 = vld [vmem:[%s12541_s11 + $0x2] ss:$8 sm:$0xf] }
 0x1c1   : > { %v8332_v62 = vpop.permute.xlu1 %1383  ;;  %v8334_v16 = vpop.permute.xlu0 %1389  ;;  %v6726_v43 = vpack.c.bf16 %v1356_v40, %v1348_v27  ;;  %v8380_v57 = vor.u32 %v6289_v61, %v6288_v6  ;;  %v6291_v61 = vld [vmem:[%s12541_s11 + $0x3] ss:$8 sm:$0xf0] }
 0x1c2   : > { %12551 = vst [vmem:[#allocation30_spill] sm:$0xff] %v8334_v16  ;;  %v1421_v22 = vsel %vm1409_vm3, %v8332_v62, %v8149_v15  ;;  %v1418_v27 = vsel %vm1409_vm3, %v8143_v14, %v8334_v16  ;;  %v1212_v14 = vmul.f32 %v7915_v60, %v1184_v59  ;;  %v1473_v9 = vmul.f32 %v1442_v44, %v1420_v54 }
 0x1c3   : > { %1923 = vrot.lane.b32.xlu1 %v8301_v1, %s12552_s29  ;;  %1645 = vrot.lane.b32.xlu0 %v8097_v55, %s12444_s28  ;;  %v1481_v31 = vmul.f32 %v1442_v44, %v1421_v22  ;;  %v1474_v40 = vmul.f32 %v1446_v3, %v1418_v27  ;;  %v1572_v27 = vrot.slane %v8380_v57, %v8273_v37 }
 0x1c4   : > { %6727 = vmatprep.subr.bf16.mxu1 %v6726_v43  ;;  %v8402_v59 = vadd.f32 %v7925_v13, %v1212_v14  ;;  %v6290_v13 = vld [vmem:[%s12541_s11 + $0x3] ss:$8 sm:$0xf] }
 0x1c5   : > { %6729 = vmatpush1.bf16.msra.mxu1 %v6728_v30  ;;  %v8354_v34 = vpop.permute.xlu1 %1391  ;;  %v8356_v23 = vpop.permute.xlu0 %1507  ;;  %v8428_v14 = vor.u32 %v6291_v61, %v6290_v13 }
 0x1c6   : > { %12553 = vst [vmem:[#allocation31_spill] sm:$0xff] %v8354_v34  ;;  %v1419_v52 = vsel %vm1409_vm3, %v8149_v15, %v8354_v34  ;;  %v8378_v15 = vadd.f32 %v7941_v24, %v1219_v36  ;;  %12558 = vst [vmem:[#allocation34_spill] sm:$0xff] %v8402_v59  ;;  %v1568_v36 = vrot.slane %v8380_v57, %v8280_v53 }
 0x1c7   : > { %v1482_v5 = vmul.f32 %v1446_v3, %v1419_v52  ;;  %2049 = vrot.lane.b32.xlu1 %v8301_v1, %s12554_s4  ;;  %1649 = vrot.lane.b32.xlu0 %v8226_v45, %s12444_s28  ;;  %v6732_v3 = vpack.c.bf16 %v1481_v31, %v1473_v9  ;;  %v1546_v52 = vsel %vm1535_vm4, %v8356_v23, %v8159_v19  ;;  %s12562_s28 = smov 31  }
 0x1c8   : > { %12555 = vst [vmem:[#allocation32_spill] sm:$0xff] %v8378_v15 }
 0x1c9   : > { %v8382_v43 = vpop.permute.xlu1 %1509  ;;  %v8384_v30 = vpop.permute.xlu0 %1515  ;;  %v6730_v22 = vpack.c.bf16 %v1482_v5, %v1474_v40 }
 0x1ca   : > { %12556 = vst [vmem:[#allocation33_spill] sm:$0xff] %v8384_v30  ;;  %v1547_v60 = vsel %vm1535_vm4, %v8382_v43, %v8165_v20  ;;  %v1544_v24 = vsel %vm1535_vm4, %v8159_v19, %v8384_v30  ;;  %v1599_v19 = vmul.f32 %v1568_v36, %v1546_v52 }
 0x1cb   : > { %1272 = vrot.lane.b32.xlu1 %v8378_v15, %s12557_s9  ;;  %1791 = vrot.lane.b32.xlu0 %v8226_v45, %s12550_s26  ;;  %v1607_v31 = vmul.f32 %v1568_v36, %v1547_v60  ;;  %v1600_v40 = vmul.f32 %v1572_v27, %v1544_v24  ;;  %v1694_v36 = vrot.slane %v8428_v14, %v8280_v53 }
 0x1cc   : > { %6731 = vmatprep.subr.bf16.mxu1 %v6730_v22 }
 0x1cd   : > { %6733 = vmatpush1.bf16.msra.mxu1 %v6732_v3  ;;  %v8406_v44 = vpop.permute.xlu1 %1517  ;;  %v8408_v54 = vpop.permute.xlu0 %1633  ;;  %v6736_v3 = vpack.c.bf16 %v1607_v31, %v1599_v19 }
 0x1ce   : > { %12559 = vst [vmem:[#allocation35_spill] sm:$0xff] %v8406_v44  ;;  %v1545_v6 = vsel %vm1535_vm4, %v8165_v20, %v8406_v44  ;;  %v1672_v13 = vsel %vm1661_vm5, %v8408_v54, %v8175_v28 }
 0x1cf   : > { %v1608_v5 = vmul.f32 %v1572_v27, %v1545_v6  ;;  %1399 = vrot.lane.b32.xlu1 %v8378_v15, %s12560_s0  ;;  %1795 = vrot.lane.b32.xlu0 %v8402_v59, %s12550_s26  ;;  %v1698_v27 = vrot.slane %v8428_v14, %v8273_v37  ;;  %v1725_v19 = vmul.f32 %v1694_v36, %v1672_v13  ;;  %v6292_v13 = vld [vmem:[%s12541_s11 + $0x5] ss:$8 sm:$0xf] }
 0x1d1   : > { %v8430_v20 = vpop.permute.xlu1 %1635  ;;  %v8432_v9 = vpop.permute.xlu0 %1641  ;;  %v6734_v22 = vpack.c.bf16 %v1608_v5, %v1600_v40 }
 0x1d2   : > { %12561 = vst [vmem:[#allocation36_spill] sm:$0xff] %v8432_v9  ;;  %v1673_v60 = vsel %vm1661_vm5, %v8430_v20, %v8181_v29  ;;  %v1670_v24 = vsel %vm1661_vm5, %v8175_v28, %v8432_v9 }
 0x1d3   : > { %1525 = vrot.lane.b32.xlu1 %v8378_v15, %s12562_s28  ;;  %1917 = vrot.lane.b32.xlu0 %v8226_v45, %s12552_s29  ;;  %v1733_v31 = vmul.f32 %v1694_v36, %v1673_v60  ;;  %v1726_v40 = vmul.f32 %v1698_v27, %v1670_v24  ;;  %v6744_v24 = vpack.c.bf16 %v7965_v33, %v7946_v26 }
 0x1d4   : > { %6735 = vmatprep.subr.bf16.mxu1 %v6734_v22 }
 0x1d5   : > { %6737 = vmatpush1.bf16.msra.mxu1 %v6736_v3  ;;  %v8451_v52 = vpop.permute.xlu1 %1643  ;;  %v8453_v6 = vpop.permute.xlu0 %1775  ;;  %v6740_v28 = vpack.c.bf16 %v1733_v31, %v1725_v19 }
 0x1d6   : > { %12563 = vst [vmem:[#allocation37_spill] sm:$0xff] %v8451_v52  ;;  %v1671_v61 = vsel %vm1661_vm5, %v8181_v29, %v8451_v52  ;;  %v6742_v29 = vpack.c.bf16 %v8041_v49, %v8030_v46  ;;  %v6297_v52 = vld [vmem:[%s12541_s11 + $0x7] ss:$8 sm:$0xf0] }
 0x1d7   : > { %v1734_v5 = vmul.f32 %v1698_v27, %v1671_v61  ;;  %1651 = vrot.lane.b32.xlu1 %v8378_v15, %s12564_s1  ;;  %1921 = vrot.lane.b32.xlu0 %v8402_v59, %s12552_s29  ;;  %v6293_v61 = vld [vmem:[%s12541_s11 + $0x5] ss:$8 sm:$0xf0] }
 0x1d8   : > { %v8509_v31 = vor.u32 %v6293_v61, %v6292_v13 }
 0x1d9   : > { %v8467_v22 = vpop.permute.xlu1 %1777  ;;  %v1784_v3 = vpop.permute.xlu0 %1783  ;;  %v6738_v55 = vpack.c.bf16 %v1734_v5, %v1726_v40  ;;  %v6294_v40 = vld [vmem:[%s12541_s11 + $0x6] ss:$8 sm:$0xf] }
 0x1da   : > { %v6295_v5 = vld [vmem:[%s12541_s11 + $0x6] ss:$8 sm:$0xf0]  ;;  %v1836_v13 = vrot.slane %v8509_v31, %v8280_v53 }
 0x1db   : > { %1793 = vrot.lane.b32.xlu1 %v8378_v15, %s12550_s26  ;;  %2043 = vrot.lane.b32.xlu0 %v8226_v45, %s12554_s4  ;;  %v8532_v61 = vor.u32 %v6295_v5, %v6294_v40  ;;  %v1812_v40 = vsel %vm1803_vm6, %v8183_v32, %v1784_v3 }
 0x1dc   : > { %6739 = vmatprep.subr.bf16.mxu1 %v6738_v55 }
 0x1dd   : > { %6741 = vmatpush1.bf16.msra.mxu1 %v6740_v28  ;;  %v1786_v27 = vpop.permute.xlu1 %1785  ;;  %v8475_v60 = vpop.permute.xlu0 %1901  ;;  %12570 = vst [vmem:[#allocation42_spill] sm:$0xff] %v8532_v61  ;;  %v1966_v30 = vrot.slane %v8532_v61, %v8273_v37 }
 0x1de   : > { %12565 = vst [vmem:[#allocation38_spill] sm:$0xff] %v8475_v60  ;;  %6743 = vmatprep.subr.bf16.mxu1 %v6742_v29  ;;  %v1813_v29 = vsel %vm1803_vm6, %v8191_v35, %v1786_v27  ;;  %v8577_v60 = vsub.s32 0, %v8237_v51 }
 0x1df   : > { %1919 = vrot.lane.b32.xlu1 %v8378_v15, %s12552_s29  ;;  %2047 = vrot.lane.b32.xlu0 %v8402_v59, %s12554_s4  ;;  %v1875_v5 = vmul.f32 %v1836_v13, %v1813_v29 }
 0x1e0   : > { %12573 = vst [vmem:[#allocation45_spill] sm:$0xff] %v8577_v60 }
 0x1e1   : > { %6745 = vmatpush1.bf16.msra.mxu1 %v6744_v24  ;;  %v8483_v36 = vpop.permute.xlu1 %1903  ;;  %v1910_v55 = vpop.permute.xlu0 %1909  ;;  %v1840_v24 = vrot.slane %v8509_v31, %v8273_v37 }
 0x1e3   : > { %2045 = vrot.lane.b32.xlu1 %v8378_v15, %s12554_s4  ;;  %2169 = vrot.lane.b32.xlu0 %v8226_v45, %s12566_s3  ;;  %v6296_v45 = vld [vmem:[%s12541_s11 + $0x7] ss:$8 sm:$0xf] }
 0x1e4   : > { %v8564_v29 = vor.u32 %v6297_v52, %v6296_v45 }
 0x1e5   : > { %v1912_v46 = vpop.permute.xlu1 %1911  ;;  %v8489_v49 = vpop.permute.xlu0 %2027 }
 0x1e6   : > { %12567 = vst [vmem:[#allocation39_spill] sm:$0xff] %v8489_v49  ;;  %v1939_v16 = vsel %vm1929_vm7, %v8217_v41, %v1912_v46  ;;  %v2092_v52 = vrot.slane %v8564_v29, %v8273_v37 }
 0x1e7   : > { %2171 = vrot.lane.b32.xlu1 %v8378_v15, %s12566_s3  ;;  %2173 = vrot.lane.b32.xlu0 %v8402_v59, %s12566_s3 }
 0x1e9   : > { %v8495_v26 = vpop.permute.xlu1 %2029  ;;  %v8497_v33 = vpop.permute.xlu0 %2035 }
 0x1ea   : > { %12568 = vst [vmem:[#allocation40_spill] sm:$0xff] %v8495_v26 }
 0x1eb   : > { %2175 = vrot.lane.b32.xlu1 %v8301_v1, %s12566_s3  ;;  %1274 = vrot.lane.b32.xlu0 %v8402_v59, %s12557_s9 }
 0x1ed   : > { %v2038_v19 = vpop.permute.xlu1 %2037  ;;  %v8517_v28 = vpop.permute.xlu0 %1787 }
 0x1ee   : > { %12569 = vst [vmem:[#allocation41_spill] sm:$0xff] %v8517_v28  ;;  %v1810_v15 = vsel %vm1803_vm6, %v1784_v3, %v8517_v28  ;;  %v1962_v3 = vrot.slane %v8532_v61, %v8280_v53 }
 0x1ef   : > { %1276 = vrot.lane.b32.xlu1 %v8301_v1, %s12557_s9  ;;  %1401 = vrot.lane.b32.xlu0 %v8402_v59, %s12560_s0  ;;  %v1868_v34 = vmul.f32 %v1840_v24, %v1810_v15  ;;  %v1938_v15 = vsel %vm1929_vm7, %v8201_v39, %v1910_v55  ;;  %s12576_s9 = sld [smem:[#allocation58_spill]] }
 0x1f0   : > { %v2001_v61 = vmul.f32 %v1962_v3, %v1939_v16  ;;  %v2065_v16 = vsel %vm2055_vm8, %v8247_v56, %v2038_v19 }
 0x1f1   : > { %v8543_v9 = vpop.permute.xlu1 %1789  ;;  %v8545_v44 = vpop.permute.xlu0 %1913 }
 0x1f2   : > { %12571 = vst [vmem:[#allocation43_spill] sm:$0xff] %v8543_v9  ;;  %v1811_v28 = vsel %vm1803_vm6, %v1786_v27, %v8543_v9  ;;  %v1936_v27 = vsel %vm1929_vm7, %v1910_v55, %v8545_v44  ;;  %v1867_v9 = vmul.f32 %v1836_v13, %v1812_v40 }
 0x1f3   : > { %v1876_v49 = vmul.f32 %v1840_v24, %v1811_v28  ;;  %1403 = vrot.lane.b32.xlu1 %v8301_v1, %s12560_s0  ;;  %1527 = vrot.lane.b32.xlu0 %v8402_v59, %s12562_s28  ;;  %v1994_v55 = vmul.f32 %v1966_v30, %v1936_v27  ;;  %v1423_v27 = vsel %vm1409_vm3, %v8141_v12, %v8332_v62  ;;  %s12574_s0 = sld [smem:[#allocation57_spill]] }
 0x1f4   : > { %v6748_v13 = vpack.c.bf16 %v1875_v5, %v1867_v9  ;;  %v1438_v62 = vrot.slane %v8330_v8, %v8261_v2 }
 0x1f5   : > { %v8572_v28 = vpop.permute.xlu1 %1915  ;;  %v8574_v24 = vpop.permute.xlu0 %2039  ;;  %v6746_v26 = vpack.c.bf16 %v1876_v49, %v1868_v34  ;;  %v1993_v34 = vmul.f32 %v1962_v3, %v1938_v15  ;;  %v1308_v49 = vrot.slane %v8258_v63, %v8577_v60 }
 0x1f6   : > { %12572 = vst [vmem:[#allocation44_spill] sm:$0xff] %v8574_v24  ;;  %v1937_v45 = vsel %vm1929_vm7, %v1912_v46, %v8572_v28  ;;  %v2062_v9 = vsel %vm2055_vm8, %v8497_v33, %v8574_v24 }
 0x1f7   : > { %v2002_v40 = vmul.f32 %v1966_v30, %v1937_v45  ;;  %1529 = vrot.lane.b32.xlu1 %v8301_v1, %s12562_s28  ;;  %1653 = vrot.lane.b32.xlu0 %v8402_v59, %s12564_s1  ;;  %v2088_v30 = vrot.slane %v8564_v29, %v8280_v53  ;;  %v6752_v15 = vpack.c.bf16 %v2001_v61, %v1993_v34  ;;  %s12492_s28 = smov 15  }
 0x1f8   : > { %6747 = vmatprep.subr.bf16.mxu1 %v6746_v26  ;;  %v2064_v26 = vsel %vm2055_vm8, %v8230_v50, %v8497_v33  ;;  %v2120_v59 = vmul.f32 %v2092_v52, %v2062_v9  ;;  %v1422_v34 = vsel %vm1409_vm3, %v8132_v10, %v8309_v48  ;;  %v1564_v48 = vrot.slane %v8380_v57, %v8261_v2 }
 0x1f9   : > { %6749 = vmatpush1.bf16.msra.mxu1 %v6748_v13  ;;  %v8598_v46 = vpop.permute.xlu1 %2041  ;;  %v8602_v5 = vpop.permute.xlu0 %1278  ;;  %v6750_v3 = vpack.c.bf16 %v2002_v40, %v1994_v55  ;;  %v2127_v13 = vmul.f32 %v2088_v30, %v2065_v16  ;;  %v2119_v61 = vmul.f32 %v2088_v30, %v2064_v26  ;;  %v1480_v16 = vmul.f32 %v1438_v62, %v1423_v27 }
 0x1fa   : > { %v2063_v45 = vsel %vm2055_vm8, %v2038_v19, %v8598_v46  ;;  %v1299_v33 = vsel %vm1284_vm2, %v8602_v5, %v8111_v0  ;;  %v1549_v0 = vsel %vm1535_vm4, %v8157_v18, %v8382_v43 }
 0x1fb   : > { %v2128_v24 = vmul.f32 %v2092_v52, %v2063_v45  ;;  %1655 = vrot.lane.b32.xlu1 %v8301_v1, %s12564_s1  ;;  %1799 = vrot.lane.b32.xlu0 %v8127_v7, %s12550_s26  ;;  %v1434_v52 = vrot.slane %v8330_v8, %v8577_v60  ;;  %v6756_v30 = vpack.c.bf16 %v2127_v13, %v2119_v61 }
 0x1fc   : > { %6751 = vmatprep.subr.bf16.mxu1 %v6750_v3  ;;  %v1345_v3 = vmul.f32 %v1308_v49, %v1299_v33  ;;  %v1606_v26 = vmul.f32 %v1564_v48, %v1549_v0  ;;  %v1675_v61 = vsel %vm1661_vm5, %v8173_v25, %v8430_v20  ;;  %v1674_v20 = vsel %vm1661_vm5, %v8167_v21, %v8408_v54 }
 0x1fd   : > { %6753 = vmatpush1.bf16.msra.mxu1 %v6752_v15  ;;  %v8625_v19 = vpop.permute.xlu1 %1280  ;;  %v8629_v55 = vpop.permute.xlu0 %1405  ;;  %v6754_v40 = vpack.c.bf16 %v2128_v24, %v2120_v59  ;;  %v1472_v59 = vmul.f32 %v1438_v62, %v1422_v34  ;;  %v1686_v0 = vrot.slane %v8428_v14, %v8577_v60 }
 0x1fe   : > { %v1300_v9 = vsel %vm1284_vm2, %v8625_v19, %v8118_v4  ;;  %v1424_v43 = vsel %vm1409_vm3, %v8629_v55, %v8132_v10  ;;  %v1548_v4 = vsel %vm1535_vm4, %v8151_v17, %v8356_v23  ;;  %v1560_v10 = vrot.slane %v8380_v57, %v8577_v60 }
 0x1ff   : > { %v1353_v15 = vmul.f32 %v1308_v49, %v1300_v9  ;;  %1801 = vrot.lane.b32.xlu1 %v8139_v11, %s12550_s26  ;;  %1925 = vrot.lane.b32.xlu0 %v8127_v7, %s12552_s29  ;;  %v1471_v13 = vmul.f32 %v1434_v52, %v1424_v43  ;;  %v6694_v23 = vpack.c.bf16 %v1480_v16, %v1472_v59 }
 0x200   : > { %6755 = vmatprep.subr.bf16.mxu1 %v6754_v40  ;;  %v1598_v33 = vmul.f32 %v1564_v48, %v1548_v4 }
 0x201   : > { %v6692_v24 = vpack.c.bf16 %v1353_v15, %v1345_v3  ;;  %6757 = vmatpush1.bf16.msra.mxu1 %v6756_v30  ;;  %v8657_v49 = vpop.permute.xlu1 %1407  ;;  %v8659_v27 = vpop.permute.xlu0 %1531 }
 0x202   : > { %v1425_v45 = vsel %vm1409_vm3, %v8657_v49, %v8141_v12  ;;  %v1550_v12 = vsel %vm1535_vm4, %v8659_v27, %v8151_v17  ;;  %v6698_v9 = vpack.c.bf16 %v1606_v26, %v1598_v33 }
 0x203   : > { %v1479_v62 = vmul.f32 %v1434_v52, %v1425_v45  ;;  %1927 = vrot.lane.b32.xlu1 %v8139_v11, %s12552_s29  ;;  %2051 = vrot.lane.b32.xlu0 %v8127_v7, %s12554_s4  ;;  %v1690_v52 = vrot.slane %v8428_v14, %v8261_v2  ;;  %v1597_v3 = vmul.f32 %v1560_v10, %v1550_v12  ;;  %v6298_v12 = vld [vmem:[%s12541_s11 + $0x40] ss:$8 sm:$0xf]  ;;  %s7675_s29 = smov 16  }
 0x204   : > { %6693 = vmatpush1.bf16.msra.mxu0 %v6692_v24 }
 0x205   : > { %v6696_v40 = vpack.c.bf16 %v1479_v62, %v1471_v13  ;;  %6695 = vmatprep.subr.bf16.mxu0 %v6694_v23  ;;  %v8681_v34 = vpop.permute.xlu1 %1533  ;;  %v8683_v16 = vpop.permute.xlu0 %1657  ;;  %v1732_v30 = vmul.f32 %v1690_v52, %v1675_v61  ;;  %v1724_v48 = vmul.f32 %v1690_v52, %v1674_v20  ;;  %v2766_v13 = vld [vmem:[%s12576_s9] sm:$0xff]  ;;  %v1832_v62 = vrot.slane %v8509_v31, %v8261_v2 }
 0x206   : > { %v1551_v17 = vsel %vm1535_vm4, %v8681_v34, %v8157_v18  ;;  %v1676_v54 = vsel %vm1661_vm5, %v8683_v16, %v8167_v21  ;;  %v2423_v18 = vld [vmem:[%s12574_s0] sm:$0xff] }
 0x207   : > { %v1605_v15 = vmul.f32 %v1560_v10, %v1551_v17  ;;  %2053 = vrot.lane.b32.xlu1 %v8139_v11, %s12554_s4  ;;  %2177 = vrot.lane.b32.xlu0 %v8127_v7, %s12566_s3  ;;  %v1723_v26 = vmul.f32 %v1686_v0, %v1676_v54  ;;  %v6702_v21 = vpack.c.bf16 %v1732_v30, %v1724_v48  ;;  %v6299_v52 = vld [vmem:[%s12541_s11 + $0x40] ss:$8 sm:$0xf0] }
 0x208   : > { %6697 = vmatpush1.bf16.msra.mxu0 %v6696_v40  ;;  %v1815_v10 = vsel %vm1803_vm6, %v8467_v22, %v8191_v35  ;;  %v1814_v35 = vsel %vm1803_vm6, %v8453_v6, %v8183_v32  ;;  %v1817_v40 = vsel %vm1803_vm6, %v8199_v38, %v8467_v22  ;;  %v6706_v17 = vpack.c.bf16 %v8033_v47, %v8021_v42  ;;  %v2767_v22 = vld [vmem:[%s12576_s9 + $0x8] sm:$0xff]  ;;  %v12577_v30 = vld [vmem:[#allocation9_spill] sm:$0xff] }
 0x209   : > { %v6700_v43 = vpack.c.bf16 %v1605_v15, %v1597_v3  ;;  %6699 = vmatprep.subr.bf16.mxu0 %v6698_v9  ;;  %v8706_v59 = vpop.permute.xlu1 %1659  ;;  %v8708_v4 = vpop.permute.xlu0 %2153  ;;  %v1874_v20 = vmul.f32 %v1832_v62, %v1815_v10  ;;  %v1828_v32 = vrot.slane %v8509_v31, %v8577_v60  ;;  %v2424_v9 = vld [vmem:[%s12574_s0 + $0x8] sm:$0xff]  ;;  %v12578_v3 = vld [vmem:[#allocation10_spill] sm:$0xff]  ;;  %v1866_v54 = vmul.f32 %v1832_v62, %v1814_v35  ;;  %s12629_s0 = smov 113  }
 0x20a   : > { %12575 = vst [vmem:[#allocation46_spill] sm:$0xff] %v8706_v59  ;;  %v1677_v24 = vsel %vm1661_vm5, %v8706_v59, %v8173_v25  ;;  %v2794_v25 = vld [vmem:[%s12387_s12] sm:$0xff]  ;;  %v6708_v42 = vpack.c.bf16 %v12578_v3, %v12577_v30  ;;  %v8768_v48 = vor.u32 %v6299_v52, %v6298_v12  ;;  %v2080_v52 = vrot.slane %v8564_v29, %v8577_v60 }
 0x20b   : > { %v1731_v45 = vmul.f32 %v1686_v0, %v1677_v24  ;;  %2179 = vrot.lane.b32.xlu1 %v8139_v11, %s12566_s3  ;;  %2427 = vperm.xlu0 %7540, %v2423_v18   ;;  %v1941_v0 = vsel %vm1929_vm7, %v8483_v36, %v8217_v41  ;;  %v12579_v47 = vld [vmem:[#allocation15_spill] sm:$0xff]  ;;  %v12580_v41 = vld [vmem:[#allocation42_spill] sm:$0xff]  ;;  %v6710_v35 = vpack.c.bf16 %v1874_v20, %v1866_v54  ;;  %v12586_v54 = vld [vmem:[#allocation24_spill] sm:$0xff]  ;;  %s12488_s3 = smov 112  }
 0x20c   : > { %6701 = vmatpush1.bf16.msra.mxu0 %v6700_v43  ;;  %v1816_v15 = vsel %vm1803_vm6, %v12579_v47, %v8453_v6  ;;  %v1958_v18 = vrot.slane %v12580_v41, %v8261_v2  ;;  %v12582_v6 = vld [vmem:[#allocation20_spill] sm:$0xff]  ;;  %v2210_v20 = vrot.slane %v8768_v48, %v8261_v2 }
 0x20d   : > { %v6704_v23 = vpack.c.bf16 %v1731_v45, %v1723_v26  ;;  %6703 = vmatprep.subr.bf16.mxu0 %v6702_v21  ;;  %v8728_v33 = vpop.permute.xlu1 %2155  ;;  %v8730_v61 = vpop.permute.xlu0 %2157  ;;  %v1873_v26 = vmul.f32 %v1828_v32, %v1817_v40  ;;  %v1954_v45 = vrot.slane %v12580_v41, %v8577_v60  ;;  %v12581_v21 = vld [vmem:[#allocation38_spill] sm:$0xff]  ;;  %v1865_v12 = vmul.f32 %v1828_v32, %v1816_v15  ;;  %v12584_v40 = vld [vmem:[#allocation40_spill] sm:$0xff] }
 0x20e   : > { %v1940_v10 = vsel %vm1929_vm7, %v12581_v21, %v8201_v39  ;;  %v2084_v39 = vrot.slane %v8564_v29, %v8261_v2  ;;  %v2218_v15 = vrot.slane %v8768_v48, %v8273_v37 }
 0x20f   : > { %2770 = vperm.xlu1 %7541, %v2766_v13   ;;  %2798 = vperm.xlu0 %7540, %v2794_v25   ;;  %v1943_v13 = vsel %vm1929_vm7, %v12582_v6, %v8483_v36  ;;  %v12583_v25 = vld [vmem:[#allocation18_spill] sm:$0xff]  ;;  %v2067_v36 = vsel %vm2055_vm8, %v12584_v40, %v8247_v56  ;;  %v6712_v30 = vpack.c.bf16 %v1873_v26, %v1865_v12  ;;  %v12585_v56 = vld [vmem:[#allocation39_spill] sm:$0xff] }
 0x210   : > { %6705 = vmatpush1.bf16.msra.mxu0 %v6704_v23  ;;  %v1942_v62 = vsel %vm1929_vm7, %v12583_v25, %v12581_v21  ;;  %v2000_v23 = vmul.f32 %v1958_v18, %v1941_v0  ;;  %v1992_v0 = vmul.f32 %v1958_v18, %v1940_v10  ;;  %v2069_v18 = vsel %vm2055_vm8, %v12586_v54, %v12584_v40  ;;  %v12587_v12 = vld [vmem:[#allocation22_spill] sm:$0xff]  ;;  %v12595_v54 = vld [vmem:[#allocation31_spill] sm:$0xff] }
 0x211   : > { %6707 = vmatprep.subr.bf16.mxu0 %v6706_v17  ;;  %v2160_v43 = vpop.permute.xlu1 %2159  ;;  %v2162_v24 = vpop.permute.xlu0 %2161  ;;  %v2795_v17 = vld [vmem:[%s12387_s12 + $0x8] sm:$0xff]  ;;  %v1991_v3 = vmul.f32 %v1954_v45, %v1942_v62  ;;  %v2126_v21 = vmul.f32 %v2084_v39, %v2067_v36  ;;  %v2206_v62 = vrot.slane %v8768_v48, %v8577_v60 }
 0x212   : > { %v6714_v26 = vpack.c.bf16 %v2000_v23, %v1992_v0  ;;  %v2068_v23 = vsel %vm2055_vm8, %v12587_v12, %v12585_v56  ;;  %v2125_v0 = vmul.f32 %v2080_v52, %v2069_v18 }
 0x213   : > { %2432 = vperm.xlu1 %7541, %v2424_v9   ;;  %2775 = vperm.xlu0 %7540, %v2767_v22   ;;  %v1999_v9 = vmul.f32 %v1954_v45, %v1943_v13  ;;  %v2193_v45 = vsel %vm2181_vm9, %v8728_v33, %v2160_v43 }
 0x214   : > { %6709 = vmatpush1.bf16.msra.mxu0 %v6708_v42  ;;  %v2066_v42 = vsel %vm2055_vm8, %v12585_v56, %v8230_v50  ;;  %v2214_v50 = vrot.slane %v8768_v48, %v8280_v53 }
 0x215   : > { %6711 = vmatprep.subr.bf16.mxu0 %v6710_v35  ;;  %v2164_v32 = vpop.permute.xlu1 %2163  ;;  %v8798_v22 = vpop.permute.xlu0 %2165  ;;  %v6716_v35 = vpack.c.bf16 %v1999_v9, %v1991_v3  ;;  %v2118_v40 = vmul.f32 %v2084_v39, %v2066_v42  ;;  %v2192_v9 = vsel %vm2181_vm9, %v8708_v4, %v8730_v61  ;;  %v2252_v3 = vmul.f32 %v2210_v20, %v2193_v45 }
 0x216   : > { %v2191_v10 = vsel %vm2181_vm9, %v2160_v43, %v2164_v32  ;;  %v2188_v13 = vsel %vm2181_vm9, %v2162_v24, %v8798_v22  ;;  %v2190_v43 = vsel %vm2181_vm9, %v8730_v61, %v2162_v24  ;;  %v2244_v37 = vmul.f32 %v2210_v20, %v2192_v9 }
 0x217   : > { %2803 = vperm.xlu1 %7541, %v2795_v17   ;;  %v2246_v56 = vmul.f32 %v2218_v15, %v2188_v13  ;;  %v6718_v24 = vpack.c.bf16 %v2126_v21, %v2118_v40  ;;  %v2245_v53 = vmul.f32 %v2214_v50, %v2190_v43  ;;  %v12590_v13 = vld [vmem:[#allocation17_spill] sm:$0xff] }
 0x218   : > { %6713 = vmatpush1.bf16.msra.mxu0 %v6712_v30  ;;  %v2253_v30 = vmul.f32 %v2214_v50, %v2191_v10  ;;  %v6722_v45 = vpack.c.bf16 %v2252_v3, %v2244_v37  ;;  %v8893_v3 = vsub.s32 4, %v8237_v51 }
 0x219   : > { %6715 = vmatprep.subr.bf16.mxu0 %v6714_v26  ;;  %v8829_v36 = vpop.permute.xlu1 %2167  ;;  %v8831_v17 = vpop.permute.xlu0 %2149  ;;  %v2117_v26 = vmul.f32 %v2080_v52, %v2068_v23 }
 0x21a   : > { %12588 = vst [vmem:[#allocation9_spill] sm:$0xff] %v8831_v17  ;;  %v2189_v39 = vsel %vm2181_vm9, %v2164_v32, %v8829_v36  ;;  %v2194_v18 = vsel %vm2181_vm9, %v8831_v17, %v8708_v4  ;;  %v6760_v32 = vpack.c.bf16 %v2253_v30, %v2245_v53  ;;  %v8853_v4 = vld [vmem:[%s12535_s6] sm:$0xff]  ;;  %12592 = vst [vmem:[#allocation38_spill] sm:$0xff] %v8893_v3 }
 0x21b   : > { %v2254_v42 = vmul.f32 %v2218_v15, %v2189_v39  ;;  %v6720_v60 = vpack.c.bf16 %v2125_v0, %v2117_v26  ;;  %v2243_v15 = vmul.f32 %v2206_v62, %v2194_v18  ;;  %v8890_v39 = vsub.s32 5, %v8237_v51 }
 0x21c   : > { %6717 = vmatpush1.bf16.msra.mxu0 %v6716_v35 }
 0x21d   : > { %6719 = vmatprep.subr.bf16.mxu0 %v6718_v24  ;;  %v8844_v61 = vpop.permute.xlu1 %2151  ;;  %v1267_v10 = vpop.permute.xlu0 %1266  ;;  %v6758_v2 = vpack.c.bf16 %v2254_v42, %v2246_v56  ;;  %12591 = vst [vmem:[#allocation42_spill] sm:$0xff] %v8890_v39  ;;  %v12593_v24 = vld [vmem:[#allocation29_spill] sm:$0xff]  ;;  %v1328_v18 = vrot.slane %v8258_v63, %v8890_v39  ;;  %v1454_v17 = vrot.slane %v8330_v8, %v8890_v39 }
 0x21e   : > { %12589 = vst [vmem:[#allocation10_spill] sm:$0xff] %v8844_v61  ;;  %v2195_v52 = vsel %vm2181_vm9, %v8844_v61, %v8728_v33  ;;  %v8860_v33 = vld [vmem:[%s12535_s6 + $0x18] sm:$0xff] }
 0x21f   : > { %v2251_v21 = vmul.f32 %v2206_v62, %v2195_v52  ;;  %6759 = vmatprep.subr.bf16.mxu1 %v6758_v2  ;;  %v8868_v2 = vld [vmem:[%s12535_s6 + $0x10] sm:$0xff] }
 0x220   : > { %6721 = vmatpush1.bf16.msra.mxu0 %v6720_v60  ;;  %6761 = vmatpush1.bf16.msra.mxu1 %v6760_v32  ;;  %v1324_v32 = vrot.slane %v8258_v63, %v8893_v3 }
 0x221   : > { %v6724_v20 = vpack.c.bf16 %v2251_v21, %v2243_v15  ;;  %6723 = vmatprep.subr.bf16.mxu0 %v6722_v45  ;;  %v1269_v50 = vpop.permute.xlu1 %1268  ;;  %v8855_v53 = vpop.permute.xlu0 %1270  ;;  %v12594_v15 = vld [vmem:[#allocation27_spill] sm:$0xff] }
 0x222   : > { %v1292_v26 = vsel %vm1284_vm2, %v12593_v24, %v1269_v50  ;;  %v1289_v52 = vsel %vm1284_vm2, %v1267_v10, %v8855_v53  ;;  %v1291_v21 = vsel %vm1284_vm2, %v12594_v15, %v1267_v10  ;;  %v1450_v24 = vrot.slane %v8330_v8, %v8893_v3  ;;  %v12596_v15 = vld [vmem:[#allocation30_spill] sm:$0xff] }
 0x223   : > { %2584 = vmatmul.mubr.f32.vlgmr.msra.gmra.mrb[8].mxu1 %v8853_v4  ;;  %v1350_v12 = vmul.f32 %v1328_v18, %v1289_v52  ;;  %v1349_v25 = vmul.f32 %v1324_v32, %v1291_v21 }
 0x224   : > { %6725 = vmatpush1.bf16.msra.mxu0 %v6724_v20  ;;  %6303 = vmatprep.mubr.msk.f32.mxu1 %vm2435_vm1, %v8860_v33 }
 0x225   : > { %v1396_v37 = vpop.permute.xlu1 %1395  ;;  %v1394_v60 = vpop.permute.xlu0 %1393 }
 0x226   : > { %v1417_v10 = vsel %vm1409_vm3, %v12595_v54, %v1396_v37  ;;  %v1416_v1 = vsel %vm1409_vm3, %v12596_v15, %v1394_v60  ;;  %v12597_v15 = vld [vmem:[#allocation33_spill] sm:$0xff] }
 0x227   : > { %2507 = vmatmul.mubr.f32.vlgmr.msra.gmra.mrb[8].mxu0 %v8853_v4  ;;  %2590 = vmatmul.mubr.f32.gmra.mrb[10].mxu1 %v8868_v2  ;;  %v1483_v47 = vmul.f32 %v1450_v24, %v1417_v10  ;;  %v1475_v38 = vmul.f32 %v1450_v24, %v1416_v1 }
 0x228   : > { %6301 = vmatprep.mubr.msk.f32.mxu0 %vm2435_vm1, %v8860_v33  ;;  %6306 = vmatprep.mubr.msk.f32.mxu1 %vm2435_vm1, %v12590_v13 }
 0x229   : > { %v1522_v62 = vpop.permute.xlu1 %1521  ;;  %v8876_v35 = vpop.permute.xlu0 %1397 }
 0x22a   : > { %v1414_v6 = vsel %vm1409_vm3, %v1394_v60, %v8876_v35  ;;  %v1580_v60 = vrot.slane %v8380_v57, %v8890_v39 }
 0x22b   : > { %2513 = vmatmul.mubr.f32.gmra.mrb[10].mxu0 %v8868_v2  ;;  %v1476_v59 = vmul.f32 %v1454_v17, %v1414_v6 }
 0x22c   : > { %6304 = vmatprep.mubr.msk.f32.mxu0 %vm2435_vm1, %v12590_v13  ;;  %v1357_v13 = vmul.f32 %v1324_v32, %v1292_v26 }
 0x22d   : > { %v8881_v23 = vpop.permute.xlu1 %1647  ;;  %v1520_v40 = vpop.permute.xlu0 %1519 }
 0x22e   : > { %v6764_v52 = vpack.c.bf16 %v1357_v13, %v1349_v25  ;;  %v12598_v25 = vld [vmem:[#allocation35_spill] sm:$0xff]  ;;  %v6768_v13 = vpack.c.bf16 %v1483_v47, %v1475_v38  ;;  %v12600_v47 = vld [vmem:[#allocation37_spill] sm:$0xff] }
 0x22f   : > { %v1543_v6 = vsel %vm1535_vm4, %v12598_v25, %v1522_v62 }
 0x231   : > { %v8883_v43 = vpop.permute.xlu1 %1797  ;;  %v8885_v0 = vpop.permute.xlu0 %1523 }
 0x232   : > { %v1540_v1 = vsel %vm1535_vm4, %v1520_v40, %v8885_v0 }
 0x233   : > { %v1602_v10 = vmul.f32 %v1580_v60, %v1540_v1 }
 0x235   : > { %v8887_v9 = vpop.permute.xlu1 %1923  ;;  %v1646_v30 = vpop.permute.xlu0 %1645 }
 0x239   : > { %v8895_v56 = vpop.permute.xlu1 %2049  ;;  %v8897_v42 = vpop.permute.xlu0 %1649 }
 0x23a   : > { %v1666_v38 = vsel %vm1661_vm5, %v1646_v30, %v8897_v42 }
 0x23d   : > { %v8912_v45 = vpop.permute.xlu1 %1272  ;;  %v8914_v20 = vpop.permute.xlu0 %1791 }
 0x23e   : > { %v1290_v61 = vsel %vm1284_vm2, %v1269_v50, %v8912_v45 }
 0x23f   : > { %v1358_v26 = vmul.f32 %v1328_v18, %v1290_v61  ;;  %v1542_v61 = vsel %vm1535_vm4, %v12597_v15, %v1520_v40 }
 0x241   : > { %v8932_v11 = vpop.permute.xlu1 %1399  ;;  %v8934_v7 = vpop.permute.xlu0 %1795  ;;  %v6762_v50 = vpack.c.bf16 %v1358_v26, %v1350_v12  ;;  %v1576_v12 = vrot.slane %v8380_v57, %v8893_v3  ;;  %v12599_v26 = vld [vmem:[#allocation36_spill] sm:$0xff] }
 0x242   : > { %v1415_v54 = vsel %vm1409_vm3, %v1396_v37, %v8932_v11  ;;  %v1668_v40 = vsel %vm1661_vm5, %v12599_v26, %v1646_v30 }
 0x243   : > { %v1484_v18 = vmul.f32 %v1454_v17, %v1415_v54  ;;  %6763 = vmatprep.subr.bf16.mxu0 %v6762_v50  ;;  %v1601_v24 = vmul.f32 %v1576_v12, %v1542_v61  ;;  %v1706_v50 = vrot.slane %v8428_v14, %v8890_v39  ;;  %v1609_v54 = vmul.f32 %v1576_v12, %v1543_v6 }
 0x244   : > { %6765 = vmatpush1.bf16.msra.mxu0 %v6764_v52 }
 0x245   : > { %v8952_v37 = vpop.permute.xlu1 %1525  ;;  %v1918_v32 = vpop.permute.xlu0 %1917  ;;  %v6766_v21 = vpack.c.bf16 %v1484_v18, %v1476_v59  ;;  %v1702_v59 = vrot.slane %v8428_v14, %v8893_v3  ;;  %v6772_v18 = vpack.c.bf16 %v1609_v54, %v1601_v24  ;;  %v1728_v25 = vmul.f32 %v1706_v50, %v1666_v38  ;;  %v12603_v54 = vld [vmem:[#allocation32_spill] sm:$0xff] }
 0x246   : > { %v1541_v17 = vsel %vm1535_vm4, %v1522_v62, %v8952_v37  ;;  %v1669_v62 = vsel %vm1661_vm5, %v12600_v47, %v8881_v23  ;;  %v1806_v24 = vsel %vm1803_vm6, %v8914_v20, %v8934_v7  ;;  %v1844_v38 = vrot.slane %v8509_v31, %v8893_v3 }
 0x247   : > { %v1610_v52 = vmul.f32 %v1580_v60, %v1541_v17  ;;  %6767 = vmatprep.subr.bf16.mxu0 %v6766_v21  ;;  %v1727_v12 = vmul.f32 %v1702_v59, %v1668_v40  ;;  %v1735_v6 = vmul.f32 %v1702_v59, %v1669_v62  ;;  %v1848_v21 = vrot.slane %v8509_v31, %v8890_v39  ;;  %v12604_v62 = vld [vmem:[#allocation41_spill] sm:$0xff] }
 0x248   : > { %6769 = vmatpush1.bf16.msra.mxu0 %v6768_v13 }
 0x249   : > { %v8971_v15 = vpop.permute.xlu1 %1651  ;;  %v8973_v61 = vpop.permute.xlu0 %1921  ;;  %v6770_v60 = vpack.c.bf16 %v1610_v52, %v1602_v10  ;;  %v6776_v47 = vpack.c.bf16 %v1735_v6, %v1727_v12  ;;  %v12601_v10 = vld [vmem:[#allocation43_spill] sm:$0xff]  ;;  %v1974_v12 = vrot.slane %v12580_v41, %v8890_v39 }
 0x24a   : > { %v1667_v1 = vsel %vm1661_vm5, %v8881_v23, %v8971_v15  ;;  %v12602_v52 = vld [vmem:[#allocation19_spill] sm:$0xff] }
 0x24b   : > { %v1736_v30 = vmul.f32 %v1706_v50, %v1667_v1  ;;  %6771 = vmatprep.subr.bf16.mxu0 %v6770_v60  ;;  %v6778_v59 = vpack.c.bf16 %v12603_v54, %v12602_v52  ;;  %v1808_v60 = vsel %vm1803_vm6, %v12604_v62, %v8914_v20  ;;  %v1970_v52 = vrot.slane %v12580_v41, %v8893_v3 }
 0x24c   : > { %6773 = vmatpush1.bf16.msra.mxu0 %v6772_v18  ;;  %v1870_v18 = vmul.f32 %v1848_v21, %v1806_v24 }
 0x24d   : > { %v1794_v13 = vpop.permute.xlu1 %1793  ;;  %v2044_v17 = vpop.permute.xlu0 %2043  ;;  %v6774_v26 = vpack.c.bf16 %v1736_v30, %v1728_v25  ;;  %v1932_v30 = vsel %vm1929_vm7, %v1918_v32, %v8973_v61 }
 0x24e   : > { %v1807_v23 = vsel %vm1803_vm6, %v1794_v13, %v8883_v43  ;;  %v1809_v40 = vsel %vm1803_vm6, %v12601_v10, %v1794_v13  ;;  %v1869_v10 = vmul.f32 %v1844_v38, %v1808_v60  ;;  %v1996_v54 = vmul.f32 %v1974_v12, %v1932_v30 }
 0x24f   : > { %v1878_v50 = vmul.f32 %v1848_v21, %v1807_v23  ;;  %6775 = vmatprep.subr.bf16.mxu0 %v6774_v26  ;;  %v1877_v6 = vmul.f32 %v1844_v38, %v1809_v40  ;;  %v12605_v26 = vld [vmem:[#allocation11_spill] sm:$0xff]  ;;  %v1934_v40 = vsel %vm1929_vm7, %v8545_v44, %v1918_v32 }
 0x250   : > { %6777 = vmatpush1.bf16.msra.mxu0 %v6776_v47  ;;  %v12606_v47 = vld [vmem:[#allocation12_spill] sm:$0xff] }
 0x251   : > { %v1920_v1 = vpop.permute.xlu1 %1919  ;;  %v9001_v25 = vpop.permute.xlu0 %2047  ;;  %6779 = vmatprep.subr.bf16.mxu0 %v6778_v59  ;;  %v6780_v20 = vpack.c.bf16 %v12606_v47, %v12605_v26  ;;  %v6782_v23 = vpack.c.bf16 %v1878_v50, %v1870_v18  ;;  %v2100_v59 = vrot.slane %v8564_v29, %v8890_v39  ;;  %v6784_v47 = vpack.c.bf16 %v1877_v6, %v1869_v10 }
 0x252   : > { %v1933_v13 = vsel %vm1929_vm7, %v1920_v1, %v8887_v9  ;;  %v1935_v21 = vsel %vm1929_vm7, %v8572_v28, %v1920_v1  ;;  %v2058_v50 = vsel %vm2055_vm8, %v2044_v17, %v9001_v25  ;;  %v1995_v18 = vmul.f32 %v1970_v52, %v1934_v40  ;;  %v12607_v1 = vld [vmem:[#allocation44_spill] sm:$0xff] }
 0x253   : > { %v2004_v24 = vmul.f32 %v1974_v12, %v1933_v13  ;;  %v2003_v28 = vmul.f32 %v1970_v52, %v1935_v21  ;;  %v2096_v12 = vrot.slane %v8564_v29, %v8893_v3  ;;  %v2060_v30 = vsel %vm2055_vm8, %v12607_v1, %v2044_v17 }
 0x254   : > { %6781 = vmatpush1.bf16.msra.mxu0 %v6780_v20  ;;  %v2122_v6 = vmul.f32 %v2100_v59, %v2058_v50  ;;  %v9043_v10 = vsub.s32 6, %v8237_v51  ;;  %v9046_v52 = vsub.s32 7, %v8237_v51 }
 0x255   : > { %v2046_v62 = vpop.permute.xlu1 %2045  ;;  %v2170_v26 = vpop.permute.xlu0 %2169  ;;  %6783 = vmatprep.subr.bf16.mxu0 %v6782_v23  ;;  %v6786_v60 = vpack.c.bf16 %v2004_v24, %v1996_v54  ;;  %v6788_v21 = vpack.c.bf16 %v2003_v28, %v1995_v18  ;;  %v2121_v40 = vmul.f32 %v2096_v12, %v2060_v30  ;;  %v2222_v54 = vrot.slane %v8768_v48, %v8893_v3 }
 0x256   : > { %v2059_v38 = vsel %vm2055_vm8, %v2046_v62, %v8895_v56  ;;  %v2061_v44 = vsel %vm2055_vm8, %v8598_v46, %v2046_v62  ;;  %v2226_v46 = vrot.slane %v8768_v48, %v8890_v39  ;;  %12608 = vst [vmem:[#allocation40_spill] sm:$0xff] %v9043_v10  ;;  %12609 = vst [vmem:[#allocation39_spill] sm:$0xff] %v9046_v52 }
 0x257   : > { %v2130_v32 = vmul.f32 %v2100_v59, %v2059_v38  ;;  %v2129_v23 = vmul.f32 %v2096_v12, %v2061_v44  ;;  %v1336_v18 = vrot.slane %v8258_v63, %v9046_v52  ;;  %v1458_v30 = vrot.slane %v8330_v8, %v9043_v10 }
 0x258   : > { %6785 = vmatpush1.bf16.msra.mxu0 %v6784_v47 }
 0x259   : > { %v2172_v13 = vpop.permute.xlu1 %2171  ;;  %v9035_v20 = vpop.permute.xlu0 %2173  ;;  %6787 = vmatprep.subr.bf16.mxu0 %v6786_v60  ;;  %v6790_v17 = vpack.c.bf16 %v2130_v32, %v2122_v6  ;;  %v6792_v28 = vpack.c.bf16 %v2129_v23, %v2121_v40  ;;  %v1332_v60 = vrot.slane %v8258_v63, %v9043_v10  ;;  %v1462_v23 = vrot.slane %v8330_v8, %v9046_v52 }
 0x25a   : > { %v2187_v24 = vsel %vm2181_vm9, %v8829_v36, %v2172_v13  ;;  %v2184_v59 = vsel %vm2181_vm9, %v2170_v26, %v9035_v20  ;;  %v2186_v36 = vsel %vm2181_vm9, %v8798_v22, %v2170_v26 }
 0x25b   : > { %v2255_v50 = vmul.f32 %v2222_v54, %v2187_v24  ;;  %v2248_v44 = vmul.f32 %v2226_v46, %v2184_v59  ;;  %v2247_v12 = vmul.f32 %v2222_v54, %v2186_v36 }
 0x25c   : > { %6789 = vmatpush1.bf16.msra.mxu0 %v6788_v21 }
 0x25d   : > { %v9056_v62 = vpop.permute.xlu1 %2175  ;;  %v1275_v47 = vpop.permute.xlu0 %1274  ;;  %6791 = vmatprep.subr.bf16.mxu0 %v6790_v17  ;;  %v6796_v21 = vpack.c.bf16 %v2255_v50, %v2247_v12 }
 0x25e   : > { %v2185_v38 = vsel %vm2181_vm9, %v2172_v13, %v9056_v62  ;;  %v1285_v22 = vsel %vm1284_vm2, %v1275_v47, %v8602_v5  ;;  %v1287_v26 = vsel %vm1284_vm2, %v8855_v53, %v1275_v47 }
 0x25f   : > { %v2256_v32 = vmul.f32 %v2226_v46, %v2185_v38  ;;  %v1351_v53 = vmul.f32 %v1332_v60, %v1287_v26  ;;  %v1352_v46 = vmul.f32 %v1336_v18, %v1285_v22  ;;  %v1714_v22 = vrot.slane %v8428_v14, %v9046_v52 }
 0x260   : > { %6793 = vmatpush1.bf16.msra.mxu0 %v6792_v28  ;;  %v1588_v28 = vrot.slane %v8380_v57, %v9046_v52 }
 0x261   : > { %v1277_v1 = vpop.permute.xlu1 %1276  ;;  %v1402_v6 = vpop.permute.xlu0 %1401  ;;  %v6794_v13 = vpack.c.bf16 %v2256_v32, %v2248_v44 }
 0x262   : > { %v1286_v63 = vsel %vm1284_vm2, %v1277_v1, %v8625_v19  ;;  %v1288_v5 = vsel %vm1284_vm2, %v8912_v45, %v1277_v1  ;;  %v1410_v40 = vsel %vm1409_vm3, %v1402_v6, %v8629_v55  ;;  %v1412_v19 = vsel %vm1409_vm3, %v8876_v35, %v1402_v6 }
 0x263   : > { %v1359_v24 = vmul.f32 %v1332_v60, %v1288_v5  ;;  %v1360_v17 = vmul.f32 %v1336_v18, %v1286_v63  ;;  %6795 = vmatprep.subr.bf16.mxu0 %v6794_v13  ;;  %v1584_v55 = vrot.slane %v8380_v57, %v9043_v10  ;;  %v1477_v35 = vmul.f32 %v1458_v30, %v1412_v19  ;;  %v12610_v5 = vld [vmem:[#allocation46_spill] sm:$0xff] }
 0x264   : > { %6797 = vmatpush1.bf16.msra.mxu0 %v6796_v21  ;;  %v1478_v50 = vmul.f32 %v1462_v23, %v1410_v40 }
 0x265   : > { %v6800_v54 = vpack.c.bf16 %v1359_v24, %v1351_v53  ;;  %v1404_v59 = vpop.permute.xlu1 %1403  ;;  %v1528_v45 = vpop.permute.xlu0 %1527  ;;  %v6798_v36 = vpack.c.bf16 %v1360_v17, %v1352_v46 }
 0x266   : > { %v1411_v8 = vsel %vm1409_vm3, %v1404_v59, %v8657_v49  ;;  %v1413_v47 = vsel %vm1409_vm3, %v8932_v11, %v1404_v59  ;;  %v1536_v49 = vsel %vm1535_vm4, %v1528_v45, %v8659_v27  ;;  %v1538_v11 = vsel %vm1535_vm4, %v8885_v0, %v1528_v45  ;;  %v12611_v45 = vld [vmem:[#allocation16_spill] sm:$0xff] }
 0x267   : > { %v1485_v38 = vmul.f32 %v1458_v30, %v1413_v47  ;;  %v1486_v44 = vmul.f32 %v1462_v23, %v1411_v8  ;;  %2661 = vmatmul.mubr.f32.vlgmr.msra.gmra.mrb[12].mxu0 %v8853_v4  ;;  %6799 = vmatprep.subr.bf16.mxu1 %v6798_v36  ;;  %v1710_v0 = vrot.slane %v8428_v14, %v9043_v10  ;;  %v12612_v8 = vld [vmem:[#allocation15_spill] sm:$0xff] }
 0x268   : > { %6305 = vmatprep.mubr.msk.f32.mxu0 %vm2435_vm1, %v8860_v33  ;;  %6801 = vmatpush1.bf16.msra.mxu1 %v6800_v54  ;;  %v1603_v26 = vmul.f32 %v1584_v55, %v1538_v11  ;;  %v1604_v1 = vmul.f32 %v1588_v28, %v1536_v49  ;;  %v1856_v59 = vrot.slane %v8509_v31, %v9046_v52 }
 0x269   : > { %v6804_v32 = vpack.c.bf16 %v1485_v38, %v1477_v35  ;;  %v1530_v57 = vpop.permute.xlu1 %1529  ;;  %v1654_v60 = vpop.permute.xlu0 %1653  ;;  %v6802_v18 = vpack.c.bf16 %v1486_v44, %v1478_v50  ;;  %v12614_v35 = vld [vmem:[#allocation14_spill] sm:$0xff]  ;;  %v1852_v38 = vrot.slane %v8509_v31, %v9043_v10 }
 0x26a   : > { %v1537_v12 = vsel %vm1535_vm4, %v1530_v57, %v8681_v34  ;;  %v1539_v27 = vsel %vm1535_vm4, %v8952_v37, %v1530_v57  ;;  %v1662_v34 = vsel %vm1661_vm5, %v1654_v60, %v8683_v16  ;;  %v1664_v37 = vsel %vm1661_vm5, %v8897_v42, %v1654_v60  ;;  %v12615_v57 = vld [vmem:[#allocation20_spill] sm:$0xff] }
 0x26b   : > { %v1611_v30 = vmul.f32 %v1584_v55, %v1539_v27  ;;  %v1612_v6 = vmul.f32 %v1588_v28, %v1537_v12  ;;  %2667 = vmatmul.mubr.f32.gmra.mrb[14].mxu0 %v8868_v2  ;;  %6803 = vmatprep.subr.bf16.mxu1 %v6802_v18  ;;  %v1729_v46 = vmul.f32 %v1710_v0, %v1664_v37  ;;  %v12613_v28 = vld [vmem:[#allocation13_spill] sm:$0xff]  ;;  %v12616_v12 = vld [vmem:[#allocation18_spill] sm:$0xff]  ;;  %vm6210_vm4 = vcmask 516096  }
 0x26c   : > { %6805 = vmatpush1.bf16.msra.mxu1 %v6804_v32  ;;  %v1730_v16 = vmul.f32 %v1714_v22, %v1662_v34  ;;  %v6814_v50 = vpack.c.bf16 %v12614_v35, %v12613_v28  ;;  %v1982_v32 = vrot.slane %v12580_v41, %v9046_v52  ;;  %v12617_v27 = vld [vmem:[#allocation34_spill] sm:$0xff]  ;;  %v2230_v28 = vrot.slane %v8768_v48, %v9043_v10 }
 0x26d   : > { %v6808_v13 = vpack.c.bf16 %v1611_v30, %v1603_v26  ;;  %v1656_v21 = vpop.permute.xlu1 %1655  ;;  %v1800_v63 = vpop.permute.xlu0 %1799  ;;  %v6806_v14 = vpack.c.bf16 %v1612_v6, %v1604_v1  ;;  %v1978_v6 = vrot.slane %v12580_v41, %v9043_v10 }
 0x26e   : > { %v1663_v23 = vsel %vm1661_vm5, %v1656_v21, %v12610_v5  ;;  %v1665_v53 = vsel %vm1661_vm5, %v8971_v15, %v1656_v21  ;;  %v1818_v15 = vsel %vm1803_vm6, %v1800_v63, %v12612_v8  ;;  %v1804_v49 = vsel %vm1803_vm6, %v8934_v7, %v1800_v63  ;;  %v12619_v63 = vld [vmem:[#allocation24_spill] sm:$0xff]  ;;  %v12622_v8 = vld [vmem:[#allocation9_spill] sm:$0xff] }
 0x26f   : > { %v1737_v24 = vmul.f32 %v1710_v0, %v1665_v53  ;;  %v1738_v17 = vmul.f32 %v1714_v22, %v1663_v23  ;;  %6807 = vmatprep.subr.bf16.mxu1 %v6806_v14  ;;  %v1872_v11 = vmul.f32 %v1856_v59, %v1818_v15  ;;  %v12618_v0 = vld [vmem:[#allocation28_spill] sm:$0xff]  ;;  %v1871_v30 = vmul.f32 %v1852_v38, %v1804_v49  ;;  %v12620_v23 = vld [vmem:[#allocation22_spill] sm:$0xff] }
 0x270   : > { %6809 = vmatpush1.bf16.msra.mxu1 %v6808_v13  ;;  %v6816_v22 = vpack.c.bf16 %v12618_v0, %v12617_v27  ;;  %v2108_v21 = vrot.slane %v8564_v29, %v9046_v52 }
 0x271   : > { %v6812_v42 = vpack.c.bf16 %v1737_v24, %v1729_v46  ;;  %v1802_v40 = vpop.permute.xlu1 %1801  ;;  %v1926_v19 = vpop.permute.xlu0 %1925  ;;  %v6810_v54 = vpack.c.bf16 %v1738_v17, %v1730_v16  ;;  %v2104_v17 = vrot.slane %v8564_v29, %v9043_v10 }
 0x272   : > { %v1819_v36 = vsel %vm1803_vm6, %v1802_v40, %v12611_v45  ;;  %v1805_v47 = vsel %vm1803_vm6, %v8883_v43, %v1802_v40  ;;  %v1944_v31 = vsel %vm1929_vm7, %v1926_v19, %v12616_v12  ;;  %v1930_v37 = vsel %vm1929_vm7, %v8973_v61, %v1926_v19 }
 0x273   : > { %6811 = vmatprep.subr.bf16.mxu1 %v6810_v54  ;;  %v1880_v55 = vmul.f32 %v1856_v59, %v1819_v36  ;;  %v1879_v18 = vmul.f32 %v1852_v38, %v1805_v47  ;;  %v1998_v13 = vmul.f32 %v1982_v32, %v1944_v31  ;;  %v1997_v24 = vmul.f32 %v1978_v6, %v1930_v37  ;;  %v12621_v59 = vld [vmem:[#allocation10_spill] sm:$0xff] }
 0x274   : > { %6813 = vmatpush1.bf16.msra.mxu1 %v6812_v42  ;;  %v2234_v54 = vrot.slane %v8768_v48, %v9046_v52 }
 0x275   : > { %v1928_v44 = vpop.permute.xlu1 %1927  ;;  %6815 = vmatprep.subr.bf16.mxu1 %v6814_v50  ;;  %v2052_v60 = vpop.permute.xlu0 %2051  ;;  %v6818_v1 = vpack.c.bf16 %v1880_v55, %v1872_v11  ;;  %v6820_v14 = vpack.c.bf16 %v1879_v18, %v1871_v30 }
 0x276   : > { %v1945_v43 = vsel %vm1929_vm7, %v1928_v44, %v12615_v57  ;;  %v1931_v7 = vsel %vm1929_vm7, %v8887_v9, %v1928_v44  ;;  %v2070_v41 = vsel %vm2055_vm8, %v2052_v60, %v12620_v23  ;;  %v2056_v40 = vsel %vm2055_vm8, %v9001_v25, %v2052_v60 }
 0x277   : > { %v2006_v26 = vmul.f32 %v1982_v32, %v1945_v43  ;;  %v2005_v5 = vmul.f32 %v1978_v6, %v1931_v7  ;;  %v2124_v19 = vmul.f32 %v2108_v21, %v2070_v41  ;;  %v2123_v55 = vmul.f32 %v2104_v17, %v2056_v40 }
 0x278   : > { %6817 = vmatpush1.bf16.msra.mxu1 %v6816_v22 }
 0x279   : > { %v2054_v34 = vpop.permute.xlu1 %2053  ;;  %6819 = vmatprep.subr.bf16.mxu1 %v6818_v1  ;;  %v2178_v46 = vpop.permute.xlu0 %2177  ;;  %v6822_v16 = vpack.c.bf16 %v2006_v26, %v1998_v13  ;;  %v6824_v45 = vpack.c.bf16 %v2005_v5, %v1997_v24 }
 0x27a   : > { %v2071_v9 = vsel %vm2055_vm8, %v2054_v34, %v12619_v63  ;;  %v2057_v53 = vsel %vm2055_vm8, %v8895_v56, %v2054_v34  ;;  %v2196_v29 = vsel %vm2181_vm9, %v2178_v46, %v12622_v8  ;;  %v2182_v35 = vsel %vm2181_vm9, %v9035_v20, %v2178_v46 }
 0x27b   : > { %v2132_v61 = vmul.f32 %v2108_v21, %v2071_v9  ;;  %v2131_v36 = vmul.f32 %v2104_v17, %v2057_v53  ;;  %v2250_v50 = vmul.f32 %v2234_v54, %v2196_v29  ;;  %v2249_v11 = vmul.f32 %v2230_v28, %v2182_v35  ;;  %v2953_v35 = vld [vmem:[%s12623_s2 + $0x18] sm:$0xff] }
 0x27c   : > { %6821 = vmatpush1.bf16.msra.mxu1 %v6820_v14 }
 0x27d   : > { %v2180_v42 = vpop.permute.xlu1 %2179  ;;  %6823 = vmatprep.subr.bf16.mxu1 %v6822_v16  ;;  %v6826_v47 = vpack.c.bf16 %v2132_v61, %v2124_v19  ;;  %v6828_v38 = vpack.c.bf16 %v2131_v36, %v2123_v55 }
 0x27e   : > { %v2197_v56 = vsel %vm2181_vm9, %v2180_v42, %v12621_v59  ;;  %v2183_v15 = vsel %vm2181_vm9, %v9056_v62, %v2180_v42 }
 0x27f   : > { %v2258_v25 = vmul.f32 %v2234_v54, %v2197_v56  ;;  %v2257_v44 = vmul.f32 %v2230_v28, %v2183_v15  ;;  %v2951_v28 = vld [vmem:[%s12623_s2 + $0x8] sm:$0xff] }
 0x280   : > { %6825 = vmatpush1.bf16.msra.mxu1 %v6824_v45 }
 0x281   : > { %6827 = vmatprep.subr.bf16.mxu1 %v6826_v47  ;;  %v6830_v49 = vpack.c.bf16 %v2258_v25, %v2250_v50  ;;  %v6832_v62 = vpack.c.bf16 %v2257_v44, %v2249_v11  ;;  %v2950_v50 = vld [vmem:[%s12623_s2] sm:$0xff]  ;;  %v2952_v44 = vld [vmem:[%s12623_s2 + $0x10] sm:$0xff]  ;;  %v2957_v11 = vld [vmem:[%s12623_s2 + $0x38] sm:$0xff] }
 0x284   : > { %6829 = vmatpush1.bf16.msra.mxu1 %v6828_v38  ;;  %v6834_v38 = vpack.c.bf16 %v2953_v35, %v2951_v28  ;;  %v2978_v35 = vld [vmem:[%s12623_s2 + $0xe0] sm:$0xff] }
 0x285   : > { %6831 = vmatprep.subr.bf16.mxu1 %v6830_v49  ;;  %v2955_v49 = vld [vmem:[%s12623_s2 + $0x28] sm:$0xff] }
 0x286   : > { %6835 = vmatprep.subr.bf16.mxu0 %v6834_v38  ;;  %v2983_v38 = vld [vmem:[%s12623_s2 + $0x108] sm:$0xff] }
 0x288   : > { %6833 = vmatpush1.bf16.msra.mxu1 %v6832_v62  ;;  %v6836_v62 = vpack.c.bf16 %v2952_v44, %v2950_v50  ;;  %v2980_v50 = vld [vmem:[%s12623_s2 + $0xf0] sm:$0xff]  ;;  %v2985_v44 = vld [vmem:[%s12623_s2 + $0x118] sm:$0xff] }
 0x28a   : > { %v9201_v48 = vpop.permute.xlu0 %2427  ;;  %6837 = vmatpush1.bf16.msra.mxu0 %v6836_v62  ;;  %v2982_v62 = vld [vmem:[%s12623_s2 + $0x100] sm:$0xff] }
 0x28b   : > { %2738 = vmatmul.mubr.f32.vlgmr.msra.gmra.mrb[12].mxu1 %v8853_v4 }
 0x28c   : > { %6307 = vmatprep.mubr.msk.f32.mxu1 %vm2435_vm1, %v8860_v33 }
 0x28e   : > { %v9203_v20 = vpop.permute.xlu1 %2770  ;;  %v9207_v18 = vpop.permute.xlu0 %2798 }
 0x28f   : > { %2744 = vmatmul.mubr.f32.gmra.mrb[14].mxu1 %v8868_v2 }
 0x292   : > { %v9209_v12 = vpop.permute.xlu1 %2432  ;;  %v9219_v23 = vpop.permute.xlu0 %2775 }
 0x296   : > { %v9240_v56 = vpop.permute.xlu1 %2803 }
 0x2f6   : > { %v2585_v32 = vpop.f32.mrb[8].mxu1 }
 0x2f7   : > { %v2586_v57 = vadd.f32 %v2585_v32, %v9201_v48  ;;  %v2587_v43 = vpop.f32.mrb[9].mxu1  ;;  %v6838_v32 = vpack.c.bf16 %v2957_v11, %v2955_v49  ;;  %v6864_v49 = vpack.c.bf16 %v2980_v50, %v2978_v35  ;;  %v6866_v11 = vpack.c.bf16 %v2985_v44, %v2983_v38 }
 0x2f8   : > { %v2588_v60 = vadd.f32 %v2587_v43, %v9201_v48  ;;  %v2956_v43 = vld [vmem:[%s12623_s2 + $0x30] sm:$0xff] }
 0x2f9   : > { %v2752_v4 = vmax.f32 %v2586_v57, 0.0  ;;  %v2954_v57 = vld [vmem:[%s12623_s2 + $0x20] sm:$0xff]  ;;  %6839 = vmatprep.subr.bf16.mxu0 %v6838_v32  ;;  %v2984_v32 = vld [vmem:[%s12623_s2 + $0x110] sm:$0xff] }
 0x2fa   : > { %v2753_v31 = vmax.f32 %v2588_v60, 0.0  ;;  %v2508_v27 = vpop.f32.mrb[8].mxu0  ;;  %v2591_v33 = vpop.f32.mrb[10].mxu1  ;;  %v2959_v60 = vld [vmem:[%s12623_s2 + $0x48] sm:$0xff] }
 0x2fb   : > { %v2509_v2 = vadd.f32 %v2508_v27, %v9201_v48  ;;  %v2510_v0 = vpop.f32.mrb[9].mxu0  ;;  %v2592_v22 = vadd.f32 %v2591_v33, %v9209_v12  ;;  %v2593_v7 = vpop.f32.mrb[11].mxu1  ;;  %v2780_v34 = vmul.f32 %v9203_v20, %v2752_v4  ;;  %v2961_v4 = vld [vmem:[%s12623_s2 + $0x58] sm:$0xff]  ;;  %v2958_v33 = vld [vmem:[%s12623_s2 + $0x40] sm:$0xff] }
 0x2fc   : > { %v2511_v26 = vadd.f32 %v2510_v0, %v9201_v48  ;;  %v2594_v1 = vadd.f32 %v2593_v7, %v9209_v12  ;;  %v2781_v30 = vmul.f32 %v9203_v20, %v2753_v31  ;;  %v6840_v31 = vpack.c.bf16 %v2956_v43, %v2954_v57  ;;  %v2963_v0 = vld [vmem:[%s12623_s2 + $0x68] sm:$0xff]  ;;  %v2989_v43 = vld [vmem:[%s12623_s2 + $0x138] sm:$0xff] }
 0x2fd   : > { %v2750_v6 = vmax.f32 %v2509_v2, 0.0  ;;  %v2760_v13 = vmax.f32 %v2592_v22, 0.0  ;;  %v9231_v17 = vadd.f32 %v9207_v18, %v2780_v34  ;;  %v6842_v27 = vpack.c.bf16 %v2961_v4, %v2959_v60  ;;  %v2960_v2 = vld [vmem:[%s12623_s2 + $0x50] sm:$0xff]  ;;  %v2965_v22 = vld [vmem:[%s12623_s2 + $0x78] sm:$0xff]  ;;  %v2987_v57 = vld [vmem:[%s12623_s2 + $0x128] sm:$0xff] }
 0x2fe   : > { %v2751_v37 = vmax.f32 %v2511_v26, 0.0  ;;  %v2761_v21 = vmax.f32 %v2594_v1, 0.0  ;;  %v2514_v63 = vpop.f32.mrb[10].mxu0  ;;  %v9224_v61 = vadd.f32 %v9207_v18, %v2781_v30  ;;  %6841 = vmatpush1.bf16.msra.mxu0 %v6840_v31  ;;  %v6844_v7 = vpack.c.bf16 %v2960_v2, %v2958_v33  ;;  %v2962_v1 = vld [vmem:[%s12623_s2 + $0x60] sm:$0xff]  ;;  %v2964_v30 = vld [vmem:[%s12623_s2 + $0x70] sm:$0xff]  ;;  %v2969_v34 = vld [vmem:[%s12623_s2 + $0x98] sm:$0xff] }
 0x2ff   : > { %v2778_v9 = vmul.f32 %v9203_v20, %v2750_v6  ;;  %v2515_v14 = vadd.f32 %v2514_v63, %v9209_v12  ;;  %v2516_v5 = vpop.f32.mrb[11].mxu0  ;;  %v2788_v40 = vmul.f32 %v9219_v23, %v2760_v13  ;;  %6843 = vmatprep.subr.bf16.mxu0 %v6842_v27  ;;  %v6846_v26 = vpack.c.bf16 %v2965_v22, %v2963_v0  ;;  %v2967_v6 = vld [vmem:[%s12623_s2 + $0x88] sm:$0xff]  ;;  %v2968_v63 = vld [vmem:[%s12623_s2 + $0x90] sm:$0xff]  ;;  %v2986_v31 = vld [vmem:[%s12623_s2 + $0x120] sm:$0xff] }
 0x300   : > { %v2779_v41 = vmul.f32 %v9203_v20, %v2751_v37  ;;  %v2517_v53 = vadd.f32 %v2516_v5, %v9209_v12  ;;  %v2789_v16 = vmul.f32 %v9219_v23, %v2761_v21  ;;  %v6848_v37 = vpack.c.bf16 %v2964_v30, %v2962_v1  ;;  %v2966_v21 = vld [vmem:[%s12623_s2 + $0x80] sm:$0xff]  ;;  %v2988_v27 = vld [vmem:[%s12623_s2 + $0x130] sm:$0xff]  ;;  %v2991_v33 = vld [vmem:[%s12623_s2 + $0x148] sm:$0xff] }
 0x301   : > { %v9227_v46 = vadd.f32 %v9207_v18, %v2778_v9  ;;  %v2758_v24 = vmax.f32 %v2515_v14, 0.0  ;;  %v9253_v15 = vadd.f32 %v9240_v56, %v2788_v40  ;;  %v6850_v13 = vpack.c.bf16 %v2969_v34, %v2967_v6  ;;  %v2971_v9 = vld [vmem:[%s12623_s2 + $0xa8] sm:$0xff]  ;;  %v2973_v14 = vld [vmem:[%s12623_s2 + $0xb8] sm:$0xff] }
 0x302   : > { %v9234_v42 = vadd.f32 %v9207_v18, %v2779_v41  ;;  %v2759_v19 = vmax.f32 %v2517_v53, 0.0  ;;  %v9246_v8 = vadd.f32 %v9240_v56, %v2789_v16  ;;  %6845 = vmatpush1.bf16.msra.mxu0 %v6844_v7  ;;  %v6852_v5 = vpack.c.bf16 %v2968_v63, %v2966_v21  ;;  %v2970_v53 = vld [vmem:[%s12623_s2 + $0xa0] sm:$0xff]  ;;  %v2972_v16 = vld [vmem:[%s12623_s2 + $0xb0] sm:$0xff]  ;;  %v2977_v40 = vld [vmem:[%s12623_s2 + $0xd8] sm:$0xff] }
 0x303   : > { %v7547_v54 = vpack.i.bf16 %v9227_v46, %v9224_v61  ;;  %v2786_v59 = vmul.f32 %v9219_v23, %v2758_v24  ;;  %6847 = vmatprep.subr.bf16.mxu0 %v6846_v26  ;;  %v6854_v41 = vpack.c.bf16 %v2973_v14, %v2971_v9  ;;  %v2975_v24 = vld [vmem:[%s12623_s2 + $0xc8] sm:$0xff]  ;;  %v6868_v60 = vpack.c.bf16 %v2984_v32, %v2982_v62  ;;  %v2993_v2 = vld [vmem:[%s12623_s2 + $0x158] sm:$0xff]  ;;  %v2990_v7 = vld [vmem:[%s12623_s2 + $0x140] sm:$0xff] }
 0x304   : > { %v7542_v45 = vpack.i.bf16 %v9231_v17, %v9234_v42  ;;  %v2787_v36 = vmul.f32 %v9219_v23, %v2759_v19  ;;  %v6856_v19 = vpack.c.bf16 %v2972_v16, %v2970_v53  ;;  %v6870_v4 = vpack.c.bf16 %v2989_v43, %v2987_v57  ;;  %v2992_v26 = vld [vmem:[%s12623_s2 + $0x150] sm:$0xff]  ;;  %v2995_v1 = vld [vmem:[%s12623_s2 + $0x168] sm:$0xff]  ;;  %v2997_v30 = vld [vmem:[%s12623_s2 + $0x178] sm:$0xff] }
 0x305   : > { %v9249_v29 = vadd.f32 %v9240_v56, %v2786_v59  ;;  %7548 = vrot.lane.b32.xlu1 %v7547_v54, %s12550_s26  ;;  %v6858_v54 = vpack.c.bf16 %v2977_v40, %v2975_v24  ;;  %v2974_v59 = vld [vmem:[%s12623_s2 + $0xc0] sm:$0xff]  ;;  %v6872_v0 = vpack.c.bf16 %v2988_v27, %v2986_v31  ;;  %v6874_v22 = vpack.c.bf16 %v2993_v2, %v2991_v33  ;;  %v2999_v63 = vld [vmem:[%s12623_s2 + $0x188] sm:$0xff]  ;;  %v3001_v9 = vld [vmem:[%s12623_s2 + $0x198] sm:$0xff] }
 0x306   : > { %v9256_v25 = vadd.f32 %v9240_v56, %v2787_v36  ;;  %7543 = vrot.lane.b32.xlu0 %v7542_v45, %s12550_s26  ;;  %6849 = vmatpush1.bf16.msra.mxu0 %v6848_v37  ;;  %v2976_v45 = vld [vmem:[%s12623_s2 + $0xd0] sm:$0xff]  ;;  %v2979_v36 = vld [vmem:[%s12623_s2 + $0xe8] sm:$0xff]  ;;  %v6876_v6 = vpack.c.bf16 %v2992_v26, %v2990_v7  ;;  %v6878_v34 = vpack.c.bf16 %v2997_v30, %v2995_v1  ;;  %v2994_v37 = vld [vmem:[%s12623_s2 + $0x160] sm:$0xff] }
 0x307   : > { %v7552_v47 = vpack.i.bf16 %v9249_v29, %v9246_v8  ;;  %6851 = vmatprep.subr.bf16.mxu0 %v6850_v13  ;;  %v2996_v13 = vld [vmem:[%s12623_s2 + $0x170] sm:$0xff]  ;;  %v2998_v53 = vld [vmem:[%s12623_s2 + $0x180] sm:$0xff]  ;;  %v3003_v40 = vld [vmem:[%s12623_s2 + $0x1a8] sm:$0xff] }
 0x308   : > { %v7557_v55 = vpack.i.bf16 %v9253_v15, %v9256_v25  ;;  %v3000_v16 = vld [vmem:[%s12623_s2 + $0x190] sm:$0xff]  ;;  %v3009_v62 = vld [vmem:[%s12623_s2 + $0x1d8] sm:$0xff]  ;;  %v3006_v32 = vld [vmem:[%s12623_s2 + $0x1c0] sm:$0xff] }
 0x309   : > { %7553 = vrot.lane.b32.xlu1 %v7552_v47, %s12550_s26  ;;  %v2981_v47 = vld [vmem:[%s12623_s2 + $0xf8] sm:$0xff]  ;;  %v3010_v26 = vld [vmem:[%s12623_s2 + $0x1e0] sm:$0xff] }
 0x30a   : > { %7558 = vrot.lane.b32.xlu0 %v7557_v55, %s12550_s26  ;;  %6853 = vmatpush1.bf16.msra.mxu0 %v6852_v5  ;;  %v6860_v55 = vpack.c.bf16 %v2976_v45, %v2974_v59  ;;  %v6862_v28 = vpack.c.bf16 %v2981_v47, %v2979_v36  ;;  %v6880_v5 = vpack.c.bf16 %v2996_v13, %v2994_v37  ;;  %v3002_v36 = vld [vmem:[%s12623_s2 + $0x1a0] sm:$0xff]  ;;  %v3004_v47 = vld [vmem:[%s12623_s2 + $0x1b0] sm:$0xff]  ;;  %v3013_v7 = vld [vmem:[%s12623_s2 + $0x1f8] sm:$0xff] }
 0x30b   : > { %6855 = vmatprep.subr.bf16.mxu0 %v6854_v41  ;;  %v6882_v41 = vpack.c.bf16 %v3001_v9, %v2999_v63  ;;  %v6884_v59 = vpack.c.bf16 %v3000_v16, %v2998_v53 }
 0x30e   : > { %6857 = vmatpush1.bf16.msra.mxu0 %v6856_v19  ;;  %v3005_v19 = vld [vmem:[%s12623_s2 + $0x1b8] sm:$0xff] }
 0x30f   : > { %6859 = vmatprep.subr.bf16.mxu0 %v6858_v54  ;;  %v6886_v45 = vpack.c.bf16 %v3005_v19, %v3003_v40 }
 0x312   : > { %6861 = vmatpush1.bf16.msra.mxu0 %v6860_v55  ;;  %v6888_v55 = vpack.c.bf16 %v3004_v47, %v3002_v36 }
 0x313   : > { %6863 = vmatprep.subr.bf16.mxu0 %v6862_v28 }
 0x316   : > { %6865 = vmatpush1.bf16.msra.mxu0 %v6864_v49 }
 0x317   : > { %6867 = vmatprep.subr.bf16.mxu0 %v6866_v11  ;;  %v3007_v11 = vld [vmem:[%s12623_s2 + $0x1c8] sm:$0xff] }
 0x31a   : > { %6869 = vmatpush1.bf16.msra.mxu0 %v6868_v60  ;;  %v6890_v60 = vpack.c.bf16 %v3009_v62, %v3007_v11 }
 0x31b   : > { %6871 = vmatprep.subr.bf16.mxu0 %v6870_v4  ;;  %v3008_v4 = vld [vmem:[%s12623_s2 + $0x1d0] sm:$0xff] }
 0x31c   : > { %v6892_v27 = vpack.c.bf16 %v3008_v4, %v3006_v32 }
 0x31e   : > { %6873 = vmatpush1.bf16.msra.mxu0 %v6872_v0 }
 0x31f   : > { %6875 = vmatprep.subr.bf16.mxu0 %v6874_v22  ;;  %v3011_v22 = vld [vmem:[%s12623_s2 + $0x1e8] sm:$0xff] }
 0x322   : > { %6877 = vmatpush1.bf16.msra.mxu0 %v6876_v6  ;;  %v6894_v6 = vpack.c.bf16 %v3013_v7, %v3011_v22 }
 0x323   : > { %6879 = vmatprep.subr.bf16.mxu0 %v6878_v34  ;;  %v3012_v34 = vld [vmem:[%s12623_s2 + $0x1f0] sm:$0xff] }
 0x324   : > { %v6896_v9 = vpack.c.bf16 %v3012_v34, %v3010_v26 }
 0x326   : > { %6881 = vmatpush1.bf16.msra.mxu0 %v6880_v5 }
 0x327   : > { %6883 = vmatprep.subr.bf16.mxu0 %v6882_v41 }
 0x32a   : > { %6885 = vmatpush1.bf16.msra.mxu0 %v6884_v59 }
 0x32b   : > { %6887 = vmatprep.subr.bf16.mxu0 %v6886_v45 }
 0x32e   : > { %6889 = vmatpush1.bf16.msra.mxu0 %v6888_v55 }
 0x32f   : > { %6891 = vmatprep.subr.bf16.mxu0 %v6890_v60 }
 0x332   : > { %6893 = vmatpush1.bf16.msra.mxu0 %v6892_v27 }
 0x333   : > { %6895 = vmatprep.subr.bf16.mxu0 %v6894_v6  ;;  %v3017_v6 = vld [vmem:[%s12623_s2 + $0x218] sm:$0xff] }
 0x336   : > { %6897 = vmatpush1.bf16.msra.mxu0 %v6896_v9 }
 0x33a   : > { %v2662_v21 = vpop.f32.mrb[12].mxu0 }
 0x33b   : > { %v2664_v14 = vpop.f32.mrb[13].mxu0  ;;  %v2663_v44 = vadd.f32 %v2662_v21, %v9201_v48 }
 0x33c   : > { %v2665_v49 = vadd.f32 %v2664_v14, %v9201_v48 }
 0x33d   : > { %v2754_v57 = vmax.f32 %v2663_v44, 0.0 }
 0x33e   : > { %v2668_v24 = vpop.f32.mrb[14].mxu0  ;;  %v2755_v43 = vmax.f32 %v2665_v49, 0.0 }
 0x33f   : > { %v2670_v54 = vpop.f32.mrb[15].mxu0  ;;  %v2669_v31 = vadd.f32 %v2668_v24, %v9209_v12  ;;  %v2782_v2 = vmul.f32 %v9203_v20, %v2754_v57 }
 0x340   : > { %v2671_v33 = vadd.f32 %v2670_v54, %v9209_v12  ;;  %v2783_v0 = vmul.f32 %v9203_v20, %v2755_v43 }
 0x341   : > { %v2762_v1 = vmax.f32 %v2669_v31, 0.0  ;;  %v9469_v53 = vadd.f32 %v9207_v18, %v2782_v2 }
 0x342   : > { %v2763_v37 = vmax.f32 %v2671_v33, 0.0  ;;  %v9472_v16 = vadd.f32 %v9207_v18, %v2783_v0 }
 0x343   : > { %v2790_v40 = vmul.f32 %v9219_v23, %v2762_v1 }
 0x35e   : > { %v2739_v28 = vpop.f32.mrb[12].mxu1 }
 0x35f   : > { %v2741_v35 = vpop.f32.mrb[13].mxu1  ;;  %v2740_v14 = vadd.f32 %v2739_v28, %v9201_v48 }
 0x360   : > { %v2742_v24 = vadd.f32 %v2741_v35, %v9201_v48  ;;  %v2791_v48 = vmul.f32 %v9219_v23, %v2763_v37 }
 0x361   : > { %v2756_v35 = vmax.f32 %v2740_v14, 0.0 }
 0x362   : > { %v2745_v50 = vpop.f32.mrb[14].mxu1  ;;  %v2757_v62 = vmax.f32 %v2742_v24, 0.0  ;;  %v9524_v60 = vadd.f32 %v9240_v56, %v2791_v48  ;;  %v3019_v24 = vld [vmem:[%s12623_s2 + $0x228] sm:$0xff] }
 0x363   : > { %v2747_v38 = vpop.f32.mrb[15].mxu1  ;;  %v2746_v32 = vadd.f32 %v2745_v50, %v9209_v12  ;;  %v2784_v4 = vmul.f32 %v9203_v20, %v2756_v35 }
 0x364   : > { %v2748_v57 = vadd.f32 %v2747_v38, %v9209_v12  ;;  %v7567_v12 = vpack.i.bf16 %v9472_v16, %v9469_v53  ;;  %v9521_v38 = vadd.f32 %v9240_v56, %v2790_v40  ;;  %v2785_v31 = vmul.f32 %v9203_v20, %v2757_v62  ;;  %v3021_v40 = vld [vmem:[%s12623_s2 + $0x238] sm:$0xff] }
 0x365   : > { %v9535_v2 = vadd.f32 %v9207_v18, %v2784_v4 }
 0x366   : > { %v2765_v27 = vmax.f32 %v2748_v57, 0.0  ;;  %v7577_v33 = vpack.i.bf16 %v9524_v60, %v9521_v38  ;;  %v9538_v0 = vadd.f32 %v9207_v18, %v2785_v31 }
 0x368   : > { %v2793_v22 = vmul.f32 %v9219_v23, %v2765_v27  ;;  %v7587_v7 = vpack.i.bf16 %v9538_v0, %v9535_v2 }
 0x36a   : > { %v9549_v1 = vadd.f32 %v9240_v56, %v2793_v22 }
 0x377   : > { %v9460_v30 = vpop.permute.xlu1 %7548 }
 0x378   : > { %v7551_v13 = vunpack.i.h.bf16 %v9460_v30  ;;  %v7550_v21 = vunpack.i.l.bf16 %v9460_v30  ;;  %v7544_v63 = vpop.permute.xlu0 %7543 }
 0x379   : > { %v7546_v5 = vunpack.i.h.bf16 %v7544_v63  ;;  %v7545_v41 = vunpack.i.l.bf16 %v7544_v63 }
 0x37b   : > { %v2862_v19 = vsel %vm1803_vm6, %v7546_v5, %v7550_v21  ;;  %v2864_v54 = vsel %vm1803_vm6, %v7545_v41, %v7546_v5  ;;  %v2866_v59 = vsel %vm1803_vm6, %v7551_v13, %v7545_v41  ;;  %v9486_v45 = vpop.permute.xlu1 %7553  ;;  %v3014_v5 = vld [vmem:[%s12623_s2 + $0x200] sm:$0xff]  ;;  %v3016_v41 = vld [vmem:[%s12623_s2 + $0x210] sm:$0xff] }
 0x37c   : > { %v9490_v36 = vmax.f32 %v9234_v42, %v2864_v54  ;;  %v9493_v47 = vmax.f32 %v9231_v17, %v2862_v19  ;;  %v7555_v55 = vunpack.i.l.bf16 %v9486_v45  ;;  %v7559_v28 = vpop.permute.xlu0 %7558  ;;  %v9497_v11 = vmax.f32 %v9227_v46, %v2866_v59 }
 0x37d   : > { %v7561_v44 = vunpack.i.h.bf16 %v7559_v28  ;;  %v7560_v49 = vunpack.i.l.bf16 %v7559_v28  ;;  %v6900_v62 = vpack.c.bf16 %v3016_v41, %v3014_v5 }
 0x37e   : > { %v7562_v42 = vpack.i.bf16 %v9493_v47, %v9490_v36  ;;  %2886 = vrot.lane.b32.xlu1 %v9497_v11, %s12554_s4 }
 0x37f   : > { %v2863_v17 = vsel %vm1803_vm6, %v7561_v44, %v7555_v55  ;;  %v2865_v43 = vsel %vm1803_vm6, %v7560_v49, %v7561_v44 }
 0x380   : > { %v9512_v46 = vmax.f32 %v9256_v25, %v2865_v43  ;;  %v9515_v50 = vmax.f32 %v9253_v15, %v2863_v17  ;;  %7563 = vrot.lane.b32.xlu0 %v7562_v42, %s12554_s4  ;;  %v2764_v25 = vmax.f32 %v2746_v32, 0.0  ;;  %v6902_v17 = vpack.c.bf16 %v3021_v40, %v3019_v24  ;;  %v3018_v43 = vld [vmem:[%s12623_s2 + $0x220] sm:$0xff] }
 0x382   : > { %v7572_v15 = vpack.i.bf16 %v9515_v50, %v9512_v46  ;;  %v2792_v20 = vmul.f32 %v9219_v23, %v2764_v25  ;;  %v3015_v23 = vld [vmem:[%s12623_s2 + $0x208] sm:$0xff] }
 0x383   : > { %v6898_v34 = vpack.c.bf16 %v3017_v6, %v3015_v23  ;;  %v3029_v23 = vld [vmem:[%s12623_s2 + $0x278] sm:$0xff] }
 0x384   : > { %7573 = vrot.lane.b32.xlu1 %v7572_v15, %s12554_s4  ;;  %7568 = vrot.lane.b32.xlu0 %v7567_v12, %s12550_s26  ;;  %v9546_v26 = vadd.f32 %v9240_v56, %v2792_v20  ;;  %v7556_v56 = vunpack.i.h.bf16 %v9486_v45 }
 0x385   : > { %6899 = vmatprep.subr.bf16.mxu0 %v6898_v34 }
 0x386   : > { %v7592_v18 = vpack.i.bf16 %v9549_v1, %v9546_v26  ;;  %v2867_v59 = vsel %vm1803_vm6, %v7556_v56, %v7560_v49  ;;  %v3020_v49 = vld [vmem:[%s12623_s2 + $0x230] sm:$0xff] }
 0x387   : > { %v9620_v25 = vmax.f32 %v9249_v29, %v2867_v59  ;;  %v6904_v20 = vpack.c.bf16 %v3020_v49, %v3018_v43  ;;  %v3024_v29 = vld [vmem:[%s12623_s2 + $0x250] sm:$0xff] }
 0x388   : > { %7578 = vrot.lane.b32.xlu1 %v7577_v33, %s12550_s26  ;;  %v3028_v59 = vld [vmem:[%s12623_s2 + $0x270] sm:$0xff] }
 0x38c   : > { %7588 = vrot.lane.b32.xlu1 %v7587_v7, %s12550_s26 }
 0x390   : > { %7593 = vrot.lane.b32.xlu1 %v7592_v18, %s12550_s26  ;;  %v3022_v18 = vld [vmem:[%s12623_s2 + $0x240] sm:$0xff] }
 0x391   : > { %v6908_v41 = vpack.c.bf16 %v3024_v29, %v3022_v18 }
 0x3f0   : > { %v9562_v37 = vpop.permute.xlu1 %2886 }
 0x3f2   : > { %v9564_v63 = vpop.permute.xlu0 %7563 }
 0x3f3   : > { %v7566_v9 = vunpack.i.h.bf16 %v9564_v63  ;;  %v7565_v14 = vunpack.i.l.bf16 %v9564_v63 }
 0x3f5   : > { %v2930_v19 = vsel %vm2055_vm8, %v9562_v37, %v7565_v14  ;;  %v2928_v54 = vsel %vm2055_vm8, %v7565_v14, %v7566_v9 }
 0x3f6   : > { %v2934_v48 = vmax.f32 %v9497_v11, %v2930_v19  ;;  %v9592_v28 = vpop.permute.xlu1 %7573  ;;  %v7569_v35 = vpop.permute.xlu0 %7568  ;;  %v2935_v44 = vmax.f32 %v9490_v36, %v2928_v54  ;;  %v3023_v36 = vld [vmem:[%s12623_s2 + $0x248] sm:$0xff]  ;;  %v3025_v11 = vld [vmem:[%s12623_s2 + $0x258] sm:$0xff]  ;;  %v3026_v54 = vld [vmem:[%s12623_s2 + $0x260] sm:$0xff] }
 0x3f7   : > { %v7576_v32 = vunpack.i.h.bf16 %v9592_v28  ;;  %v7575_v57 = vunpack.i.l.bf16 %v9592_v28  ;;  %v7570_v42 = vunpack.i.l.bf16 %v7569_v35  ;;  %v7571_v12 = vunpack.i.h.bf16 %v7569_v35 }
 0x3f8   : > { %3270 = vmatprep.mubr.f32.mxu0 %v2935_v44  ;;  %v6906_v7 = vpack.c.bf16 %v3025_v11, %v3023_v36  ;;  %v3031_v44 = vld [vmem:[%s12623_s2 + $0x288] sm:$0xff] }
 0x3f9   : > { %v2860_v4 = vsel %vm1803_vm6, %v7550_v21, %v7570_v42  ;;  %3271 = vmatmul.mubr.f32.vlgmr.msra.gmra.mrb[16].mxu0 %v2934_v48  ;;  %v2929_v31 = vsel %vm2055_vm8, %v7575_v57, %v7576_v32  ;;  %v2858_v6 = vsel %vm1803_vm6, %v7570_v42, %v7571_v12 }
 0x3fa   : > { %v9623_v27 = vmax.f32 %v9224_v61, %v2860_v4  ;;  %v7579_v15 = vpop.permute.xlu1 %7578  ;;  %v2943_v33 = vmax.f32 %v9512_v46, %v2929_v31  ;;  %6901 = vmatpush1.bf16.msra.mxu0 %v6900_v62  ;;  %v3027_v46 = vld [vmem:[%s12623_s2 + $0x268] sm:$0xff]  ;;  %v9662_v35 = vmax.f32 %v9469_v53, %v2858_v6  ;;  %v3033_v62 = vld [vmem:[%s12623_s2 + $0x298] sm:$0xff]  ;;  %v6912_v53 = vpack.c.bf16 %v3028_v59, %v3026_v54  ;;  %v3032_v31 = vld [vmem:[%s12623_s2 + $0x290] sm:$0xff] }
 0x3fb   : > { %v7581_v21 = vunpack.i.h.bf16 %v7579_v15  ;;  %v7580_v22 = vunpack.i.l.bf16 %v7579_v15  ;;  %6903 = vmatprep.subr.bf16.mxu0 %v6902_v17  ;;  %v6910_v19 = vpack.c.bf16 %v3029_v23, %v3027_v46  ;;  %v6914_v49 = vpack.c.bf16 %v3033_v62, %v3031_v44  ;;  %v3039_v23 = vld [vmem:[%s12623_s2 + $0x2c8] sm:$0xff]  ;;  %v3041_v6 = vld [vmem:[%s12623_s2 + $0x2d8] sm:$0xff]  ;;  %v3046_v62 = vld [vmem:[%s12623_s2 + $0x300] sm:$0xff] }
 0x3fc   : > { %3276 = vmatprep.mubr.f32.mxu0 %v2943_v33  ;;  %v7582_v61 = vpack.i.bf16 %v9623_v27, %v9620_v25  ;;  %v3037_v33 = vld [vmem:[%s12623_s2 + $0x2b8] sm:$0xff] }
 0x3fd   : > { %v2859_v34 = vsel %vm1803_vm6, %v7580_v22, %v7581_v21  ;;  %v2861_v14 = vsel %vm1803_vm6, %v7555_v55, %v7580_v22  ;;  %v3049_v54 = vld [vmem:[%s12623_s2 + $0x318] sm:$0xff] }
 0x3fe   : > { %v7589_v5 = vpop.permute.xlu1 %7588  ;;  %7583 = vrot.lane.b32.xlu0 %v7582_v61, %s12554_s4  ;;  %6905 = vmatpush1.bf16.msra.mxu0 %v6904_v20  ;;  %v9656_v48 = vmax.f32 %v9246_v8, %v2861_v14  ;;  %v9659_v55 = vmax.f32 %v9521_v38, %v2859_v34  ;;  %v3038_v34 = vld [vmem:[%s12623_s2 + $0x2c0] sm:$0xff]  ;;  %v3040_v14 = vld [vmem:[%s12623_s2 + $0x2d0] sm:$0xff] }
 0x3ff   : > { %v7591_v24 = vunpack.i.h.bf16 %v7589_v5  ;;  %v7590_v40 = vunpack.i.l.bf16 %v7589_v5  ;;  %6907 = vmatprep.subr.bf16.mxu0 %v6906_v7  ;;  %v3043_v5 = vld [vmem:[%s12623_s2 + $0x2e8] sm:$0xff] }
 0x400   : > { %v7597_v4 = vpack.i.bf16 %v9659_v55, %v9656_v48 }
 0x401   : > { %v2854_v42 = vsel %vm1803_vm6, %v7590_v40, %v7591_v24  ;;  %v2856_v8 = vsel %vm1803_vm6, %v7571_v12, %v7590_v40  ;;  %v3030_v12 = vld [vmem:[%s12623_s2 + $0x280] sm:$0xff]  ;;  %v2868_v61 = vsel %vm1803_vm6, %v7591_v24, %v7551_v13  ;;  %v3044_v40 = vld [vmem:[%s12623_s2 + $0x2f0] sm:$0xff] }
 0x402   : > { %v7594_v17 = vpop.permute.xlu1 %7593  ;;  %2902 = vrot.lane.b32.xlu0 %v9662_v35, %s12554_s4  ;;  %6909 = vmatpush1.bf16.msra.mxu0 %v6908_v41  ;;  %v9677_v36 = vmax.f32 %v9472_v16, %v2856_v8  ;;  %v9680_v11 = vmax.f32 %v9535_v2, %v2854_v42  ;;  %v3035_v2 = vld [vmem:[%s12623_s2 + $0x2a8] sm:$0xff]  ;;  %v6916_v7 = vpack.c.bf16 %v3032_v31, %v3030_v12  ;;  %v3042_v24 = vld [vmem:[%s12623_s2 + $0x2e0] sm:$0xff]  ;;  %v3048_v42 = vld [vmem:[%s12623_s2 + $0x310] sm:$0xff] }
 0x403   : > { %v7596_v38 = vunpack.i.h.bf16 %v7594_v17  ;;  %v7595_v43 = vunpack.i.l.bf16 %v7594_v17  ;;  %6911 = vmatprep.subr.bf16.mxu0 %v6910_v19  ;;  %v6918_v29 = vpack.c.bf16 %v3037_v33, %v3035_v2  ;;  %v9737_v45 = vmax.f32 %v9538_v0, %v2868_v61  ;;  %v3047_v19 = vld [vmem:[%s12623_s2 + $0x308] sm:$0xff]  ;;  %v3053_v17 = vld [vmem:[%s12623_s2 + $0x338] sm:$0xff]  ;;  %v3056_v2 = vld [vmem:[%s12623_s2 + $0x350] sm:$0xff] }
 0x404   : > { %v7602_v18 = vpack.i.bf16 %v9680_v11, %v9677_v36  ;;  %v6924_v0 = vpack.c.bf16 %v3040_v14, %v3038_v34  ;;  %v6928_v59 = vpack.c.bf16 %v3044_v40, %v3042_v24  ;;  %v6930_v44 = vpack.c.bf16 %v3049_v54, %v3047_v19  ;;  %v3051_v8 = vld [vmem:[%s12623_s2 + $0x328] sm:$0xff]  ;;  %v3057_v12 = vld [vmem:[%s12623_s2 + $0x358] sm:$0xff]  ;;  %v3070_v54 = vld [vmem:[%s12623_s2 + $0x3c0] sm:$0xff] }
 0x405   : > { %v2855_v15 = vsel %vm1803_vm6, %v7595_v43, %v7596_v38  ;;  %v2857_v16 = vsel %vm1803_vm6, %v7581_v21, %v7595_v43  ;;  %v2869_v46 = vsel %vm1803_vm6, %v7596_v38, %v7556_v56  ;;  %v6922_v56 = vpack.c.bf16 %v3041_v6, %v3039_v23  ;;  %v3050_v43 = vld [vmem:[%s12623_s2 + $0x320] sm:$0xff]  ;;  %v3059_v33 = vld [vmem:[%s12623_s2 + $0x368] sm:$0xff]  ;;  %v3065_v61 = vld [vmem:[%s12623_s2 + $0x398] sm:$0xff] }
 0x406   : > { %v9701_v20 = vmax.f32 %v9524_v60, %v2857_v16  ;;  %v9704_v22 = vmax.f32 %v9546_v26, %v2855_v15  ;;  %7598 = vrot.lane.b32.xlu0 %v7597_v4, %s12554_s4  ;;  %6913 = vmatpush1.bf16.msra.mxu0 %v6912_v53  ;;  %v3034_v60 = vld [vmem:[%s12623_s2 + $0x2a0] sm:$0xff]  ;;  %v3036_v26 = vld [vmem:[%s12623_s2 + $0x2b0] sm:$0xff]  ;;  %v9734_v13 = vmax.f32 %v9549_v1, %v2869_v46  ;;  %v3045_v1 = vld [vmem:[%s12623_s2 + $0x2f8] sm:$0xff] }
 0x407   : > { %6915 = vmatprep.subr.bf16.mxu0 %v6914_v49  ;;  %v6920_v30 = vpack.c.bf16 %v3036_v26, %v3034_v60  ;;  %v6926_v41 = vpack.c.bf16 %v3045_v1, %v3043_v5  ;;  %v6932_v53 = vpack.c.bf16 %v3048_v42, %v3046_v62  ;;  %v6934_v38 = vpack.c.bf16 %v3053_v17, %v3051_v8  ;;  %v3052_v49 = vld [vmem:[%s12623_s2 + $0x330] sm:$0xff]  ;;  %v3055_v4 = vld [vmem:[%s12623_s2 + $0x348] sm:$0xff]  ;;  %v3054_v16 = vld [vmem:[%s12623_s2 + $0x340] sm:$0xff] }
 0x408   : > { %v7607_v21 = vpack.i.bf16 %v9704_v22, %v9701_v20  ;;  %v6936_v31 = vpack.c.bf16 %v3052_v49, %v3050_v43  ;;  %v6938_v15 = vpack.c.bf16 %v3057_v12, %v3055_v4  ;;  %v3060_v60 = vld [vmem:[%s12623_s2 + $0x370] sm:$0xff]  ;;  %v3063_v26 = vld [vmem:[%s12623_s2 + $0x388] sm:$0xff]  ;;  %v3062_v6 = vld [vmem:[%s12623_s2 + $0x380] sm:$0xff] }
 0x409   : > { %v6946_v23 = vpack.c.bf16 %v3065_v61, %v3063_v26  ;;  %v3069_v34 = vld [vmem:[%s12623_s2 + $0x3b8] sm:$0xff]  ;;  %v3066_v1 = vld [vmem:[%s12623_s2 + $0x3a0] sm:$0xff] }
 0x40a   : > { %7608 = vrot.lane.b32.xlu1 %v7607_v21, %s12554_s4  ;;  %7603 = vrot.lane.b32.xlu0 %v7602_v18, %s12554_s4  ;;  %v6940_v21 = vpack.c.bf16 %v3056_v2, %v3054_v16  ;;  %v3073_v24 = vld [vmem:[%s12623_s2 + $0x3d8] sm:$0xff]  ;;  %v3074_v17 = vld [vmem:[%s12623_s2 + $0x3e0] sm:$0xff] }
 0x40b   : > { %6917 = vmatpush1.bf16.msra.mxu0 %v6916_v7  ;;  %v3061_v7 = vld [vmem:[%s12623_s2 + $0x378] sm:$0xff] }
 0x40c   : > { %6919 = vmatprep.subr.bf16.mxu0 %v6918_v29  ;;  %v6942_v18 = vpack.c.bf16 %v3061_v7, %v3059_v33  ;;  %v3058_v29 = vld [vmem:[%s12623_s2 + $0x360] sm:$0xff]  ;;  %v3077_v62 = vld [vmem:[%s12623_s2 + $0x3f8] sm:$0xff] }
 0x40d   : > { %v6944_v46 = vpack.c.bf16 %v3060_v60, %v3058_v29  ;;  %v3081_v43 = vld [vmem:[%s12623_s2 + $0x418] sm:$0xff]  ;;  %v3078_v7 = vld [vmem:[%s12623_s2 + $0x400] sm:$0xff] }
 0x40e   : > { %2916 = vrot.lane.b32.xlu1 %v9734_v13, %s12554_s4  ;;  %2914 = vrot.lane.b32.xlu0 %v9737_v45, %s12554_s4  ;;  %v3085_v29 = vld [vmem:[%s12623_s2 + $0x438] sm:$0xff]  ;;  %s12628_s4 = smov 15  }
 0x40f   : > { %6921 = vmatpush1.bf16.msra.mxu0 %v6920_v30  ;;  %v3064_v30 = vld [vmem:[%s12623_s2 + $0x390] sm:$0xff] }
 0x410   : > { %6923 = vmatprep.subr.bf16.mxu0 %v6922_v56  ;;  %v3067_v56 = vld [vmem:[%s12623_s2 + $0x3a8] sm:$0xff]  ;;  %v6948_v14 = vpack.c.bf16 %v3064_v30, %v3062_v6 }
 0x411   : > { %v6950_v5 = vpack.c.bf16 %v3069_v34, %v3067_v56 }
 0x413   : > { %6925 = vmatpush1.bf16.msra.mxu0 %v6924_v0  ;;  %v3068_v0 = vld [vmem:[%s12623_s2 + $0x3b0] sm:$0xff] }
 0x414   : > { %6927 = vmatprep.subr.bf16.mxu0 %v6926_v41  ;;  %v3071_v41 = vld [vmem:[%s12623_s2 + $0x3c8] sm:$0xff]  ;;  %v6952_v40 = vpack.c.bf16 %v3068_v0, %v3066_v1 }
 0x415   : > { %v6954_v19 = vpack.c.bf16 %v3073_v24, %v3071_v41  ;;  %v3086_v24 = vld [vmem:[%s12623_s2 + $0x440] sm:$0xff] }
 0x417   : > { %6929 = vmatpush1.bf16.msra.mxu0 %v6928_v59  ;;  %v3072_v59 = vld [vmem:[%s12623_s2 + $0x3d0] sm:$0xff] }
 0x418   : > { %6931 = vmatprep.subr.bf16.mxu0 %v6930_v44  ;;  %v3075_v44 = vld [vmem:[%s12623_s2 + $0x3e8] sm:$0xff]  ;;  %v6956_v42 = vpack.c.bf16 %v3072_v59, %v3070_v54 }
 0x419   : > { %v6958_v8 = vpack.c.bf16 %v3077_v62, %v3075_v44  ;;  %v3090_v62 = vld [vmem:[%s12623_s2 + $0x460] sm:$0xff] }
 0x41b   : > { %6933 = vmatpush1.bf16.msra.mxu0 %v6932_v53  ;;  %v3076_v53 = vld [vmem:[%s12623_s2 + $0x3f0] sm:$0xff] }
 0x41c   : > { %6935 = vmatprep.subr.bf16.mxu0 %v6934_v38  ;;  %v3079_v38 = vld [vmem:[%s12623_s2 + $0x408] sm:$0xff]  ;;  %v6960_v49 = vpack.c.bf16 %v3076_v53, %v3074_v17  ;;  %v3097_v17 = vld [vmem:[%s12623_s2 + $0x498] sm:$0xff] }
 0x41d   : > { %v6962_v4 = vpack.c.bf16 %v3081_v43, %v3079_v38  ;;  %v3094_v38 = vld [vmem:[%s12623_s2 + $0x480] sm:$0xff]  ;;  %v3096_v43 = vld [vmem:[%s12623_s2 + $0x490] sm:$0xff] }
 0x41f   : > { %6937 = vmatpush1.bf16.msra.mxu0 %v6936_v31 }
 0x420   : > { %6939 = vmatprep.subr.bf16.mxu0 %v6938_v15 }
 0x423   : > { %6941 = vmatpush1.bf16.msra.mxu0 %v6940_v21  ;;  %v3080_v21 = vld [vmem:[%s12623_s2 + $0x410] sm:$0xff] }
 0x424   : > { %6943 = vmatprep.subr.bf16.mxu0 %v6942_v18  ;;  %v6964_v26 = vpack.c.bf16 %v3080_v21, %v3078_v7  ;;  %v3100_v7 = vld [vmem:[%s12623_s2 + $0x4b0] sm:$0xff]  ;;  %v3103_v21 = vld [vmem:[%s12623_s2 + $0x4c8] sm:$0xff] }
 0x427   : > { %6945 = vmatpush1.bf16.msra.mxu0 %v6944_v46  ;;  %v3082_v46 = vld [vmem:[%s12623_s2 + $0x420] sm:$0xff] }
 0x428   : > { %6947 = vmatprep.subr.bf16.mxu0 %v6946_v23  ;;  %v3084_v23 = vld [vmem:[%s12623_s2 + $0x430] sm:$0xff] }
 0x429   : > { %v6968_v34 = vpack.c.bf16 %v3084_v23, %v3082_v46  ;;  %v3106_v23 = vld [vmem:[%s12623_s2 + $0x4e0] sm:$0xff] }
 0x42b   : > { %6949 = vmatpush1.bf16.msra.mxu0 %v6948_v14 }
 0x42c   : > { %6951 = vmatprep.subr.bf16.mxu0 %v6950_v5 }
 0x42f   : > { %6953 = vmatpush1.bf16.msra.mxu0 %v6952_v40  ;;  %v3088_v40 = vld [vmem:[%s12623_s2 + $0x450] sm:$0xff] }
 0x430   : > { %6955 = vmatprep.subr.bf16.mxu0 %v6954_v19  ;;  %v3091_v19 = vld [vmem:[%s12623_s2 + $0x468] sm:$0xff] }
 0x433   : > { %6957 = vmatpush1.bf16.msra.mxu0 %v6956_v42  ;;  %v3092_v42 = vld [vmem:[%s12623_s2 + $0x470] sm:$0xff] }
 0x434   : > { %6959 = vmatprep.subr.bf16.mxu0 %v6958_v8  ;;  %v3095_v8 = vld [vmem:[%s12623_s2 + $0x488] sm:$0xff] }
 0x435   : > { %v6978_v53 = vpack.c.bf16 %v3097_v17, %v3095_v8  ;;  %v3123_v8 = vld [vmem:[%s12623_s2 + $0x568] sm:$0xff]  ;;  %v3125_v17 = vld [vmem:[%s12623_s2 + $0x578] sm:$0xff] }
 0x437   : > { %6961 = vmatpush1.bf16.msra.mxu0 %v6960_v49  ;;  %v3099_v49 = vld [vmem:[%s12623_s2 + $0x4a8] sm:$0xff] }
 0x438   : > { %6963 = vmatprep.subr.bf16.mxu0 %v6962_v4  ;;  %v3101_v4 = vld [vmem:[%s12623_s2 + $0x4b8] sm:$0xff] }
 0x470   : > { %v9863_v12 = vpop.permute.xlu0 %7583 }
 0x471   : > { %v7586_v31 = vunpack.i.h.bf16 %v9863_v12  ;;  %v7585_v15 = vunpack.i.l.bf16 %v9863_v12 }
 0x473   : > { %v2931_v16 = vsel %vm2055_vm8, %v7585_v15, %v7575_v57  ;;  %v2926_v18 = vsel %vm2055_vm8, %v7566_v9, %v7586_v31 }
 0x474   : > { %v9873_v2 = vpop.permute.xlu0 %2902  ;;  %v2942_v33 = vmax.f32 %v9620_v25, %v2931_v16  ;;  %v3083_v25 = vld [vmem:[%s12623_s2 + $0x428] sm:$0xff]  ;;  %v2936_v63 = vmax.f32 %v9493_v47, %v2926_v18  ;;  %v6982_v16 = vpack.c.bf16 %v3101_v4, %v3099_v49  ;;  %v3105_v18 = vld [vmem:[%s12623_s2 + $0x4d8] sm:$0xff] }
 0x475   : > { %v2924_v57 = vsel %vm2055_vm8, %v7586_v31, %v9873_v2  ;;  %v6966_v9 = vpack.c.bf16 %v3085_v29, %v3083_v25  ;;  %v3087_v47 = vld [vmem:[%s12623_s2 + $0x448] sm:$0xff]  ;;  %v6980_v31 = vpack.c.bf16 %v3096_v43, %v3094_v38  ;;  %v6986_v25 = vpack.c.bf16 %v3105_v18, %v3103_v21  ;;  %v3102_v29 = vld [vmem:[%s12623_s2 + $0x4c0] sm:$0xff]  ;;  %v3124_v43 = vld [vmem:[%s12623_s2 + $0x570] sm:$0xff] }
 0x476   : > { %3277 = vmatmul.mubr.f32.gmra.mrb[18].mxu0 %v2942_v33  ;;  %v2937_v60 = vmax.f32 %v9623_v27, %v2924_v57  ;;  %v3089_v27 = vld [vmem:[%s12623_s2 + $0x458] sm:$0xff]  ;;  %v3098_v33 = vld [vmem:[%s12623_s2 + $0x4a0] sm:$0xff]  ;;  %v3127_v49 = vld [vmem:[%s12623_s2 + $0x588] sm:$0xff] }
 0x477   : > { %v6970_v41 = vpack.c.bf16 %v3089_v27, %v3087_v47  ;;  %v6984_v57 = vpack.c.bf16 %v3100_v7, %v3098_v33  ;;  %v3111_v47 = vld [vmem:[%s12623_s2 + $0x508] sm:$0xff]  ;;  %v3113_v27 = vld [vmem:[%s12623_s2 + $0x518] sm:$0xff]  ;;  %v3122_v38 = vld [vmem:[%s12623_s2 + $0x560] sm:$0xff] }
 0x478   : > { %v9897_v61 = vpop.permute.xlu0 %7598  ;;  %3347 = vmatprep.mubr.f32.mxu0 %v2937_v60  ;;  %v3104_v60 = vld [vmem:[%s12623_s2 + $0x4d0] sm:$0xff]  ;;  %v3129_v4 = vld [vmem:[%s12623_s2 + $0x598] sm:$0xff]  ;;  %v3126_v33 = vld [vmem:[%s12623_s2 + $0x580] sm:$0xff] }
 0x479   : > { %v7601_v6 = vunpack.i.h.bf16 %v9897_v61  ;;  %v7600_v30 = vunpack.i.l.bf16 %v9897_v61  ;;  %v3128_v7 = vld [vmem:[%s12623_s2 + $0x590] sm:$0xff]  ;;  %v3131_v21 = vld [vmem:[%s12623_s2 + $0x5a8] sm:$0xff]  ;;  %v3133_v18 = vld [vmem:[%s12623_s2 + $0x5b8] sm:$0xff] }
 0x47a   : > { %3348 = vmatmul.mubr.f32.vlgmr.msra.gmra.mrb[16].mxu0 %v2936_v63  ;;  %v3109_v63 = vld [vmem:[%s12623_s2 + $0x4f8] sm:$0xff] }
 0x47b   : > { %6965 = vmatpush1.bf16.msra.mxu0 %v6964_v26  ;;  %v2925_v56 = vsel %vm2055_vm8, %v7600_v30, %v7601_v6  ;;  %v2927_v14 = vsel %vm2055_vm8, %v7576_v32, %v7600_v30  ;;  %v3107_v26 = vld [vmem:[%s12623_s2 + $0x4e8] sm:$0xff]  ;;  %v3108_v30 = vld [vmem:[%s12623_s2 + $0x4f0] sm:$0xff] }
 0x47c   : > { %v9921_v5 = vpop.permute.xlu0 %7603  ;;  %6967 = vmatprep.subr.bf16.mxu0 %v6966_v9  ;;  %v2945_v1 = vmax.f32 %v9656_v48, %v2925_v56  ;;  %v2944_v0 = vmax.f32 %v9515_v50, %v2927_v14  ;;  %v3093_v50 = vld [vmem:[%s12623_s2 + $0x478] sm:$0xff]  ;;  %v6972_v48 = vpack.c.bf16 %v3088_v40, %v3086_v24  ;;  %v6988_v9 = vpack.c.bf16 %v3104_v60, %v3102_v29  ;;  %v3110_v14 = vld [vmem:[%s12623_s2 + $0x500] sm:$0xff]  ;;  %v3132_v60 = vld [vmem:[%s12623_s2 + $0x5b0] sm:$0xff] }
 0x47d   : > { %v7606_v28 = vunpack.i.h.bf16 %v9921_v5  ;;  %v7605_v32 = vunpack.i.l.bf16 %v9921_v5  ;;  %v6974_v44 = vpack.c.bf16 %v3093_v50, %v3091_v19  ;;  %v6990_v46 = vpack.c.bf16 %v3109_v63, %v3107_v26  ;;  %v3114_v19 = vld [vmem:[%s12623_s2 + $0x520] sm:$0xff]  ;;  %v3116_v50 = vld [vmem:[%s12623_s2 + $0x530] sm:$0xff]  ;;  %v3135_v26 = vld [vmem:[%s12623_s2 + $0x5c8] sm:$0xff] }
 0x47e   : > { %3353 = vmatprep.mubr.f32.mxu0 %v2945_v1  ;;  %v6992_v56 = vpack.c.bf16 %v3108_v30, %v3106_v23  ;;  %v3112_v1 = vld [vmem:[%s12623_s2 + $0x510] sm:$0xff]  ;;  %v3130_v29 = vld [vmem:[%s12623_s2 + $0x5a0] sm:$0xff]  ;;  %v3137_v63 = vld [vmem:[%s12623_s2 + $0x5d8] sm:$0xff] }
 0x47f   : > { %6969 = vmatpush1.bf16.msra.mxu0 %v6968_v34  ;;  %v2920_v54 = vsel %vm2055_vm8, %v7605_v32, %v7606_v28  ;;  %v6994_v34 = vpack.c.bf16 %v3113_v27, %v3111_v47  ;;  %v6996_v24 = vpack.c.bf16 %v3112_v1, %v3110_v14  ;;  %v3134_v23 = vld [vmem:[%s12623_s2 + $0x5c0] sm:$0xff]  ;;  %v3136_v30 = vld [vmem:[%s12623_s2 + $0x5d0] sm:$0xff]  ;;  %v3139_v47 = vld [vmem:[%s12623_s2 + $0x5e8] sm:$0xff] }
 0x480   : > { %3354 = vmatmul.mubr.f32.gmra.mrb[18].mxu0 %v2944_v0  ;;  %6971 = vmatprep.subr.bf16.mxu0 %v6970_v41  ;;  %v2939_v59 = vmax.f32 %v9677_v36, %v2920_v54  ;;  %v6976_v36 = vpack.c.bf16 %v3092_v42, %v3090_v62  ;;  %v3115_v0 = vld [vmem:[%s12623_s2 + $0x528] sm:$0xff]  ;;  %v3117_v41 = vld [vmem:[%s12623_s2 + $0x538] sm:$0xff]  ;;  %v3118_v62 = vld [vmem:[%s12623_s2 + $0x540] sm:$0xff] }
 0x481   : > { %v6998_v40 = vpack.c.bf16 %v3117_v41, %v3115_v0  ;;  %v3121_v54 = vld [vmem:[%s12623_s2 + $0x558] sm:$0xff]  ;;  %v3120_v42 = vld [vmem:[%s12623_s2 + $0x550] sm:$0xff]  ;;  %v3138_v1 = vld [vmem:[%s12623_s2 + $0x5e0] sm:$0xff] }
 0x482   : > { %3424 = vmatprep.mubr.f32.mxu0 %v2939_v59  ;;  %v7000_v59 = vpack.c.bf16 %v3116_v50, %v3114_v19  ;;  %v3141_v27 = vld [vmem:[%s12623_s2 + $0x5f8] sm:$0xff]  ;;  %v3140_v0 = vld [vmem:[%s12623_s2 + $0x5f0] sm:$0xff]  ;;  %v3143_v41 = vld [vmem:[%s12623_s2 + $0x608] sm:$0xff] }
 0x483   : > { %6973 = vmatpush1.bf16.msra.mxu0 %v6972_v48  ;;  %v3119_v48 = vld [vmem:[%s12623_s2 + $0x548] sm:$0xff]  ;;  %v7022_v14 = vpack.c.bf16 %v3141_v27, %v3139_v47  ;;  %v7024_v50 = vpack.c.bf16 %v3140_v0, %v3138_v1  ;;  %v3162_v27 = vld [vmem:[%s12623_s2 + $0x6a0] sm:$0xff]  ;;  %v3169_v1 = vld [vmem:[%s12623_s2 + $0x6d8] sm:$0xff] }
 0x484   : > { %6975 = vmatprep.subr.bf16.mxu0 %v6974_v44  ;;  %v7002_v44 = vpack.c.bf16 %v3121_v54, %v3119_v48  ;;  %v3142_v54 = vld [vmem:[%s12623_s2 + $0x600] sm:$0xff] }
 0x487   : > { %6977 = vmatpush1.bf16.msra.mxu0 %v6976_v36  ;;  %v7004_v36 = vpack.c.bf16 %v3120_v42, %v3118_v62  ;;  %v3147_v62 = vld [vmem:[%s12623_s2 + $0x628] sm:$0xff]  ;;  %v3149_v42 = vld [vmem:[%s12623_s2 + $0x638] sm:$0xff] }
 0x488   : > { %6979 = vmatprep.subr.bf16.mxu0 %v6978_v53  ;;  %v7006_v53 = vpack.c.bf16 %v3125_v17, %v3123_v8  ;;  %v10127_v17 = vpop.permute.xlu0 %2914 }
 0x48b   : > { %6981 = vmatpush1.bf16.msra.mxu0 %v6980_v31  ;;  %v7008_v31 = vpack.c.bf16 %v3124_v43, %v3122_v38  ;;  %v3148_v38 = vld [vmem:[%s12623_s2 + $0x630] sm:$0xff] }
 0x48c   : > { %6983 = vmatprep.subr.bf16.mxu0 %v6982_v16  ;;  %v7010_v16 = vpack.c.bf16 %v3129_v4, %v3127_v49  ;;  %v3153_v4 = vld [vmem:[%s12623_s2 + $0x658] sm:$0xff] }
 0x48f   : > { %6985 = vmatpush1.bf16.msra.mxu0 %v6984_v57  ;;  %v7012_v57 = vpack.c.bf16 %v3128_v7, %v3126_v33  ;;  %v3152_v33 = vld [vmem:[%s12623_s2 + $0x650] sm:$0xff] }
 0x490   : > { %6987 = vmatprep.subr.bf16.mxu0 %v6986_v25  ;;  %v7014_v25 = vpack.c.bf16 %v3133_v18, %v3131_v21 }
 0x493   : > { %6989 = vmatpush1.bf16.msra.mxu0 %v6988_v9  ;;  %v7016_v9 = vpack.c.bf16 %v3132_v60, %v3130_v29  ;;  %v3161_v29 = vld [vmem:[%s12623_s2 + $0x698] sm:$0xff] }
 0x494   : > { %6991 = vmatprep.subr.bf16.mxu0 %v6990_v46  ;;  %v7018_v46 = vpack.c.bf16 %v3137_v63, %v3135_v26  ;;  %v3158_v63 = vld [vmem:[%s12623_s2 + $0x680] sm:$0xff] }
 0x497   : > { %6993 = vmatpush1.bf16.msra.mxu0 %v6992_v56  ;;  %v10090_v56 = vpop.permute.xlu1 %7608 }
 0x498   : > { %6995 = vmatprep.subr.bf16.mxu0 %v6994_v34  ;;  %v7020_v34 = vpack.c.bf16 %v3136_v30, %v3134_v23  ;;  %v7610_v19 = vunpack.i.l.bf16 %v10090_v56  ;;  %v3165_v23 = vld [vmem:[%s12623_s2 + $0x6b8] sm:$0xff] }
 0x49a   : > { %v2923_v49 = vsel %vm2055_vm8, %v7601_v6, %v7610_v19 }
 0x49b   : > { %6997 = vmatpush1.bf16.msra.mxu0 %v6996_v24  ;;  %v3145_v24 = vld [vmem:[%s12623_s2 + $0x618] sm:$0xff]  ;;  %v2946_v61 = vmax.f32 %v9659_v55, %v2923_v49 }
 0x49c   : > { %6999 = vmatprep.subr.bf16.mxu0 %v6998_v40  ;;  %v7611_v40 = vunpack.i.h.bf16 %v10090_v56  ;;  %v7026_v48 = vpack.c.bf16 %v3145_v24, %v3143_v41  ;;  %v3157_v55 = vld [vmem:[%s12623_s2 + $0x678] sm:$0xff]  ;;  %v3166_v24 = vld [vmem:[%s12623_s2 + $0x6c0] sm:$0xff] }
 0x49e   : > { %v2921_v8 = vsel %vm2055_vm8, %v7610_v19, %v7611_v40  ;;  %v3168_v19 = vld [vmem:[%s12623_s2 + $0x6d0] sm:$0xff] }
 0x49f   : > { %7001 = vmatpush1.bf16.msra.mxu0 %v7000_v59  ;;  %v3144_v59 = vld [vmem:[%s12623_s2 + $0x610] sm:$0xff]  ;;  %v2947_v43 = vmax.f32 %v9701_v20, %v2921_v8  ;;  %v3177_v8 = vld [vmem:[%s12623_s2 + $0x718] sm:$0xff] }
 0x4a0   : > { %7003 = vmatprep.subr.bf16.mxu0 %v7002_v44  ;;  %v2922_v44 = vsel %vm2055_vm8, %v9873_v2, %v7605_v32  ;;  %v7030_v2 = vpack.c.bf16 %v3149_v42, %v3147_v62  ;;  %v3146_v32 = vld [vmem:[%s12623_s2 + $0x620] sm:$0xff]  ;;  %v3172_v62 = vld [vmem:[%s12623_s2 + $0x6f0] sm:$0xff]  ;;  %v3175_v42 = vld [vmem:[%s12623_s2 + $0x708] sm:$0xff] }
 0x4a1   : > { %v7032_v20 = vpack.c.bf16 %v3148_v38, %v3146_v32  ;;  %v3176_v32 = vld [vmem:[%s12623_s2 + $0x710] sm:$0xff]  ;;  %v3179_v38 = vld [vmem:[%s12623_s2 + $0x728] sm:$0xff] }
 0x4a3   : > { %7005 = vmatpush1.bf16.msra.mxu0 %v7004_v36  ;;  %v7028_v36 = vpack.c.bf16 %v3144_v59, %v3142_v54  ;;  %v7052_v54 = vpack.c.bf16 %v3168_v19, %v3166_v24  ;;  %v3198_v24 = vld [vmem:[%s12623_s2 + $0x7c0] sm:$0xff]  ;;  %v3200_v19 = vld [vmem:[%s12623_s2 + $0x7d0] sm:$0xff] }
 0x4a4   : > { %7007 = vmatprep.subr.bf16.mxu0 %v7006_v53  ;;  %v2938_v53 = vmax.f32 %v9662_v35, %v2922_v44  ;;  %v3151_v35 = vld [vmem:[%s12623_s2 + $0x648] sm:$0xff]  ;;  %v3170_v44 = vld [vmem:[%s12623_s2 + $0x6e0] sm:$0xff] }
 0x4a5   : > { %v7034_v6 = vpack.c.bf16 %v3153_v4, %v3151_v35  ;;  %v3178_v4 = vld [vmem:[%s12623_s2 + $0x720] sm:$0xff] }
 0x4a7   : > { %7009 = vmatpush1.bf16.msra.mxu0 %v7008_v31  ;;  %v2932_v31 = vsel %vm2055_vm8, %v10127_v17, %v9562_v37  ;;  %v3155_v37 = vld [vmem:[%s12623_s2 + $0x668] sm:$0xff] }
 0x4a8   : > { %7011 = vmatprep.subr.bf16.mxu0 %v7010_v16  ;;  %v3150_v16 = vld [vmem:[%s12623_s2 + $0x640] sm:$0xff]  ;;  %v2941_v7 = vmax.f32 %v9737_v45, %v2932_v31  ;;  %v7038_v18 = vpack.c.bf16 %v3157_v55, %v3155_v37  ;;  %v3156_v45 = vld [vmem:[%s12623_s2 + $0x670] sm:$0xff]  ;;  %v3187_v37 = vld [vmem:[%s12623_s2 + $0x768] sm:$0xff] }
 0x4a9   : > { %v7036_v21 = vpack.c.bf16 %v3152_v33, %v3150_v16  ;;  %v3180_v31 = vld [vmem:[%s12623_s2 + $0x730] sm:$0xff]  ;;  %v3182_v33 = vld [vmem:[%s12623_s2 + $0x740] sm:$0xff]  ;;  %v3189_v55 = vld [vmem:[%s12623_s2 + $0x778] sm:$0xff] }
 0x4ab   : > { %7013 = vmatpush1.bf16.msra.mxu0 %v7012_v57  ;;  %v3154_v57 = vld [vmem:[%s12623_s2 + $0x660] sm:$0xff] }
 0x4ac   : > { %7015 = vmatprep.subr.bf16.mxu0 %v7014_v25  ;;  %v3159_v25 = vld [vmem:[%s12623_s2 + $0x688] sm:$0xff]  ;;  %v7040_v60 = vpack.c.bf16 %v3156_v45, %v3154_v57  ;;  %v3186_v57 = vld [vmem:[%s12623_s2 + $0x760] sm:$0xff]  ;;  %v3188_v45 = vld [vmem:[%s12623_s2 + $0x770] sm:$0xff] }
 0x4ad   : > { %v7042_v26 = vpack.c.bf16 %v3161_v29, %v3159_v25  ;;  %v3191_v25 = vld [vmem:[%s12623_s2 + $0x788] sm:$0xff]  ;;  %v3193_v29 = vld [vmem:[%s12623_s2 + $0x798] sm:$0xff] }
 0x4af   : > { %7017 = vmatpush1.bf16.msra.mxu0 %v7016_v9  ;;  %v3160_v9 = vld [vmem:[%s12623_s2 + $0x690] sm:$0xff] }
 0x4b0   : > { %7019 = vmatprep.subr.bf16.mxu0 %v7018_v46  ;;  %v3163_v46 = vld [vmem:[%s12623_s2 + $0x6a8] sm:$0xff]  ;;  %v7044_v30 = vpack.c.bf16 %v3160_v9, %v3158_v63  ;;  %v3190_v63 = vld [vmem:[%s12623_s2 + $0x780] sm:$0xff]  ;;  %v3192_v9 = vld [vmem:[%s12623_s2 + $0x790] sm:$0xff] }
 0x4b1   : > { %v7046_v47 = vpack.c.bf16 %v3165_v23, %v3163_v46  ;;  %v3195_v46 = vld [vmem:[%s12623_s2 + $0x7a8] sm:$0xff]  ;;  %v3197_v23 = vld [vmem:[%s12623_s2 + $0x7b8] sm:$0xff] }
 0x4b3   : > { %7021 = vmatpush1.bf16.msra.mxu0 %v7020_v34  ;;  %v3164_v34 = vld [vmem:[%s12623_s2 + $0x6b0] sm:$0xff] }
 0x4b4   : > { %7023 = vmatprep.subr.bf16.mxu0 %v7022_v14  ;;  %v3167_v14 = vld [vmem:[%s12623_s2 + $0x6c8] sm:$0xff]  ;;  %v7048_v0 = vpack.c.bf16 %v3164_v34, %v3162_v27  ;;  %v3194_v27 = vld [vmem:[%s12623_s2 + $0x7a0] sm:$0xff]  ;;  %v3196_v34 = vld [vmem:[%s12623_s2 + $0x7b0] sm:$0xff] }
 0x4b5   : > { %v7050_v41 = vpack.c.bf16 %v3169_v1, %v3167_v14  ;;  %v3199_v14 = vld [vmem:[%s12623_s2 + $0x7c8] sm:$0xff]  ;;  %v3201_v1 = vld [vmem:[%s12623_s2 + $0x7d8] sm:$0xff] }
 0x4b7   : > { %7025 = vmatpush1.bf16.msra.mxu0 %v7024_v50  ;;  %v3171_v50 = vld [vmem:[%s12623_s2 + $0x6e8] sm:$0xff] }
 0x4b8   : > { %7027 = vmatprep.subr.bf16.mxu0 %v7026_v48  ;;  %v3173_v48 = vld [vmem:[%s12623_s2 + $0x6f8] sm:$0xff] }
 0x4b9   : > { %v7054_v59 = vpack.c.bf16 %v3173_v48, %v3171_v50  ;;  %v3203_v50 = vld [vmem:[%s12623_s2 + $0x7e8] sm:$0xff]  ;;  %v3205_v48 = vld [vmem:[%s12623_s2 + $0x7f8] sm:$0xff] }
 0x4ba   : > { %3425 = vmatmul.mubr.f32.vlgmr.msra.gmra.mrb[16].mxu0 %v2938_v53  ;;  %v7058_v53 = vpack.c.bf16 %v3177_v8, %v3175_v42  ;;  %v2917_v42 = vpop.permute.xlu1 %2916 }
 0x4bb   : > { %3430 = vmatprep.mubr.f32.mxu0 %v2947_v43  ;;  %7029 = vmatpush1.bf16.msra.mxu0 %v7028_v36  ;;  %v7056_v36 = vpack.c.bf16 %v3172_v62, %v3170_v44  ;;  %v3181_v43 = vld [vmem:[%s12623_s2 + $0x738] sm:$0xff]  ;;  %v3202_v44 = vld [vmem:[%s12623_s2 + $0x7e0] sm:$0xff]  ;;  %v3204_v62 = vld [vmem:[%s12623_s2 + $0x7f0] sm:$0xff] }
 0x4bc   : > { %7031 = vmatprep.subr.bf16.mxu0 %v7030_v2  ;;  %v3174_v2 = vld [vmem:[%s12623_s2 + $0x700] sm:$0xff]  ;;  %v7062_v35 = vpack.c.bf16 %v3181_v43, %v3179_v38  ;;  %v7088_v8 = vpack.c.bf16 %v3204_v62, %v3202_v44  ;;  %v3833_v43 = vld [vmem:[%s12389_s14 + $0x10] sm:$0xff] }
 0x4bd   : > { %v7060_v49 = vpack.c.bf16 %v3176_v32, %v3174_v2  ;;  %v2919_v32 = vsel %vm2055_vm8, %v7611_v40, %v2917_v42  ;;  %v3824_v40 = vld [vmem:[%s12388_s13 + $0x8] sm:$0xff] }
 0x4be   : > { %3431 = vmatmul.mubr.f32.gmra.mrb[18].mxu0 %v2946_v61  ;;  %v3185_v61 = vld [vmem:[%s12623_s2 + $0x758] sm:$0xff]  ;;  %v2948_v5 = vmax.f32 %v9704_v22, %v2919_v32  ;;  %6315 = vmatprep.mubr.msk.f32.mxu1 %vm2435_vm1, %v3824_v40 }
 0x4bf   : > { %7033 = vmatpush1.bf16.msra.mxu0 %v7032_v20  ;;  %3501 = vmatprep.mubr.f32.mxu0 %v2941_v7  ;;  %v3183_v20 = vld [vmem:[%s12623_s2 + $0x748] sm:$0xff]  ;;  %v3184_v7 = vld [vmem:[%s12623_s2 + $0x750] sm:$0xff] }
 0x4c0   : > { %7035 = vmatprep.subr.bf16.mxu0 %v7034_v6  ;;  %v7064_v6 = vpack.c.bf16 %v3180_v31, %v3178_v4  ;;  %v7066_v16 = vpack.c.bf16 %v3185_v61, %v3183_v20  ;;  %v3834_v4 = vld [vmem:[%s12389_s14 + $0x18] sm:$0xff]  ;;  %v3996_v31 = vld [vmem:[%s12391_s16] sm:$0xff]  ;;  %v3965_v20 = vld [vmem:[%s12390_s15 + $0x8] sm:$0xff] }
 0x4c1   : > { %v3966_v61 = vld [vmem:[%s12390_s15 + $0x10] sm:$0xff] }
 0x4c3   : > { %7037 = vmatpush1.bf16.msra.mxu0 %v7036_v21  ;;  %v7068_v21 = vpack.c.bf16 %v3184_v7, %v3182_v33  ;;  %v3967_v33 = vld [vmem:[%s12390_s15 + $0x18] sm:$0xff] }
 0x4c4   : > { %7039 = vmatprep.subr.bf16.mxu0 %v7038_v18  ;;  %v7070_v18 = vpack.c.bf16 %v3189_v55, %v3187_v37  ;;  %v3999_v7 = vld [vmem:[%s12391_s16 + $0x18] sm:$0xff] }
 0x4c7   : > { %7041 = vmatpush1.bf16.msra.mxu0 %v7040_v60  ;;  %v7072_v60 = vpack.c.bf16 %v3188_v45, %v3186_v57 }
 0x4c8   : > { %7043 = vmatprep.subr.bf16.mxu0 %v7042_v26  ;;  %v7074_v26 = vpack.c.bf16 %v3193_v29, %v3191_v25 }
 0x4cb   : > { %7045 = vmatpush1.bf16.msra.mxu0 %v7044_v30  ;;  %v7076_v30 = vpack.c.bf16 %v3192_v9, %v3190_v63 }
 0x4cc   : > { %7047 = vmatprep.subr.bf16.mxu0 %v7046_v47  ;;  %v7078_v47 = vpack.c.bf16 %v3197_v23, %v3195_v46 }
 0x4cf   : > { %7049 = vmatpush1.bf16.msra.mxu0 %v7048_v0  ;;  %v7080_v0 = vpack.c.bf16 %v3196_v34, %v3194_v27  ;;  %v12626_v27 = vld [vmem:[#allocation45_spill] sm:$0xff] }
 0x4d0   : > { %7051 = vmatprep.subr.bf16.mxu0 %v7050_v41  ;;  %v7082_v41 = vpack.c.bf16 %v3201_v1, %v3199_v14  ;;  %v12627_v14 = vld [vmem:[#allocation23_spill] sm:$0xff] }
 0x4d3   : > { %7053 = vmatpush1.bf16.msra.mxu0 %v7052_v54  ;;  %v7084_v54 = vpack.c.bf16 %v3200_v19, %v3198_v24 }
 0x4d4   : > { %7055 = vmatprep.subr.bf16.mxu0 %v7054_v59  ;;  %v7086_v59 = vpack.c.bf16 %v3205_v48, %v3203_v50 }
 0x4d7   : > { %7057 = vmatpush1.bf16.msra.mxu0 %v7056_v36  ;;  %v2918_v36 = vsel %vm2055_vm8, %v7606_v28, %v10127_v17  ;;  %v12624_v28 = vmov 0.0   ;;  %v3831_v17 = vld [vmem:[%s12389_s14] sm:$0xff] }
 0x4d8   : > { %7059 = vmatprep.subr.bf16.mxu0 %v7058_v53  ;;  %v2933_v53 = vsel %vm2055_vm8, %v2917_v42, %v7585_v15  ;;  %v2940_v2 = vmax.f32 %v9680_v11, %v2918_v36 }
 0x4d9   : > { %v2949_v38 = vmax.f32 %v9734_v13, %v2933_v53 }
 0x4db   : > { %7061 = vmatpush1.bf16.msra.mxu0 %v7060_v49  ;;  %v3832_v49 = vld [vmem:[%s12389_s14 + $0x8] sm:$0xff] }
 0x4dc   : > { %7063 = vmatprep.subr.bf16.mxu0 %v7062_v35  ;;  %v3964_v35 = vld [vmem:[%s12390_s15] sm:$0xff] }
 0x4df   : > { %7065 = vmatpush1.bf16.msra.mxu0 %v7064_v6  ;;  %v3997_v6 = vld [vmem:[%s12391_s16 + $0x8] sm:$0xff] }
 0x4e0   : > { %7067 = vmatprep.subr.bf16.mxu0 %v7066_v16  ;;  %v3998_v16 = vld [vmem:[%s12391_s16 + $0x10] sm:$0xff] }
 0x4e3   : > { %7069 = vmatpush1.bf16.msra.mxu0 %v7068_v21 }
 0x4e4   : > { %7071 = vmatprep.subr.bf16.mxu0 %v7070_v18 }
 0x4e7   : > { %7073 = vmatpush1.bf16.msra.mxu0 %v7072_v60 }
 0x4e8   : > { %7075 = vmatprep.subr.bf16.mxu0 %v7074_v26 }
 0x4eb   : > { %7077 = vmatpush1.bf16.msra.mxu0 %v7076_v30 }
 0x4ec   : > { %7079 = vmatprep.subr.bf16.mxu0 %v7078_v47 }
 0x4ef   : > { %7081 = vmatpush1.bf16.msra.mxu0 %v7080_v0 }
 0x4f0   : > { %7083 = vmatprep.subr.bf16.mxu0 %v7082_v41 }
 0x4f3   : > { %7085 = vmatpush1.bf16.msra.mxu0 %v7084_v54 }
 0x4f4   : > { %7087 = vmatprep.subr.bf16.mxu0 %v7086_v59 }
 0x4f7   : > { %7089 = vmatpush1.bf16.msra.mxu0 %v7088_v8 }
 0x4fa   : > { %3502 = vmatmul.mubr.f32.vlgmr.msra.gmra.mrb[16].mxu0 %v2940_v2 }
 0x4fb   : > { %3507 = vmatprep.mubr.f32.mxu0 %v2949_v38 }
 0x4fe   : > { %3508 = vmatmul.mubr.f32.gmra.mrb[18].mxu0 %v2948_v5 }
 0x4ff   : > { %4725 = vmatprep.mubr.f32.mxu0 %v12624_v28 }
 0x5cd   : > { %v10332_v12 = vpop.f32.mrb[16].mxu0 }
 0x5ce   : > { %3514 = vrot.lane.b32.xlu0 %v10332_v12, %s7674_s10  ;;  %v10336_v11 = vpop.f32.mrb[17].mxu0 }
 0x5d1   : > { %v10338_v15 = vpop.f32.mrb[18].mxu0 }
 0x5d2   : > { %3547 = vrot.lane.b32.xlu0 %v10332_v12, %s7675_s29  ;;  %3516 = vrot.lane.b32.xlu1 %v10338_v15, %s7674_s10  ;;  %v10344_v22 = vpop.f32.mrb[19].mxu0  ;;  %v7108_v13 = vpack.c.bf16 %v10338_v15, %v10332_v12 }
 0x5d3   : > { %v7106_v56 = vpack.c.bf16 %v10344_v22, %v10336_v11 }
 0x5d6   : > { %3581 = vrot.lane.b32.xlu0 %v10332_v12, %s12492_s28  ;;  %3549 = vrot.lane.b32.xlu1 %v10338_v15, %s7675_s29 }
 0x5da   : > { %3615 = vrot.lane.b32.xlu0 %v10332_v12, %s12564_s1  ;;  %3583 = vrot.lane.b32.xlu1 %v10338_v15, %s12492_s28 }
 0x5de   : > { %3652 = vrot.lane.b32.xlu0 %v10332_v12, %s12550_s26  ;;  %3617 = vrot.lane.b32.xlu1 %v10338_v15, %s12564_s1 }
 0x5e2   : > { %3685 = vrot.lane.b32.xlu0 %v10332_v12, %s12486_s7  ;;  %3654 = vrot.lane.b32.xlu1 %v10338_v15, %s12550_s26 }
 0x5e6   : > { %3719 = vrot.lane.b32.xlu0 %v10332_v12, %s12488_s3  ;;  %3687 = vrot.lane.b32.xlu1 %v10338_v15, %s12486_s7 }
 0x5ea   : > { %3518 = vrot.lane.b32.xlu0 %v10336_v11, %s7674_s10  ;;  %3721 = vrot.lane.b32.xlu1 %v10338_v15, %s12488_s3 }
 0x5ee   : > { %3551 = vrot.lane.b32.xlu0 %v10336_v11, %s7675_s29  ;;  %3520 = vrot.lane.b32.xlu1 %v10344_v22, %s7674_s10 }
 0x5f2   : > { %3585 = vrot.lane.b32.xlu0 %v10336_v11, %s12492_s28  ;;  %3553 = vrot.lane.b32.xlu1 %v10344_v22, %s7675_s29 }
 0x5f6   : > { %3619 = vrot.lane.b32.xlu0 %v10336_v11, %s12564_s1  ;;  %3587 = vrot.lane.b32.xlu1 %v10344_v22, %s12492_s28 }
 0x5fa   : > { %3753 = vrot.lane.b32.xlu0 %v10332_v12, %s12490_s25  ;;  %3621 = vrot.lane.b32.xlu1 %v10344_v22, %s12564_s1 }
 0x5fe   : > { %3656 = vrot.lane.b32.xlu0 %v10336_v11, %s12550_s26  ;;  %3755 = vrot.lane.b32.xlu1 %v10338_v15, %s12490_s25 }
 0x602   : > { %3689 = vrot.lane.b32.xlu0 %v10336_v11, %s12486_s7  ;;  %3658 = vrot.lane.b32.xlu1 %v10344_v22, %s12550_s26 }
 0x606   : > { %3723 = vrot.lane.b32.xlu0 %v10336_v11, %s12488_s3  ;;  %3691 = vrot.lane.b32.xlu1 %v10344_v22, %s12486_s7  ;;  %s12625_s7 = sld [smem:[#allocation49_spill]] }
 0x60a   : > { %3757 = vrot.lane.b32.xlu0 %v10336_v11, %s12490_s25  ;;  %3725 = vrot.lane.b32.xlu1 %v10344_v22, %s12488_s3 }
 0x60c   : > { %v3527_v23 = vld [vmem:[%s12625_s7] ss:$8 sm:$0x3]  ;;  %v6308_v0 = vld [vmem:[%s12625_s7 + $0x1] ss:$8 sm:$0x3] }
 0x60d   : > { %v3532_v34 = vrot.slane %v3527_v23, %v12626_v27  ;;  %v3536_v1 = vrot.slane %v3527_v23, %v12627_v14  ;;  %v3566_v48 = vrot.slane %v6308_v0, %v12626_v27  ;;  %v3570_v54 = vrot.slane %v6308_v0, %v12627_v14  ;;  %v6309_v53 = vld [vmem:[%s12625_s7 + $0x2] ss:$8 sm:$0x3]  ;;  %v6313_v11 = vld [vmem:[%s12625_s7 + $0x7] ss:$8 sm:$0x3] }
 0x60e   : > { %3837 = vperm.xlu0 %7540, %v3831_v17   ;;  %3759 = vrot.lane.b32.xlu1 %v10344_v22, %s12490_s25 }
 0x612   : > { %3847 = vperm.xlu0 %7540, %v3833_v43   ;;  %3842 = vperm.xlu1 %7541, %v3832_v49   ;;  %v3600_v43 = vrot.slane %v6309_v53, %v12626_v27  ;;  %v3604_v49 = vrot.slane %v6309_v53, %v12627_v14 }
 0x616   : > { %3970 = vperm.xlu0 %7540, %v3964_v35   ;;  %3852 = vperm.xlu1 %7541, %v3834_v4  }
 0x61a   : > { %4002 = vperm.xlu0 %7540, %v3996_v31   ;;  %3975 = vperm.xlu1 %7541, %v3965_v20  }
 0x61e   : > { %3980 = vperm.xlu0 %7540, %v3966_v61   ;;  %4007 = vperm.xlu1 %7541, %v3997_v6  }
 0x622   : > { %4012 = vperm.xlu0 %7540, %v3998_v16   ;;  %3985 = vperm.xlu1 %7541, %v3967_v33   ;;  %v6310_v16 = vld [vmem:[%s12625_s7 + $0x3] ss:$8 sm:$0x3] }
 0x623   : > { %v3633_v23 = vrot.slane %v6310_v16, %v12626_v27 }
 0x626   : > { %4017 = vperm.xlu1 %7541, %v3999_v7  }
 0x640   : > { %v3515_v37 = vpop.permute.xlu0 %3514 }
 0x644   : > { %v3548_v55 = vpop.permute.xlu0 %3547  ;;  %v3517_v21 = vpop.permute.xlu1 %3516 }
 0x648   : > { %v3582_v18 = vpop.permute.xlu0 %3581  ;;  %v3550_v57 = vpop.permute.xlu1 %3549 }
 0x64c   : > { %v10448_v45 = vpop.permute.xlu0 %3615  ;;  %v3584_v25 = vpop.permute.xlu1 %3583 }
 0x650   : > { %v10450_v29 = vpop.permute.xlu0 %3652  ;;  %v10452_v60 = vpop.permute.xlu1 %3617 }
 0x654   : > { %v10454_v26 = vpop.permute.xlu0 %3685  ;;  %v10456_v63 = vpop.permute.xlu1 %3654 }
 0x658   : > { %v10458_v9 = vpop.permute.xlu0 %3719  ;;  %v10460_v46 = vpop.permute.xlu1 %3687 }
 0x65c   : > { %v3519_v30 = vpop.permute.xlu0 %3518  ;;  %v10466_v47 = vpop.permute.xlu1 %3721 }
 0x65d   : > { %v3523_v41 = vsel %vm3522_vm10, %v3515_v37, %v3519_v30  ;;  %v3525_v24 = vsel %vm3522_vm10, %v3519_v30, %v3515_v37  ;;  %v3637_v30 = vrot.slane %v6310_v16, %v12627_v14 }
 0x65e   : > { %v3539_v62 = vmul.f32 %v3532_v34, %v3525_v24  ;;  %v3540_v42 = vmul.f32 %v3536_v1, %v3523_v41 }
 0x660   : > { %v3552_v19 = vpop.permute.xlu0 %3551  ;;  %v3521_v50 = vpop.permute.xlu1 %3520 }
 0x661   : > { %v3524_v59 = vsel %vm3522_vm10, %v3517_v21, %v3521_v50  ;;  %v3526_v44 = vsel %vm3522_vm10, %v3521_v50, %v3517_v21  ;;  %v3556_v2 = vsel %vm3555_vm11, %v3548_v55, %v3552_v19  ;;  %v3558_v32 = vsel %vm3555_vm11, %v3552_v19, %v3548_v55 }
 0x662   : > { %v3541_v8 = vmul.f32 %v3532_v34, %v3526_v44  ;;  %v3542_v36 = vmul.f32 %v3536_v1, %v3524_v59  ;;  %v3573_v31 = vmul.f32 %v3566_v48, %v3558_v32  ;;  %v3574_v20 = vmul.f32 %v3570_v54, %v3556_v2 }
 0x664   : > { %v7092_v38 = vpack.c.bf16 %v3541_v8, %v3539_v62  ;;  %v3586_v5 = vpop.permute.xlu0 %3585  ;;  %v3554_v40 = vpop.permute.xlu1 %3553  ;;  %v7090_v17 = vpack.c.bf16 %v3542_v36, %v3540_v42 }
 0x665   : > { %v3557_v35 = vsel %vm3555_vm11, %v3550_v57, %v3554_v40  ;;  %v3559_v4 = vsel %vm3555_vm11, %v3554_v40, %v3550_v57  ;;  %v3590_v33 = vsel %vm3589_vm12, %v3582_v18, %v3586_v5  ;;  %v3592_v7 = vsel %vm3589_vm12, %v3586_v5, %v3582_v18 }
 0x666   : > { %v3575_v61 = vmul.f32 %v3566_v48, %v3559_v4  ;;  %v3576_v6 = vmul.f32 %v3570_v54, %v3557_v35  ;;  %7091 = vmatprep.subr.bf16.mxu1 %v7090_v17  ;;  %v3607_v0 = vmul.f32 %v3600_v43, %v3592_v7  ;;  %v3608_v41 = vmul.f32 %v3604_v49, %v3590_v33 }
 0x667   : > { %7093 = vmatpush1.bf16.msra.mxu1 %v7092_v38 }
 0x668   : > { %v7096_v37 = vpack.c.bf16 %v3575_v61, %v3573_v31  ;;  %v3620_v55 = vpop.permute.xlu0 %3619  ;;  %v3588_v21 = vpop.permute.xlu1 %3587  ;;  %v7094_v57 = vpack.c.bf16 %v3576_v6, %v3574_v20 }
 0x669   : > { %v3591_v34 = vsel %vm3589_vm12, %v3584_v25, %v3588_v21  ;;  %v3593_v1 = vsel %vm3589_vm12, %v3588_v21, %v3584_v25  ;;  %v3623_v18 = vsel %vm1661_vm5, %v10448_v45, %v3620_v55  ;;  %v3625_v50 = vsel %vm1661_vm5, %v3620_v55, %v10448_v45  ;;  %v6311_v45 = vld [vmem:[%s12625_s7 + $0x5] ss:$8 sm:$0x3] }
 0x66a   : > { %v3609_v24 = vmul.f32 %v3600_v43, %v3593_v1  ;;  %v3610_v19 = vmul.f32 %v3604_v49, %v3591_v34  ;;  %7095 = vmatprep.subr.bf16.mxu1 %v7094_v57  ;;  %v3640_v42 = vmul.f32 %v3633_v23, %v3625_v50  ;;  %v3641_v8 = vmul.f32 %v3637_v30, %v3623_v18  ;;  %v6314_v1 = vld [vmem:[%s12625_s7 + $0x10] ss:$8 sm:$0x3] }
 0x66b   : > { %7097 = vmatpush1.bf16.msra.mxu1 %v7096_v37  ;;  %v3670_v40 = vrot.slane %v6311_v45, %v12626_v27  ;;  %v3674_v17 = vrot.slane %v6311_v45, %v12627_v14  ;;  %v3738_v57 = vrot.slane %v6313_v11, %v12626_v27  ;;  %v3772_v50 = vrot.slane %v6314_v1, %v12626_v27 }
 0x66c   : > { %v7100_v48 = vpack.c.bf16 %v3609_v24, %v3607_v0  ;;  %v10517_v54 = vpop.permute.xlu0 %3753  ;;  %v3622_v59 = vpop.permute.xlu1 %3621  ;;  %v7098_v44 = vpack.c.bf16 %v3610_v19, %v3608_v41 }
 0x66d   : > { %v3624_v25 = vsel %vm1661_vm5, %v10452_v60, %v3622_v59  ;;  %v3626_v62 = vsel %vm1661_vm5, %v3622_v59, %v10452_v60  ;;  %v6312_v60 = vld [vmem:[%s12625_s7 + $0x6] ss:$8 sm:$0x3] }
 0x66e   : > { %v3642_v36 = vmul.f32 %v3633_v23, %v3626_v62  ;;  %v3643_v53 = vmul.f32 %v3637_v30, %v3624_v25  ;;  %7099 = vmatprep.subr.bf16.mxu1 %v7098_v44  ;;  %v3704_v31 = vrot.slane %v6312_v60, %v12626_v27  ;;  %v3708_v20 = vrot.slane %v6312_v60, %v12627_v14 }
 0x66f   : > { %7101 = vmatpush1.bf16.msra.mxu1 %v7100_v48  ;;  %v3742_v23 = vrot.slane %v6313_v11, %v12627_v14  ;;  %v3776_v48 = vrot.slane %v6314_v1, %v12627_v14 }
 0x670   : > { %v7104_v2 = vpack.c.bf16 %v3642_v36, %v3640_v42  ;;  %v3657_v32 = vpop.permute.xlu0 %3656  ;;  %v10528_v38 = vpop.permute.xlu1 %3755  ;;  %v7102_v5 = vpack.c.bf16 %v3643_v53, %v3641_v8 }
 0x671   : > { %v3660_v43 = vsel %vm1803_vm6, %v10450_v29, %v3657_v32  ;;  %v3662_v49 = vsel %vm1803_vm6, %v3657_v32, %v10450_v29 }
 0x672   : > { %7103 = vmatprep.subr.bf16.mxu1 %v7102_v5  ;;  %v3677_v6 = vmul.f32 %v3670_v40, %v3660_v43  ;;  %v3678_v16 = vmul.f32 %v3674_v17, %v3662_v49  ;;  %v3823_v49 = vld [vmem:[%s12388_s13] sm:$0xff] }
 0x673   : > { %7105 = vmatpush1.bf16.msra.mxu1 %v7104_v2 }
 0x674   : > { %v3690_v35 = vpop.permute.xlu0 %3689  ;;  %v3659_v4 = vpop.permute.xlu1 %3658  ;;  %7107 = vmatprep.subr.bf16.mxu1 %v7106_v56 }
 0x675   : > { %v3661_v61 = vsel %vm1803_vm6, %v10456_v63, %v3659_v4  ;;  %v3663_v29 = vsel %vm1803_vm6, %v3659_v4, %v10456_v63  ;;  %v3694_v22 = vsel %vm3693_vm13, %v10454_v26, %v3690_v35  ;;  %v3696_v56 = vsel %vm3693_vm13, %v3690_v35, %v10454_v26  ;;  %v3826_v35 = vld [vmem:[%s12388_s13 + $0x18] sm:$0xff]  ;;  %v3828_v4 = vld [vmem:[%s12388_s13 + $0x28] sm:$0xff] }
 0x676   : > { %v3679_v33 = vmul.f32 %v3670_v40, %v3661_v61  ;;  %v3680_v7 = vmul.f32 %v3674_v17, %v3663_v29  ;;  %v3711_v12 = vmul.f32 %v3704_v31, %v3694_v22  ;;  %v3712_v15 = vmul.f32 %v3708_v20, %v3696_v56  ;;  %v3829_v61 = vld [vmem:[%s12388_s13 + $0x30] sm:$0xff] }
 0x677   : > { %7109 = vmatpush1.bf16.msra.mxu1 %v7108_v13 }
 0x678   : > { %v7112_v63 = vpack.c.bf16 %v3679_v33, %v3677_v6  ;;  %v3724_v37 = vpop.permute.xlu0 %3723  ;;  %v3692_v55 = vpop.permute.xlu1 %3691  ;;  %v7110_v21 = vpack.c.bf16 %v3680_v7, %v3678_v16 }
 0x679   : > { %v3695_v30 = vsel %vm3693_vm13, %v10460_v46, %v3692_v55  ;;  %v3697_v26 = vsel %vm3693_vm13, %v3692_v55, %v10460_v46  ;;  %v3728_v0 = vsel %vm3727_vm14, %v10458_v9, %v3724_v37  ;;  %v3730_v41 = vsel %vm3727_vm14, %v3724_v37, %v10458_v9 }
 0x67a   : > { %v3713_v13 = vmul.f32 %v3704_v31, %v3695_v30  ;;  %v3714_v34 = vmul.f32 %v3708_v20, %v3697_v26  ;;  %7111 = vmatprep.subr.bf16.mxu1 %v7110_v21  ;;  %v3745_v9 = vmul.f32 %v3738_v57, %v3728_v0  ;;  %v3746_v25 = vmul.f32 %v3742_v23, %v3730_v41  ;;  %v3827_v31 = vld [vmem:[%s12388_s13 + $0x20] sm:$0xff]  ;;  %v3830_v20 = vld [vmem:[%s12388_s13 + $0x38] sm:$0xff] }
 0x67b   : > { %7113 = vmatpush1.bf16.msra.mxu1 %v7112_v63 }
 0x67c   : > { %v7116_v24 = vpack.c.bf16 %v3713_v13, %v3711_v12  ;;  %v3758_v46 = vpop.permute.xlu0 %3757  ;;  %v3726_v19 = vpop.permute.xlu1 %3725  ;;  %v7114_v18 = vpack.c.bf16 %v3714_v34, %v3712_v15 }
 0x67d   : > { %v3729_v59 = vsel %vm3727_vm14, %v10466_v47, %v3726_v19  ;;  %v3731_v44 = vsel %vm3727_vm14, %v3726_v19, %v10466_v47  ;;  %v3762_v8 = vsel %vm3761_vm15, %v10517_v54, %v3758_v46  ;;  %v3764_v36 = vsel %vm3761_vm15, %v3758_v46, %v10517_v54 }
 0x67e   : > { %v3747_v62 = vmul.f32 %v3738_v57, %v3729_v59  ;;  %v3748_v42 = vmul.f32 %v3742_v23, %v3731_v44  ;;  %7115 = vmatprep.subr.bf16.mxu1 %v7114_v18  ;;  %v3779_v5 = vmul.f32 %v3772_v50, %v3762_v8  ;;  %v3780_v40 = vmul.f32 %v3776_v48, %v3764_v36 }
 0x67f   : > { %7117 = vmatpush1.bf16.msra.mxu1 %v7116_v24 }
 0x680   : > { %v7120_v53 = vpack.c.bf16 %v3747_v62, %v3745_v9  ;;  %v3760_v45 = vpop.permute.xlu1 %3759  ;;  %v7118_v2 = vpack.c.bf16 %v3748_v42, %v3746_v25 }
 0x681   : > { %v3763_v47 = vsel %vm3761_vm15, %v10528_v38, %v3760_v45  ;;  %v3765_v32 = vsel %vm3761_vm15, %v3760_v45, %v10528_v38  ;;  %v3825_v38 = vld [vmem:[%s12388_s13 + $0x10] sm:$0xff] }
 0x682   : > { %v3781_v17 = vmul.f32 %v3772_v50, %v3763_v47  ;;  %v3782_v60 = vmul.f32 %v3776_v48, %v3765_v32  ;;  %7119 = vmatprep.subr.bf16.mxu1 %v7118_v2 }
 0x683   : > { %7121 = vmatpush1.bf16.msra.mxu1 %v7120_v53 }
 0x684   : > { %v7124_v43 = vpack.c.bf16 %v3781_v17, %v3779_v5  ;;  %v7122_v54 = vpack.c.bf16 %v3782_v60, %v3780_v40 }
 0x686   : > { %7123 = vmatprep.subr.bf16.mxu1 %v7122_v54 }
 0x687   : > { %7125 = vmatpush1.bf16.msra.mxu1 %v7124_v43 }
 0x68a   : > { %3932 = vmatmul.mubr.f32.vlgmr.msra.gmra.mrb[16].mxu1 %v3823_v49 }
 0x68b   : > { %6316 = vmatprep.mubr.msk.f32.mxu1 %vm2435_vm1, %v3826_v35 }
 0x68d   : > { %v3838_v29 = vpop.permute.xlu0 %3837 }
 0x68e   : > { %3938 = vmatmul.mubr.f32.gmra.mrb[18].mxu1 %v3825_v38 }
 0x68f   : > { %6317 = vmatprep.mubr.msk.f32.mxu1 %vm2435_vm1, %v3828_v4 }
 0x691   : > { %v3843_v6 = vpop.permute.xlu1 %3842  ;;  %v10628_v16 = vpop.permute.xlu0 %3847 }
 0x692   : > { %3944 = vmatmul.mubr.f32.gmra.mrb[20].mxu1 %v3827_v31 }
 0x693   : > { %6318 = vmatprep.mubr.msk.f32.mxu1 %vm2435_vm1, %v3830_v20 }
 0x695   : > { %v10630_v33 = vpop.permute.xlu1 %3852  ;;  %v3971_v7 = vpop.permute.xlu0 %3970 }
 0x696   : > { %3950 = vmatmul.mubr.f32.gmra.mrb[22].mxu1 %v3829_v61 }
 0x699   : > { %v3976_v37 = vpop.permute.xlu1 %3975  ;;  %v4003_v30 = vpop.permute.xlu0 %4002 }
 0x69d   : > { %v4008_v1 = vpop.permute.xlu1 %4007  ;;  %v3981_v8 = vpop.permute.xlu0 %3980 }
 0x6a1   : > { %v3986_v45 = vpop.permute.xlu1 %3985  ;;  %v4013_v2 = vpop.permute.xlu0 %4012 }
 0x6a5   : > { %v4018_v5 = vpop.permute.xlu1 %4017 }
 0x75d   : > { %v3933_v11 = vpop.f32.mrb[16].mxu1 }
 0x75e   : > { %v3934_v22 = vadd.f32 %v3933_v11, %v3838_v29  ;;  %v3935_v56 = vpop.f32.mrb[17].mxu1 }
 0x75f   : > { %v3936_v46 = vadd.f32 %v3935_v56, %v3838_v29  ;;  %v4525_v29 = vld [vmem:[%s12392_s17 + $0x8] sm:$0xff]  ;;  %v4758_v56 = vld [vmem:[%s12394_s19] sm:$0xff] }
 0x760   : > { %v3956_v63 = vmax.f32 %v3934_v22, 0.0  ;;  %4636 = vmatprep.mubr.f32.mxu1 %v4525_v29  ;;  %v4537_v22 = vld [vmem:[%s12393_s18 + $0x8] sm:$0xff] }
 0x761   : > { %v3939_v55 = vpop.f32.mrb[18].mxu1  ;;  %v3957_v19 = vmax.f32 %v3936_v46, 0.0  ;;  %v6322_v29 = vld [vmem:[%s12625_s7 + $0x5] ss:$8 sm:$0x3] }
 0x762   : > { %v3988_v21 = vmul.f32 %v3971_v7, %v3956_v63  ;;  %v3940_v57 = vadd.f32 %v3939_v55, %v3843_v6  ;;  %v3941_v23 = vpop.f32.mrb[19].mxu1  ;;  %v4790_v55 = vld [vmem:[%s12395_s20] sm:$0xff] }
 0x763   : > { %v3942_v18 = vadd.f32 %v3941_v23, %v3843_v6  ;;  %v3989_v50 = vmul.f32 %v3971_v7, %v3957_v19 }
 0x764   : > { %v10632_v26 = vadd.f32 %v4003_v30, %v3988_v21  ;;  %v3958_v12 = vmax.f32 %v3940_v57, 0.0  ;;  %v4759_v21 = vld [vmem:[%s12394_s19 + $0x8] sm:$0xff] }
 0x765   : > { %v3945_v15 = vpop.f32.mrb[20].mxu1  ;;  %v3959_v48 = vmax.f32 %v3942_v18, 0.0  ;;  %v10658_v59 = vadd.f32 %v4003_v30, %v3989_v50  ;;  %v4052_v30 = vld [vmem:[%s12625_s7] ss:$8 sm:$0x3] }
 0x766   : > { %v3990_v13 = vmul.f32 %v3976_v37, %v3958_v12  ;;  %v3947_v34 = vpop.f32.mrb[21].mxu1  ;;  %4028 = vrot.lane.b32.xlu0 %v10632_v26, %s7674_s10  ;;  %v3946_v25 = vadd.f32 %v3945_v15, %v10628_v16  ;;  %v4791_v12 = vld [vmem:[%s12395_s20 + $0x8] sm:$0xff] }
 0x767   : > { %v3991_v44 = vmul.f32 %v3976_v37, %v3959_v48  ;;  %v3948_v17 = vadd.f32 %v3947_v34, %v10628_v16  ;;  %v10817_v34 = vrot.slane %v4052_v30, %v12626_v27 }
 0x768   : > { %v10636_v0 = vadd.f32 %v4008_v1, %v3990_v13  ;;  %v3960_v62 = vmax.f32 %v3946_v25, 0.0 }
 0x769   : > { %v3951_v41 = vpop.f32.mrb[22].mxu1  ;;  %v10664_v9 = vadd.f32 %v4008_v1, %v3991_v44  ;;  %v3961_v60 = vmax.f32 %v3948_v17, 0.0  ;;  %v10820_v1 = vrot.slane %v4052_v30, %v12627_v14 }
 0x76a   : > { %v3953_v24 = vpop.f32.mrb[23].mxu1  ;;  %4030 = vrot.lane.b32.xlu1 %v10636_v0, %s7674_s10  ;;  %4080 = vrot.lane.b32.xlu0 %v10632_v26, %s7675_s29  ;;  %v3952_v42 = vadd.f32 %v3951_v41, %v10630_v33  ;;  %v3992_v36 = vmul.f32 %v3981_v8, %v3960_v62 }
 0x76b   : > { %v3954_v43 = vadd.f32 %v3953_v24, %v10630_v33  ;;  %v3993_v54 = vmul.f32 %v3981_v8, %v3961_v60  ;;  %v4536_v33 = vld [vmem:[%s12393_s18] sm:$0xff] }
 0x76c   : > { %v3962_v53 = vmax.f32 %v3952_v42, 0.0  ;;  %v10684_v47 = vadd.f32 %v4013_v2, %v3992_v36  ;;  %v6320_v42 = vld [vmem:[%s12625_s7 + $0x2] ss:$8 sm:$0x3] }
 0x76d   : > { %v3963_v49 = vmax.f32 %v3954_v43, 0.0  ;;  %v10710_v35 = vadd.f32 %v4013_v2, %v3993_v54  ;;  %v10842_v2 = vrot.slane %v6320_v42, %v12626_v27 }
 0x76e   : > { %4082 = vrot.lane.b32.xlu1 %v10636_v0, %s7675_s29  ;;  %4132 = vrot.lane.b32.xlu0 %v10632_v26, %s12628_s4  ;;  %v3994_v32 = vmul.f32 %v3986_v45, %v3962_v53 }
 0x76f   : > { %v3995_v38 = vmul.f32 %v3986_v45, %v3963_v49 }
 0x770   : > { %v10690_v40 = vadd.f32 %v4018_v5, %v3994_v32  ;;  %v10845_v32 = vrot.slane %v6320_v42, %v12627_v14 }
 0x771   : > { %v10716_v4 = vadd.f32 %v4018_v5, %v3995_v38  ;;  %v6321_v5 = vld [vmem:[%s12625_s7 + $0x3] ss:$8 sm:$0x3] }
 0x772   : > { %4134 = vrot.lane.b32.xlu1 %v10636_v0, %s12628_s4  ;;  %4184 = vrot.lane.b32.xlu0 %v10632_v26, %s12564_s1 }
 0x776   : > { %4186 = vrot.lane.b32.xlu1 %v10636_v0, %s12564_s1  ;;  %4244 = vrot.lane.b32.xlu0 %v10632_v26, %s12550_s26 }
 0x77a   : > { %4246 = vrot.lane.b32.xlu1 %v10636_v0, %s12550_s26  ;;  %4296 = vrot.lane.b32.xlu0 %v10632_v26, %s12629_s0 }
 0x77e   : > { %4298 = vrot.lane.b32.xlu1 %v10636_v0, %s12629_s0  ;;  %4036 = vrot.lane.b32.xlu0 %v10658_v59, %s7674_s10 }
 0x782   : > { %4038 = vrot.lane.b32.xlu1 %v10664_v9, %s7674_s10  ;;  %4088 = vrot.lane.b32.xlu0 %v10658_v59, %s7675_s29 }
 0x786   : > { %4090 = vrot.lane.b32.xlu1 %v10664_v9, %s7675_s29  ;;  %4140 = vrot.lane.b32.xlu0 %v10658_v59, %s12628_s4 }
 0x78a   : > { %4142 = vrot.lane.b32.xlu1 %v10664_v9, %s12628_s4  ;;  %4192 = vrot.lane.b32.xlu0 %v10658_v59, %s12564_s1 }
 0x78e   : > { %4194 = vrot.lane.b32.xlu1 %v10664_v9, %s12564_s1  ;;  %4252 = vrot.lane.b32.xlu0 %v10658_v59, %s12550_s26 }
 0x792   : > { %4254 = vrot.lane.b32.xlu1 %v10664_v9, %s12550_s26  ;;  %4032 = vrot.lane.b32.xlu0 %v10684_v47, %s7674_s10 }
 0x796   : > { %4034 = vrot.lane.b32.xlu1 %v10690_v40, %s7674_s10  ;;  %4084 = vrot.lane.b32.xlu0 %v10684_v47, %s7675_s29 }
 0x79a   : > { %4086 = vrot.lane.b32.xlu1 %v10690_v40, %s7675_s29  ;;  %4136 = vrot.lane.b32.xlu0 %v10684_v47, %s12628_s4 }
 0x79e   : > { %4138 = vrot.lane.b32.xlu1 %v10690_v40, %s12628_s4  ;;  %4188 = vrot.lane.b32.xlu0 %v10684_v47, %s12564_s1 }
 0x7a2   : > { %4190 = vrot.lane.b32.xlu1 %v10690_v40, %s12564_s1  ;;  %4248 = vrot.lane.b32.xlu0 %v10684_v47, %s12550_s26 }
 0x7a6   : > { %4250 = vrot.lane.b32.xlu1 %v10690_v40, %s12550_s26  ;;  %4040 = vrot.lane.b32.xlu0 %v10710_v35, %s7674_s10 }
 0x7aa   : > { %4042 = vrot.lane.b32.xlu1 %v10716_v4, %s7674_s10  ;;  %4304 = vrot.lane.b32.xlu0 %v10658_v59, %s12629_s0  ;;  %s12630_s10 = smov 112  }
 0x7ae   : > { %4306 = vrot.lane.b32.xlu1 %v10664_v9, %s12629_s0  ;;  %4092 = vrot.lane.b32.xlu0 %v10710_v35, %s7675_s29 }
 0x7b2   : > { %4094 = vrot.lane.b32.xlu1 %v10716_v4, %s7675_s29  ;;  %4144 = vrot.lane.b32.xlu0 %v10710_v35, %s12628_s4  ;;  %s12631_s29 = smov 111  }
 0x7b6   : > { %4302 = vrot.lane.b32.xlu1 %v10690_v40, %s12629_s0  ;;  %4196 = vrot.lane.b32.xlu0 %v10710_v35, %s12564_s1 }
 0x7ba   : > { %4146 = vrot.lane.b32.xlu1 %v10716_v4, %s12628_s4  ;;  %4256 = vrot.lane.b32.xlu0 %v10710_v35, %s12550_s26 }
 0x7be   : > { %4350 = vrot.lane.b32.xlu1 %v10636_v0, %s12630_s10  ;;  %4300 = vrot.lane.b32.xlu0 %v10684_v47, %s12629_s0 }
 0x7c2   : > { %4198 = vrot.lane.b32.xlu1 %v10716_v4, %s12564_s1  ;;  %4308 = vrot.lane.b32.xlu0 %v10710_v35, %s12629_s0 }
 0x7c6   : > { %4358 = vrot.lane.b32.xlu1 %v10664_v9, %s12630_s10  ;;  %4348 = vrot.lane.b32.xlu0 %v10632_v26, %s12630_s10 }
 0x7ca   : > { %4402 = vrot.lane.b32.xlu1 %v10636_v0, %s12631_s29  ;;  %4356 = vrot.lane.b32.xlu0 %v10658_v59, %s12630_s10 }
 0x7ce   : > { %4410 = vrot.lane.b32.xlu1 %v10664_v9, %s12631_s29  ;;  %4400 = vrot.lane.b32.xlu0 %v10632_v26, %s12631_s29 }
 0x7d2   : > { %4258 = vrot.lane.b32.xlu1 %v10716_v4, %s12550_s26  ;;  %4408 = vrot.lane.b32.xlu0 %v10658_v59, %s12631_s29 }
 0x7d6   : > { %4354 = vrot.lane.b32.xlu1 %v10690_v40, %s12630_s10  ;;  %4352 = vrot.lane.b32.xlu0 %v10684_v47, %s12630_s10 }
 0x7d8   : > { %v4029_v31 = vpop.permute.xlu0 %4028 }
 0x7da   : > { %4310 = vrot.lane.b32.xlu1 %v10716_v4, %s12629_s0  ;;  %4360 = vrot.lane.b32.xlu0 %v10710_v35, %s12630_s10  ;;  %s12658_s0 = sld [smem:[#allocation60_spill]] }
 0x7dc   : > { %v4031_v20 = vpop.permute.xlu1 %4030  ;;  %v10770_v61 = vpop.permute.xlu0 %4080 }
 0x7de   : > { %4406 = vrot.lane.b32.xlu1 %v10690_v40, %s12631_s29  ;;  %4404 = vrot.lane.b32.xlu0 %v10684_v47, %s12631_s29 }
 0x7e0   : > { %v10779_v6 = vpop.permute.xlu1 %4082  ;;  %v4133_v16 = vpop.permute.xlu0 %4132 }
 0x7e2   : > { %4362 = vrot.lane.b32.xlu1 %v10716_v4, %s12630_s10  ;;  %4412 = vrot.lane.b32.xlu0 %v10710_v35, %s12631_s29 }
 0x7e4   : > { %v4135_v7 = vpop.permute.xlu1 %4134  ;;  %v4185_v11 = vpop.permute.xlu0 %4184 }
 0x7e6   : > { %4414 = vrot.lane.b32.xlu1 %v10716_v4, %s12631_s29  ;;  %4542 = vperm.xlu0 %7540, %v4536_v33   ;;  %s12643_s29 = sld [smem:[#allocation51_spill]] }
 0x7e8   : > { %v4187_v63 = vpop.permute.xlu1 %4186  ;;  %v10796_v37 = vpop.permute.xlu0 %4244 }
 0x7ea   : > { %4547 = vperm.xlu1 %7541, %v4537_v22   ;;  %4764 = vperm.xlu0 %7540, %v4758_v56  }
 0x7ec   : > { %v10804_v57 = vpop.permute.xlu1 %4246  ;;  %v10806_v23 = vpop.permute.xlu0 %4296 }
 0x7ee   : > { %4796 = vperm.xlu1 %7541, %v4790_v55   ;;  %4769 = vperm.xlu0 %7540, %v4759_v21  }
 0x7f0   : > { %v10814_v15 = vpop.permute.xlu1 %4298  ;;  %v4037_v13 = vpop.permute.xlu0 %4036 }
 0x7f1   : > { %v4044_v41 = vsel %vm3522_vm10, %v4029_v31, %v4037_v13  ;;  %v4048_v24 = vsel %vm3522_vm10, %v4037_v13, %v4029_v31  ;;  %v10859_v31 = vrot.slane %v6321_v5, %v12626_v27 }
 0x7f2   : > { %4801 = vperm.xlu1 %7541, %v4791_v12   ;;  %v4064_v48 = vmul.f32 %v10817_v34, %v4048_v24  ;;  %v4065_v44 = vmul.f32 %v10820_v1, %v4044_v41  ;;  %v10886_v12 = vrot.slane %v6322_v29, %v12626_v27 }
 0x7f4   : > { %v4039_v46 = vpop.permute.xlu1 %4038  ;;  %v10826_v19 = vpop.permute.xlu0 %4088 }
 0x7f5   : > { %v4045_v18 = vsel %vm3522_vm10, %v4031_v20, %v4039_v46  ;;  %v4049_v50 = vsel %vm3522_vm10, %v4039_v46, %v4031_v20  ;;  %v10862_v20 = vrot.slane %v6321_v5, %v12627_v14 }
 0x7f6   : > { %v4066_v25 = vmul.f32 %v10817_v34, %v4049_v50  ;;  %v4067_v62 = vmul.f32 %v10820_v1, %v4045_v18  ;;  %v10895_v18 = vrot.slane %v6322_v29, %v12627_v14 }
 0x7f8   : > { %v7128_v8 = vpack.c.bf16 %v4066_v25, %v4064_v48  ;;  %v10839_v36 = vpop.permute.xlu1 %4090  ;;  %v4141_v53 = vpop.permute.xlu0 %4140  ;;  %v7126_v45 = vpack.c.bf16 %v4067_v62, %v4065_v44  ;;  %v4096_v62 = vsel %vm3555_vm11, %v10770_v61, %v10826_v19 }
 0x7f9   : > { %v4148_v17 = vsel %vm3589_vm12, %v4133_v16, %v4141_v53  ;;  %v4152_v60 = vsel %vm3589_vm12, %v4141_v53, %v4133_v16  ;;  %v4101_v52 = vsel %vm3555_vm11, %v10839_v36, %v10779_v6 }
 0x7fa   : > { %7127 = vmatprep.subr.bf16.mxu1 %v7126_v45  ;;  %v10868_v16 = vmul.f32 %v10842_v2, %v4152_v60  ;;  %v10871_v33 = vmul.f32 %v10845_v32, %v4148_v17 }
 0x7fb   : > { %7129 = vmatpush1.bf16.msra.mxu1 %v7128_v8 }
 0x7fc   : > { %v4143_v43 = vpop.permute.xlu1 %4142  ;;  %v4193_v54 = vpop.permute.xlu0 %4192 }
 0x7fd   : > { %v4149_v49 = vsel %vm3589_vm12, %v4135_v7, %v4143_v43  ;;  %v4153_v38 = vsel %vm3589_vm12, %v4143_v43, %v4135_v7  ;;  %v4200_v56 = vsel %vm1661_vm5, %v4185_v11, %v4193_v54  ;;  %v4204_v55 = vsel %vm1661_vm5, %v4193_v54, %v4185_v11 }
 0x7fe   : > { %v10874_v22 = vmul.f32 %v10842_v2, %v4153_v38  ;;  %v10877_v7 = vmul.f32 %v10845_v32, %v4149_v49  ;;  %v10901_v50 = vmul.f32 %v10859_v31, %v4204_v55  ;;  %v10904_v48 = vmul.f32 %v10862_v20, %v4200_v56 }
 0x800   : > { %v4195_v30 = vpop.permute.xlu1 %4194  ;;  %v4253_v13 = vpop.permute.xlu0 %4252 }
 0x801   : > { %v4201_v24 = vsel %vm1661_vm5, %v4187_v63, %v4195_v30  ;;  %v4205_v46 = vsel %vm1661_vm5, %v4195_v30, %v4187_v63  ;;  %v4260_v11 = vsel %vm1803_vm6, %v10796_v37, %v4253_v13  ;;  %v4264_v63 = vsel %vm1803_vm6, %v4253_v13, %v10796_v37 }
 0x802   : > { %v10907_v44 = vmul.f32 %v10859_v31, %v4205_v46  ;;  %v10910_v25 = vmul.f32 %v10862_v20, %v4201_v24  ;;  %v10926_v17 = vmul.f32 %v10886_v12, %v4260_v11  ;;  %v10929_v37 = vmul.f32 %v10895_v18, %v4264_v63  ;;  %v6319_v46 = vld [vmem:[%s12625_s7 + $0x1] ss:$8 sm:$0x3] }
 0x804   : > { %v4255_v42 = vpop.permute.xlu1 %4254  ;;  %v4033_v8 = vpop.permute.xlu0 %4032  ;;  %12632 = vst [vmem:[#allocation17_spill] sm:$0xff] %v10926_v17  ;;  %v4109_v17 = vrot.slane %v6319_v46, %v12626_v27 }
 0x805   : > { %v4261_v45 = vsel %vm1803_vm6, %v10804_v57, %v4255_v42  ;;  %v4265_v5 = vsel %vm1803_vm6, %v4255_v42, %v10804_v57  ;;  %v6323_v42 = vld [vmem:[%s12625_s7 + $0x6] ss:$8 sm:$0x3] }
 0x806   : > { %v10932_v60 = vmul.f32 %v10886_v12, %v4261_v45  ;;  %v10935_v43 = vmul.f32 %v10895_v18, %v4265_v5  ;;  %v4097_v45 = vsel %vm3555_vm11, %v10779_v6, %v10839_v36  ;;  %v4113_v5 = vrot.slane %v6319_v46, %v12627_v14 }
 0x807   : > { %v10973_v21 = vrot.slane %v6323_v42, %v12626_v27  ;;  %v10976_v41 = vrot.slane %v6323_v42, %v12627_v14 }
 0x808   : > { %12633 = vst [vmem:[#allocation29_spill] sm:$0xff] %v10932_v60  ;;  %v4035_v49 = vpop.permute.xlu1 %4034  ;;  %v4085_v38 = vpop.permute.xlu0 %4084  ;;  %v4119_v3 = vmul.f32 %v4113_v5, %v4097_v45  ;;  %v4117_v60 = vmul.f32 %v4113_v5, %v4096_v62 }
 0x80a   : > { %v7134_v45 = vpack.c.bf16 %v4119_v3, %v4117_v60 }
 0x80c   : > { %v4087_v29 = vpop.permute.xlu1 %4086  ;;  %v10941_v56 = vpop.permute.xlu0 %4136 }
 0x810   : > { %v10943_v55 = vpop.permute.xlu1 %4138  ;;  %v10945_v30 = vpop.permute.xlu0 %4188 }
 0x814   : > { %v10947_v13 = vpop.permute.xlu1 %4190  ;;  %v10949_v24 = vpop.permute.xlu0 %4248 }
 0x818   : > { %v10954_v11 = vpop.permute.xlu1 %4250  ;;  %v4041_v63 = vpop.permute.xlu0 %4040 }
 0x819   : > { %v4046_v54 = vsel %vm3522_vm10, %v4033_v8, %v4041_v63  ;;  %v4050_v57 = vsel %vm3522_vm10, %v4041_v63, %v4033_v8 }
 0x81a   : > { %v4068_v39 = vmul.f32 %v10817_v34, %v4050_v57  ;;  %v4069_v51 = vmul.f32 %v10820_v1, %v4046_v54  ;;  %v4118_v57 = vmul.f32 %v4109_v17, %v4101_v52 }
 0x81c   : > { %v4043_v53 = vpop.permute.xlu1 %4042  ;;  %v4305_v10 = vpop.permute.xlu0 %4304 }
 0x81d   : > { %v4047_v8 = vsel %vm3522_vm10, %v4035_v49, %v4043_v53  ;;  %v4051_v63 = vsel %vm3522_vm10, %v4043_v53, %v4035_v49  ;;  %v4312_v6 = vsel %vm3693_vm13, %v10806_v23, %v4305_v10  ;;  %v4316_v36 = vsel %vm3693_vm13, %v4305_v10, %v10806_v23 }
 0x81e   : > { %v4070_v42 = vmul.f32 %v10817_v34, %v4051_v63  ;;  %v4071_v28 = vmul.f32 %v10820_v1, %v4047_v8  ;;  %v4100_v53 = vsel %vm3555_vm11, %v10826_v19, %v10770_v61  ;;  %v11008_v10 = vmul.f32 %v10973_v21, %v4312_v6 }
 0x81f   : > { %v11011_v23 = vmul.f32 %v10976_v41, %v4316_v36  ;;  %v4116_v52 = vmul.f32 %v4109_v17, %v4100_v53 }
 0x820   : > { %v7132_v54 = vpack.c.bf16 %v4070_v42, %v4068_v39  ;;  %v4307_v34 = vpop.permute.xlu1 %4306  ;;  %v4093_v49 = vpop.permute.xlu0 %4092  ;;  %v7130_v1 = vpack.c.bf16 %v4071_v28, %v4069_v51 }
 0x821   : > { %v4313_v62 = vsel %vm3693_vm13, %v10814_v15, %v4307_v34  ;;  %v4317_v46 = vsel %vm3693_vm13, %v4307_v34, %v10814_v15  ;;  %v4098_v28 = vsel %vm3555_vm11, %v4085_v38, %v4093_v49  ;;  %v4102_v3 = vsel %vm3555_vm11, %v4093_v49, %v4085_v38 }
 0x822   : > { %v11014_v39 = vmul.f32 %v10973_v21, %v4313_v62  ;;  %v11017_v51 = vmul.f32 %v10976_v41, %v4317_v46  ;;  %7131 = vmatprep.subr.bf16.mxu1 %v7130_v1  ;;  %v7136_v8 = vpack.c.bf16 %v4118_v57, %v4116_v52  ;;  %v4120_v6 = vmul.f32 %v4109_v17, %v4102_v3 }
 0x823   : > { %7133 = vmatpush1.bf16.msra.mxu1 %v7132_v54  ;;  %v4121_v36 = vmul.f32 %v4113_v5, %v4098_v28 }
 0x824   : > { %v7176_v61 = vpack.c.bf16 %v11014_v39, %v11008_v10  ;;  %v4095_v15 = vpop.permute.xlu1 %4094  ;;  %7135 = vmatprep.subr.bf16.mxu1 %v7134_v45  ;;  %v4145_v19 = vpop.permute.xlu0 %4144  ;;  %v7174_v60 = vpack.c.bf16 %v11017_v51, %v11011_v23 }
 0x825   : > { %v4099_v63 = vsel %vm3555_vm11, %v4087_v29, %v4095_v15  ;;  %v4103_v42 = vsel %vm3555_vm11, %v4095_v15, %v4087_v29  ;;  %v4150_v57 = vsel %vm3589_vm12, %v10941_v56, %v4145_v19  ;;  %v4154_v62 = vsel %vm3589_vm12, %v4145_v19, %v10941_v56 }
 0x826   : > { %v4122_v38 = vmul.f32 %v4109_v17, %v4103_v42  ;;  %v4123_v53 = vmul.f32 %v4113_v5, %v4099_v63  ;;  %v12634_v17 = vpack.c.bf16 %v10877_v7, %v10871_v33  ;;  %v4172_v52 = vmul.f32 %v10842_v2, %v4154_v62 }
 0x827   : > { %7137 = vmatpush1.bf16.msra.mxu1 %v7136_v8  ;;  %v4173_v28 = vmul.f32 %v10845_v32, %v4150_v57  ;;  %v12635_v33 = vpack.c.bf16 %v10874_v22, %v10868_v16  ;;  %v12636_v16 = vpack.c.bf16 %v10910_v25, %v10904_v48  ;;  %v12637_v48 = vpack.c.bf16 %v10907_v44, %v10901_v50  ;;  %v6325_v50 = vld [vmem:[%s12625_s7 + $0x10] ss:$8 sm:$0x3] }
 0x828   : > { %v7140_v54 = vpack.c.bf16 %v4122_v38, %v4120_v6  ;;  %v11031_v34 = vpop.permute.xlu1 %4302  ;;  %v4197_v49 = vpop.permute.xlu0 %4196  ;;  %v7138_v1 = vpack.c.bf16 %v4123_v53, %v4121_v36  ;;  %v7162_v44 = vpack.c.bf16 %v10716_v4, %v10710_v35  ;;  %v11095_v57 = vrot.slane %v6325_v50, %v12626_v27 }
 0x82a   : > { %7139 = vmatprep.subr.bf16.mxu1 %v7138_v1 }
 0x82b   : > { %7141 = vmatpush1.bf16.msra.mxu1 %v7140_v54 }
 0x82c   : > { %v4147_v29 = vpop.permute.xlu1 %4146  ;;  %7143 = vmatprep.subr.bf16.mxu1 %v12634_v17  ;;  %v4257_v5 = vpop.permute.xlu0 %4256 }
 0x82d   : > { %v4151_v46 = vsel %vm3589_vm12, %v10943_v55, %v4147_v29  ;;  %v4155_v45 = vsel %vm3589_vm12, %v4147_v29, %v10943_v55  ;;  %v4202_v55 = vsel %vm1661_vm5, %v10945_v30, %v4197_v49  ;;  %v4266_v35 = vsel %vm1803_vm6, %v4257_v5, %v10949_v24 }
 0x82e   : > { %v4174_v56 = vmul.f32 %v10842_v2, %v4155_v45  ;;  %v4175_v3 = vmul.f32 %v10845_v32, %v4151_v46  ;;  %v4206_v2 = vsel %vm1661_vm5, %v4197_v49, %v10945_v30  ;;  %v4225_v36 = vmul.f32 %v10862_v20, %v4202_v55  ;;  %v12640_v55 = vld [vmem:[#allocation17_spill] sm:$0xff] }
 0x82f   : > { %7145 = vmatpush1.bf16.msra.mxu1 %v12635_v33  ;;  %v4224_v6 = vmul.f32 %v10859_v31, %v4206_v2  ;;  %v4285_v46 = vmul.f32 %v10895_v18, %v4266_v35 }
 0x830   : > { %v7148_v7 = vpack.c.bf16 %v4174_v56, %v4172_v52  ;;  %v11055_v15 = vpop.permute.xlu1 %4350  ;;  %v11057_v19 = vpop.permute.xlu0 %4300  ;;  %v7146_v8 = vpack.c.bf16 %v4175_v3, %v4173_v28 }
 0x832   : > { %7147 = vmatprep.subr.bf16.mxu1 %v7146_v8  ;;  %v12639_v8 = vld [vmem:[#allocation29_spill] sm:$0xff] }
 0x833   : > { %7149 = vmatpush1.bf16.msra.mxu1 %v7148_v7  ;;  %v12641_v2 = vpack.c.bf16 %v12639_v8, %v12640_v55  ;;  %v4528_v55 = vld [vmem:[%s12392_s17 + $0x20] sm:$0xff] }
 0x834   : > { %v4199_v32 = vpop.permute.xlu1 %4198  ;;  %7151 = vmatprep.subr.bf16.mxu1 %v12636_v16  ;;  %v4309_v22 = vpop.permute.xlu0 %4308 }
 0x835   : > { %v4203_v63 = vsel %vm1661_vm5, %v10947_v13, %v4199_v32  ;;  %v4207_v42 = vsel %vm1661_vm5, %v4199_v32, %v10947_v13  ;;  %v7158_v13 = vpack.c.bf16 %v10664_v9, %v10658_v59  ;;  %v11098_v59 = vrot.slane %v6325_v50, %v12627_v14 }
 0x836   : > { %v4226_v30 = vmul.f32 %v10859_v31, %v4207_v42  ;;  %v4227_v38 = vmul.f32 %v10862_v20, %v4203_v63  ;;  %v7160_v20 = vpack.c.bf16 %v10636_v0, %v10632_v26  ;;  %v7164_v26 = vpack.c.bf16 %v10690_v40, %v10684_v47 }
 0x837   : > { %7153 = vmatpush1.bf16.msra.mxu1 %v12637_v48  ;;  %v4262_v0 = vsel %vm1803_vm6, %v10949_v24, %v4257_v5  ;;  %v12638_v24 = vpack.c.bf16 %v10935_v43, %v10929_v37  ;;  %vm6222_vm5 = vcmask 0  }
 0x838   : > { %v7156_v25 = vpack.c.bf16 %v4226_v30, %v4224_v6  ;;  %v11081_v53 = vpop.permute.xlu1 %4358  ;;  %v11083_v54 = vpop.permute.xlu0 %4348  ;;  %v7154_v49 = vpack.c.bf16 %v4227_v38, %v4225_v36  ;;  %v4284_v17 = vmul.f32 %v10886_v12, %v4262_v0  ;;  %v4318_v36 = vsel %vm3693_vm13, %v4309_v22, %v11057_v19 }
 0x83a   : > { %7155 = vmatprep.subr.bf16.mxu1 %v7154_v49 }
 0x83b   : > { %7157 = vmatpush1.bf16.msra.mxu1 %v7156_v25 }
 0x83c   : > { %v4403_v1 = vpop.permute.xlu1 %4402  ;;  %7159 = vmatprep.subr.bf16.mxu1 %v7158_v13  ;;  %v4357_v31 = vpop.permute.xlu0 %4356 }
 0x83d   : > { %v4368_v30 = vsel %vm3727_vm14, %v4357_v31, %v11083_v54  ;;  %v4364_v23 = vsel %vm3727_vm14, %v11083_v54, %v4357_v31 }
 0x83f   : > { %7161 = vmatpush1.bf16.msra.mxu1 %v7160_v20 }
 0x840   : > { %v4411_v9 = vpop.permute.xlu1 %4410  ;;  %v4401_v62 = vpop.permute.xlu0 %4400  ;;  %7163 = vmatprep.subr.bf16.mxu1 %v7162_v44 }
 0x841   : > { %v4417_v4 = vsel %vm3761_vm15, %v4403_v1, %v4411_v9  ;;  %v4421_v29 = vsel %vm3761_vm15, %v4411_v9, %v4403_v1 }
 0x842   : > { %v4438_v47 = vmul.f32 %v11095_v57, %v4417_v4  ;;  %v4439_v40 = vmul.f32 %v11098_v59, %v4421_v29 }
 0x843   : > { %7165 = vmatpush1.bf16.msra.mxu1 %v7164_v26 }
 0x844   : > { %v4259_v45 = vpop.permute.xlu1 %4258  ;;  %v4409_v52 = vpop.permute.xlu0 %4408  ;;  %7167 = vmatprep.subr.bf16.mxu1 %v12638_v24 }
 0x845   : > { %v4263_v5 = vsel %vm1803_vm6, %v10954_v11, %v4259_v45  ;;  %v4267_v28 = vsel %vm1803_vm6, %v4259_v45, %v10954_v11  ;;  %v4416_v56 = vsel %vm3761_vm15, %v4401_v62, %v4409_v52  ;;  %v4420_v3 = vsel %vm3761_vm15, %v4409_v52, %v4401_v62 }
 0x846   : > { %v4286_v33 = vmul.f32 %v10886_v12, %v4263_v5  ;;  %v4287_v7 = vmul.f32 %v10895_v18, %v4267_v28  ;;  %v4436_v37 = vmul.f32 %v11095_v57, %v4416_v56  ;;  %v4437_v43 = vmul.f32 %v11098_v59, %v4420_v3  ;;  %v6324_v18 = vld [vmem:[%s12625_s7 + $0x7] ss:$8 sm:$0x3] }
 0x847   : > { %7169 = vmatpush1.bf16.msra.mxu1 %v12641_v2  ;;  %v4314_v12 = vsel %vm3693_vm13, %v11057_v19, %v4309_v22  ;;  %v4381_v48 = vrot.slane %v6324_v18, %v12627_v14  ;;  %v4337_v19 = vmul.f32 %v10976_v41, %v4318_v36  ;;  %v4369_v22 = vsel %vm3727_vm14, %v11081_v53, %v11055_v15  ;;  %v4531_v2 = vld [vmem:[%s12392_s17 + $0x38] sm:$0xff] }
 0x848   : > { %v7172_v32 = vpack.c.bf16 %v4286_v33, %v4284_v17  ;;  %v7192_v11 = vpack.c.bf16 %v4438_v47, %v4436_v37  ;;  %v4355_v16 = vpop.permute.xlu1 %4354  ;;  %v4353_v63 = vpop.permute.xlu0 %4352  ;;  %v7170_v42 = vpack.c.bf16 %v4287_v7, %v4285_v46  ;;  %v7190_v6 = vpack.c.bf16 %v4439_v40, %v4437_v43  ;;  %v4524_v37 = vld [vmem:[%s12392_s17] sm:$0xff] }
 0x849   : > { %v4336_v38 = vmul.f32 %v10973_v21, %v4314_v12  ;;  %v4385_v51 = vmul.f32 %v4381_v48, %v4368_v30  ;;  %v4377_v50 = vrot.slane %v6324_v18, %v12626_v27  ;;  %v4387_v44 = vmul.f32 %v4381_v48, %v4369_v22  ;;  %v4535_v12 = vld [vmem:[%s12392_s17 + $0x58] sm:$0xff] }
 0x84a   : > { %7171 = vmatprep.subr.bf16.mxu1 %v7170_v42  ;;  %7191 = vmatprep.subr.bf16.mxu0 %v7190_v6  ;;  %v4532_v42 = vld [vmem:[%s12392_s17 + $0x40] sm:$0xff]  ;;  %v4533_v6 = vld [vmem:[%s12392_s17 + $0x48] sm:$0xff] }
 0x84b   : > { %7173 = vmatpush1.bf16.msra.mxu1 %v7172_v32  ;;  %7193 = vmatpush1.bf16.msra.mxu0 %v7192_v11  ;;  %v4384_v26 = vmul.f32 %v4377_v50, %v4364_v23  ;;  %v12642_v32 = vmov 0.0   ;;  %v4529_v11 = vld [vmem:[%s12392_s17 + $0x28] sm:$0xff] }
 0x84c   : > { %v4311_v25 = vpop.permute.xlu1 %4310  ;;  %v4361_v49 = vpop.permute.xlu0 %4360  ;;  %7175 = vmatprep.subr.bf16.mxu1 %v7174_v60 }
 0x84d   : > { %v4315_v13 = vsel %vm3693_vm13, %v11031_v34, %v4311_v25  ;;  %v4319_v1 = vsel %vm3693_vm13, %v4311_v25, %v11031_v34  ;;  %v4365_v34 = vsel %vm3727_vm14, %v11055_v15, %v11081_v53  ;;  %v4366_v0 = vsel %vm3727_vm14, %v4353_v63, %v4361_v49 }
 0x84e   : > { %v4338_v60 = vmul.f32 %v10973_v21, %v4315_v13  ;;  %v4339_v20 = vmul.f32 %v10976_v41, %v4319_v1  ;;  %v7182_v21 = vpack.c.bf16 %v4387_v44, %v4385_v51  ;;  %v4386_v41 = vmul.f32 %v4377_v50, %v4365_v34 }
 0x84f   : > { %7177 = vmatpush1.bf16.msra.mxu1 %v7176_v61  ;;  %v4370_v10 = vsel %vm3727_vm14, %v4361_v49, %v4353_v63  ;;  %v4388_v4 = vmul.f32 %v4377_v50, %v4366_v0  ;;  %v4534_v63 = vld [vmem:[%s12392_s17 + $0x50] sm:$0xff] }
 0x850   : > { %v7180_v9 = vpack.c.bf16 %v4338_v60, %v4336_v38  ;;  %v4407_v62 = vpop.permute.xlu1 %4406  ;;  %v4405_v54 = vpop.permute.xlu0 %4404  ;;  %v7178_v31 = vpack.c.bf16 %v4339_v20, %v4337_v19  ;;  %v7184_v15 = vpack.c.bf16 %v4386_v41, %v4384_v26  ;;  %v4389_v29 = vmul.f32 %v4381_v48, %v4370_v10 }
 0x852   : > { %7179 = vmatprep.subr.bf16.mxu1 %v7178_v31 }
 0x853   : > { %7181 = vmatpush1.bf16.msra.mxu1 %v7180_v9 }
 0x854   : > { %v4363_v39 = vpop.permute.xlu1 %4362  ;;  %v4413_v61 = vpop.permute.xlu0 %4412  ;;  %7183 = vmatprep.subr.bf16.mxu1 %v7182_v21 }
 0x855   : > { %v4367_v53 = vsel %vm3727_vm14, %v4355_v16, %v4363_v39  ;;  %v4371_v35 = vsel %vm3727_vm14, %v4363_v39, %v4355_v16  ;;  %v4418_v47 = vsel %vm3761_vm15, %v4405_v54, %v4413_v61  ;;  %v4422_v40 = vsel %vm3761_vm15, %v4413_v61, %v4405_v54  ;;  %v4530_v16 = vld [vmem:[%s12392_s17 + $0x30] sm:$0xff] }
 0x856   : > { %v4390_v17 = vmul.f32 %v4377_v50, %v4367_v53  ;;  %v4391_v46 = vmul.f32 %v4381_v48, %v4371_v35  ;;  %v4440_v56 = vmul.f32 %v11095_v57, %v4418_v47  ;;  %v4441_v3 = vmul.f32 %v11098_v59, %v4422_v40  ;;  %v4538_v40 = vld [vmem:[%s12393_s18 + $0x10] sm:$0xff] }
 0x857   : > { %7185 = vmatpush1.bf16.msra.mxu1 %v7184_v15 }
 0x858   : > { %v7188_v45 = vpack.c.bf16 %v4390_v17, %v4388_v4  ;;  %v4415_v52 = vpop.permute.xlu1 %4414  ;;  %v7186_v24 = vpack.c.bf16 %v4391_v46, %v4389_v29 }
 0x859   : > { %v4419_v5 = vsel %vm3761_vm15, %v4407_v62, %v4415_v52  ;;  %v4423_v28 = vsel %vm3761_vm15, %v4415_v52, %v4407_v62 }
 0x85a   : > { %v4442_v33 = vmul.f32 %v11095_v57, %v4419_v5  ;;  %v4443_v7 = vmul.f32 %v11098_v59, %v4423_v28  ;;  %7187 = vmatprep.subr.bf16.mxu1 %v7186_v24  ;;  %v4527_v57 = vld [vmem:[%s12392_s17 + $0x18] sm:$0xff]  ;;  %v4526_v59 = vld [vmem:[%s12392_s17 + $0x10] sm:$0xff] }
 0x85b   : > { %7189 = vmatpush1.bf16.msra.mxu1 %v7188_v45  ;;  %v4539_v24 = vld [vmem:[%s12393_s18 + $0x18] sm:$0xff]  ;;  %v4760_v5 = vld [vmem:[%s12394_s19 + $0x10] sm:$0xff] }
 0x85c   : > { %v7196_v43 = vpack.c.bf16 %v4442_v33, %v4440_v56  ;;  %v7194_v8 = vpack.c.bf16 %v4443_v7, %v4441_v3  ;;  %v4792_v3 = vld [vmem:[%s12395_s20 + $0x10] sm:$0xff]  ;;  %v4761_v33 = vld [vmem:[%s12394_s19 + $0x18] sm:$0xff] }
 0x85e   : > { %4637 = vmatmul.mubr.f32.vlgmr.msra.gmra.mrb[24].mxu1 %v4524_v37  ;;  %7195 = vmatprep.subr.bf16.mxu0 %v7194_v8  ;;  %v4793_v8 = vld [vmem:[%s12395_s20 + $0x18] sm:$0xff] }
 0x85f   : > { %7197 = vmatpush1.bf16.msra.mxu0 %v7196_v43  ;;  %4642 = vmatprep.mubr.f32.mxu1 %v4528_v55  ;;  %v4902_v55 = vld [vmem:[%s12643_s29 + $0x80] sm:$0xff] }
 0x862   : > { %4643 = vmatmul.mubr.f32.gmra.mrb[26].mxu1 %v4527_v57  ;;  %6326 = vmatmul.mubr.msk.f32.vlgmr.msra.gmra.mrb[20].mxu0 %vm863_vm0, %v4526_v59  ;;  %v4903_v57 = vld [vmem:[%s12643_s29 + $0x88] sm:$0xff]  ;;  %v4886_v59 = vld [vmem:[%s12643_s29] sm:$0xff] }
 0x863   : > { %4731 = vmatprep.mubr.f32.mxu0 %v12642_v32  ;;  %4648 = vmatprep.mubr.f32.mxu1 %v4531_v2  ;;  %v7198_v2 = vpack.c.bf16 %v4903_v57, %v4902_v55 }
 0x865   : > { %v4543_v18 = vpop.permute.xlu0 %4542  ;;  %7199 = vmatprep.subr.bf16.mxu1 %v7198_v2 }
 0x866   : > { %6327 = vmatmul.mubr.msk.f32.gmra.mrb[22].mxu0 %vm863_vm0, %v4529_v11  ;;  %4649 = vmatmul.mubr.f32.gmra.mrb[28].mxu1 %v4530_v16  ;;  %v4904_v11 = vld [vmem:[%s12643_s29 + $0x90] sm:$0xff]  ;;  %v4905_v16 = vld [vmem:[%s12643_s29 + $0x98] sm:$0xff] }
 0x867   : > { %4737 = vmatprep.mubr.f32.mxu0 %v12642_v32  ;;  %4654 = vmatprep.mubr.f32.mxu1 %v4534_v63 }
 0x869   : > { %v4548_v38 = vpop.permute.xlu1 %4547  ;;  %v4765_v23 = vpop.permute.xlu0 %4764 }
 0x86a   : > { %6328 = vmatmul.mubr.msk.f32.gmra.mrb[24].mxu0 %vm863_vm0, %v4532_v42  ;;  %4655 = vmatmul.mubr.f32.gmra.mrb[30].mxu1 %v4533_v6  ;;  %v7202_v42 = vpack.c.bf16 %v4905_v16, %v4904_v11  ;;  %v4888_v6 = vld [vmem:[%s12643_s29 + $0x10] sm:$0xff] }
 0x86b   : > { %4743 = vmatprep.mubr.f32.mxu0 %v12642_v32  ;;  %v4887_v32 = vld [vmem:[%s12643_s29 + $0x8] sm:$0xff] }
 0x86c   : > { %v7200_v63 = vpack.c.bf16 %v4887_v32, %v4886_v59 }
 0x86d   : > { %v4797_v50 = vpop.permute.xlu1 %4796  ;;  %v4770_v10 = vpop.permute.xlu0 %4769 }
 0x86e   : > { %6329 = vmatmul.mubr.msk.f32.gmra.mrb[26].mxu0 %vm863_vm0, %v4535_v12  ;;  %v4889_v12 = vld [vmem:[%s12643_s29 + $0x18] sm:$0xff]  ;;  %7201 = vmatpush3.bf16.msra.mxu1 %v7200_v63 }
 0x86f   : > { %7203 = vmatprep.subr.bf16.mxu1 %v7202_v42 }
 0x871   : > { %v4802_v53 = vpop.permute.xlu1 %4801 }
 0x931   : > { %v4638_v36 = vpop.f32.mrb[24].mxu1 }
 0x932   : > { %v4640_v30 = vpop.f32.mrb[25].mxu1  ;;  %v4639_v48 = vadd.f32 %v4638_v36, %v4543_v18  ;;  %v4907_v36 = vld [vmem:[%s12643_s29 + $0xa8] sm:$0xff] }
 0x933   : > { %v4641_v25 = vadd.f32 %v4640_v30, %v4543_v18  ;;  %v4906_v18 = vld [vmem:[%s12643_s29 + $0xa0] sm:$0xff]  ;;  %v7204_v30 = vpack.c.bf16 %v4889_v12, %v4888_v6 }
 0x935   : > { %v4644_v49 = vpop.f32.mrb[26].mxu1  ;;  %v4727_v19 = vpop.f32.mrb[20].mxu0  ;;  %7205 = vmatpush3.bf16.msra.mxu1 %v7204_v30 }
 0x936   : > { %v4728_v22 = vadd.f32 %v4727_v19, %v4639_v48  ;;  %v4646_v13 = vpop.f32.mrb[27].mxu1  ;;  %v4729_v1 = vpop.f32.mrb[21].mxu0  ;;  %v4645_v60 = vadd.f32 %v4644_v49, %v4548_v38  ;;  %v4890_v48 = vld [vmem:[%s12643_s29 + $0x20] sm:$0xff]  ;;  %v4908_v49 = vld [vmem:[%s12643_s29 + $0xb0] sm:$0xff]  ;;  %v4909_v19 = vld [vmem:[%s12643_s29 + $0xb8] sm:$0xff] }
 0x937   : > { %v4730_v51 = vadd.f32 %v4729_v1, %v4641_v25  ;;  %v4647_v34 = vadd.f32 %v4646_v13, %v4548_v38  ;;  %v7206_v38 = vpack.c.bf16 %v4907_v36, %v4906_v18  ;;  %v4891_v25 = vld [vmem:[%s12643_s29 + $0x28] sm:$0xff]  ;;  %v7210_v13 = vpack.c.bf16 %v4909_v19, %v4908_v49  ;;  %v4892_v1 = vld [vmem:[%s12643_s29 + $0x30] sm:$0xff] }
 0x938   : > { %v4750_v20 = vmax.f32 %v4728_v22, 0.0  ;;  %v7208_v22 = vpack.c.bf16 %v4891_v25, %v4890_v48 }
 0x939   : > { %v4751_v44 = vmax.f32 %v4730_v51, 0.0  ;;  %v4733_v9 = vpop.f32.mrb[22].mxu0  ;;  %v11243_v29 = vpop.f32.mrb[28].mxu1  ;;  %7207 = vmatprep.subr.bf16.mxu1 %v7206_v38  ;;  %v4910_v51 = vld [vmem:[%s12643_s29 + $0xc0] sm:$0xff] }
 0x93a   : > { %v4782_v62 = vmul.f32 %v4765_v23, %v4750_v20  ;;  %v4734_v54 = vadd.f32 %v4733_v9, %v4645_v60  ;;  %v4735_v31 = vpop.f32.mrb[23].mxu0  ;;  %v11247_v46 = vpop.f32.mrb[29].mxu1  ;;  %v4911_v60 = vld [vmem:[%s12643_s29 + $0xc8] sm:$0xff]  ;;  %7209 = vmatpush3.bf16.msra.mxu1 %v7208_v22  ;;  %v4912_v9 = vld [vmem:[%s12643_s29 + $0xd0] sm:$0xff] }
 0x93b   : > { %v4783_v26 = vmul.f32 %v4765_v23, %v4751_v44  ;;  %v4736_v21 = vadd.f32 %v4735_v31, %v4647_v34  ;;  %v4893_v23 = vld [vmem:[%s12643_s29 + $0x38] sm:$0xff]  ;;  %7211 = vmatprep.subr.bf16.mxu1 %v7210_v13  ;;  %v4894_v34 = vld [vmem:[%s12643_s29 + $0x40] sm:$0xff]  ;;  %v4895_v44 = vld [vmem:[%s12643_s29 + $0x48] sm:$0xff] }
 0x93c   : > { %v11237_v41 = vadd.f32 %v4797_v50, %v4782_v62  ;;  %v4752_v0 = vmax.f32 %v4734_v54, 0.0  ;;  %v7212_v20 = vpack.c.bf16 %v4893_v23, %v4892_v1  ;;  %v4913_v62 = vld [vmem:[%s12643_s29 + $0xd8] sm:$0xff]  ;;  %v7216_v54 = vpack.c.bf16 %v4895_v44, %v4894_v34 }
 0x93d   : > { %v11239_v39 = vadd.f32 %v4797_v50, %v4783_v26  ;;  %v4753_v61 = vmax.f32 %v4736_v21, 0.0  ;;  %v11258_v52 = vpop.f32.mrb[24].mxu0  ;;  %v11268_v56 = vpop.f32.mrb[30].mxu1  ;;  %v7214_v50 = vpack.c.bf16 %v4911_v60, %v4910_v51  ;;  %v7218_v31 = vpack.c.bf16 %v4913_v62, %v4912_v9  ;;  %v4896_v26 = vld [vmem:[%s12643_s29 + $0x50] sm:$0xff]  ;;  %v4897_v21 = vld [vmem:[%s12643_s29 + $0x58] sm:$0xff] }
 0x93e   : > { %v4784_v15 = vmul.f32 %v4770_v10, %v4752_v0  ;;  %v11266_v28 = vpop.f32.mrb[25].mxu0  ;;  %v11276_v7 = vpop.f32.mrb[31].mxu1  ;;  %7213 = vmatpush3.bf16.msra.mxu1 %v7212_v20  ;;  %v4914_v0 = vld [vmem:[%s12643_s29 + $0xe0] sm:$0xff] }
 0x93f   : > { %v7612_v35 = vpack.i.bf16 %v11239_v39, %v11237_v41  ;;  %v4785_v4 = vmul.f32 %v4770_v10, %v4753_v61  ;;  %7215 = vmatprep.subr.bf16.mxu1 %v7214_v50  ;;  %v4915_v10 = vld [vmem:[%s12643_s29 + $0xe8] sm:$0xff]  ;;  %v7220_v61 = vpack.c.bf16 %v4897_v21, %v4896_v26 }
 0x940   : > { %v11245_v17 = vadd.f32 %v4802_v53, %v4784_v15  ;;  %v7222_v15 = vpack.c.bf16 %v4915_v10, %v4914_v0 }
 0x941   : > { %v11249_v47 = vadd.f32 %v4802_v53, %v4785_v4  ;;  %7613 = vrot.lane.b32.xlu0 %v7612_v35, %s12550_s26  ;;  %v11278_v37 = vpop.f32.mrb[26].mxu0  ;;  %v4898_v53 = vld [vmem:[%s12643_s29 + $0x60] sm:$0xff]  ;;  %v4899_v35 = vld [vmem:[%s12643_s29 + $0x68] sm:$0xff] }
 0x942   : > { %v11280_v43 = vpop.f32.mrb[27].mxu0  ;;  %7217 = vmatpush3.bf16.msra.mxu1 %v7216_v54  ;;  %v7224_v4 = vpack.c.bf16 %v4899_v35, %v4898_v53 }
 0x943   : > { %v7617_v45 = vpack.i.bf16 %v11249_v47, %v11245_v17  ;;  %7219 = vmatprep.subr.bf16.mxu1 %v7218_v31 }
 0x945   : > { %7618 = vrot.lane.b32.xlu1 %v7617_v45, %s12550_s26  ;;  %4552 = vperm.xlu0 %7540, %v4538_v40   ;;  %v4916_v40 = vld [vmem:[%s12643_s29 + $0xf0] sm:$0xff]  ;;  %v4917_v45 = vld [vmem:[%s12643_s29 + $0xf8] sm:$0xff] }
 0x946   : > { %7221 = vmatpush3.bf16.msra.mxu1 %v7220_v61 }
 0x947   : > { %7223 = vmatprep.subr.bf16.mxu1 %v7222_v15 }
 0x949   : > { %4557 = vperm.xlu1 %7541, %v4539_v24   ;;  %4774 = vperm.xlu0 %7540, %v4760_v5   ;;  %v4900_v24 = vld [vmem:[%s12643_s29 + $0x70] sm:$0xff]  ;;  %v7226_v5 = vpack.c.bf16 %v4917_v45, %v4916_v40 }
 0x94a   : > { %7225 = vmatpush3.bf16.msra.mxu1 %v7224_v4 }
 0x94b   : > { %7227 = vmatprep.subr.bf16.mxu1 %v7226_v5 }
 0x94d   : > { %4806 = vperm.xlu1 %7541, %v4792_v3   ;;  %4779 = vperm.xlu0 %7540, %v4761_v33   ;;  %v4901_v3 = vld [vmem:[%s12643_s29 + $0x78] sm:$0xff] }
 0x951   : > { %4811 = vperm.xlu0 %7540, %v4793_v8   ;;  %v7228_v8 = vpack.c.bf16 %v4901_v3, %v4900_v24 }
 0x953   : > { %7229 = vmatpush3.bf16.msra.mxu1 %v7228_v8 }
 0x9b3   : > { %v7614_v33 = vpop.permute.xlu0 %7613 }
 0x9b4   : > { %v7616_v55 = vunpack.i.h.bf16 %v7614_v33  ;;  %v7615_v57 = vunpack.i.l.bf16 %v7614_v33 }
 0x9b6   : > { %v4838_v59 = vsel %vm1803_vm6, %v7615_v57, %v7616_v55  ;;  %v4842_v2 = vsel %vm1803_vm6, %v7616_v55, %v7615_v57 }
 0x9b7   : > { %v4846_v32 = vmax.f32 %v11237_v41, %v4838_v59  ;;  %v4847_v11 = vmax.f32 %v11239_v39, %v4842_v2  ;;  %v7619_v16 = vpop.permute.xlu1 %7618 }
 0x9b8   : > { %v7621_v63 = vunpack.i.h.bf16 %v7619_v16  ;;  %v7620_v42 = vunpack.i.l.bf16 %v7619_v16 }
 0x9b9   : > { %v7622_v6 = vpack.i.bf16 %v4847_v11, %v4846_v32 }
 0x9ba   : > { %v4839_v12 = vsel %vm1803_vm6, %v7620_v42, %v7621_v63  ;;  %v4843_v18 = vsel %vm1803_vm6, %v7621_v63, %v7620_v42 }
 0x9bb   : > { %v4848_v36 = vmax.f32 %v11245_v17, %v4839_v12  ;;  %v4849_v30 = vmax.f32 %v11249_v47, %v4843_v18  ;;  %7623 = vrot.lane.b32.xlu1 %v7622_v6, %s12630_s10 }
 0x9bd   : > { %v7627_v38 = vpack.i.bf16 %v4849_v30, %v4848_v36 }
 0x9bf   : > { %7628 = vrot.lane.b32.xlu1 %v7627_v38, %s12630_s10  ;;  %v5304_v38 = vld [vmem:[%s12396_s21] sm:$0xff] }
 0x9c4   : > { %v4553_v41 = vpop.permute.xlu0 %4552 }
 0x9c5   : > { %v4651_v39 = vadd.f32 %v11243_v29, %v4553_v41  ;;  %v4653_v48 = vadd.f32 %v11247_v46, %v4553_v41 }
 0x9c7   : > { %v4740_v25 = vadd.f32 %v11258_v52, %v4651_v39  ;;  %v4742_v49 = vadd.f32 %v11266_v28, %v4653_v48  ;;  %v5305_v39 = vld [vmem:[%s12396_s21 + $0x8] sm:$0xff]  ;;  %v5322_v48 = vld [vmem:[%s12396_s21 + $0x90] sm:$0xff] }
 0x9c8   : > { %v4558_v19 = vpop.permute.xlu1 %4557  ;;  %v4775_v22 = vpop.permute.xlu0 %4774 }
 0x9c9   : > { %v4754_v13 = vmax.f32 %v4740_v25, 0.0  ;;  %v4755_v17 = vmax.f32 %v4742_v49, 0.0  ;;  %v4657_v47 = vadd.f32 %v11268_v56, %v4558_v19  ;;  %v4659_v1 = vadd.f32 %v11276_v7, %v4558_v19  ;;  %v5323_v25 = vld [vmem:[%s12396_s21 + $0x98] sm:$0xff] }
 0x9ca   : > { %v7232_v49 = vpack.c.bf16 %v5305_v39, %v5304_v38  ;;  %v7234_v19 = vpack.c.bf16 %v5323_v25, %v5322_v48  ;;  %v5330_v25 = vld [vmem:[%s12396_s21 + $0xd0] sm:$0xff] }
 0x9cb   : > { %v4786_v23 = vmul.f32 %v4775_v22, %v4754_v13  ;;  %v4787_v51 = vmul.f32 %v4775_v22, %v4755_v17  ;;  %v4746_v60 = vadd.f32 %v11278_v37, %v4657_v47  ;;  %v4748_v29 = vadd.f32 %v11280_v43, %v4659_v1  ;;  %v5306_v22 = vld [vmem:[%s12396_s21 + $0x10] sm:$0xff]  ;;  %v5307_v13 = vld [vmem:[%s12396_s21 + $0x18] sm:$0xff] }
 0x9cc   : > { %v4807_v20 = vpop.permute.xlu1 %4806  ;;  %v4780_v46 = vpop.permute.xlu0 %4779  ;;  %v7236_v17 = vpack.c.bf16 %v5307_v13, %v5306_v22 }
 0x9cd   : > { %v4756_v50 = vmax.f32 %v4746_v60, 0.0  ;;  %v4757_v52 = vmax.f32 %v4748_v29, 0.0  ;;  %v4818_v34 = vadd.f32 %v4807_v20, %v4786_v23  ;;  %v4819_v28 = vadd.f32 %v4807_v20, %v4787_v51 }
 0x9cf   : > { %v7632_v44 = vpack.i.bf16 %v4819_v28, %v4818_v34  ;;  %v4788_v9 = vmul.f32 %v4780_v46, %v4756_v50  ;;  %v4789_v62 = vmul.f32 %v4780_v46, %v4757_v52 }
 0x9d0   : > { %v4812_v54 = vpop.permute.xlu0 %4811 }
 0x9d1   : > { %v4820_v31 = vadd.f32 %v4812_v54, %v4788_v9  ;;  %v4821_v56 = vadd.f32 %v4812_v54, %v4789_v62  ;;  %7633 = vrot.lane.b32.xlu0 %v7632_v44, %s12550_s26  ;;  %v7680_v62 = vmov 1966171168  }
 0x9d2   : > { %v5010_v54 = vunpack.c.l.s4 %v7680_v62 }
 0x9d3   : > { %v7637_v7 = vpack.i.bf16 %v4821_v56, %v4820_v31 }
 0x9d5   : > { %7638 = vrot.lane.b32.xlu1 %v7637_v7, %s12550_s26  ;;  %v5325_v7 = vld [vmem:[%s12396_s21 + $0xa8] sm:$0xff]  ;;  %s12657_s26 = sld [smem:[#allocation59_spill]] }
 0xa2d   : > { %v7624_v37 = vpop.permute.xlu1 %7623 }
 0xa2e   : > { %v7626_v26 = vunpack.i.h.bf16 %v7624_v37  ;;  %v7625_v43 = vunpack.i.l.bf16 %v7624_v37 }
 0xa30   : > { %v4870_v21 = vsel %vm3727_vm14, %v7625_v43, %v7626_v26  ;;  %v4874_v0 = vsel %vm3727_vm14, %v7626_v26, %v7625_v43  ;;  %v5309_v26 = vld [vmem:[%s12396_s21 + $0x28] sm:$0xff] }
 0xa31   : > { %v4878_v10 = vmax.f32 %v4846_v32, %v4870_v21  ;;  %v7629_v61 = vpop.permute.xlu1 %7628  ;;  %v4879_v15 = vmax.f32 %v4847_v11, %v4874_v0  ;;  %v7240_v43 = vpack.c.bf16 %v5309_v26, %v5308_v58  ;;  %v12644_v0 = vld [vmem:[#allocation21_spill] sm:$0xff] }
 0xa32   : > { %v7631_v53 = vunpack.i.h.bf16 %v7629_v61  ;;  %v7630_v35 = vunpack.i.l.bf16 %v7629_v61  ;;  %v5335_v26 = vld [vmem:[%s12396_s21 + $0xf8] sm:$0xff] }
 0xa33   : > { %4982 = vmatprep.mubr.f32.mxu1 %v4879_v15  ;;  %v12645_v15 = vlaneseq }
 0xa34   : > { %4983 = vmatmul.mubr.f32.vlgmr.msra.gmra.mrb[32].mxu1 %v4878_v10  ;;  %v4875_v4 = vsel %vm3727_vm14, %v7631_v53, %v7630_v35  ;;  %v4871_v40 = vsel %vm3727_vm14, %v7630_v35, %v7631_v53  ;;  %v5326_v35 = vld [vmem:[%s12396_s21 + $0xb0] sm:$0xff] }
 0xa35   : > { %v4881_v45 = vmax.f32 %v4849_v30, %v4875_v4  ;;  %v4880_v24 = vmax.f32 %v4848_v36, %v4871_v40  ;;  %v5320_v36 = vld [vmem:[%s12396_s21 + $0x80] sm:$0xff]  ;;  %v5321_v30 = vld [vmem:[%s12396_s21 + $0x88] sm:$0xff]  ;;  %vm11471_vm0 = vcmp.lt.s32.totalorder %v12645_v15, 64  ;;  %v5327_v4 = vld [vmem:[%s12396_s21 + $0xb8] sm:$0xff]  ;;  %vm5034_vm1 = vcmp.ge.s32.totalorder %v12645_v15, 64 }
 0xa36   : > { %v7230_v41 = vpack.c.bf16 %v5321_v30, %v5320_v36  ;;  %v5310_v40 = vld [vmem:[%s12396_s21 + $0x30] sm:$0xff]  ;;  %vm5035_vm2 = vcmp.lt.s32.totalorder %v12645_v15, 128 }
 0xa37   : > { %4987 = vmatprep.mubr.f32.mxu1 %v4881_v45  ;;  %vm11597_vm3 = vmand %vm5034_vm1, %vm5035_vm2  ;;  %v5514_v15 = vld [vmem:[%s12396_s21 + $0x690] sm:$0xff] }
 0xa38   : > { %4988 = vmatmul.mubr.f32.gmra.mrb[34].mxu1 %v4880_v24  ;;  %7231 = vmatprep.subr.bf16.mxu1 %v7230_v41  ;;  %v7242_v24 = vpack.c.bf16 %v5327_v4, %v5326_v35  ;;  %v5352_v4 = vld [vmem:[%s12396_s21 + $0x180] sm:$0xff] }
 0xa39   : > { %7233 = vmatpush3.bf16.msra.mxu1 %v7232_v49  ;;  %v5331_v49 = vld [vmem:[%s12396_s21 + $0xd8] sm:$0xff] }
 0xa3a   : > { %7235 = vmatprep.subr.bf16.mxu1 %v7234_v19  ;;  %v5314_v19 = vld [vmem:[%s12396_s21 + $0x50] sm:$0xff] }
 0xa3d   : > { %7237 = vmatpush3.bf16.msra.mxu1 %v7236_v17 }
 0xa43   : > { %v7634_v5 = vpop.permute.xlu0 %7633 }
 0xa44   : > { %v7636_v3 = vunpack.i.h.bf16 %v7634_v5  ;;  %v7635_v33 = vunpack.i.l.bf16 %v7634_v5  ;;  %v5311_v5 = vld [vmem:[%s12396_s21 + $0x38] sm:$0xff] }
 0xa46   : > { %v4840_v8 = vsel %vm1803_vm6, %v7635_v33, %v7636_v3  ;;  %v4844_v55 = vsel %vm1803_vm6, %v7636_v3, %v7635_v33  ;;  %v7244_v3 = vpack.c.bf16 %v5311_v5, %v5310_v40  ;;  %v5353_v40 = vld [vmem:[%s12396_s21 + $0x188] sm:$0xff] }
 0xa47   : > { %v4850_v57 = vmax.f32 %v4818_v34, %v4840_v8  ;;  %v4851_v59 = vmax.f32 %v4819_v28, %v4844_v55  ;;  %v7639_v2 = vpop.permute.xlu1 %7638  ;;  %v5449_v5 = vld [vmem:[%s12396_s21 + $0x488] sm:$0xff] }
 0xa48   : > { %v7641_v32 = vunpack.i.h.bf16 %v7639_v2  ;;  %v7640_v11 = vunpack.i.l.bf16 %v7639_v2  ;;  %v5329_v2 = vld [vmem:[%s12396_s21 + $0xc8] sm:$0xff] }
 0xa49   : > { %v7642_v16 = vpack.i.bf16 %v4851_v59, %v4850_v57 }
 0xa4a   : > { %v4841_v63 = vsel %vm1803_vm6, %v7640_v11, %v7641_v32  ;;  %v4845_v42 = vsel %vm1803_vm6, %v7641_v32, %v7640_v11  ;;  %v5312_v32 = vld [vmem:[%s12396_s21 + $0x40] sm:$0xff] }
 0xa4b   : > { %v4852_v6 = vmax.f32 %v4820_v31, %v4841_v63  ;;  %v4853_v12 = vmax.f32 %v4821_v56, %v4845_v42  ;;  %7643 = vrot.lane.b32.xlu0 %v7642_v16, %s12630_s10  ;;  %v5011_v31 = vunpack.c.0.s8 %v5010_v54  ;;  %v5324_v56 = vld [vmem:[%s12396_s21 + $0xa0] sm:$0xff] }
 0xa4c   : > { %v7238_v37 = vpack.c.bf16 %v5325_v7, %v5324_v56 }
 0xa4d   : > { %v7647_v18 = vpack.i.bf16 %v4853_v12, %v4852_v6  ;;  %v11468_v10 = vsub.s32 %v5011_v31, %v12644_v0  ;;  %v5319_v0 = vld [vmem:[%s12396_s21 + $0x78] sm:$0xff] }
 0xa4e   : > { %7239 = vmatprep.subr.bf16.mxu1 %v7238_v37  ;;  %v5334_v37 = vld [vmem:[%s12396_s21 + $0xf0] sm:$0xff] }
 0xa4f   : > { %7648 = vrot.lane.b32.xlu1 %v7647_v18, %s12630_s10  ;;  %7241 = vmatpush3.bf16.msra.mxu1 %v7240_v43  ;;  %v7258_v43 = vpack.c.bf16 %v5335_v26, %v5334_v37  ;;  %v5357_v37 = vld [vmem:[%s12396_s21 + $0x1a8] sm:$0xff]  ;;  %s12656_s10 = sld [smem:[#allocation8_spill]] }
 0xa50   : > { %7243 = vmatprep.subr.bf16.mxu1 %v7242_v24  ;;  %v5448_v24 = vld [vmem:[%s12396_s21 + $0x480] sm:$0xff] }
 0xa53   : > { %7245 = vmatpush3.bf16.msra.mxu1 %v7244_v3  ;;  %v7358_v3 = vpack.c.bf16 %v5449_v5, %v5448_v24  ;;  %v5341_v5 = vld [vmem:[%s12396_s21 + $0x128] sm:$0xff] }
 0xa55   : > { %7359 = vmatprep.subr.bf16.mxu0 %v7358_v3  ;;  %s816_s1 = scalar_lea.vmem %s12658_s0, %s12656_s10 }
 0xabd   : > { %v7644_v47 = vpop.permute.xlu0 %7643 }
 0xabe   : > { %v7646_v1 = vunpack.i.h.bf16 %v7644_v47  ;;  %v7645_v23 = vunpack.i.l.bf16 %v7644_v47 }
 0xac0   : > { %v4876_v51 = vsel %vm3727_vm14, %v7646_v1, %v7645_v23  ;;  %v4872_v60 = vsel %vm3727_vm14, %v7645_v23, %v7646_v1  ;;  %v5315_v1 = vld [vmem:[%s12396_s21 + $0x58] sm:$0xff] }
 0xac1   : > { %v7649_v29 = vpop.permute.xlu1 %7648  ;;  %v4883_v20 = vmax.f32 %v4851_v59, %v4876_v51  ;;  %v4882_v46 = vmax.f32 %v4850_v57, %v4872_v60  ;;  %v5328_v59 = vld [vmem:[%s12396_s21 + $0xc0] sm:$0xff]  ;;  %v7250_v60 = vpack.c.bf16 %v5331_v49, %v5330_v25  ;;  %v5437_v49 = vld [vmem:[%s12396_s21 + $0x428] sm:$0xff] }
 0xac2   : > { %v7651_v50 = vunpack.i.h.bf16 %v7649_v29  ;;  %v7650_v52 = vunpack.i.l.bf16 %v7649_v29  ;;  %v7252_v29 = vpack.c.bf16 %v5315_v1, %v5314_v19  ;;  %v5436_v25 = vld [vmem:[%s12396_s21 + $0x420] sm:$0xff] }
 0xac3   : > { %4992 = vmatprep.mubr.f32.mxu1 %v4883_v20  ;;  %v5332_v20 = vld [vmem:[%s12396_s21 + $0xe0] sm:$0xff]  ;;  %v7368_v19 = vpack.c.bf16 %v5437_v49, %v5436_v25  ;;  %v5442_v49 = vld [vmem:[%s12396_s21 + $0x450] sm:$0xff] }
 0xac4   : > { %4993 = vmatmul.mubr.f32.gmra.mrb[36].mxu1 %v4882_v46  ;;  %v4877_v34 = vsel %vm3727_vm14, %v7651_v50, %v7650_v52  ;;  %v4873_v28 = vsel %vm3727_vm14, %v7650_v52, %v7651_v50  ;;  %v5333_v46 = vld [vmem:[%s12396_s21 + $0xe8] sm:$0xff]  ;;  %v5316_v52 = vld [vmem:[%s12396_s21 + $0x60] sm:$0xff] }
 0xac5   : > { %v4885_v44 = vmax.f32 %v4853_v12, %v4877_v34  ;;  %v4884_v9 = vmax.f32 %v4852_v6, %v4873_v28  ;;  %v5313_v6 = vld [vmem:[%s12396_s21 + $0x48] sm:$0xff]  ;;  %v7246_v12 = vpack.c.bf16 %v5329_v2, %v5328_v59  ;;  %v5451_v59 = vld [vmem:[%s12396_s21 + $0x498] sm:$0xff] }
 0xac6   : > { %v7248_v18 = vpack.c.bf16 %v5313_v6, %v5312_v32  ;;  %v5317_v34 = vld [vmem:[%s12396_s21 + $0x68] sm:$0xff]  ;;  %v5434_v32 = vld [vmem:[%s12396_s21 + $0x410] sm:$0xff] }
 0xac7   : > { %4997 = vmatprep.mubr.f32.mxu1 %v4885_v44  ;;  %7247 = vmatprep.subr.bf16.mxu1 %v7246_v12  ;;  %v7254_v44 = vpack.c.bf16 %v5333_v46, %v5332_v20  ;;  %v7256_v56 = vpack.c.bf16 %v5317_v34, %v5316_v52 }
 0xac8   : > { %4998 = vmatmul.mubr.f32.gmra.mrb[38].mxu1 %v4884_v9 }
 0xac9   : > { %7249 = vmatpush3.bf16.msra.mxu1 %v7248_v18 }
 0xaca   : > { %7251 = vmatprep.subr.bf16.mxu1 %v7250_v60  ;;  %v5455_v60 = vld [vmem:[%s12396_s21 + $0x4b8] sm:$0xff] }
 0xacd   : > { %7253 = vmatpush3.bf16.msra.mxu1 %v7252_v29 }
 0xace   : > { %7255 = vmatprep.subr.bf16.mxu1 %v7254_v44  ;;  %v5338_v44 = vld [vmem:[%s12396_s21 + $0x110] sm:$0xff] }
 0xad1   : > { %7257 = vmatpush3.bf16.msra.mxu1 %v7256_v56 }
 0xad2   : > { %7259 = vmatprep.subr.bf16.mxu1 %v7258_v43  ;;  %v12650_v43 = vld [vmem:[#allocation25_spill] sm:$0xff] }
 0xb07   : > { %v6366_v21 = vpop.f32.mrb[32].mxu1 }
 0xb08   : > { %v6367_v61 = vpop.f32.mrb[33].mxu1 }
 0xb09   : > { %v6368_v45 = vadd.f32 %v6367_v61, %v6366_v21  ;;  %v5318_v21 = vld [vmem:[%s12396_s21 + $0x70] sm:$0xff] }
 0xb0a   : > { %v7260_v61 = vpack.c.bf16 %v5319_v0, %v5318_v21  ;;  %v11685_v0 = vld [vmem:[%s12396_s21 + $0x120] sm:$0xff] }
 0xb0b   : > { %v5015_v33 = vrot.slane %v6368_v45, %v11468_v10  ;;  %v5046_v8 = vcombine.high %v6368_v45, %v6368_v45  ;;  %v6369_v55 = vpop.f32.mrb[34].mxu1  ;;  %5007 = vst.msk [vmem:[#allocation5] sm:$0x1] %vm11471_vm0, %v6368_v45  ;;  %v7262_v45 = vpack.c.bf16 %v5353_v40, %v5352_v4  ;;  %v5457_v4 = vld [vmem:[%s12396_s21 + $0x4c8] sm:$0xff] }
 0xb0c   : > { %v6370_v57 = vpop.f32.mrb[35].mxu1  ;;  %7261 = vmatpush3.bf16.msra.mxu1 %v7260_v61 }
 0xb0d   : > { %v5016_v11 = vcombine.high %v5015_v33, %v5015_v33  ;;  %v5053_v16 = vrot.slane %v5046_v8, %v11468_v10  ;;  %v6371_v63 = vadd.f32 %v6370_v57, %v6369_v55  ;;  %v5023_v42 = vrot.slane %v5015_v33, %v11468_v10  ;;  %7263 = vmatprep.subr.bf16.mxu1 %v7262_v45  ;;  %v5432_v33 = vld [vmem:[%s12396_s21 + $0x400] sm:$0xff]  ;;  %v5433_v8 = vld [vmem:[%s12396_s21 + $0x408] sm:$0xff]  ;;  %v5450_v57 = vld [vmem:[%s12396_s21 + $0x490] sm:$0xff] }
 0xb0e   : > { %v7360_v55 = vpack.c.bf16 %v5433_v8, %v5432_v33  ;;  %v7362_v2 = vpack.c.bf16 %v5451_v59, %v5450_v57  ;;  %v5440_v33 = vld [vmem:[%s12396_s21 + $0x440] sm:$0xff]  ;;  %v5441_v8 = vld [vmem:[%s12396_s21 + $0x448] sm:$0xff] }
 0xb0f   : > { %v5063_v36 = vcombine.high %v5053_v16, %v5053_v16  ;;  %v5091_v30 = vrot.slane %v6371_v63, %v11468_v10  ;;  %v5119_v38 = vcombine.high %v6371_v63, %v6371_v63  ;;  %v5030_v41 = vrot.slane %v5016_v11, %v11468_v10  ;;  %5083 = vst.msk [vmem:[#allocation5 + $0x4] sm:$0x1] %vm11471_vm0, %v6371_v63  ;;  %v5435_v11 = vld [vmem:[%s12396_s21 + $0x418] sm:$0xff] }
 0xb10   : > { %v5038_v39 = vcombine.high %v5023_v42, %v5023_v42  ;;  %v5060_v48 = vrot.slane %v5053_v16, %v11468_v10  ;;  %7361 = vmatpush3.bf16.msra.mxu0 %v7360_v55  ;;  %v7364_v16 = vpack.c.bf16 %v5435_v11, %v5434_v32 }
 0xb11   : > { %v5092_v22 = vcombine.high %v5091_v30, %v5091_v30  ;;  %v5126_v13 = vrot.slane %v5119_v38, %v11468_v10  ;;  %5031 = vrot.lane.b32.xlu0 %v5030_v41, %s7681_s30  ;;  %v5041_v17 = vcombine.high %v5030_v41, %v5030_v41  ;;  %v5070_v47 = vrot.slane %v5063_v36, %v11468_v10  ;;  %v5452_v41 = vld [vmem:[%s12396_s21 + $0x4a0] sm:$0xff] }
 0xb12   : > { %5040 = vst.msk [vmem:[#allocation5 + $0x1] sm:$0x1] %vm11471_vm0, %v5038_v39  ;;  %5062 = vst.msk [vmem:[#allocation5 + $0x2] sm:$0x1] %vm11471_vm0, %v5060_v48  ;;  %v5075_v23 = vcombine.high %v5060_v48, %v5060_v48  ;;  %v5099_v51 = vrot.slane %v5091_v30, %v11468_v10  ;;  %7363 = vmatprep.subr.bf16.mxu0 %v7362_v2  ;;  %v5453_v39 = vld [vmem:[%s12396_s21 + $0x4a8] sm:$0xff] }
 0xb13   : > { %5042 = vrot.lane.b32.xlu1 %v5041_v17, %s7681_s30  ;;  %v5133_v50 = vrot.slane %v5126_v13, %v11468_v10  ;;  %v5136_v9 = vcombine.high %v5126_v13, %v5126_v13  ;;  %v5078_v62 = vcombine.high %v5070_v47, %v5070_v47  ;;  %v5106_v54 = vrot.slane %v5092_v22, %v11468_v10  ;;  %v5336_v13 = vld [vmem:[%s12396_s21 + $0x100] sm:$0xff]  ;;  %v5337_v17 = vld [vmem:[%s12396_s21 + $0x108] sm:$0xff] }
 0xb14   : > { %5077 = vst.msk [vmem:[#allocation5 + $0x3] sm:$0x1] %vm11471_vm0, %v5075_v23  ;;  %v5111_v28 = vcombine.high %v5099_v51, %v5099_v51  ;;  %7365 = vmatpush3.bf16.msra.mxu0 %v7364_v16  ;;  %v7366_v48 = vpack.c.bf16 %v5453_v39, %v5452_v41  ;;  %v5355_v23 = vld [vmem:[%s12396_s21 + $0x198] sm:$0xff]  ;;  %v5454_v51 = vld [vmem:[%s12396_s21 + $0x4b0] sm:$0xff] }
 0xb15   : > { %5071 = vrot.lane.b32.xlu0 %v5070_v47, %s7681_s30  ;;  %5135 = vst.msk [vmem:[#allocation5 + $0x6] sm:$0x1] %vm11471_vm0, %v5133_v50  ;;  %v5148_v31 = vcombine.high %v5133_v50, %v5133_v50  ;;  %v5114_v7 = vcombine.high %v5106_v54, %v5106_v54  ;;  %v5143_v58 = vrot.slane %v5136_v9, %v11468_v10  ;;  %v5354_v47 = vld [vmem:[%s12396_s21 + $0x190] sm:$0xff]  ;;  %v5439_v9 = vld [vmem:[%s12396_s21 + $0x438] sm:$0xff] }
 0xb16   : > { %5113 = vst.msk [vmem:[#allocation5 + $0x5] sm:$0x1] %vm11471_vm0, %v5111_v28  ;;  %7367 = vmatprep.subr.bf16.mxu0 %v7366_v48  ;;  %v7370_v46 = vpack.c.bf16 %v5455_v60, %v5454_v51  ;;  %v5438_v50 = vld [vmem:[%s12396_s21 + $0x430] sm:$0xff]  ;;  %v7264_v28 = vpack.c.bf16 %v5337_v17, %v5336_v13  ;;  %v7266_v56 = vpack.c.bf16 %v5355_v23, %v5354_v47  ;;  %v5343_v23 = vld [vmem:[%s12396_s21 + $0x138] sm:$0xff]  ;;  %v5460_v51 = vld [vmem:[%s12396_s21 + $0x4e0] sm:$0xff] }
 0xb17   : > { %5079 = vrot.lane.b32.xlu1 %v5078_v62, %s7681_s30  ;;  %5150 = vst.msk [vmem:[#allocation5 + $0x7] sm:$0x1] %vm11471_vm0, %v5148_v31  ;;  %v5151_v35 = vcombine.high %v5143_v58, %v5143_v58  ;;  %v7372_v61 = vpack.c.bf16 %v5439_v9, %v5438_v50  ;;  %v5461_v60 = vld [vmem:[%s12396_s21 + $0x4e8] sm:$0xff] }
 0xb18   : > { %7369 = vmatpush3.bf16.msra.mxu0 %v7368_v19  ;;  %v5443_v19 = vld [vmem:[%s12396_s21 + $0x458] sm:$0xff] }
 0xb19   : > { %5107 = vrot.lane.b32.xlu0 %v5106_v54, %s7681_s30  ;;  %7371 = vmatprep.subr.bf16.mxu0 %v7370_v46  ;;  %v5361_v46 = vld [vmem:[%s12396_s21 + $0x1c8] sm:$0xff] }
 0xb1b   : > { %5115 = vrot.lane.b32.xlu1 %v5114_v7, %s7681_s30  ;;  %v5339_v7 = vld [vmem:[%s12396_s21 + $0x118] sm:$0xff] }
 0xb1c   : > { %v7268_v55 = vpack.c.bf16 %v5339_v7, %v5338_v44  ;;  %7373 = vmatpush3.bf16.msra.mxu0 %v7372_v61  ;;  %v7382_v7 = vpack.c.bf16 %v5461_v60, %v5460_v51  ;;  %v5362_v61 = vld [vmem:[%s12396_s21 + $0x1d0] sm:$0xff] }
 0xb1d   : > { %5144 = vrot.lane.b32.xlu0 %v5143_v58, %s7681_s30  ;;  %v5356_v58 = vld [vmem:[%s12396_s21 + $0x1a0] sm:$0xff] }
 0xb1e   : > { %v7270_v57 = vpack.c.bf16 %v5357_v37, %v5356_v58  ;;  %v5462_v58 = vld [vmem:[%s12396_s21 + $0x4f0] sm:$0xff]  ;;  %v5463_v37 = vld [vmem:[%s12396_s21 + $0x4f8] sm:$0xff] }
 0xb1f   : > { %5152 = vrot.lane.b32.xlu1 %v5151_v35, %s7681_s30  ;;  %v5456_v35 = vld [vmem:[%s12396_s21 + $0x4c0] sm:$0xff] }
 0xb20   : > { %v7374_v59 = vpack.c.bf16 %v5457_v4, %v5456_v35  ;;  %v5363_v35 = vld [vmem:[%s12396_s21 + $0x1d8] sm:$0xff] }
 0xb21   : > { %v7282_v53 = vpack.c.bf16 %v5363_v35, %v5362_v61 }
 0xb22   : > { %7375 = vmatprep.subr.bf16.mxu0 %v7374_v59 }
 0xb83   : > { %v5032_v63 = vpop.permute.xlu0 %5031 }
 0xb84   : > { %5037 = vst.msk [vmem:[#allocation5] sm:$0x1] %vm11597_vm3, %v5032_v63  ;;  %v5358_v63 = vld [vmem:[%s12396_s21 + $0x1b0] sm:$0xff] }
 0xb85   : > { %v5043_v42 = vpop.permute.xlu1 %5042 }
 0xb86   : > { %5045 = vst.msk [vmem:[#allocation5 + $0x1] sm:$0x1] %vm11597_vm3, %v5043_v42  ;;  %v7272_v42 = vpack.c.bf16 %v5341_v5, %v11685_v0  ;;  %v5345_v0 = vld [vmem:[%s12396_s21 + $0x148] sm:$0xff]  ;;  %v5446_v5 = vld [vmem:[%s12396_s21 + $0x470] sm:$0xff] }
 0xb87   : > { %v5072_v6 = vpop.permute.xlu0 %5071 }
 0xb88   : > { %5074 = vst.msk [vmem:[#allocation5 + $0x2] sm:$0x1] %vm11597_vm3, %v5072_v6  ;;  %v5359_v6 = vld [vmem:[%s12396_s21 + $0x1b8] sm:$0xff] }
 0xb89   : > { %v5080_v12 = vpop.permute.xlu1 %5079 }
 0xb8a   : > { %5082 = vst.msk [vmem:[#allocation5 + $0x3] sm:$0x1] %vm11597_vm3, %v5080_v12 }
 0xb8b   : > { %v5108_v18 = vpop.permute.xlu0 %5107 }
 0xb8c   : > { %5110 = vst.msk [vmem:[#allocation5 + $0x4] sm:$0x1] %vm11597_vm3, %v5108_v18 }
 0xb8d   : > { %v5116_v36 = vpop.permute.xlu1 %5115 }
 0xb8e   : > { %5118 = vst.msk [vmem:[#allocation5 + $0x5] sm:$0x1] %vm11597_vm3, %v5116_v36  ;;  %v7376_v36 = vpack.c.bf16 %v5441_v8, %v5440_v33  ;;  %v5347_v8 = vld [vmem:[%s12396_s21 + $0x158] sm:$0xff] }
 0xb8f   : > { %v5145_v30 = vpop.permute.xlu0 %5144 }
 0xb90   : > { %5147 = vst.msk [vmem:[#allocation5 + $0x6] sm:$0x1] %vm11597_vm3, %v5145_v30  ;;  %v5458_v30 = vld [vmem:[%s12396_s21 + $0x4d0] sm:$0xff]  ;;  %7377 = vmatpush3.bf16.msra.mxu0 %v7376_v36  ;;  %v5367_v36 = vld [vmem:[%s12396_s21 + $0x1f8] sm:$0xff] }
 0xb91   : > { %v5153_v38 = vpop.permute.xlu1 %5152 }
 0xb92   : > { %5155 = vst.msk [vmem:[#allocation5 + $0x7] sm:$0x1] %vm11597_vm3, %v5153_v38  ;;  %v5459_v38 = vld [vmem:[%s12396_s21 + $0x4d8] sm:$0xff] }
 0xb93   : > { %v7378_v47 = vpack.c.bf16 %v5459_v38, %v5458_v30 }
 0xb95   : > { %7379 = vmatprep.subr.bf16.mxu0 %v7378_v47  ;;  %v5387_v47 = vld [vmem:[%s12396_s21 + $0x298] sm:$0xff] }
 0xb97   : > { %v6372_v22 = vpop.f32.mrb[36].mxu1 }
 0xb98   : > { %v6373_v1 = vpop.f32.mrb[37].mxu1 }
 0xb99   : > { %v6374_v29 = vadd.f32 %v6373_v1, %v6372_v22  ;;  %v11653_v20 = vld [vmem:[#allocation5] sm:$0xff]  ;;  %v5342_v22 = vld [vmem:[%s12396_s21 + $0x130] sm:$0xff]  ;;  %v7274_v1 = vpack.c.bf16 %v5359_v6, %v5358_v63 }
 0xb9a   : > { %v5570_v52 = vrot.slane %v11653_v20, %v12627_v14  ;;  %v5566_v34 = vrot.slane %v11653_v20, %v12626_v27  ;;  %v5578_v21 = vrot.slane %v11653_v20, %v12650_v43  ;;  %v5348_v6 = vld [vmem:[%s12396_s21 + $0x160] sm:$0xff] }
 0xb9b   : > { %v5164_v62 = vrot.slane %v6374_v29, %v11468_v10  ;;  %v5192_v54 = vcombine.high %v6374_v29, %v6374_v29  ;;  %5156 = vst.msk [vmem:[#allocation5 + $0x8] sm:$0x1] %vm11471_vm0, %v6374_v29  ;;  %v6375_v31 = vpop.f32.mrb[38].mxu1  ;;  %v5360_v29 = vld [vmem:[%s12396_s21 + $0x1c0] sm:$0xff] }
 0xb9c   : > { %v6376_v26 = vpop.f32.mrb[39].mxu1  ;;  %5707 = vmatprep.mubr.f32.mxu1 %v5570_v52 }
 0xb9d   : > { %v5165_v40 = vcombine.high %v5164_v62, %v5164_v62  ;;  %v5199_v45 = vrot.slane %v5192_v54, %v11468_v10  ;;  %v6377_v24 = vadd.f32 %v6376_v26, %v6375_v31  ;;  %5708 = vmatmul.mubr.f32.vlgmr.msra.gmra.mrb[40].mxu1 %v5566_v34  ;;  %v5172_v3 = vrot.slane %v5164_v62, %v11468_v10  ;;  %v5444_v62 = vld [vmem:[%s12396_s21 + $0x460] sm:$0xff]  ;;  %v5445_v54 = vld [vmem:[%s12396_s21 + $0x468] sm:$0xff] }
 0xb9e   : > { %7265 = vmatpush3.bf16.msra.mxu1 %v7264_v28  ;;  %5777 = vmatprep.mubr.f32.mxu1 %v5578_v21  ;;  %v7380_v34 = vpack.c.bf16 %v5443_v19, %v5442_v49  ;;  %v7276_v31 = vpack.c.bf16 %v5343_v23, %v5342_v22  ;;  %v7278_v26 = vpack.c.bf16 %v5361_v46, %v5360_v29  ;;  %v5344_v21 = vld [vmem:[%s12396_s21 + $0x140] sm:$0xff]  ;;  %v5370_v29 = vld [vmem:[%s12396_s21 + $0x210] sm:$0xff]  ;;  %v5371_v46 = vld [vmem:[%s12396_s21 + $0x218] sm:$0xff] }
 0xb9f   : > { %v5209_v2 = vcombine.high %v5199_v45, %v5199_v45  ;;  %v5237_v32 = vrot.slane %v6377_v24, %v11468_v10  ;;  %v5265_v11 = vcombine.high %v6377_v24, %v6377_v24  ;;  %5229 = vst.msk [vmem:[#allocation5 + $0xc] sm:$0x1] %vm11471_vm0, %v6377_v24  ;;  %7267 = vmatprep.subr.bf16.mxu1 %v7266_v56  ;;  %v5368_v22 = vld [vmem:[%s12396_s21 + $0x200] sm:$0xff] }
 0xba0   : > { %v5179_v16 = vrot.slane %v5165_v40, %v11468_v10  ;;  %v5184_v12 = vcombine.high %v5172_v3, %v5172_v3  ;;  %v5206_v18 = vrot.slane %v5199_v45, %v11468_v10  ;;  %7381 = vmatpush3.bf16.msra.mxu0 %v7380_v34  ;;  %v7384_v4 = vpack.c.bf16 %v5445_v54, %v5444_v62  ;;  %v5447_v3 = vld [vmem:[%s12396_s21 + $0x478] sm:$0xff]  ;;  %v5388_v34 = vld [vmem:[%s12396_s21 + $0x2a0] sm:$0xff]  ;;  %v5373_v54 = vld [vmem:[%s12396_s21 + $0x228] sm:$0xff] }
 0xba1   : > { %v5238_v41 = vcombine.high %v5237_v32, %v5237_v32  ;;  %v5272_v39 = vrot.slane %v5265_v11, %v11468_v10  ;;  %v5216_v25 = vrot.slane %v5209_v2, %v11468_v10  ;;  %v5245_v17 = vrot.slane %v5237_v32, %v11468_v10  ;;  %7383 = vmatprep.subr.bf16.mxu0 %v7382_v7  ;;  %v5512_v2 = vld [vmem:[%s12396_s21 + $0x680] sm:$0xff]  ;;  %v5513_v32 = vld [vmem:[%s12396_s21 + $0x688] sm:$0xff] }
 0xba2   : > { %5180 = vrot.lane.b32.xlu0 %v5179_v16, %s7681_s30  ;;  %v5187_v48 = vcombine.high %v5179_v16, %v5179_v16  ;;  %7269 = vmatpush3.bf16.msra.mxu1 %v7268_v55  ;;  %5186 = vst.msk [vmem:[#allocation5 + $0x9] sm:$0x1] %vm11471_vm0, %v5184_v12  ;;  %5208 = vst.msk [vmem:[#allocation5 + $0xa] sm:$0x1] %vm11471_vm0, %v5206_v18  ;;  %v5221_v13 = vcombine.high %v5206_v18, %v5206_v18  ;;  %v5364_v55 = vld [vmem:[%s12396_s21 + $0x1e0] sm:$0xff]  ;;  %v5349_v12 = vld [vmem:[%s12396_s21 + $0x168] sm:$0xff] }
 0xba3   : > { %7271 = vmatprep.subr.bf16.mxu1 %v7270_v57  ;;  %v5257_v50 = vcombine.high %v5245_v17, %v5245_v17  ;;  %v5279_v52 = vrot.slane %v5272_v39, %v11468_v10  ;;  %v5282_v28 = vcombine.high %v5272_v39, %v5272_v39  ;;  %v5224_v44 = vcombine.high %v5216_v25, %v5216_v25  ;;  %v5365_v57 = vld [vmem:[%s12396_s21 + $0x1e8] sm:$0xff]  ;;  %v5366_v18 = vld [vmem:[%s12396_s21 + $0x1f0] sm:$0xff]  ;;  %v5351_v39 = vld [vmem:[%s12396_s21 + $0x178] sm:$0xff] }
 0xba4   : > { %5188 = vrot.lane.b32.xlu1 %v5187_v48, %s7681_s30  ;;  %5223 = vst.msk [vmem:[#allocation5 + $0xb] sm:$0x1] %vm11471_vm0, %v5221_v13  ;;  %v5252_v9 = vrot.slane %v5238_v41, %v11468_v10  ;;  %v7386_v24 = vpack.c.bf16 %v5463_v37, %v5462_v58  ;;  %v7280_v33 = vpack.c.bf16 %v5345_v0, %v5344_v21  ;;  %v5350_v41 = vld [vmem:[%s12396_s21 + $0x170] sm:$0xff]  ;;  %v5384_v48 = vld [vmem:[%s12396_s21 + $0x280] sm:$0xff]  ;;  %v5369_v13 = vld [vmem:[%s12396_s21 + $0x208] sm:$0xff] }
 0xba5   : > { %5259 = vst.msk [vmem:[#allocation5 + $0xd] sm:$0x1] %vm11471_vm0, %v5257_v50  ;;  %5281 = vst.msk [vmem:[#allocation5 + $0xe] sm:$0x1] %vm11471_vm0, %v5279_v52  ;;  %v5294_v56 = vcombine.high %v5279_v52, %v5279_v52  ;;  %v5289_v45 = vrot.slane %v5282_v28, %v11468_v10  ;;  %v5346_v10 = vld [vmem:[%s12396_s21 + $0x150] sm:$0xff]  ;;  %7385 = vmatpush3.bf16.msra.mxu0 %v7384_v4  ;;  %v7388_v59 = vpack.c.bf16 %v5447_v3, %v5446_v5  ;;  %v12651_v23 = vld [vmem:[#allocation26_spill] sm:$0xff] }
 0xba6   : > { %5217 = vrot.lane.b32.xlu0 %v5216_v25, %s7681_s30  ;;  %7273 = vmatpush3.bf16.msra.mxu1 %v7272_v42  ;;  %v5260_v40 = vcombine.high %v5252_v9, %v5252_v9  ;;  %v7422_v16 = vpack.c.bf16 %v5513_v32, %v5512_v2  ;;  %v7284_v63 = vpack.c.bf16 %v5347_v8, %v5346_v10  ;;  %v5385_v25 = vld [vmem:[%s12396_s21 + $0x288] sm:$0xff]  ;;  %v5386_v17 = vld [vmem:[%s12396_s21 + $0x290] sm:$0xff]  ;;  %v12652_v50 = vld [vmem:[#allocation42_spill] sm:$0xff] }
 0xba7   : > { %7275 = vmatprep.subr.bf16.mxu1 %v7274_v1  ;;  %5296 = vst.msk [vmem:[#allocation5 + $0xf] sm:$0x1] %vm11471_vm0, %v5294_v56  ;;  %v5297_v11 = vcombine.high %v5289_v45, %v5289_v45  ;;  %7387 = vmatprep.subr.bf16.mxu0 %v7386_v24  ;;  %v7286_v42 = vpack.c.bf16 %v5365_v57, %v5364_v55  ;;  %v5389_v28 = vld [vmem:[%s12396_s21 + $0x2a8] sm:$0xff]  ;;  %v5372_v62 = vld [vmem:[%s12396_s21 + $0x220] sm:$0xff]  ;;  %v5391_v56 = vld [vmem:[%s12396_s21 + $0x2b8] sm:$0xff] }
 0xba8   : > { %5225 = vrot.lane.b32.xlu1 %v5224_v44, %s7681_s30  ;;  %v7288_v30 = vpack.c.bf16 %v5349_v12, %v5348_v6  ;;  %v7290_v38 = vpack.c.bf16 %v5367_v36, %v5366_v18  ;;  %v7292_v49 = vpack.c.bf16 %v5351_v39, %v5350_v41  ;;  %v7294_v19 = vpack.c.bf16 %v5385_v25, %v5384_v48  ;;  %v5374_v37 = vld [vmem:[%s12396_s21 + $0x230] sm:$0xff]  ;;  %v5392_v21 = vld [vmem:[%s12396_s21 + $0x2c0] sm:$0xff]  ;;  %v5393_v0 = vld [vmem:[%s12396_s21 + $0x2c8] sm:$0xff] }
 0xba9   : > { %7389 = vmatpush3.bf16.msra.mxu0 %v7388_v59  ;;  %v7296_v1 = vpack.c.bf16 %v5369_v13, %v5368_v22  ;;  %v5574_v51 = vrot.slane %v11653_v20, %v12651_v23  ;;  %v7298_v60 = vpack.c.bf16 %v5387_v47, %v5386_v17  ;;  %v5586_v52 = vrot.slane %v11653_v20, %v12652_v50  ;;  %v5376_v4 = vld [vmem:[%s12396_s21 + $0x240] sm:$0xff]  ;;  %v5395_v24 = vld [vmem:[%s12396_s21 + $0x2d8] sm:$0xff]  ;;  %v5397_v8 = vld [vmem:[%s12396_s21 + $0x2e8] sm:$0xff] }
 0xbaa   : > { %5253 = vrot.lane.b32.xlu0 %v5252_v9, %s7681_s30  ;;  %7277 = vmatpush3.bf16.msra.mxu1 %v7276_v31  ;;  %v7300_v44 = vpack.c.bf16 %v5371_v46, %v5370_v29  ;;  %v7302_v9 = vpack.c.bf16 %v5389_v28, %v5388_v34  ;;  %v5390_v31 = vld [vmem:[%s12396_s21 + $0x2b0] sm:$0xff]  ;;  %v7304_v7 = vpack.c.bf16 %v5373_v54, %v5372_v62  ;;  %v5396_v10 = vld [vmem:[%s12396_s21 + $0x2e0] sm:$0xff]  ;;  %v5381_v2 = vld [vmem:[%s12396_s21 + $0x268] sm:$0xff] }
 0xbab   : > { %7279 = vmatprep.subr.bf16.mxu1 %v7278_v26  ;;  %7423 = vmatprep.subr.bf16.mxu0 %v7422_v16  ;;  %v7306_v58 = vpack.c.bf16 %v5391_v56, %v5390_v31  ;;  %v5375_v26 = vld [vmem:[%s12396_s21 + $0x238] sm:$0xff]  ;;  %v7310_v35 = vpack.c.bf16 %v5393_v0, %v5392_v21  ;;  %v7318_v57 = vpack.c.bf16 %v5397_v8, %v5396_v10  ;;  %v5380_v59 = vld [vmem:[%s12396_s21 + $0x260] sm:$0xff]  ;;  %v5398_v32 = vld [vmem:[%s12396_s21 + $0x2f0] sm:$0xff] }
 0xbac   : > { %5261 = vrot.lane.b32.xlu1 %v5260_v40, %s7681_s30  ;;  %v7308_v61 = vpack.c.bf16 %v5375_v26, %v5374_v37  ;;  %v5377_v40 = vld [vmem:[%s12396_s21 + $0x248] sm:$0xff]  ;;  %v7320_v16 = vpack.c.bf16 %v5381_v2, %v5380_v59  ;;  %v5383_v6 = vld [vmem:[%s12396_s21 + $0x278] sm:$0xff]  ;;  %v5416_v12 = vld [vmem:[%s12396_s21 + $0x380] sm:$0xff] }
 0xbad   : > { %v7312_v5 = vpack.c.bf16 %v5377_v40, %v5376_v4  ;;  %v5417_v18 = vld [vmem:[%s12396_s21 + $0x388] sm:$0xff]  ;;  %v5418_v39 = vld [vmem:[%s12396_s21 + $0x390] sm:$0xff]  ;;  %v5419_v48 = vld [vmem:[%s12396_s21 + $0x398] sm:$0xff] }
 0xbae   : > { %5290 = vrot.lane.b32.xlu0 %v5289_v45, %s7681_s30  ;;  %7281 = vmatpush3.bf16.msra.mxu1 %v7280_v33  ;;  %v5394_v45 = vld [vmem:[%s12396_s21 + $0x2d0] sm:$0xff]  ;;  %v5401_v41 = vld [vmem:[%s12396_s21 + $0x308] sm:$0xff]  ;;  %v7330_v22 = vpack.c.bf16 %v5419_v48, %v5418_v39  ;;  %v5403_v17 = vld [vmem:[%s12396_s21 + $0x318] sm:$0xff] }
 0xbaf   : > { %7283 = vmatprep.subr.bf16.mxu1 %v7282_v53  ;;  %v7314_v3 = vpack.c.bf16 %v5395_v24, %v5394_v45  ;;  %v5378_v33 = vld [vmem:[%s12396_s21 + $0x250] sm:$0xff]  ;;  %v5379_v53 = vld [vmem:[%s12396_s21 + $0x258] sm:$0xff]  ;;  %v12654_v47 = vld [vmem:[#allocation39_spill] sm:$0xff] }
 0xbb0   : > { %5298 = vrot.lane.b32.xlu1 %v5297_v11, %s7681_s30  ;;  %v7316_v55 = vpack.c.bf16 %v5379_v53, %v5378_v33  ;;  %v5399_v11 = vld [vmem:[%s12396_s21 + $0x2f8] sm:$0xff]  ;;  %v5402_v13 = vld [vmem:[%s12396_s21 + $0x310] sm:$0xff]  ;;  %v5405_v34 = vld [vmem:[%s12396_s21 + $0x328] sm:$0xff] }
 0xbb1   : > { %v7332_v29 = vpack.c.bf16 %v5403_v17, %v5402_v13  ;;  %v5422_v28 = vld [vmem:[%s12396_s21 + $0x3b0] sm:$0xff]  ;;  %v5407_v31 = vld [vmem:[%s12396_s21 + $0x338] sm:$0xff]  ;;  %v5424_v56 = vld [vmem:[%s12396_s21 + $0x3c0] sm:$0xff] }
 0xbb2   : > { %7285 = vmatpush3.bf16.msra.mxu1 %v7284_v63  ;;  %v7322_v63 = vpack.c.bf16 %v5399_v11, %v5398_v32  ;;  %v5406_v54 = vld [vmem:[%s12396_s21 + $0x330] sm:$0xff]  ;;  %v5408_v26 = vld [vmem:[%s12396_s21 + $0x340] sm:$0xff]  ;;  %v5409_v21 = vld [vmem:[%s12396_s21 + $0x348] sm:$0xff] }
 0xbb3   : > { %7287 = vmatprep.subr.bf16.mxu1 %v7286_v42  ;;  %v5382_v42 = vld [vmem:[%s12396_s21 + $0x270] sm:$0xff]  ;;  %v5411_v45 = vld [vmem:[%s12396_s21 + $0x358] sm:$0xff]  ;;  %v5428_v24 = vld [vmem:[%s12396_s21 + $0x3e0] sm:$0xff] }
 0xbb4   : > { %v7324_v36 = vpack.c.bf16 %v5383_v6, %v5382_v42  ;;  %v5426_v0 = vld [vmem:[%s12396_s21 + $0x3d0] sm:$0xff]  ;;  %v5412_v53 = vld [vmem:[%s12396_s21 + $0x360] sm:$0xff]  ;;  %v5413_v10 = vld [vmem:[%s12396_s21 + $0x368] sm:$0xff] }
 0xbb5   : > { %v5410_v40 = vld [vmem:[%s12396_s21 + $0x350] sm:$0xff]  ;;  %v5415_v32 = vld [vmem:[%s12396_s21 + $0x378] sm:$0xff]  ;;  %v5480_v11 = vld [vmem:[%s12396_s21 + $0x580] sm:$0xff] }
 0xbb6   : > { %7289 = vmatpush3.bf16.msra.mxu1 %v7288_v30  ;;  %v7326_v30 = vpack.c.bf16 %v5417_v18, %v5416_v12  ;;  %v5430_v8 = vld [vmem:[%s12396_s21 + $0x3f0] sm:$0xff]  ;;  %v5464_v6 = vld [vmem:[%s12396_s21 + $0x500] sm:$0xff]  ;;  %v5465_v12 = vld [vmem:[%s12396_s21 + $0x508] sm:$0xff] }
 0xbb7   : > { %7291 = vmatprep.subr.bf16.mxu1 %v7290_v38  ;;  %v5400_v38 = vld [vmem:[%s12396_s21 + $0x300] sm:$0xff]  ;;  %v5414_v2 = vld [vmem:[%s12396_s21 + $0x370] sm:$0xff] }
 0xbb8   : > { %v7328_v25 = vpack.c.bf16 %v5401_v41, %v5400_v38  ;;  %v5482_v18 = vld [vmem:[%s12396_s21 + $0x590] sm:$0xff]  ;;  %v5468_v17 = vld [vmem:[%s12396_s21 + $0x520] sm:$0xff] }
 0xbb9   : > { %v12655_v38 = vld [vmem:[#allocation40_spill] sm:$0xff] }
 0xbba   : > { %7293 = vmatpush3.bf16.msra.mxu1 %v7292_v49  ;;  %v12653_v49 = vld [vmem:[#allocation38_spill] sm:$0xff]  ;;  %v5590_v41 = vrot.slane %v11653_v20, %v12655_v38  ;;  %v5466_v48 = vld [vmem:[%s12396_s21 + $0x510] sm:$0xff] }
 0xbbb   : > { %7295 = vmatprep.subr.bf16.mxu1 %v7294_v19  ;;  %v5582_v19 = vrot.slane %v11653_v20, %v12653_v49 }
 0xbbd   : > { %5778 = vmatmul.mubr.f32.vlgmr.msra.gmra.mrb[42].mxu1 %v5574_v51  ;;  %v5420_v51 = vld [vmem:[%s12396_s21 + $0x3a0] sm:$0xff] }
 0xbbe   : > { %7297 = vmatpush3.bf16.msra.mxu1 %v7296_v1  ;;  %5847 = vmatprep.mubr.f32.mxu1 %v5586_v52  ;;  %v5594_v1 = vrot.slane %v11653_v20, %v12654_v47  ;;  %v5404_v52 = vld [vmem:[%s12396_s21 + $0x320] sm:$0xff] }
 0xbbf   : > { %7299 = vmatprep.subr.bf16.mxu1 %v7298_v60  ;;  %v5421_v60 = vld [vmem:[%s12396_s21 + $0x3a8] sm:$0xff] }
 0xbc0   : > { %v7334_v46 = vpack.c.bf16 %v5421_v60, %v5420_v51  ;;  %v5486_v51 = vld [vmem:[%s12396_s21 + $0x5b0] sm:$0xff]  ;;  %v5487_v60 = vld [vmem:[%s12396_s21 + $0x5b8] sm:$0xff] }
 0xbc2   : > { %7301 = vmatpush3.bf16.msra.mxu1 %v7300_v44  ;;  %v5423_v44 = vld [vmem:[%s12396_s21 + $0x3b8] sm:$0xff] }
 0xbc3   : > { %7303 = vmatprep.subr.bf16.mxu1 %v7302_v9  ;;  %v7336_v9 = vpack.c.bf16 %v5405_v34, %v5404_v52  ;;  %v7338_v62 = vpack.c.bf16 %v5423_v44, %v5422_v28  ;;  %v5470_v52 = vld [vmem:[%s12396_s21 + $0x530] sm:$0xff]  ;;  %v5471_v34 = vld [vmem:[%s12396_s21 + $0x538] sm:$0xff]  ;;  %v5488_v28 = vld [vmem:[%s12396_s21 + $0x5c0] sm:$0xff] }
 0xbc4   : > { %v5489_v44 = vld [vmem:[%s12396_s21 + $0x5c8] sm:$0xff] }
 0xbc6   : > { %7305 = vmatpush3.bf16.msra.mxu1 %v7304_v7  ;;  %v5425_v7 = vld [vmem:[%s12396_s21 + $0x3c8] sm:$0xff] }
 0xbc7   : > { %7307 = vmatprep.subr.bf16.mxu1 %v7306_v58  ;;  %v7340_v58 = vpack.c.bf16 %v5407_v31, %v5406_v54  ;;  %v7342_v37 = vpack.c.bf16 %v5425_v7, %v5424_v56  ;;  %v5472_v54 = vld [vmem:[%s12396_s21 + $0x540] sm:$0xff]  ;;  %v5473_v31 = vld [vmem:[%s12396_s21 + $0x548] sm:$0xff]  ;;  %v5490_v56 = vld [vmem:[%s12396_s21 + $0x5d0] sm:$0xff] }
 0xbc8   : > { %v5491_v7 = vld [vmem:[%s12396_s21 + $0x5d8] sm:$0xff] }
 0xbca   : > { %7309 = vmatpush3.bf16.msra.mxu1 %v7308_v61  ;;  %v5427_v61 = vld [vmem:[%s12396_s21 + $0x3d8] sm:$0xff] }
 0xbcb   : > { %7311 = vmatprep.subr.bf16.mxu1 %v7310_v35  ;;  %v7344_v35 = vpack.c.bf16 %v5409_v21, %v5408_v26  ;;  %v7346_v4 = vpack.c.bf16 %v5427_v61, %v5426_v0  ;;  %v5474_v26 = vld [vmem:[%s12396_s21 + $0x550] sm:$0xff]  ;;  %v5475_v21 = vld [vmem:[%s12396_s21 + $0x558] sm:$0xff]  ;;  %v5492_v0 = vld [vmem:[%s12396_s21 + $0x5e0] sm:$0xff] }
 0xbcc   : > { %v5493_v61 = vld [vmem:[%s12396_s21 + $0x5e8] sm:$0xff] }
 0xbce   : > { %7313 = vmatpush3.bf16.msra.mxu1 %v7312_v5  ;;  %v5429_v5 = vld [vmem:[%s12396_s21 + $0x3e8] sm:$0xff] }
 0xbcf   : > { %7315 = vmatprep.subr.bf16.mxu1 %v7314_v3  ;;  %v7348_v3 = vpack.c.bf16 %v5411_v45, %v5410_v40  ;;  %v7350_v33 = vpack.c.bf16 %v5429_v5, %v5428_v24  ;;  %v5476_v40 = vld [vmem:[%s12396_s21 + $0x560] sm:$0xff]  ;;  %v5477_v45 = vld [vmem:[%s12396_s21 + $0x568] sm:$0xff]  ;;  %v5494_v24 = vld [vmem:[%s12396_s21 + $0x5f0] sm:$0xff] }
 0xbd0   : > { %v5495_v5 = vld [vmem:[%s12396_s21 + $0x5f8] sm:$0xff] }
 0xbd2   : > { %7317 = vmatpush3.bf16.msra.mxu1 %v7316_v55  ;;  %v5431_v55 = vld [vmem:[%s12396_s21 + $0x3f8] sm:$0xff] }
 0xbd3   : > { %7319 = vmatprep.subr.bf16.mxu1 %v7318_v57  ;;  %v7352_v57 = vpack.c.bf16 %v5413_v10, %v5412_v53  ;;  %v7354_v59 = vpack.c.bf16 %v5431_v55, %v5430_v8  ;;  %v7418_v53 = vpack.c.bf16 %v5495_v5, %v5494_v24  ;;  %v5478_v10 = vld [vmem:[%s12396_s21 + $0x570] sm:$0xff]  ;;  %v5479_v8 = vld [vmem:[%s12396_s21 + $0x578] sm:$0xff]  ;;  %v5544_v55 = vld [vmem:[%s12396_s21 + $0x780] sm:$0xff] }
 0xbd4   : > { %v5534_v5 = vld [vmem:[%s12396_s21 + $0x730] sm:$0xff] }
 0xbd6   : > { %7321 = vmatpush3.bf16.msra.mxu1 %v7320_v16  ;;  %v5481_v16 = vld [vmem:[%s12396_s21 + $0x588] sm:$0xff] }
 0xbd7   : > { %7323 = vmatprep.subr.bf16.mxu1 %v7322_v63  ;;  %v7356_v63 = vpack.c.bf16 %v5415_v32, %v5414_v2  ;;  %v7390_v42 = vpack.c.bf16 %v5481_v16, %v5480_v11  ;;  %v7420_v2 = vpack.c.bf16 %v5479_v8, %v5478_v10  ;;  %v5552_v10 = vld [vmem:[%s12396_s21 + $0x7c0] sm:$0xff]  ;;  %v5553_v8 = vld [vmem:[%s12396_s21 + $0x7c8] sm:$0xff] }
 0xbda   : > { %7325 = vmatpush3.bf16.msra.mxu1 %v7324_v36  ;;  %v5483_v36 = vld [vmem:[%s12396_s21 + $0x598] sm:$0xff] }
 0xbdb   : > { %7327 = vmatprep.subr.bf16.mxu1 %v7326_v30  ;;  %v7392_v30 = vpack.c.bf16 %v5465_v12, %v5464_v6  ;;  %v7394_v39 = vpack.c.bf16 %v5483_v36, %v5482_v18  ;;  %v5496_v18 = vld [vmem:[%s12396_s21 + $0x600] sm:$0xff]  ;;  %v5497_v36 = vld [vmem:[%s12396_s21 + $0x608] sm:$0xff] }
 0xbdd   : > { %5848 = vmatmul.mubr.f32.vlgmr.msra.gmra.mrb[44].mxu1 %v5582_v19  ;;  %v5484_v19 = vld [vmem:[%s12396_s21 + $0x5a0] sm:$0xff] }
 0xbde   : > { %7329 = vmatpush3.bf16.msra.mxu1 %v7328_v25  ;;  %5917 = vmatprep.mubr.f32.mxu1 %v5594_v1  ;;  %v5467_v25 = vld [vmem:[%s12396_s21 + $0x518] sm:$0xff]  ;;  %v5469_v1 = vld [vmem:[%s12396_s21 + $0x528] sm:$0xff] }
 0xbdf   : > { %7331 = vmatprep.subr.bf16.mxu1 %v7330_v22  ;;  %v5485_v22 = vld [vmem:[%s12396_s21 + $0x5a8] sm:$0xff]  ;;  %v7396_v20 = vpack.c.bf16 %v5467_v25, %v5466_v48  ;;  %v7424_v25 = vpack.c.bf16 %v5497_v36, %v5496_v18  ;;  %v5555_v18 = vld [vmem:[%s12396_s21 + $0x7d8] sm:$0xff] }
 0xbe0   : > { %v7398_v13 = vpack.c.bf16 %v5485_v22, %v5484_v19  ;;  %v5546_v22 = vld [vmem:[%s12396_s21 + $0x790] sm:$0xff] }
 0xbe2   : > { %7333 = vmatpush3.bf16.msra.mxu1 %v7332_v29  ;;  %v7400_v29 = vpack.c.bf16 %v5469_v1, %v5468_v17 }
 0xbe3   : > { %7335 = vmatprep.subr.bf16.mxu1 %v7334_v46  ;;  %v7402_v46 = vpack.c.bf16 %v5487_v60, %v5486_v51  ;;  %v5498_v60 = vld [vmem:[%s12396_s21 + $0x610] sm:$0xff] }
 0xbe6   : > { %7337 = vmatpush3.bf16.msra.mxu1 %v7336_v9  ;;  %v7404_v9 = vpack.c.bf16 %v5471_v34, %v5470_v52  ;;  %v5517_v52 = vld [vmem:[%s12396_s21 + $0x6a8] sm:$0xff]  ;;  %v5548_v34 = vld [vmem:[%s12396_s21 + $0x7a0] sm:$0xff] }
 0xbe7   : > { %7339 = vmatprep.subr.bf16.mxu1 %v7338_v62  ;;  %v7406_v62 = vpack.c.bf16 %v5489_v44, %v5488_v28  ;;  %v5549_v28 = vld [vmem:[%s12396_s21 + $0x7a8] sm:$0xff] }
 0xbea   : > { %7341 = vmatpush3.bf16.msra.mxu1 %v7340_v58  ;;  %v7408_v58 = vpack.c.bf16 %v5473_v31, %v5472_v54  ;;  %v5500_v31 = vld [vmem:[%s12396_s21 + $0x620] sm:$0xff] }
 0xbeb   : > { %7343 = vmatprep.subr.bf16.mxu1 %v7342_v37  ;;  %v7410_v37 = vpack.c.bf16 %v5491_v7, %v5490_v56  ;;  %v5501_v56 = vld [vmem:[%s12396_s21 + $0x628] sm:$0xff] }
 0xbee   : > { %7345 = vmatpush3.bf16.msra.mxu1 %v7344_v35  ;;  %v7412_v35 = vpack.c.bf16 %v5475_v21, %v5474_v26  ;;  %v5519_v26 = vld [vmem:[%s12396_s21 + $0x6b8] sm:$0xff]  ;;  %v5550_v21 = vld [vmem:[%s12396_s21 + $0x7b0] sm:$0xff] }
 0xbef   : > { %7347 = vmatprep.subr.bf16.mxu1 %v7346_v4  ;;  %v7414_v4 = vpack.c.bf16 %v5493_v61, %v5492_v0  ;;  %v5551_v0 = vld [vmem:[%s12396_s21 + $0x7b8] sm:$0xff]  ;;  %v7432_v61 = vpack.c.bf16 %v5501_v56, %v5500_v31 }
 0xbf0   : > { %v7466_v24 = vpack.c.bf16 %v5551_v0, %v5550_v21 }
 0xbf2   : > { %7349 = vmatpush3.bf16.msra.mxu1 %v7348_v3  ;;  %v7416_v3 = vpack.c.bf16 %v5477_v45, %v5476_v40  ;;  %v5503_v40 = vld [vmem:[%s12396_s21 + $0x638] sm:$0xff] }
 0xbf3   : > { %7351 = vmatprep.subr.bf16.mxu1 %v7350_v33 }
 0xbf6   : > { %7353 = vmatpush3.bf16.msra.mxu1 %v7352_v57  ;;  %v5545_v57 = vld [vmem:[%s12396_s21 + $0x788] sm:$0xff] }
 0xbf7   : > { %7355 = vmatprep.subr.bf16.mxu1 %v7354_v59  ;;  %v7454_v11 = vpack.c.bf16 %v5545_v57, %v5544_v55 }
 0xbfa   : > { %7357 = vmatpush3.bf16.msra.mxu1 %v7356_v63 }
 0xbfb   : > { %7391 = vmatprep.subr.bf16.mxu1 %v7390_v42 }
 0xbfd   : > { %5918 = vmatmul.mubr.f32.vlgmr.msra.gmra.mrb[46].mxu1 %v5590_v41  ;;  %v5529_v41 = vld [vmem:[%s12396_s21 + $0x708] sm:$0xff] }
 0xbfe   : > { %7393 = vmatpush3.bf16.msra.mxu1 %v7392_v30  ;;  %v5528_v30 = vld [vmem:[%s12396_s21 + $0x700] sm:$0xff] }
 0xbff   : > { %7395 = vmatprep.subr.bf16.mxu1 %v7394_v39  ;;  %v5515_v39 = vld [vmem:[%s12396_s21 + $0x698] sm:$0xff]  ;;  %v7456_v19 = vpack.c.bf16 %v5529_v41, %v5528_v30  ;;  %v5506_v41 = vld [vmem:[%s12396_s21 + $0x650] sm:$0xff] }
 0xc02   : > { %7397 = vmatpush3.bf16.msra.mxu1 %v7396_v20  ;;  %v5547_v20 = vld [vmem:[%s12396_s21 + $0x798] sm:$0xff] }
 0xc03   : > { %7399 = vmatprep.subr.bf16.mxu1 %v7398_v13 }
 0xc06   : > { %7401 = vmatpush3.bf16.msra.mxu1 %v7400_v29  ;;  %v5499_v29 = vld [vmem:[%s12396_s21 + $0x618] sm:$0xff] }
 0xc07   : > { %7403 = vmatprep.subr.bf16.mxu1 %v7402_v46  ;;  %v7458_v46 = vpack.c.bf16 %v5547_v20, %v5546_v22  ;;  %v5539_v22 = vld [vmem:[%s12396_s21 + $0x758] sm:$0xff]  ;;  %v5524_v20 = vld [vmem:[%s12396_s21 + $0x6e0] sm:$0xff] }
 0xc0a   : > { %7405 = vmatpush3.bf16.msra.mxu1 %v7404_v9 }
 0xc0b   : > { %7407 = vmatprep.subr.bf16.mxu1 %v7406_v62  ;;  %v7428_v62 = vpack.c.bf16 %v5499_v29, %v5498_v60  ;;  %v5508_v29 = vld [vmem:[%s12396_s21 + $0x660] sm:$0xff] }
 0xc0e   : > { %7409 = vmatpush3.bf16.msra.mxu1 %v7408_v58  ;;  %v7462_v58 = vpack.c.bf16 %v5549_v28, %v5548_v34  ;;  %v5527_v34 = vld [vmem:[%s12396_s21 + $0x6f8] sm:$0xff]  ;;  %v5558_v28 = vld [vmem:[%s12396_s21 + $0x7f0] sm:$0xff] }
 0xc0f   : > { %7411 = vmatprep.subr.bf16.mxu1 %v7410_v37  ;;  %v5518_v37 = vld [vmem:[%s12396_s21 + $0x6b0] sm:$0xff] }
 0xc10   : > { %v7434_v45 = vpack.c.bf16 %v5519_v26, %v5518_v37 }
 0xc12   : > { %7413 = vmatpush3.bf16.msra.mxu1 %v7412_v35 }
 0xc13   : > { %7415 = vmatprep.subr.bf16.mxu1 %v7414_v4  ;;  %v5502_v4 = vld [vmem:[%s12396_s21 + $0x630] sm:$0xff] }
 0xc14   : > { %v5181_v33 = vpop.permute.xlu0 %5180  ;;  %v7436_v55 = vpack.c.bf16 %v5503_v40, %v5502_v4  ;;  %v5560_v4 = vld [vmem:[%s12397_s22] sm:$0x1] }
 0xc15   : > { %5183 = vst.msk [vmem:[#allocation5 + $0x8] sm:$0x1] %vm11597_vm3, %v5181_v33  ;;  %v5520_v33 = vld [vmem:[%s12396_s21 + $0x6c0] sm:$0xff] }
 0xc16   : > { %v5189_v59 = vpop.permute.xlu1 %5188  ;;  %7417 = vmatpush3.bf16.msra.mxu1 %v7416_v3  ;;  %v5535_v3 = vld [vmem:[%s12396_s21 + $0x738] sm:$0xff] }
 0xc17   : > { %5191 = vst.msk [vmem:[#allocation5 + $0x9] sm:$0x1] %vm11597_vm3, %v5189_v59  ;;  %7419 = vmatprep.subr.bf16.mxu1 %v7418_v53  ;;  %v5521_v53 = vld [vmem:[%s12396_s21 + $0x6c8] sm:$0xff]  ;;  %v7468_v57 = vpack.c.bf16 %v5535_v3, %v5534_v5  ;;  %v5504_v59 = vld [vmem:[%s12396_s21 + $0x640] sm:$0xff] }
 0xc18   : > { %v5218_v32 = vpop.permute.xlu0 %5217 }
 0xc19   : > { %5220 = vst.msk [vmem:[#allocation5 + $0xa] sm:$0x1] %vm11597_vm3, %v5218_v32  ;;  %v7438_v32 = vpack.c.bf16 %v5521_v53, %v5520_v33 }
 0xc1a   : > { %v5226_v16 = vpop.permute.xlu1 %5225  ;;  %7421 = vmatpush3.bf16.msra.mxu1 %v7420_v2  ;;  %v5505_v2 = vld [vmem:[%s12396_s21 + $0x648] sm:$0xff] }
 0xc1b   : > { %5228 = vst.msk [vmem:[#allocation5 + $0xb] sm:$0x1] %vm11597_vm3, %v5226_v16  ;;  %7455 = vmatprep.subr.bf16.mxu1 %v7454_v11  ;;  %v7470_v11 = vpack.c.bf16 %v5553_v8, %v5552_v10  ;;  %v5536_v16 = vld [vmem:[%s12396_s21 + $0x740] sm:$0xff]  ;;  %v7440_v36 = vpack.c.bf16 %v5505_v2, %v5504_v59 }
 0xc1c   : > { %v5254_v63 = vpop.permute.xlu0 %5253 }
 0xc1d   : > { %5256 = vst.msk [vmem:[#allocation5 + $0xc] sm:$0x1] %vm11597_vm3, %v5254_v63  ;;  %v5537_v63 = vld [vmem:[%s12396_s21 + $0x748] sm:$0xff] }
 0xc1e   : > { %v5262_v42 = vpop.permute.xlu1 %5261  ;;  %v7472_v30 = vpack.c.bf16 %v5537_v63, %v5536_v16 }
 0xc1f   : > { %5264 = vst.msk [vmem:[#allocation5 + $0xd] sm:$0x1] %vm11597_vm3, %v5262_v42  ;;  %v5522_v42 = vld [vmem:[%s12396_s21 + $0x6d0] sm:$0xff] }
 0xc20   : > { %v5291_v6 = vpop.permute.xlu0 %5290 }
 0xc21   : > { %5293 = vst.msk [vmem:[#allocation5 + $0xe] sm:$0x1] %vm11597_vm3, %v5291_v6  ;;  %v5523_v6 = vld [vmem:[%s12396_s21 + $0x6d8] sm:$0xff] }
 0xc22   : > { %v5299_v12 = vpop.permute.xlu1 %5298 }
 0xc23   : > { %5301 = vst.msk [vmem:[#allocation5 + $0xf] sm:$0x1] %vm11597_vm3, %v5299_v12  ;;  %v5554_v12 = vld [vmem:[%s12396_s21 + $0x7d0] sm:$0xff] }
 0xc2a   : > { %v12176_v48 = vld [vmem:[#allocation5 + $0x8] sm:$0xff] }
 0xc2b   : > { %v5602_v13 = vrot.slane %v12176_v48, %v12627_v14  ;;  %v5610_v17 = vrot.slane %v12176_v48, %v12650_v43  ;;  %v5598_v1 = vrot.slane %v12176_v48, %v12626_v27  ;;  %v5606_v51 = vrot.slane %v12176_v48, %v12651_v23  ;;  %v5530_v14 = vld [vmem:[%s12396_s21 + $0x710] sm:$0xff]  ;;  %v5531_v43 = vld [vmem:[%s12396_s21 + $0x718] sm:$0xff]  ;;  %v5516_v27 = vld [vmem:[%s12396_s21 + $0x6a0] sm:$0xff] }
 0xc2c   : > { %v7426_v23 = vpack.c.bf16 %v5515_v39, %v5514_v15  ;;  %v5618_v44 = vrot.slane %v12176_v48, %v12652_v50  ;;  %v5626_v9 = vrot.slane %v12176_v48, %v12654_v47  ;;  %v7460_v54 = vpack.c.bf16 %v5531_v43, %v5530_v14  ;;  %v5532_v50 = vld [vmem:[%s12396_s21 + $0x720] sm:$0xff]  ;;  %v5533_v47 = vld [vmem:[%s12396_s21 + $0x728] sm:$0xff]  ;;  %v5507_v15 = vld [vmem:[%s12396_s21 + $0x658] sm:$0xff] }
 0xc2d   : > { %5987 = vmatprep.mubr.f32.mxu0 %v5602_v13  ;;  %6057 = vmatprep.mubr.f32.mxu1 %v5610_v17  ;;  %v7430_v7 = vpack.c.bf16 %v5517_v52, %v5516_v27  ;;  %v7464_v35 = vpack.c.bf16 %v5533_v47, %v5532_v50  ;;  %v7442_v39 = vpack.c.bf16 %v5523_v6, %v5522_v42  ;;  %v5525_v13 = vld [vmem:[%s12396_s21 + $0x6e8] sm:$0xff]  ;;  %v5556_v17 = vld [vmem:[%s12396_s21 + $0x7e0] sm:$0xff]  ;;  %v5526_v52 = vld [vmem:[%s12396_s21 + $0x6f0] sm:$0xff] }
 0xc2e   : > { %5988 = vmatmul.mubr.f32.vlgmr.msra.gmra.mrb[28].mxu0 %v5598_v1  ;;  %6058 = vmatmul.mubr.f32.vlgmr.msra.gmra.mrb[48].mxu1 %v5606_v51  ;;  %v5557_v1 = vld [vmem:[%s12396_s21 + $0x7e8] sm:$0xff]  ;;  %v7444_v51 = vpack.c.bf16 %v5507_v15, %v5506_v41  ;;  %v7446_v43 = vpack.c.bf16 %v5525_v13, %v5524_v20  ;;  %v7450_v31 = vpack.c.bf16 %v5527_v34, %v5526_v52  ;;  %v5543_v50 = vld [vmem:[%s12396_s21 + $0x778] sm:$0xff]  ;;  %v6208_v13 = vld [vmem:[%s12657_s26] sm:$0x1] }
 0xc2f   : > { %7425 = vmatpush3.bf16.msra.mxu0 %v7424_v25  ;;  %7457 = vmatpush3.bf16.msra.mxu1 %v7456_v19  ;;  %v7474_v25 = vpack.c.bf16 %v5555_v18, %v5554_v12  ;;  %v5538_v19 = vld [vmem:[%s12396_s21 + $0x750] sm:$0xff]  ;;  %v5509_v14 = vld [vmem:[%s12396_s21 + $0x668] sm:$0xff]  ;;  %v7478_v27 = vpack.c.bf16 %v5557_v1, %v5556_v17  ;;  %v5614_v26 = vrot.slane %v12176_v48, %v12653_v49 }
 0xc30   : > { %6127 = vmatprep.mubr.f32.mxu0 %v5618_v44  ;;  %6197 = vmatprep.mubr.f32.mxu1 %v5626_v9  ;;  %v7476_v60 = vpack.c.bf16 %v5539_v22, %v5538_v19  ;;  %v5559_v44 = vld [vmem:[%s12396_s21 + $0x7f8] sm:$0xff]  ;;  %v7448_v9 = vpack.c.bf16 %v5509_v14, %v5508_v29  ;;  %v5622_v21 = vrot.slane %v12176_v48, %v12655_v38  ;;  %v6206_v22 = vld [vmem:[%s12399_s24] sm:$0x1] }
 0xc31   : > { %7427 = vmatprep.subr.bf16.mxu0 %v7426_v23  ;;  %7459 = vmatprep.subr.bf16.mxu1 %v7458_v46  ;;  %v5540_v23 = vld [vmem:[%s12396_s21 + $0x760] sm:$0xff]  ;;  %v5541_v46 = vld [vmem:[%s12396_s21 + $0x768] sm:$0xff]  ;;  %v7482_v56 = vpack.c.bf16 %v5559_v44, %v5558_v28 }
 0xc33   : > { %7429 = vmatpush3.bf16.msra.mxu0 %v7428_v62  ;;  %7461 = vmatpush3.bf16.msra.mxu1 %v7460_v54  ;;  %v7480_v62 = vpack.c.bf16 %v5541_v46, %v5540_v23  ;;  %v5510_v54 = vld [vmem:[%s12396_s21 + $0x670] sm:$0xff] }
 0xc34   : > { %7431 = vmatprep.subr.bf16.mxu0 %v7430_v7  ;;  %7463 = vmatprep.subr.bf16.mxu1 %v7462_v58  ;;  %v5511_v7 = vld [vmem:[%s12396_s21 + $0x678] sm:$0xff]  ;;  %v5542_v58 = vld [vmem:[%s12396_s21 + $0x770] sm:$0xff] }
 0xc35   : > { %v7452_v47 = vpack.c.bf16 %v5511_v7, %v5510_v54  ;;  %v7484_v37 = vpack.c.bf16 %v5543_v50, %v5542_v58 }
 0xc37   : > { %7433 = vmatpush3.bf16.msra.mxu0 %v7432_v61  ;;  %7465 = vmatpush3.bf16.msra.mxu1 %v7464_v35 }
 0xc38   : > { %7435 = vmatprep.subr.bf16.mxu0 %v7434_v45  ;;  %7467 = vmatprep.subr.bf16.mxu1 %v7466_v24 }
 0xc3b   : > { %7437 = vmatpush3.bf16.msra.mxu0 %v7436_v55  ;;  %7469 = vmatpush3.bf16.msra.mxu1 %v7468_v57 }
 0xc3c   : > { %7439 = vmatprep.subr.bf16.mxu0 %v7438_v32  ;;  %7471 = vmatprep.subr.bf16.mxu1 %v7470_v11 }
 0xc3f   : > { %7441 = vmatpush3.bf16.msra.mxu0 %v7440_v36  ;;  %7473 = vmatpush3.bf16.msra.mxu1 %v7472_v30 }
 0xc40   : > { %7443 = vmatprep.subr.bf16.mxu0 %v7442_v39  ;;  %7475 = vmatprep.subr.bf16.mxu1 %v7474_v25  ;;  %v6204_v25 = vld [vmem:[%s12398_s23] sm:$0x1] }
 0xc43   : > { %7445 = vmatpush3.bf16.msra.mxu0 %v7444_v51  ;;  %7477 = vmatpush3.bf16.msra.mxu1 %v7476_v60  ;;  %v6214_v60 = vld [vmem:[#allocation6] sm:$0x1] }
 0xc44   : > { %7447 = vmatprep.subr.bf16.mxu0 %v7446_v43  ;;  %7479 = vmatprep.subr.bf16.mxu1 %v7478_v27 }
 0xc47   : > { %7449 = vmatpush3.bf16.msra.mxu0 %v7448_v9  ;;  %7481 = vmatpush3.bf16.msra.mxu1 %v7480_v62 }
 0xc48   : > { %7451 = vmatprep.subr.bf16.mxu0 %v7450_v31  ;;  %7483 = vmatprep.subr.bf16.mxu1 %v7482_v56 }
 0xc4b   : > { %7453 = vmatpush3.bf16.msra.mxu0 %v7452_v47  ;;  %7485 = vmatpush3.bf16.msra.mxu1 %v7484_v37 }
 0xc4e   : > { %6128 = vmatmul.mubr.f32.vlgmr.msra.gmra.mrb[30].mxu0 %v5614_v26  ;;  %6198 = vmatmul.mubr.f32.vlgmr.msra.gmra.mrb[50].mxu1 %v5622_v21 }
 0xc70   : > { %v6410_v0 = vpop.f32.mrb[40].mxu1 }
 0xc71   : > { %v6411_v61 = vpop.f32.mrb[41].mxu1 }
 0xc72   : > { %v6412_v35 = vadd.f32 %v6411_v61, %v6410_v0 }
 0xc74   : > { %v5710_v24 = vadd.f32 %v6412_v35, %v5560_v4 }
 0xc90   : > { %v6445_v40 = vpop.f32.mrb[42].mxu1 }
 0xc91   : > { %v6446_v45 = vpop.f32.mrb[43].mxu1 }
 0xc92   : > { %v6447_v5 = vadd.f32 %v6446_v45, %v6445_v40 }
 0xc94   : > { %v5780_v3 = vadd.f32 %v6447_v5, %v5710_v24 }
 0xcb0   : > { %v6480_v33 = vpop.f32.mrb[44].mxu1 }
 0xcb1   : > { %v6481_v53 = vpop.f32.mrb[45].mxu1 }
 0xcb2   : > { %v6482_v49 = vadd.f32 %v6481_v53, %v6480_v33 }
 0xcb4   : > { %v5850_v10 = vadd.f32 %v6482_v49, %v5780_v3 }
 0xcd0   : > { %v6515_v8 = vpop.f32.mrb[46].mxu1 }
 0xcd1   : > { %v6516_v38 = vpop.f32.mrb[47].mxu1 }
 0xcd2   : > { %v6517_v48 = vadd.f32 %v6516_v38, %v6515_v8 }
 0xcd4   : > { %v5920_v55 = vadd.f32 %v6517_v48, %v5850_v10 }
 0xd01   : > { %v6550_v57 = vpop.f32.mrb[28].mxu0  ;;  %v6585_v59 = vpop.f32.mrb[48].mxu1 }
 0xd02   : > { %v6551_v2 = vpop.f32.mrb[29].mxu0  ;;  %v6586_v32 = vpop.f32.mrb[49].mxu1 }
 0xd03   : > { %v6552_v11 = vadd.f32 %v6551_v2, %v6550_v57  ;;  %v6587_v16 = vadd.f32 %v6586_v32, %v6585_v59 }
 0xd05   : > { %v5990_v63 = vadd.f32 %v6552_v11, %v5920_v55 }
 0xd07   : > { %v6060_v42 = vadd.f32 %v6587_v16, %v5990_v63 }
 0xd21   : > { %v6620_v6 = vpop.f32.mrb[30].mxu0  ;;  %v6655_v12 = vpop.f32.mrb[50].mxu1 }
 0xd22   : > { %v6621_v18 = vpop.f32.mrb[31].mxu0  ;;  %v6656_v36 = vpop.f32.mrb[51].mxu1 }
 0xd23   : > { %v6622_v30 = vadd.f32 %v6621_v18, %v6620_v6  ;;  %v6657_v41 = vadd.f32 %v6656_v36, %v6655_v12 }
 0xd25   : > { %v6130_v15 = vadd.f32 %v6622_v30, %v6060_v42 }
 0xd27   : > { %v6200_v39 = vadd.f32 %v6657_v41, %v6130_v15 }
 0xd29   : > { %v6203_v19 = vmax.f32 %v6200_v39, 0.0 }
 0xd2b   : > { %v6205_v20 = vmul.f32 %v6204_v25, %v6203_v19 }
 0xd2d   : > { %v6207_v17 = vadd.f32 %v6206_v22, %v6205_v20 }
 0xd2f   : > { %v6209_v1 = vmul.f32 %v6208_v13, %v6207_v17 }
 0xd31   : > { %v6211_v51 = vsel %vm6210_vm4, %v6209_v1, 0.0 }
 0xd32   : > { %6212 = vadd.xlane.f32.xlu0 %v6211_v51 }
 0xdbf   : > { %v6213_v29 = vpop.xlane.xlu0 %6212 }
 0xdc0   : > { %v6215_v14 = vadd.f32 %v6214_v60, %v6213_v29 }
 0xdc2   : > { %v6330_v43 = vmul.f32 -1.442695, %v6215_v14 }
 0xdc4   : > { %7652 = vpow2.f32 %v6330_v43 }
 0xdce   : > { %v7653_v27 = vpop.eup %7652 }
 0xdcf   : > { %v6219_v23 = vadd.f32 1.0, %v7653_v27 }
 0xdd1   : > { %7654 = vrcp.f32 %v6219_v23 }
 0xddb   : > { %v7655_v46 = vpop.eup %7654 }
 0xddc   : > { %6223 = vst.msk [vmem:[%s816_s1] sm:$0x1] %vm6222_vm5, %v7655_v46 }
 0xddd PF: > { %s12659_s28 = sld [smem:[#allocation7_spill]] }
 0xde3   : > { %s39_s8 = sadd.s32 1, %s12659_s28  }
 0xde4   : > { %p36_p4 = scmp.ge.s32.totalorder %s39_s8, 4  }
 0xde6   :  { %38 = sbr.rel (!%p36_p4) target bundleno = 15 (0xf), region = 172 }

</bundles_post_ra>
